<compile_context>
chip_gen: v5e
topology: v5e:2x2
jax: 0.10.0
libtpu: 0.0.40
codegen_flags: <defaults>
</compile_context>

<pallas_src>
import jax
import jax.numpy as jnp
from jax.experimental import pallas as pl
from jax.experimental.pallas import tpu as pltpu

BN_EPS = 1e-5


def _make_kernel(Bt, Cin, C1, C2, H1, W1, H2, W2):
    """Fused conv1(+BN)+ReLU+conv2(stride 2) kernel body (stride=1 BasicBlock)."""
    Hp = H1 + 2                      # padded input rows
    WE = (W1 + 3) // 2               # width of the even-column half of the split input (= W2+1)
    W1o = W1 // 2                    # number of odd conv1-output columns
    N2 = H2 * W2

    def kernel(x_ref, w1_ref, b1_ref, w2_ref, out_ref):
        # x_ref : [Bt, Cin, Hp, Wp]  padded input, columns de-interleaved [even | odd], bf16
        # w1_ref: [C1, 9*Cin] bf16   BN-folded conv1 weight (tap-major, cin-minor)
        # b1_ref: [C1, 1]     f32    folded BN bias
        # w2_ref: [C2, 9*C1]  bf16   conv2 weight (tap-major, c1-minor)
        # out_ref: [1, C2, Bt*N2] f32
        w1 = w1_ref[...]
        b1 = b1_ref[...]
        w2 = w2_ref[...]

        outs = []
        for bi in range(Bt):
            xq = x_ref[bi]                          # [Cin, Hp, Wp]
            xE = xq[:, :, :WE]                      # even padded-input columns
            xO = xq[:, :, WE:]                      # odd  padded-input columns

            # ---- conv1 im2col: 9 taps via static contiguous slices ----------
            # even conv1 columns w=2u read padded cols 2u+dw;
            # odd  conv1 columns w=2u+1 read padded cols 2u+1+dw.
            tapsE, tapsO = [], []
            for dh in range(3):
                for dw in range(3):
                    if dw == 0:
                        tapsE.append(xE[:, dh:dh + H1, 0:W2])
                        tapsO.append(xO[:, dh:dh + H1, 0:W1o])
                    elif dw == 1:
                        tapsE.append(xO[:, dh:dh + H1, 0:W2])
                        tapsO.append(xE[:, dh:dh + H1, 1:W1o + 1])
                    else:
                        tapsE.append(xE[:, dh:dh + H1, 1:W2 + 1])
                        tapsO.append(xO[:, dh:dh + H1, 1:W1o + 1])
            rhsE3 = jnp.concatenate(tapsE, axis=0)   # [9*Cin, H1, W2]
            rhsO3 = jnp.concatenate(tapsO, axis=0)   # [9*Cin, H1, W1o]
            # flatten rows via lane concat (no in-kernel reshape of the lane dim)
            rhsE = jnp.concatenate([rhsE3[:, h, :] for h in range(H1)], axis=1)
            rhsO = jnp.concatenate([rhsO3[:, h, :] for h in range(H1)], axis=1)

            # ---- conv1 + folded BN + ReLU: one K=9*Cin matmul per column half
            midE = jnp.dot(w1, rhsE, preferred_element_type=jnp.float32) + b1
            midO = jnp.dot(w1, rhsO, preferred_element_type=jnp.float32) + b1
            midE = jnp.maximum(midE, 0.0).astype(jnp.bfloat16)   # [C1, H1*W2]
            midO = jnp.maximum(midO, 0.0).astype(jnp.bfloat16)   # [C1, H1*W1o]

            # ---- conv2 (stride 2): gather the 9 taps by static slices -------
            zrow = jnp.zeros((C1, W2), jnp.bfloat16)
            zcol = jnp.zeros((C1, 1), jnp.bfloat16)
            cache = {}

            def tap_row(r, dw):
                # returns mid[:, r, 2*ow + dw - 1] for ow in [0, W2)  ->  [C1, W2]
                if r < 0 or r >= H1:
                    return zrow
                key = (r, dw)
                if key not in cache:
                    if dw == 1:                                   # even columns 2*ow
                        v = midE[:, r * W2:(r + 1) * W2]
                    else:
                        ro = midO[:, r * W1o:(r + 1) * W1o]       # odd columns of row r
                        if dw == 0:                               # columns 2*ow - 1
                            v = jnp.concatenate([zcol, ro[:, 0:W2 - 1]], axis=1)
                        else:                                     # dw == 2: columns 2*ow + 1
                            v = (ro[:, 0:W2] if W1o >= W2
                                 else jnp.concatenate([ro, zcol], axis=1))
                    cache[key] = v
                return cache[key]

            cols = []
            for oh in range(H2):
                pieces = [tap_row(2 * oh + dh - 1, dw)
                          for dh in range(3) for dw in range(3)]
                cols.append(jnp.concatenate(pieces, axis=0))      # [9*C1, W2]
            rhs2 = jnp.concatenate(cols, axis=1)                  # [9*C1, N2]

            # ---- conv2: ONE matmul, contraction K = 9*C1 ---------------------
            outs.append(jnp.dot(w2, rhs2, preferred_element_type=jnp.float32))

        # lane-dense store: [C2, Bt*N2]
        out_ref[0] = jnp.concatenate(outs, axis=1)

    return kernel


def basic_block_forward(x, params, *, stride=1, eps=BN_EPS):
    """x: [B, Cin, H, W] -> [B, Cout, H2, W2]   (conv1 s=1, conv2 s=2)."""
    if stride != 1:
        # TODO(synk): only the default stride=1 BasicBlock configuration is implemented.
        raise NotImplementedError("basic_block_forward supports stride=1 only")

    B, Cin, H, W = x.shape
    w1 = params["w1"]                    # [C1, Cin, 3, 3]
    w2 = params["w2"]                    # [C2, C1, 3, 3]
    C1, C2 = w1.shape[0], w2.shape[0]
    H1, W1 = H, W                        # conv1: k=3, s=1, p=1
    H2 = (H1 - 1) // 2 + 1
    W2 = (W1 - 1) // 2 + 1
    N2 = H2 * W2

    # Batch elements per grid step -> lane-dense output (aim for >=128 lanes).
    Bt = max(1, min(B, -(-128 // N2)))
    while B % Bt:
        Bt -= 1
    G = B // Bt

    # ---- host prep: pad once, de-interleave columns (pure permutation, 1x data)
    xpad = jnp.pad(x, ((0, 0), (0, 0), (1, 1), (1, 1)))
    xsplit = jnp.concatenate([xpad[..., 0::2], xpad[..., 1::2]], axis=-1)
    xsplit = xsplit.astype(jnp.bfloat16)                          # [B, Cin, H+2, W+2]

    # ---- fold eval-mode BN into conv1 weight / bias (conv1 has no bias) -----
    scale = params["gamma"] / jnp.sqrt(params["var"] + eps)       # [C1]
    w1m = (jnp.transpose(w1, (0, 2, 3, 1)).reshape(C1, 9 * Cin)
           * scale[:, None]).astype(jnp.bfloat16)                 # tap-major, ch-minor
    b1 = (params["beta"] - params["mean"] * scale)[:, None].astype(jnp.float32)
    w2m = jnp.transpose(w2, (0, 2, 3, 1)).reshape(C2, 9 * C1).astype(jnp.bfloat16)

    Hp, Wp = H + 2, W + 2
    kernel = _make_kernel(Bt, Cin, C1, C2, H1, W1, H2, W2)

    out_flat = pl.pallas_call(
        kernel,
        out_shape=jax.ShapeDtypeStruct((G, C2, Bt * N2), jnp.float32),
        grid_spec=pltpu.PrefetchScalarGridSpec(
            num_scalar_prefetch=0,
            grid=(G,),
            in_specs=[
                pl.BlockSpec((Bt, Cin, Hp, Wp), lambda g: (g, 0, 0, 0)),   # streamed
                pl.BlockSpec((C1, 9 * Cin), lambda g: (0, 0),
                             pipeline_mode=pl.Buffered(1)),                # resident
                pl.BlockSpec((C1, 1), lambda g: (0, 0),
                             pipeline_mode=pl.Buffered(1)),                # resident
                pl.BlockSpec((C2, 9 * C1), lambda g: (0, 0),
                             pipeline_mode=pl.Buffered(1)),                # resident
            ],
            out_specs=pl.BlockSpec((1, C2, Bt * N2), lambda g: (g, 0, 0)),
        ),
        compiler_params=pltpu.CompilerParams(dimension_semantics=("parallel",)),
    )(xsplit, w1m, b1, w2m)

    out = out_flat.reshape(G, C2, Bt, H2, W2)
    out = jnp.transpose(out, (0, 2, 1, 3, 4)).reshape(B, C2, H2, W2)
    return out


def make_params(key, inplanes, outplanes):
    """Deterministic synthetic parameters matching the PyTorch module shapes."""
    ks = jax.random.split(key, 6)
    n = lambda k, shape, s=0.1: (s * jax.random.normal(k, shape)).astype(jnp.float32)
    return dict(
        w1=n(ks[0], (outplanes, inplanes, 3, 3)),        # conv1.weight
        w2=n(ks[1], (outplanes, outplanes, 3, 3)),       # conv2.weight
        gamma=1.0 + n(ks[2], (outplanes,), 0.05),        # bn1.weight
        beta=n(ks[3], (outplanes,), 0.05),               # bn1.bias
        mean=n(ks[4], (outplanes,), 0.05),               # bn1.running_mean
        var=1.0 + jnp.abs(n(ks[5], (outplanes,), 0.05)), # bn1.running_var
    )


def reference(x, params, *, stride=1, eps=BN_EPS):
    """Pure-JAX f32 reference reproducing the PyTorch forward (eval-mode BN)."""
    hp = jax.lax.Precision.HIGHEST
    y = jax.lax.conv_general_dilated(
        x, params["w1"], window_strides=(stride, stride), padding=((1, 1), (1, 1)),
        dimension_numbers=("NCHW", "OIHW", "NCHW"), precision=hp)
    g = params["gamma"][None, :, None, None]
    b = params["beta"][None, :, None, None]
    m = params["mean"][None, :, None, None]
    v = params["var"][None, :, None, None]
    y = (y - m) / jnp.sqrt(v + eps) * g + b
    y = jnp.maximum(y, 0.0)
    out = jax.lax.conv_general_dilated(
        y, params["w2"], window_strides=(2 * stride, 2 * stride), padding=((1, 1), (1, 1)),
        dimension_numbers=("NCHW", "OIHW", "NCHW"), precision=hp)
    return out


if __name__ == "__main__":
    # Small shapes consistent with the module: B=2, inplanes=4, outplanes=8,
    # 16x16 feature map, default stride=1 (conv1 stride 1, conv2 stride 2).
    B, CIN, COUT, H, W = 2, 4, 8, 16, 16

    key = jax.random.PRNGKey(0)
    kx, kp = jax.random.split(key)
    x = jax.random.normal(kx, (B, CIN, H, W), dtype=jnp.float32)
    params = make_params(kp, CIN, COUT)

    out = basic_block_forward(x, params, stride=1)
    out = jax.block_until_ready(out)

    ref = reference(x, params, stride=1)
    assert out.shape == (B, COUT, H // 2, W // 2), out.shape
    err = float(jnp.max(jnp.abs(out - ref)))
    # bf16 matmul operands (f32 accumulation) => slightly looser tolerance vs f32 reference.
    assert err < 5e-2, f"max abs err {err}"

    print("KERNEL_OK")
</pallas_src>

<mosaic_0001>
module attributes {stable_mosaic.version = 11 : i64} {
  func.func @kernel(%arg0: i32, %arg1: memref<2x4x18x18xbf16, #tpu.memory_space<vmem>>, %arg2: memref<8x36xbf16, #tpu.memory_space<vmem>>, %arg3: memref<8x1xf32, #tpu.memory_space<vmem>>, %arg4: memref<8x72xbf16, #tpu.memory_space<vmem>>, %arg5: memref<1x8x128xf32, #tpu.memory_space<vmem>>) attributes {dimension_semantics = [#tpu.dimension_semantics<parallel>], iteration_bounds = array<i64: 1>, scalar_prefetch = 0 : i64, scratch_operands = 0 : i64, tpu.core_type = #tpu.core_type<tc>, window_params = [{transform_indices = @transform_0, window_bounds = array<i64: 2, 4, 18, 18>}, {pipeline_mode = #tpu.pipeline_mode<synchronous>, transform_indices = @transform_1, window_bounds = array<i64: 8, 36>}, {pipeline_mode = #tpu.pipeline_mode<synchronous>, transform_indices = @transform_2, window_bounds = array<i64: 8, 1>}, {pipeline_mode = #tpu.pipeline_mode<synchronous>, transform_indices = @transform_3, window_bounds = array<i64: 8, 72>}, {transform_indices = @transform_4, window_bounds = array<i64: 1, 8, 128>}]} {
    %c0 = arith.constant 0 : index
    %c0_0 = arith.constant 0 : index
    %0 = vector.load %arg2[%c0, %c0_0] : memref<8x36xbf16, #tpu.memory_space<vmem>>, vector<8x36xbf16>
    %c0_1 = arith.constant 0 : index
    %c0_2 = arith.constant 0 : index
    %1 = vector.load %arg3[%c0_1, %c0_2] : memref<8x1xf32, #tpu.memory_space<vmem>>, vector<8x1xf32>
    %c0_3 = arith.constant 0 : index
    %c0_4 = arith.constant 0 : index
    %2 = vector.load %arg4[%c0_3, %c0_4] : memref<8x72xbf16, #tpu.memory_space<vmem>>, vector<8x72xbf16>
    %c0_5 = arith.constant 0 : index
    %c0_6 = arith.constant 0 : index
    %c0_7 = arith.constant 0 : index
    %c0_8 = arith.constant 0 : index
    %3 = vector.load %arg1[%c0_5, %c0_6, %c0_7, %c0_8] : memref<2x4x18x18xbf16, #tpu.memory_space<vmem>>, vector<1x4x18x18xbf16>
    %4 = vector.shape_cast %3 : vector<1x4x18x18xbf16> to vector<4x18x18xbf16>
    %5 = vector.extract_strided_slice %4 {offsets = [0, 0, 0], sizes = [4, 18, 9], strides = [1, 1, 1]} : vector<4x18x18xbf16> to vector<4x18x9xbf16>
    %6 = vector.extract_strided_slice %4 {offsets = [0, 0, 9], sizes = [4, 18, 9], strides = [1, 1, 1]} : vector<4x18x18xbf16> to vector<4x18x9xbf16>
    %7 = vector.extract_strided_slice %5 {offsets = [0, 0, 0], sizes = [4, 16, 8], strides = [1, 1, 1]} : vector<4x18x9xbf16> to vector<4x16x8xbf16>
    %8 = vector.extract_strided_slice %6 {offsets = [0, 0, 0], sizes = [4, 16, 8], strides = [1, 1, 1]} : vector<4x18x9xbf16> to vector<4x16x8xbf16>
    %9 = vector.extract_strided_slice %6 {offsets = [0, 0, 0], sizes = [4, 16, 8], strides = [1, 1, 1]} : vector<4x18x9xbf16> to vector<4x16x8xbf16>
    %10 = vector.extract_strided_slice %5 {offsets = [0, 0, 1], sizes = [4, 16, 8], strides = [1, 1, 1]} : vector<4x18x9xbf16> to vector<4x16x8xbf16>
    %11 = vector.extract_strided_slice %5 {offsets = [0, 0, 1], sizes = [4, 16, 8], strides = [1, 1, 1]} : vector<4x18x9xbf16> to vector<4x16x8xbf16>
    %12 = vector.extract_strided_slice %6 {offsets = [0, 0, 1], sizes = [4, 16, 8], strides = [1, 1, 1]} : vector<4x18x9xbf16> to vector<4x16x8xbf16>
    %13 = vector.extract_strided_slice %5 {offsets = [0, 1, 0], sizes = [4, 16, 8], strides = [1, 1, 1]} : vector<4x18x9xbf16> to vector<4x16x8xbf16>
    %14 = vector.extract_strided_slice %6 {offsets = [0, 1, 0], sizes = [4, 16, 8], strides = [1, 1, 1]} : vector<4x18x9xbf16> to vector<4x16x8xbf16>
    %15 = vector.extract_strided_slice %6 {offsets = [0, 1, 0], sizes = [4, 16, 8], strides = [1, 1, 1]} : vector<4x18x9xbf16> to vector<4x16x8xbf16>
    %16 = vector.extract_strided_slice %5 {offsets = [0, 1, 1], sizes = [4, 16, 8], strides = [1, 1, 1]} : vector<4x18x9xbf16> to vector<4x16x8xbf16>
    %17 = vector.extract_strided_slice %5 {offsets = [0, 1, 1], sizes = [4, 16, 8], strides = [1, 1, 1]} : vector<4x18x9xbf16> to vector<4x16x8xbf16>
    %18 = vector.extract_strided_slice %6 {offsets = [0, 1, 1], sizes = [4, 16, 8], strides = [1, 1, 1]} : vector<4x18x9xbf16> to vector<4x16x8xbf16>
    %19 = vector.extract_strided_slice %5 {offsets = [0, 2, 0], sizes = [4, 16, 8], strides = [1, 1, 1]} : vector<4x18x9xbf16> to vector<4x16x8xbf16>
    %20 = vector.extract_strided_slice %6 {offsets = [0, 2, 0], sizes = [4, 16, 8], strides = [1, 1, 1]} : vector<4x18x9xbf16> to vector<4x16x8xbf16>
    %21 = vector.extract_strided_slice %6 {offsets = [0, 2, 0], sizes = [4, 16, 8], strides = [1, 1, 1]} : vector<4x18x9xbf16> to vector<4x16x8xbf16>
    %22 = vector.extract_strided_slice %5 {offsets = [0, 2, 1], sizes = [4, 16, 8], strides = [1, 1, 1]} : vector<4x18x9xbf16> to vector<4x16x8xbf16>
    %23 = vector.extract_strided_slice %5 {offsets = [0, 2, 1], sizes = [4, 16, 8], strides = [1, 1, 1]} : vector<4x18x9xbf16> to vector<4x16x8xbf16>
    %24 = vector.extract_strided_slice %6 {offsets = [0, 2, 1], sizes = [4, 16, 8], strides = [1, 1, 1]} : vector<4x18x9xbf16> to vector<4x16x8xbf16>
    %25 = tpu.concatenate %7, %9, %11, %13, %15, %17, %19, %21, %23 in 0 : vector<4x16x8xbf16>, vector<4x16x8xbf16>, vector<4x16x8xbf16>, vector<4x16x8xbf16>, vector<4x16x8xbf16>, vector<4x16x8xbf16>, vector<4x16x8xbf16>, vector<4x16x8xbf16>, vector<4x16x8xbf16> -> vector<36x16x8xbf16>
    %26 = tpu.concatenate %8, %10, %12, %14, %16, %18, %20, %22, %24 in 0 : vector<4x16x8xbf16>, vector<4x16x8xbf16>, vector<4x16x8xbf16>, vector<4x16x8xbf16>, vector<4x16x8xbf16>, vector<4x16x8xbf16>, vector<4x16x8xbf16>, vector<4x16x8xbf16>, vector<4x16x8xbf16> -> vector<36x16x8xbf16>
    %27 = vector.extract_strided_slice %25 {offsets = [0, 0, 0], sizes = [36, 1, 8], strides = [1, 1, 1]} : vector<36x16x8xbf16> to vector<36x1x8xbf16>
    %28 = vector.shape_cast %27 : vector<36x1x8xbf16> to vector<36x8xbf16>
    %29 = vector.extract_strided_slice %25 {offsets = [0, 1, 0], sizes = [36, 1, 8], strides = [1, 1, 1]} : vector<36x16x8xbf16> to vector<36x1x8xbf16>
    %30 = vector.shape_cast %29 : vector<36x1x8xbf16> to vector<36x8xbf16>
    %31 = vector.extract_strided_slice %25 {offsets = [0, 2, 0], sizes = [36, 1, 8], strides = [1, 1, 1]} : vector<36x16x8xbf16> to vector<36x1x8xbf16>
    %32 = vector.shape_cast %31 : vector<36x1x8xbf16> to vector<36x8xbf16>
    %33 = vector.extract_strided_slice %25 {offsets = [0, 3, 0], sizes = [36, 1, 8], strides = [1, 1, 1]} : vector<36x16x8xbf16> to vector<36x1x8xbf16>
    %34 = vector.shape_cast %33 : vector<36x1x8xbf16> to vector<36x8xbf16>
    %35 = vector.extract_strided_slice %25 {offsets = [0, 4, 0], sizes = [36, 1, 8], strides = [1, 1, 1]} : vector<36x16x8xbf16> to vector<36x1x8xbf16>
    %36 = vector.shape_cast %35 : vector<36x1x8xbf16> to vector<36x8xbf16>
    %37 = vector.extract_strided_slice %25 {offsets = [0, 5, 0], sizes = [36, 1, 8], strides = [1, 1, 1]} : vector<36x16x8xbf16> to vector<36x1x8xbf16>
    %38 = vector.shape_cast %37 : vector<36x1x8xbf16> to vector<36x8xbf16>
    %39 = vector.extract_strided_slice %25 {offsets = [0, 6, 0], sizes = [36, 1, 8], strides = [1, 1, 1]} : vector<36x16x8xbf16> to vector<36x1x8xbf16>
    %40 = vector.shape_cast %39 : vector<36x1x8xbf16> to vector<36x8xbf16>
    %41 = vector.extract_strided_slice %25 {offsets = [0, 7, 0], sizes = [36, 1, 8], strides = [1, 1, 1]} : vector<36x16x8xbf16> to vector<36x1x8xbf16>
    %42 = vector.shape_cast %41 : vector<36x1x8xbf16> to vector<36x8xbf16>
    %43 = vector.extract_strided_slice %25 {offsets = [0, 8, 0], sizes = [36, 1, 8], strides = [1, 1, 1]} : vector<36x16x8xbf16> to vector<36x1x8xbf16>
    %44 = vector.shape_cast %43 : vector<36x1x8xbf16> to vector<36x8xbf16>
    %45 = vector.extract_strided_slice %25 {offsets = [0, 9, 0], sizes = [36, 1, 8], strides = [1, 1, 1]} : vector<36x16x8xbf16> to vector<36x1x8xbf16>
    %46 = vector.shape_cast %45 : vector<36x1x8xbf16> to vector<36x8xbf16>
    %47 = vector.extract_strided_slice %25 {offsets = [0, 10, 0], sizes = [36, 1, 8], strides = [1, 1, 1]} : vector<36x16x8xbf16> to vector<36x1x8xbf16>
    %48 = vector.shape_cast %47 : vector<36x1x8xbf16> to vector<36x8xbf16>
    %49 = vector.extract_strided_slice %25 {offsets = [0, 11, 0], sizes = [36, 1, 8], strides = [1, 1, 1]} : vector<36x16x8xbf16> to vector<36x1x8xbf16>
    %50 = vector.shape_cast %49 : vector<36x1x8xbf16> to vector<36x8xbf16>
    %51 = vector.extract_strided_slice %25 {offsets = [0, 12, 0], sizes = [36, 1, 8], strides = [1, 1, 1]} : vector<36x16x8xbf16> to vector<36x1x8xbf16>
    %52 = vector.shape_cast %51 : vector<36x1x8xbf16> to vector<36x8xbf16>
    %53 = vector.extract_strided_slice %25 {offsets = [0, 13, 0], sizes = [36, 1, 8], strides = [1, 1, 1]} : vector<36x16x8xbf16> to vector<36x1x8xbf16>
    %54 = vector.shape_cast %53 : vector<36x1x8xbf16> to vector<36x8xbf16>
    %55 = vector.extract_strided_slice %25 {offsets = [0, 14, 0], sizes = [36, 1, 8], strides = [1, 1, 1]} : vector<36x16x8xbf16> to vector<36x1x8xbf16>
    %56 = vector.shape_cast %55 : vector<36x1x8xbf16> to vector<36x8xbf16>
    %57 = vector.extract_strided_slice %25 {offsets = [0, 15, 0], sizes = [36, 1, 8], strides = [1, 1, 1]} : vector<36x16x8xbf16> to vector<36x1x8xbf16>
    %58 = vector.shape_cast %57 : vector<36x1x8xbf16> to vector<36x8xbf16>
    %59 = tpu.concatenate %28, %30, %32, %34, %36, %38, %40, %42, %44, %46, %48, %50, %52, %54, %56, %58 in 1 : vector<36x8xbf16>, vector<36x8xbf16>, vector<36x8xbf16>, vector<36x8xbf16>, vector<36x8xbf16>, vector<36x8xbf16>, vector<36x8xbf16>, vector<36x8xbf16>, vector<36x8xbf16>, vector<36x8xbf16>, vector<36x8xbf16>, vector<36x8xbf16>, vector<36x8xbf16>, vector<36x8xbf16>, vector<36x8xbf16>, vector<36x8xbf16> -> vector<36x128xbf16>
    %60 = vector.extract_strided_slice %26 {offsets = [0, 0, 0], sizes = [36, 1, 8], strides = [1, 1, 1]} : vector<36x16x8xbf16> to vector<36x1x8xbf16>
    %61 = vector.shape_cast %60 : vector<36x1x8xbf16> to vector<36x8xbf16>
    %62 = vector.extract_strided_slice %26 {offsets = [0, 1, 0], sizes = [36, 1, 8], strides = [1, 1, 1]} : vector<36x16x8xbf16> to vector<36x1x8xbf16>
    %63 = vector.shape_cast %62 : vector<36x1x8xbf16> to vector<36x8xbf16>
    %64 = vector.extract_strided_slice %26 {offsets = [0, 2, 0], sizes = [36, 1, 8], strides = [1, 1, 1]} : vector<36x16x8xbf16> to vector<36x1x8xbf16>
    %65 = vector.shape_cast %64 : vector<36x1x8xbf16> to vector<36x8xbf16>
    %66 = vector.extract_strided_slice %26 {offsets = [0, 3, 0], sizes = [36, 1, 8], strides = [1, 1, 1]} : vector<36x16x8xbf16> to vector<36x1x8xbf16>
    %67 = vector.shape_cast %66 : vector<36x1x8xbf16> to vector<36x8xbf16>
    %68 = vector.extract_strided_slice %26 {offsets = [0, 4, 0], sizes = [36, 1, 8], strides = [1, 1, 1]} : vector<36x16x8xbf16> to vector<36x1x8xbf16>
    %69 = vector.shape_cast %68 : vector<36x1x8xbf16> to vector<36x8xbf16>
    %70 = vector.extract_strided_slice %26 {offsets = [0, 5, 0], sizes = [36, 1, 8], strides = [1, 1, 1]} : vector<36x16x8xbf16> to vector<36x1x8xbf16>
    %71 = vector.shape_cast %70 : vector<36x1x8xbf16> to vector<36x8xbf16>
    %72 = vector.extract_strided_slice %26 {offsets = [0, 6, 0], sizes = [36, 1, 8], strides = [1, 1, 1]} : vector<36x16x8xbf16> to vector<36x1x8xbf16>
    %73 = vector.shape_cast %72 : vector<36x1x8xbf16> to vector<36x8xbf16>
    %74 = vector.extract_strided_slice %26 {offsets = [0, 7, 0], sizes = [36, 1, 8], strides = [1, 1, 1]} : vector<36x16x8xbf16> to vector<36x1x8xbf16>
    %75 = vector.shape_cast %74 : vector<36x1x8xbf16> to vector<36x8xbf16>
    %76 = vector.extract_strided_slice %26 {offsets = [0, 8, 0], sizes = [36, 1, 8], strides = [1, 1, 1]} : vector<36x16x8xbf16> to vector<36x1x8xbf16>
    %77 = vector.shape_cast %76 : vector<36x1x8xbf16> to vector<36x8xbf16>
    %78 = vector.extract_strided_slice %26 {offsets = [0, 9, 0], sizes = [36, 1, 8], strides = [1, 1, 1]} : vector<36x16x8xbf16> to vector<36x1x8xbf16>
    %79 = vector.shape_cast %78 : vector<36x1x8xbf16> to vector<36x8xbf16>
    %80 = vector.extract_strided_slice %26 {offsets = [0, 10, 0], sizes = [36, 1, 8], strides = [1, 1, 1]} : vector<36x16x8xbf16> to vector<36x1x8xbf16>
    %81 = vector.shape_cast %80 : vector<36x1x8xbf16> to vector<36x8xbf16>
    %82 = vector.extract_strided_slice %26 {offsets = [0, 11, 0], sizes = [36, 1, 8], strides = [1, 1, 1]} : vector<36x16x8xbf16> to vector<36x1x8xbf16>
    %83 = vector.shape_cast %82 : vector<36x1x8xbf16> to vector<36x8xbf16>
    %84 = vector.extract_strided_slice %26 {offsets = [0, 12, 0], sizes = [36, 1, 8], strides = [1, 1, 1]} : vector<36x16x8xbf16> to vector<36x1x8xbf16>
    %85 = vector.shape_cast %84 : vector<36x1x8xbf16> to vector<36x8xbf16>
    %86 = vector.extract_strided_slice %26 {offsets = [0, 13, 0], sizes = [36, 1, 8], strides = [1, 1, 1]} : vector<36x16x8xbf16> to vector<36x1x8xbf16>
    %87 = vector.shape_cast %86 : vector<36x1x8xbf16> to vector<36x8xbf16>
    %88 = vector.extract_strided_slice %26 {offsets = [0, 14, 0], sizes = [36, 1, 8], strides = [1, 1, 1]} : vector<36x16x8xbf16> to vector<36x1x8xbf16>
    %89 = vector.shape_cast %88 : vector<36x1x8xbf16> to vector<36x8xbf16>
    %90 = vector.extract_strided_slice %26 {offsets = [0, 15, 0], sizes = [36, 1, 8], strides = [1, 1, 1]} : vector<36x16x8xbf16> to vector<36x1x8xbf16>
    %91 = vector.shape_cast %90 : vector<36x1x8xbf16> to vector<36x8xbf16>
    %92 = tpu.concatenate %61, %63, %65, %67, %69, %71, %73, %75, %77, %79, %81, %83, %85, %87, %89, %91 in 1 : vector<36x8xbf16>, vector<36x8xbf16>, vector<36x8xbf16>, vector<36x8xbf16>, vector<36x8xbf16>, vector<36x8xbf16>, vector<36x8xbf16>, vector<36x8xbf16>, vector<36x8xbf16>, vector<36x8xbf16>, vector<36x8xbf16>, vector<36x8xbf16>, vector<36x8xbf16>, vector<36x8xbf16>, vector<36x8xbf16>, vector<36x8xbf16> -> vector<36x128xbf16>
    %cst = arith.constant dense<0.000000e+00> : vector<8x128xf32>
    %93 = tpu.matmul %0, %59, %cst {dimension_numbers = #tpu.dot_dimension_numbers<[1], [0], [0], [1], [0, 0, 1, 1], [], []>} : vector<8x36xbf16>, vector<36x128xbf16>, vector<8x128xf32> -> vector<8x128xf32>
    %94 = vector.broadcast %1 : vector<8x1xf32> to vector<8x128xf32>
    %95 = arith.addf %93, %94 : vector<8x128xf32>
    %cst_9 = arith.constant dense<0.000000e+00> : vector<8x128xf32>
    %96 = tpu.matmul %0, %92, %cst_9 {dimension_numbers = #tpu.dot_dimension_numbers<[1], [0], [0], [1], [0, 0, 1, 1], [], []>} : vector<8x36xbf16>, vector<36x128xbf16>, vector<8x128xf32> -> vector<8x128xf32>
    %97 = vector.broadcast %1 : vector<8x1xf32> to vector<8x128xf32>
    %98 = arith.addf %96, %97 : vector<8x128xf32>
    %cst_10 = arith.constant 0.000000e+00 : f32
    %99 = vector.broadcast %cst_10 : f32 to vector<8x128xf32>
    %100 = arith.maximumf %95, %99 : vector<8x128xf32>
    %101 = arith.truncf %100 : vector<8x128xf32> to vector<8x128xbf16>
    %cst_11 = arith.constant 0.000000e+00 : f32
    %102 = vector.broadcast %cst_11 : f32 to vector<8x128xf32>
    %103 = arith.maximumf %98, %102 : vector<8x128xf32>
    %104 = arith.truncf %103 : vector<8x128xf32> to vector<8x128xbf16>
    %cst_12 = arith.constant 0.000000e+00 : bf16
    %105 = vector.broadcast %cst_12 : bf16 to vector<8x8xbf16>
    %cst_13 = arith.constant 0.000000e+00 : bf16
    %106 = vector.broadcast %cst_13 : bf16 to vector<8x1xbf16>
    %107 = vector.extract_strided_slice %104 {offsets = [0, 0], sizes = [8, 8], strides = [1, 1]} : vector<8x128xbf16> to vector<8x8xbf16>
    %108 = vector.extract_strided_slice %107 {offsets = [0, 0], sizes = [8, 7], strides = [1, 1]} : vector<8x8xbf16> to vector<8x7xbf16>
    %109 = tpu.concatenate %106, %108 in 1 : vector<8x1xbf16>, vector<8x7xbf16> -> vector<8x8xbf16>
    %110 = vector.extract_strided_slice %101 {offsets = [0, 0], sizes = [8, 8], strides = [1, 1]} : vector<8x128xbf16> to vector<8x8xbf16>
    %111 = vector.extract_strided_slice %104 {offsets = [0, 0], sizes = [8, 8], strides = [1, 1]} : vector<8x128xbf16> to vector<8x8xbf16>
    %112 = vector.extract_strided_slice %104 {offsets = [0, 8], sizes = [8, 8], strides = [1, 1]} : vector<8x128xbf16> to vector<8x8xbf16>
    %113 = vector.extract_strided_slice %112 {offsets = [0, 0], sizes = [8, 7], strides = [1, 1]} : vector<8x8xbf16> to vector<8x7xbf16>
    %114 = tpu.concatenate %106, %113 in 1 : vector<8x1xbf16>, vector<8x7xbf16> -> vector<8x8xbf16>
    %115 = vector.extract_strided_slice %101 {offsets = [0, 8], sizes = [8, 8], strides = [1, 1]} : vector<8x128xbf16> to vector<8x8xbf16>
    %116 = vector.extract_strided_slice %104 {offsets = [0, 8], sizes = [8, 8], strides = [1, 1]} : vector<8x128xbf16> to vector<8x8xbf16>
    %117 = tpu.concatenate %105, %105, %105, %109, %110, %111, %114, %115, %116 in 0 : vector<8x8xbf16>, vector<8x8xbf16>, vector<8x8xbf16>, vector<8x8xbf16>, vector<8x8xbf16>, vector<8x8xbf16>, vector<8x8xbf16>, vector<8x8xbf16>, vector<8x8xbf16> -> vector<72x8xbf16>
    %118 = vector.extract_strided_slice %104 {offsets = [0, 16], sizes = [8, 8], strides = [1, 1]} : vector<8x128xbf16> to vector<8x8xbf16>
    %119 = vector.extract_strided_slice %118 {offsets = [0, 0], sizes = [8, 7], strides = [1, 1]} : vector<8x8xbf16> to vector<8x7xbf16>
    %120 = tpu.concatenate %106, %119 in 1 : vector<8x1xbf16>, vector<8x7xbf16> -> vector<8x8xbf16>
    %121 = vector.extract_strided_slice %101 {offsets = [0, 16], sizes = [8, 8], strides = [1, 1]} : vector<8x128xbf16> to vector<8x8xbf16>
    %122 = vector.extract_strided_slice %104 {offsets = [0, 16], sizes = [8, 8], strides = [1, 1]} : vector<8x128xbf16> to vector<8x8xbf16>
    %123 = vector.extract_strided_slice %104 {offsets = [0, 24], sizes = [8, 8], strides = [1, 1]} : vector<8x128xbf16> to vector<8x8xbf16>
    %124 = vector.extract_strided_slice %123 {offsets = [0, 0], sizes = [8, 7], strides = [1, 1]} : vector<8x8xbf16> to vector<8x7xbf16>
    %125 = tpu.concatenate %106, %124 in 1 : vector<8x1xbf16>, vector<8x7xbf16> -> vector<8x8xbf16>
    %126 = vector.extract_strided_slice %101 {offsets = [0, 24], sizes = [8, 8], strides = [1, 1]} : vector<8x128xbf16> to vector<8x8xbf16>
    %127 = vector.extract_strided_slice %104 {offsets = [0, 24], sizes = [8, 8], strides = [1, 1]} : vector<8x128xbf16> to vector<8x8xbf16>
    %128 = tpu.concatenate %114, %115, %116, %120, %121, %122, %125, %126, %127 in 0 : vector<8x8xbf16>, vector<8x8xbf16>, vector<8x8xbf16>, vector<8x8xbf16>, vector<8x8xbf16>, vector<8x8xbf16>, vector<8x8xbf16>, vector<8x8xbf16>, vector<8x8xbf16> -> vector<72x8xbf16>
    %129 = vector.extract_strided_slice %104 {offsets = [0, 32], sizes = [8, 8], strides = [1, 1]} : vector<8x128xbf16> to vector<8x8xbf16>
    %130 = vector.extract_strided_slice %129 {offsets = [0, 0], sizes = [8, 7], strides = [1, 1]} : vector<8x8xbf16> to vector<8x7xbf16>
    %131 = tpu.concatenate %106, %130 in 1 : vector<8x1xbf16>, vector<8x7xbf16> -> vector<8x8xbf16>
    %132 = vector.extract_strided_slice %101 {offsets = [0, 32], sizes = [8, 8], strides = [1, 1]} : vector<8x128xbf16> to vector<8x8xbf16>
    %133 = vector.extract_strided_slice %104 {offsets = [0, 32], sizes = [8, 8], strides = [1, 1]} : vector<8x128xbf16> to vector<8x8xbf16>
    %134 = vector.extract_strided_slice %104 {offsets = [0, 40], sizes = [8, 8], strides = [1, 1]} : vector<8x128xbf16> to vector<8x8xbf16>
    %135 = vector.extract_strided_slice %134 {offsets = [0, 0], sizes = [8, 7], strides = [1, 1]} : vector<8x8xbf16> to vector<8x7xbf16>
    %136 = tpu.concatenate %106, %135 in 1 : vector<8x1xbf16>, vector<8x7xbf16> -> vector<8x8xbf16>
    %137 = vector.extract_strided_slice %101 {offsets = [0, 40], sizes = [8, 8], strides = [1, 1]} : vector<8x128xbf16> to vector<8x8xbf16>
    %138 = vector.extract_strided_slice %104 {offsets = [0, 40], sizes = [8, 8], strides = [1, 1]} : vector<8x128xbf16> to vector<8x8xbf16>
    %139 = tpu.concatenate %125, %126, %127, %131, %132, %133, %136, %137, %138 in 0 : vector<8x8xbf16>, vector<8x8xbf16>, vector<8x8xbf16>, vector<8x8xbf16>, vector<8x8xbf16>, vector<8x8xbf16>, vector<8x8xbf16>, vector<8x8xbf16>, vector<8x8xbf16> -> vector<72x8xbf16>
    %140 = vector.extract_strided_slice %104 {offsets = [0, 48], sizes = [8, 8], strides = [1, 1]} : vector<8x128xbf16> to vector<8x8xbf16>
    %141 = vector.extract_strided_slice %140 {offsets = [0, 0], sizes = [8, 7], strides = [1, 1]} : vector<8x8xbf16> to vector<8x7xbf16>
    %142 = tpu.concatenate %106, %141 in 1 : vector<8x1xbf16>, vector<8x7xbf16> -> vector<8x8xbf16>
    %143 = vector.extract_strided_slice %101 {offsets = [0, 48], sizes = [8, 8], strides = [1, 1]} : vector<8x128xbf16> to vector<8x8xbf16>
    %144 = vector.extract_strided_slice %104 {offsets = [0, 48], sizes = [8, 8], strides = [1, 1]} : vector<8x128xbf16> to vector<8x8xbf16>
    %145 = vector.extract_strided_slice %104 {offsets = [0, 56], sizes = [8, 8], strides = [1, 1]} : vector<8x128xbf16> to vector<8x8xbf16>
    %146 = vector.extract_strided_slice %145 {offsets = [0, 0], sizes = [8, 7], strides = [1, 1]} : vector<8x8xbf16> to vector<8x7xbf16>
    %147 = tpu.concatenate %106, %146 in 1 : vector<8x1xbf16>, vector<8x7xbf16> -> vector<8x8xbf16>
    %148 = vector.extract_strided_slice %101 {offsets = [0, 56], sizes = [8, 8], strides = [1, 1]} : vector<8x128xbf16> to vector<8x8xbf16>
    %149 = vector.extract_strided_slice %104 {offsets = [0, 56], sizes = [8, 8], strides = [1, 1]} : vector<8x128xbf16> to vector<8x8xbf16>
    %150 = tpu.concatenate %136, %137, %138, %142, %143, %144, %147, %148, %149 in 0 : vector<8x8xbf16>, vector<8x8xbf16>, vector<8x8xbf16>, vector<8x8xbf16>, vector<8x8xbf16>, vector<8x8xbf16>, vector<8x8xbf16>, vector<8x8xbf16>, vector<8x8xbf16> -> vector<72x8xbf16>
    %151 = vector.extract_strided_slice %104 {offsets = [0, 64], sizes = [8, 8], strides = [1, 1]} : vector<8x128xbf16> to vector<8x8xbf16>
    %152 = vector.extract_strided_slice %151 {offsets = [0, 0], sizes = [8, 7], strides = [1, 1]} : vector<8x8xbf16> to vector<8x7xbf16>
    %153 = tpu.concatenate %106, %152 in 1 : vector<8x1xbf16>, vector<8x7xbf16> -> vector<8x8xbf16>
    %154 = vector.extract_strided_slice %101 {offsets = [0, 64], sizes = [8, 8], strides = [1, 1]} : vector<8x128xbf16> to vector<8x8xbf16>
    %155 = vector.extract_strided_slice %104 {offsets = [0, 64], sizes = [8, 8], strides = [1, 1]} : vector<8x128xbf16> to vector<8x8xbf16>
    %156 = vector.extract_strided_slice %104 {offsets = [0, 72], sizes = [8, 8], strides = [1, 1]} : vector<8x128xbf16> to vector<8x8xbf16>
    %157 = vector.extract_strided_slice %156 {offsets = [0, 0], sizes = [8, 7], strides = [1, 1]} : vector<8x8xbf16> to vector<8x7xbf16>
    %158 = tpu.concatenate %106, %157 in 1 : vector<8x1xbf16>, vector<8x7xbf16> -> vector<8x8xbf16>
    %159 = vector.extract_strided_slice %101 {offsets = [0, 72], sizes = [8, 8], strides = [1, 1]} : vector<8x128xbf16> to vector<8x8xbf16>
    %160 = vector.extract_strided_slice %104 {offsets = [0, 72], sizes = [8, 8], strides = [1, 1]} : vector<8x128xbf16> to vector<8x8xbf16>
    %161 = tpu.concatenate %147, %148, %149, %153, %154, %155, %158, %159, %160 in 0 : vector<8x8xbf16>, vector<8x8xbf16>, vector<8x8xbf16>, vector<8x8xbf16>, vector<8x8xbf16>, vector<8x8xbf16>, vector<8x8xbf16>, vector<8x8xbf16>, vector<8x8xbf16> -> vector<72x8xbf16>
    %162 = vector.extract_strided_slice %104 {offsets = [0, 80], sizes = [8, 8], strides = [1, 1]} : vector<8x128xbf16> to vector<8x8xbf16>
    %163 = vector.extract_strided_slice %162 {offsets = [0, 0], sizes = [8, 7], strides = [1, 1]} : vector<8x8xbf16> to vector<8x7xbf16>
    %164 = tpu.concatenate %106, %163 in 1 : vector<8x1xbf16>, vector<8x7xbf16> -> vector<8x8xbf16>
    %165 = vector.extract_strided_slice %101 {offsets = [0, 80], sizes = [8, 8], strides = [1, 1]} : vector<8x128xbf16> to vector<8x8xbf16>
    %166 = vector.extract_strided_slice %104 {offsets = [0, 80], sizes = [8, 8], strides = [1, 1]} : vector<8x128xbf16> to vector<8x8xbf16>
    %167 = vector.extract_strided_slice %104 {offsets = [0, 88], sizes = [8, 8], strides = [1, 1]} : vector<8x128xbf16> to vector<8x8xbf16>
    %168 = vector.extract_strided_slice %167 {offsets = [0, 0], sizes = [8, 7], strides = [1, 1]} : vector<8x8xbf16> to vector<8x7xbf16>
    %169 = tpu.concatenate %106, %168 in 1 : vector<8x1xbf16>, vector<8x7xbf16> -> vector<8x8xbf16>
    %170 = vector.extract_strided_slice %101 {offsets = [0, 88], sizes = [8, 8], strides = [1, 1]} : vector<8x128xbf16> to vector<8x8xbf16>
    %171 = vector.extract_strided_slice %104 {offsets = [0, 88], sizes = [8, 8], strides = [1, 1]} : vector<8x128xbf16> to vector<8x8xbf16>
    %172 = tpu.concatenate %158, %159, %160, %164, %165, %166, %169, %170, %171 in 0 : vector<8x8xbf16>, vector<8x8xbf16>, vector<8x8xbf16>, vector<8x8xbf16>, vector<8x8xbf16>, vector<8x8xbf16>, vector<8x8xbf16>, vector<8x8xbf16>, vector<8x8xbf16> -> vector<72x8xbf16>
    %173 = vector.extract_strided_slice %104 {offsets = [0, 96], sizes = [8, 8], strides = [1, 1]} : vector<8x128xbf16> to vector<8x8xbf16>
    %174 = vector.extract_strided_slice %173 {offsets = [0, 0], sizes = [8, 7], strides = [1, 1]} : vector<8x8xbf16> to vector<8x7xbf16>
    %175 = tpu.concatenate %106, %174 in 1 : vector<8x1xbf16>, vector<8x7xbf16> -> vector<8x8xbf16>
    %176 = vector.extract_strided_slice %101 {offsets = [0, 96], sizes = [8, 8], strides = [1, 1]} : vector<8x128xbf16> to vector<8x8xbf16>
    %177 = vector.extract_strided_slice %104 {offsets = [0, 96], sizes = [8, 8], strides = [1, 1]} : vector<8x128xbf16> to vector<8x8xbf16>
    %178 = vector.extract_strided_slice %104 {offsets = [0, 104], sizes = [8, 8], strides = [1, 1]} : vector<8x128xbf16> to vector<8x8xbf16>
    %179 = vector.extract_strided_slice %178 {offsets = [0, 0], sizes = [8, 7], strides = [1, 1]} : vector<8x8xbf16> to vector<8x7xbf16>
    %180 = tpu.concatenate %106, %179 in 1 : vector<8x1xbf16>, vector<8x7xbf16> -> vector<8x8xbf16>
    %181 = vector.extract_strided_slice %101 {offsets = [0, 104], sizes = [8, 8], strides = [1, 1]} : vector<8x128xbf16> to vector<8x8xbf16>
    %182 = vector.extract_strided_slice %104 {offsets = [0, 104], sizes = [8, 8], strides = [1, 1]} : vector<8x128xbf16> to vector<8x8xbf16>
    %183 = tpu.concatenate %169, %170, %171, %175, %176, %177, %180, %181, %182 in 0 : vector<8x8xbf16>, vector<8x8xbf16>, vector<8x8xbf16>, vector<8x8xbf16>, vector<8x8xbf16>, vector<8x8xbf16>, vector<8x8xbf16>, vector<8x8xbf16>, vector<8x8xbf16> -> vector<72x8xbf16>
    %184 = vector.extract_strided_slice %104 {offsets = [0, 112], sizes = [8, 8], strides = [1, 1]} : vector<8x128xbf16> to vector<8x8xbf16>
    %185 = vector.extract_strided_slice %184 {offsets = [0, 0], sizes = [8, 7], strides = [1, 1]} : vector<8x8xbf16> to vector<8x7xbf16>
    %186 = tpu.concatenate %106, %185 in 1 : vector<8x1xbf16>, vector<8x7xbf16> -> vector<8x8xbf16>
    %187 = vector.extract_strided_slice %101 {offsets = [0, 112], sizes = [8, 8], strides = [1, 1]} : vector<8x128xbf16> to vector<8x8xbf16>
    %188 = vector.extract_strided_slice %104 {offsets = [0, 112], sizes = [8, 8], strides = [1, 1]} : vector<8x128xbf16> to vector<8x8xbf16>
    %189 = vector.extract_strided_slice %104 {offsets = [0, 120], sizes = [8, 8], strides = [1, 1]} : vector<8x128xbf16> to vector<8x8xbf16>
    %190 = vector.extract_strided_slice %189 {offsets = [0, 0], sizes = [8, 7], strides = [1, 1]} : vector<8x8xbf16> to vector<8x7xbf16>
    %191 = tpu.concatenate %106, %190 in 1 : vector<8x1xbf16>, vector<8x7xbf16> -> vector<8x8xbf16>
    %192 = vector.extract_strided_slice %101 {offsets = [0, 120], sizes = [8, 8], strides = [1, 1]} : vector<8x128xbf16> to vector<8x8xbf16>
    %193 = vector.extract_strided_slice %104 {offsets = [0, 120], sizes = [8, 8], strides = [1, 1]} : vector<8x128xbf16> to vector<8x8xbf16>
    %194 = tpu.concatenate %180, %181, %182, %186, %187, %188, %191, %192, %193 in 0 : vector<8x8xbf16>, vector<8x8xbf16>, vector<8x8xbf16>, vector<8x8xbf16>, vector<8x8xbf16>, vector<8x8xbf16>, vector<8x8xbf16>, vector<8x8xbf16>, vector<8x8xbf16> -> vector<72x8xbf16>
    %195 = tpu.concatenate %117, %128, %139, %150, %161, %172, %183, %194 in 1 : vector<72x8xbf16>, vector<72x8xbf16>, vector<72x8xbf16>, vector<72x8xbf16>, vector<72x8xbf16>, vector<72x8xbf16>, vector<72x8xbf16>, vector<72x8xbf16> -> vector<72x64xbf16>
    %cst_14 = arith.constant dense<0.000000e+00> : vector<8x64xf32>
    %196 = tpu.matmul %2, %195, %cst_14 {dimension_numbers = #tpu.dot_dimension_numbers<[1], [0], [0], [1], [0, 0, 1, 1], [], []>} : vector<8x72xbf16>, vector<72x64xbf16>, vector<8x64xf32> -> vector<8x64xf32>
    %c1 = arith.constant 1 : index
    %c0_15 = arith.constant 0 : index
    %c0_16 = arith.constant 0 : index
    %c0_17 = arith.constant 0 : index
    %197 = vector.load %arg1[%c1, %c0_15, %c0_16, %c0_17] : memref<2x4x18x18xbf16, #tpu.memory_space<vmem>>, vector<1x4x18x18xbf16>
    %198 = vector.shape_cast %197 : vector<1x4x18x18xbf16> to vector<4x18x18xbf16>
    %199 = vector.extract_strided_slice %198 {offsets = [0, 0, 0], sizes = [4, 18, 9], strides = [1, 1, 1]} : vector<4x18x18xbf16> to vector<4x18x9xbf16>
    %200 = vector.extract_strided_slice %198 {offsets = [0, 0, 9], sizes = [4, 18, 9], strides = [1, 1, 1]} : vector<4x18x18xbf16> to vector<4x18x9xbf16>
    %201 = vector.extract_strided_slice %199 {offsets = [0, 0, 0], sizes = [4, 16, 8], strides = [1, 1, 1]} : vector<4x18x9xbf16> to vector<4x16x8xbf16>
    %202 = vector.extract_strided_slice %200 {offsets = [0, 0, 0], sizes = [4, 16, 8], strides = [1, 1, 1]} : vector<4x18x9xbf16> to vector<4x16x8xbf16>
    %203 = vector.extract_strided_slice %200 {offsets = [0, 0, 0], sizes = [4, 16, 8], strides = [1, 1, 1]} : vector<4x18x9xbf16> to vector<4x16x8xbf16>
    %204 = vector.extract_strided_slice %199 {offsets = [0, 0, 1], sizes = [4, 16, 8], strides = [1, 1, 1]} : vector<4x18x9xbf16> to vector<4x16x8xbf16>
    %205 = vector.extract_strided_slice %199 {offsets = [0, 0, 1], sizes = [4, 16, 8], strides = [1, 1, 1]} : vector<4x18x9xbf16> to vector<4x16x8xbf16>
    %206 = vector.extract_strided_slice %200 {offsets = [0, 0, 1], sizes = [4, 16, 8], strides = [1, 1, 1]} : vector<4x18x9xbf16> to vector<4x16x8xbf16>
    %207 = vector.extract_strided_slice %199 {offsets = [0, 1, 0], sizes = [4, 16, 8], strides = [1, 1, 1]} : vector<4x18x9xbf16> to vector<4x16x8xbf16>
    %208 = vector.extract_strided_slice %200 {offsets = [0, 1, 0], sizes = [4, 16, 8], strides = [1, 1, 1]} : vector<4x18x9xbf16> to vector<4x16x8xbf16>
    %209 = vector.extract_strided_slice %200 {offsets = [0, 1, 0], sizes = [4, 16, 8], strides = [1, 1, 1]} : vector<4x18x9xbf16> to vector<4x16x8xbf16>
    %210 = vector.extract_strided_slice %199 {offsets = [0, 1, 1], sizes = [4, 16, 8], strides = [1, 1, 1]} : vector<4x18x9xbf16> to vector<4x16x8xbf16>
    %211 = vector.extract_strided_slice %199 {offsets = [0, 1, 1], sizes = [4, 16, 8], strides = [1, 1, 1]} : vector<4x18x9xbf16> to vector<4x16x8xbf16>
    %212 = vector.extract_strided_slice %200 {offsets = [0, 1, 1], sizes = [4, 16, 8], strides = [1, 1, 1]} : vector<4x18x9xbf16> to vector<4x16x8xbf16>
    %213 = vector.extract_strided_slice %199 {offsets = [0, 2, 0], sizes = [4, 16, 8], strides = [1, 1, 1]} : vector<4x18x9xbf16> to vector<4x16x8xbf16>
    %214 = vector.extract_strided_slice %200 {offsets = [0, 2, 0], sizes = [4, 16, 8], strides = [1, 1, 1]} : vector<4x18x9xbf16> to vector<4x16x8xbf16>
    %215 = vector.extract_strided_slice %200 {offsets = [0, 2, 0], sizes = [4, 16, 8], strides = [1, 1, 1]} : vector<4x18x9xbf16> to vector<4x16x8xbf16>
    %216 = vector.extract_strided_slice %199 {offsets = [0, 2, 1], sizes = [4, 16, 8], strides = [1, 1, 1]} : vector<4x18x9xbf16> to vector<4x16x8xbf16>
    %217 = vector.extract_strided_slice %199 {offsets = [0, 2, 1], sizes = [4, 16, 8], strides = [1, 1, 1]} : vector<4x18x9xbf16> to vector<4x16x8xbf16>
    %218 = vector.extract_strided_slice %200 {offsets = [0, 2, 1], sizes = [4, 16, 8], strides = [1, 1, 1]} : vector<4x18x9xbf16> to vector<4x16x8xbf16>
    %219 = tpu.concatenate %201, %203, %205, %207, %209, %211, %213, %215, %217 in 0 : vector<4x16x8xbf16>, vector<4x16x8xbf16>, vector<4x16x8xbf16>, vector<4x16x8xbf16>, vector<4x16x8xbf16>, vector<4x16x8xbf16>, vector<4x16x8xbf16>, vector<4x16x8xbf16>, vector<4x16x8xbf16> -> vector<36x16x8xbf16>
    %220 = tpu.concatenate %202, %204, %206, %208, %210, %212, %214, %216, %218 in 0 : vector<4x16x8xbf16>, vector<4x16x8xbf16>, vector<4x16x8xbf16>, vector<4x16x8xbf16>, vector<4x16x8xbf16>, vector<4x16x8xbf16>, vector<4x16x8xbf16>, vector<4x16x8xbf16>, vector<4x16x8xbf16> -> vector<36x16x8xbf16>
    %221 = vector.extract_strided_slice %219 {offsets = [0, 0, 0], sizes = [36, 1, 8], strides = [1, 1, 1]} : vector<36x16x8xbf16> to vector<36x1x8xbf16>
    %222 = vector.shape_cast %221 : vector<36x1x8xbf16> to vector<36x8xbf16>
    %223 = vector.extract_strided_slice %219 {offsets = [0, 1, 0], sizes = [36, 1, 8], strides = [1, 1, 1]} : vector<36x16x8xbf16> to vector<36x1x8xbf16>
    %224 = vector.shape_cast %223 : vector<36x1x8xbf16> to vector<36x8xbf16>
    %225 = vector.extract_strided_slice %219 {offsets = [0, 2, 0], sizes = [36, 1, 8], strides = [1, 1, 1]} : vector<36x16x8xbf16> to vector<36x1x8xbf16>
    %226 = vector.shape_cast %225 : vector<36x1x8xbf16> to vector<36x8xbf16>
    %227 = vector.extract_strided_slice %219 {offsets = [0, 3, 0], sizes = [36, 1, 8], strides = [1, 1, 1]} : vector<36x16x8xbf16> to vector<36x1x8xbf16>
    %228 = vector.shape_cast %227 : vector<36x1x8xbf16> to vector<36x8xbf16>
    %229 = vector.extract_strided_slice %219 {offsets = [0, 4, 0], sizes = [36, 1, 8], strides = [1, 1, 1]} : vector<36x16x8xbf16> to vector<36x1x8xbf16>
    %230 = vector.shape_cast %229 : vector<36x1x8xbf16> to vector<36x8xbf16>
    %231 = vector.extract_strided_slice %219 {offsets = [0, 5, 0], sizes = [36, 1, 8], strides = [1, 1, 1]} : vector<36x16x8xbf16> to vector<36x1x8xbf16>
    %232 = vector.shape_cast %231 : vector<36x1x8xbf16> to vector<36x8xbf16>
    %233 = vector.extract_strided_slice %219 {offsets = [0, 6, 0], sizes = [36, 1, 8], strides = [1, 1, 1]} : vector<36x16x8xbf16> to vector<36x1x8xbf16>
    %234 = vector.shape_cast %233 : vector<36x1x8xbf16> to vector<36x8xbf16>
    %235 = vector.extract_strided_slice %219 {offsets = [0, 7, 0], sizes = [36, 1, 8], strides = [1, 1, 1]} : vector<36x16x8xbf16> to vector<36x1x8xbf16>
    %236 = vector.shape_cast %235 : vector<36x1x8xbf16> to vector<36x8xbf16>
    %237 = vector.extract_strided_slice %219 {offsets = [0, 8, 0], sizes = [36, 1, 8], strides = [1, 1, 1]} : vector<36x16x8xbf16> to vector<36x1x8xbf16>
    %238 = vector.shape_cast %237 : vector<36x1x8xbf16> to vector<36x8xbf16>
    %239 = vector.extract_strided_slice %219 {offsets = [0, 9, 0], sizes = [36, 1, 8], strides = [1, 1, 1]} : vector<36x16x8xbf16> to vector<36x1x8xbf16>
    %240 = vector.shape_cast %239 : vector<36x1x8xbf16> to vector<36x8xbf16>
    %241 = vector.extract_strided_slice %219 {offsets = [0, 10, 0], sizes = [36, 1, 8], strides = [1, 1, 1]} : vector<36x16x8xbf16> to vector<36x1x8xbf16>
    %242 = vector.shape_cast %241 : vector<36x1x8xbf16> to vector<36x8xbf16>
    %243 = vector.extract_strided_slice %219 {offsets = [0, 11, 0], sizes = [36, 1, 8], strides = [1, 1, 1]} : vector<36x16x8xbf16> to vector<36x1x8xbf16>
    %244 = vector.shape_cast %243 : vector<36x1x8xbf16> to vector<36x8xbf16>
    %245 = vector.extract_strided_slice %219 {offsets = [0, 12, 0], sizes = [36, 1, 8], strides = [1, 1, 1]} : vector<36x16x8xbf16> to vector<36x1x8xbf16>
    %246 = vector.shape_cast %245 : vector<36x1x8xbf16> to vector<36x8xbf16>
    %247 = vector.extract_strided_slice %219 {offsets = [0, 13, 0], sizes = [36, 1, 8], strides = [1, 1, 1]} : vector<36x16x8xbf16> to vector<36x1x8xbf16>
    %248 = vector.shape_cast %247 : vector<36x1x8xbf16> to vector<36x8xbf16>
    %249 = vector.extract_strided_slice %219 {offsets = [0, 14, 0], sizes = [36, 1, 8], strides = [1, 1, 1]} : vector<36x16x8xbf16> to vector<36x1x8xbf16>
    %250 = vector.shape_cast %249 : vector<36x1x8xbf16> to vector<36x8xbf16>
    %251 = vector.extract_strided_slice %219 {offsets = [0, 15, 0], sizes = [36, 1, 8], strides = [1, 1, 1]} : vector<36x16x8xbf16> to vector<36x1x8xbf16>
    %252 = vector.shape_cast %251 : vector<36x1x8xbf16> to vector<36x8xbf16>
    %253 = tpu.concatenate %222, %224, %226, %228, %230, %232, %234, %236, %238, %240, %242, %244, %246, %248, %250, %252 in 1 : vector<36x8xbf16>, vector<36x8xbf16>, vector<36x8xbf16>, vector<36x8xbf16>, vector<36x8xbf16>, vector<36x8xbf16>, vector<36x8xbf16>, vector<36x8xbf16>, vector<36x8xbf16>, vector<36x8xbf16>, vector<36x8xbf16>, vector<36x8xbf16>, vector<36x8xbf16>, vector<36x8xbf16>, vector<36x8xbf16>, vector<36x8xbf16> -> vector<36x128xbf16>
    %254 = vector.extract_strided_slice %220 {offsets = [0, 0, 0], sizes = [36, 1, 8], strides = [1, 1, 1]} : vector<36x16x8xbf16> to vector<36x1x8xbf16>
    %255 = vector.shape_cast %254 : vector<36x1x8xbf16> to vector<36x8xbf16>
    %256 = vector.extract_strided_slice %220 {offsets = [0, 1, 0], sizes = [36, 1, 8], strides = [1, 1, 1]} : vector<36x16x8xbf16> to vector<36x1x8xbf16>
    %257 = vector.shape_cast %256 : vector<36x1x8xbf16> to vector<36x8xbf16>
    %258 = vector.extract_strided_slice %220 {offsets = [0, 2, 0], sizes = [36, 1, 8], strides = [1, 1, 1]} : vector<36x16x8xbf16> to vector<36x1x8xbf16>
    %259 = vector.shape_cast %258 : vector<36x1x8xbf16> to vector<36x8xbf16>
    %260 = vector.extract_strided_slice %220 {offsets = [0, 3, 0], sizes = [36, 1, 8], strides = [1, 1, 1]} : vector<36x16x8xbf16> to vector<36x1x8xbf16>
    %261 = vector.shape_cast %260 : vector<36x1x8xbf16> to vector<36x8xbf16>
    %262 = vector.extract_strided_slice %220 {offsets = [0, 4, 0], sizes = [36, 1, 8], strides = [1, 1, 1]} : vector<36x16x8xbf16> to vector<36x1x8xbf16>
    %263 = vector.shape_cast %262 : vector<36x1x8xbf16> to vector<36x8xbf16>
    %264 = vector.extract_strided_slice %220 {offsets = [0, 5, 0], sizes = [36, 1, 8], strides = [1, 1, 1]} : vector<36x16x8xbf16> to vector<36x1x8xbf16>
    %265 = vector.shape_cast %264 : vector<36x1x8xbf16> to vector<36x8xbf16>
    %266 = vector.extract_strided_slice %220 {offsets = [0, 6, 0], sizes = [36, 1, 8], strides = [1, 1, 1]} : vector<36x16x8xbf16> to vector<36x1x8xbf16>
    %267 = vector.shape_cast %266 : vector<36x1x8xbf16> to vector<36x8xbf16>
    %268 = vector.extract_strided_slice %220 {offsets = [0, 7, 0], sizes = [36, 1, 8], strides = [1, 1, 1]} : vector<36x16x8xbf16> to vector<36x1x8xbf16>
    %269 = vector.shape_cast %268 : vector<36x1x8xbf16> to vector<36x8xbf16>
    %270 = vector.extract_strided_slice %220 {offsets = [0, 8, 0], sizes = [36, 1, 8], strides = [1, 1, 1]} : vector<36x16x8xbf16> to vector<36x1x8xbf16>
    %271 = vector.shape_cast %270 : vector<36x1x8xbf16> to vector<36x8xbf16>
    %272 = vector.extract_strided_slice %220 {offsets = [0, 9, 0], sizes = [36, 1, 8], strides = [1, 1, 1]} : vector<36x16x8xbf16> to vector<36x1x8xbf16>
    %273 = vector.shape_cast %272 : vector<36x1x8xbf16> to vector<36x8xbf16>
    %274 = vector.extract_strided_slice %220 {offsets = [0, 10, 0], sizes = [36, 1, 8], strides = [1, 1, 1]} : vector<36x16x8xbf16> to vector<36x1x8xbf16>
    %275 = vector.shape_cast %274 : vector<36x1x8xbf16> to vector<36x8xbf16>
    %276 = vector.extract_strided_slice %220 {offsets = [0, 11, 0], sizes = [36, 1, 8], strides = [1, 1, 1]} : vector<36x16x8xbf16> to vector<36x1x8xbf16>
    %277 = vector.shape_cast %276 : vector<36x1x8xbf16> to vector<36x8xbf16>
    %278 = vector.extract_strided_slice %220 {offsets = [0, 12, 0], sizes = [36, 1, 8], strides = [1, 1, 1]} : vector<36x16x8xbf16> to vector<36x1x8xbf16>
    %279 = vector.shape_cast %278 : vector<36x1x8xbf16> to vector<36x8xbf16>
    %280 = vector.extract_strided_slice %220 {offsets = [0, 13, 0], sizes = [36, 1, 8], strides = [1, 1, 1]} : vector<36x16x8xbf16> to vector<36x1x8xbf16>
    %281 = vector.shape_cast %280 : vector<36x1x8xbf16> to vector<36x8xbf16>
    %282 = vector.extract_strided_slice %220 {offsets = [0, 14, 0], sizes = [36, 1, 8], strides = [1, 1, 1]} : vector<36x16x8xbf16> to vector<36x1x8xbf16>
    %283 = vector.shape_cast %282 : vector<36x1x8xbf16> to vector<36x8xbf16>
    %284 = vector.extract_strided_slice %220 {offsets = [0, 15, 0], sizes = [36, 1, 8], strides = [1, 1, 1]} : vector<36x16x8xbf16> to vector<36x1x8xbf16>
    %285 = vector.shape_cast %284 : vector<36x1x8xbf16> to vector<36x8xbf16>
    %286 = tpu.concatenate %255, %257, %259, %261, %263, %265, %267, %269, %271, %273, %275, %277, %279, %281, %283, %285 in 1 : vector<36x8xbf16>, vector<36x8xbf16>, vector<36x8xbf16>, vector<36x8xbf16>, vector<36x8xbf16>, vector<36x8xbf16>, vector<36x8xbf16>, vector<36x8xbf16>, vector<36x8xbf16>, vector<36x8xbf16>, vector<36x8xbf16>, vector<36x8xbf16>, vector<36x8xbf16>, vector<36x8xbf16>, vector<36x8xbf16>, vector<36x8xbf16> -> vector<36x128xbf16>
    %cst_18 = arith.constant dense<0.000000e+00> : vector<8x128xf32>
    %287 = tpu.matmul %0, %253, %cst_18 {dimension_numbers = #tpu.dot_dimension_numbers<[1], [0], [0], [1], [0, 0, 1, 1], [], []>} : vector<8x36xbf16>, vector<36x128xbf16>, vector<8x128xf32> -> vector<8x128xf32>
    %288 = vector.broadcast %1 : vector<8x1xf32> to vector<8x128xf32>
    %289 = arith.addf %287, %288 : vector<8x128xf32>
    %cst_19 = arith.constant dense<0.000000e+00> : vector<8x128xf32>
    %290 = tpu.matmul %0, %286, %cst_19 {dimension_numbers = #tpu.dot_dimension_numbers<[1], [0], [0], [1], [0, 0, 1, 1], [], []>} : vector<8x36xbf16>, vector<36x128xbf16>, vector<8x128xf32> -> vector<8x128xf32>
    %291 = vector.broadcast %1 : vector<8x1xf32> to vector<8x128xf32>
    %292 = arith.addf %290, %291 : vector<8x128xf32>
    %cst_20 = arith.constant 0.000000e+00 : f32
    %293 = vector.broadcast %cst_20 : f32 to vector<8x128xf32>
    %294 = arith.maximumf %289, %293 : vector<8x128xf32>
    %295 = arith.truncf %294 : vector<8x128xf32> to vector<8x128xbf16>
    %cst_21 = arith.constant 0.000000e+00 : f32
    %296 = vector.broadcast %cst_21 : f32 to vector<8x128xf32>
    %297 = arith.maximumf %292, %296 : vector<8x128xf32>
    %298 = arith.truncf %297 : vector<8x128xf32> to vector<8x128xbf16>
    %cst_22 = arith.constant 0.000000e+00 : bf16
    %299 = vector.broadcast %cst_22 : bf16 to vector<8x8xbf16>
    %cst_23 = arith.constant 0.000000e+00 : bf16
    %300 = vector.broadcast %cst_23 : bf16 to vector<8x1xbf16>
    %301 = vector.extract_strided_slice %298 {offsets = [0, 0], sizes = [8, 8], strides = [1, 1]} : vector<8x128xbf16> to vector<8x8xbf16>
    %302 = vector.extract_strided_slice %301 {offsets = [0, 0], sizes = [8, 7], strides = [1, 1]} : vector<8x8xbf16> to vector<8x7xbf16>
    %303 = tpu.concatenate %300, %302 in 1 : vector<8x1xbf16>, vector<8x7xbf16> -> vector<8x8xbf16>
    %304 = vector.extract_strided_slice %295 {offsets = [0, 0], sizes = [8, 8], strides = [1, 1]} : vector<8x128xbf16> to vector<8x8xbf16>
    %305 = vector.extract_strided_slice %298 {offsets = [0, 0], sizes = [8, 8], strides = [1, 1]} : vector<8x128xbf16> to vector<8x8xbf16>
    %306 = vector.extract_strided_slice %298 {offsets = [0, 8], sizes = [8, 8], strides = [1, 1]} : vector<8x128xbf16> to vector<8x8xbf16>
    %307 = vector.extract_strided_slice %306 {offsets = [0, 0], sizes = [8, 7], strides = [1, 1]} : vector<8x8xbf16> to vector<8x7xbf16>
    %308 = tpu.concatenate %300, %307 in 1 : vector<8x1xbf16>, vector<8x7xbf16> -> vector<8x8xbf16>
    %309 = vector.extract_strided_slice %295 {offsets = [0, 8], sizes = [8, 8], strides = [1, 1]} : vector<8x128xbf16> to vector<8x8xbf16>
    %310 = vector.extract_strided_slice %298 {offsets = [0, 8], sizes = [8, 8], strides = [1, 1]} : vector<8x128xbf16> to vector<8x8xbf16>
    %311 = tpu.concatenate %299, %299, %299, %303, %304, %305, %308, %309, %310 in 0 : vector<8x8xbf16>, vector<8x8xbf16>, vector<8x8xbf16>, vector<8x8xbf16>, vector<8x8xbf16>, vector<8x8xbf16>, vector<8x8xbf16>, vector<8x8xbf16>, vector<8x8xbf16> -> vector<72x8xbf16>
    %312 = vector.extract_strided_slice %298 {offsets = [0, 16], sizes = [8, 8], strides = [1, 1]} : vector<8x128xbf16> to vector<8x8xbf16>
    %313 = vector.extract_strided_slice %312 {offsets = [0, 0], sizes = [8, 7], strides = [1, 1]} : vector<8x8xbf16> to vector<8x7xbf16>
    %314 = tpu.concatenate %300, %313 in 1 : vector<8x1xbf16>, vector<8x7xbf16> -> vector<8x8xbf16>
    %315 = vector.extract_strided_slice %295 {offsets = [0, 16], sizes = [8, 8], strides = [1, 1]} : vector<8x128xbf16> to vector<8x8xbf16>
    %316 = vector.extract_strided_slice %298 {offsets = [0, 16], sizes = [8, 8], strides = [1, 1]} : vector<8x128xbf16> to vector<8x8xbf16>
    %317 = vector.extract_strided_slice %298 {offsets = [0, 24], sizes = [8, 8], strides = [1, 1]} : vector<8x128xbf16> to vector<8x8xbf16>
    %318 = vector.extract_strided_slice %317 {offsets = [0, 0], sizes = [8, 7], strides = [1, 1]} : vector<8x8xbf16> to vector<8x7xbf16>
    %319 = tpu.concatenate %300, %318 in 1 : vector<8x1xbf16>, vector<8x7xbf16> -> vector<8x8xbf16>
    %320 = vector.extract_strided_slice %295 {offsets = [0, 24], sizes = [8, 8], strides = [1, 1]} : vector<8x128xbf16> to vector<8x8xbf16>
    %321 = vector.extract_strided_slice %298 {offsets = [0, 24], sizes = [8, 8], strides = [1, 1]} : vector<8x128xbf16> to vector<8x8xbf16>
    %322 = tpu.concatenate %308, %309, %310, %314, %315, %316, %319, %320, %321 in 0 : vector<8x8xbf16>, vector<8x8xbf16>, vector<8x8xbf16>, vector<8x8xbf16>, vector<8x8xbf16>, vector<8x8xbf16>, vector<8x8xbf16>, vector<8x8xbf16>, vector<8x8xbf16> -> vector<72x8xbf16>
    %323 = vector.extract_strided_slice %298 {offsets = [0, 32], sizes = [8, 8], strides = [1, 1]} : vector<8x128xbf16> to vector<8x8xbf16>
    %324 = vector.extract_strided_slice %323 {offsets = [0, 0], sizes = [8, 7], strides = [1, 1]} : vector<8x8xbf16> to vector<8x7xbf16>
    %325 = tpu.concatenate %300, %324 in 1 : vector<8x1xbf16>, vector<8x7xbf16> -> vector<8x8xbf16>
    %326 = vector.extract_strided_slice %295 {offsets = [0, 32], sizes = [8, 8], strides = [1, 1]} : vector<8x128xbf16> to vector<8x8xbf16>
    %327 = vector.extract_strided_slice %298 {offsets = [0, 32], sizes = [8, 8], strides = [1, 1]} : vector<8x128xbf16> to vector<8x8xbf16>
    %328 = vector.extract_strided_slice %298 {offsets = [0, 40], sizes = [8, 8], strides = [1, 1]} : vector<8x128xbf16> to vector<8x8xbf16>
    %329 = vector.extract_strided_slice %328 {offsets = [0, 0], sizes = [8, 7], strides = [1, 1]} : vector<8x8xbf16> to vector<8x7xbf16>
    %330 = tpu.concatenate %300, %329 in 1 : vector<8x1xbf16>, vector<8x7xbf16> -> vector<8x8xbf16>
    %331 = vector.extract_strided_slice %295 {offsets = [0, 40], sizes = [8, 8], strides = [1, 1]} : vector<8x128xbf16> to vector<8x8xbf16>
    %332 = vector.extract_strided_slice %298 {offsets = [0, 40], sizes = [8, 8], strides = [1, 1]} : vector<8x128xbf16> to vector<8x8xbf16>
    %333 = tpu.concatenate %319, %320, %321, %325, %326, %327, %330, %331, %332 in 0 : vector<8x8xbf16>, vector<8x8xbf16>, vector<8x8xbf16>, vector<8x8xbf16>, vector<8x8xbf16>, vector<8x8xbf16>, vector<8x8xbf16>, vector<8x8xbf16>, vector<8x8xbf16> -> vector<72x8xbf16>
    %334 = vector.extract_strided_slice %298 {offsets = [0, 48], sizes = [8, 8], strides = [1, 1]} : vector<8x128xbf16> to vector<8x8xbf16>
    %335 = vector.extract_strided_slice %334 {offsets = [0, 0], sizes = [8, 7], strides = [1, 1]} : vector<8x8xbf16> to vector<8x7xbf16>
    %336 = tpu.concatenate %300, %335 in 1 : vector<8x1xbf16>, vector<8x7xbf16> -> vector<8x8xbf16>
    %337 = vector.extract_strided_slice %295 {offsets = [0, 48], sizes = [8, 8], strides = [1, 1]} : vector<8x128xbf16> to vector<8x8xbf16>
    %338 = vector.extract_strided_slice %298 {offsets = [0, 48], sizes = [8, 8], strides = [1, 1]} : vector<8x128xbf16> to vector<8x8xbf16>
    %339 = vector.extract_strided_slice %298 {offsets = [0, 56], sizes = [8, 8], strides = [1, 1]} : vector<8x128xbf16> to vector<8x8xbf16>
    %340 = vector.extract_strided_slice %339 {offsets = [0, 0], sizes = [8, 7], strides = [1, 1]} : vector<8x8xbf16> to vector<8x7xbf16>
    %341 = tpu.concatenate %300, %340 in 1 : vector<8x1xbf16>, vector<8x7xbf16> -> vector<8x8xbf16>
    %342 = vector.extract_strided_slice %295 {offsets = [0, 56], sizes = [8, 8], strides = [1, 1]} : vector<8x128xbf16> to vector<8x8xbf16>
    %343 = vector.extract_strided_slice %298 {offsets = [0, 56], sizes = [8, 8], strides = [1, 1]} : vector<8x128xbf16> to vector<8x8xbf16>
    %344 = tpu.concatenate %330, %331, %332, %336, %337, %338, %341, %342, %343 in 0 : vector<8x8xbf16>, vector<8x8xbf16>, vector<8x8xbf16>, vector<8x8xbf16>, vector<8x8xbf16>, vector<8x8xbf16>, vector<8x8xbf16>, vector<8x8xbf16>, vector<8x8xbf16> -> vector<72x8xbf16>
    %345 = vector.extract_strided_slice %298 {offsets = [0, 64], sizes = [8, 8], strides = [1, 1]} : vector<8x128xbf16> to vector<8x8xbf16>
    %346 = vector.extract_strided_slice %345 {offsets = [0, 0], sizes = [8, 7], strides = [1, 1]} : vector<8x8xbf16> to vector<8x7xbf16>
    %347 = tpu.concatenate %300, %346 in 1 : vector<8x1xbf16>, vector<8x7xbf16> -> vector<8x8xbf16>
    %348 = vector.extract_strided_slice %295 {offsets = [0, 64], sizes = [8, 8], strides = [1, 1]} : vector<8x128xbf16> to vector<8x8xbf16>
    %349 = vector.extract_strided_slice %298 {offsets = [0, 64], sizes = [8, 8], strides = [1, 1]} : vector<8x128xbf16> to vector<8x8xbf16>
    %350 = vector.extract_strided_slice %298 {offsets = [0, 72], sizes = [8, 8], strides = [1, 1]} : vector<8x128xbf16> to vector<8x8xbf16>
    %351 = vector.extract_strided_slice %350 {offsets = [0, 0], sizes = [8, 7], strides = [1, 1]} : vector<8x8xbf16> to vector<8x7xbf16>
    %352 = tpu.concatenate %300, %351 in 1 : vector<8x1xbf16>, vector<8x7xbf16> -> vector<8x8xbf16>
    %353 = vector.extract_strided_slice %295 {offsets = [0, 72], sizes = [8, 8], strides = [1, 1]} : vector<8x128xbf16> to vector<8x8xbf16>
    %354 = vector.extract_strided_slice %298 {offsets = [0, 72], sizes = [8, 8], strides = [1, 1]} : vector<8x128xbf16> to vector<8x8xbf16>
    %355 = tpu.concatenate %341, %342, %343, %347, %348, %349, %352, %353, %354 in 0 : vector<8x8xbf16>, vector<8x8xbf16>, vector<8x8xbf16>, vector<8x8xbf16>, vector<8x8xbf16>, vector<8x8xbf16>, vector<8x8xbf16>, vector<8x8xbf16>, vector<8x8xbf16> -> vector<72x8xbf16>
    %356 = vector.extract_strided_slice %298 {offsets = [0, 80], sizes = [8, 8], strides = [1, 1]} : vector<8x128xbf16> to vector<8x8xbf16>
    %357 = vector.extract_strided_slice %356 {offsets = [0, 0], sizes = [8, 7], strides = [1, 1]} : vector<8x8xbf16> to vector<8x7xbf16>
    %358 = tpu.concatenate %300, %357 in 1 : vector<8x1xbf16>, vector<8x7xbf16> -> vector<8x8xbf16>
    %359 = vector.extract_strided_slice %295 {offsets = [0, 80], sizes = [8, 8], strides = [1, 1]} : vector<8x128xbf16> to vector<8x8xbf16>
    %360 = vector.extract_strided_slice %298 {offsets = [0, 80], sizes = [8, 8], strides = [1, 1]} : vector<8x128xbf16> to vector<8x8xbf16>
    %361 = vector.extract_strided_slice %298 {offsets = [0, 88], sizes = [8, 8], strides = [1, 1]} : vector<8x128xbf16> to vector<8x8xbf16>
    %362 = vector.extract_strided_slice %361 {offsets = [0, 0], sizes = [8, 7], strides = [1, 1]} : vector<8x8xbf16> to vector<8x7xbf16>
    %363 = tpu.concatenate %300, %362 in 1 : vector<8x1xbf16>, vector<8x7xbf16> -> vector<8x8xbf16>
    %364 = vector.extract_strided_slice %295 {offsets = [0, 88], sizes = [8, 8], strides = [1, 1]} : vector<8x128xbf16> to vector<8x8xbf16>
    %365 = vector.extract_strided_slice %298 {offsets = [0, 88], sizes = [8, 8], strides = [1, 1]} : vector<8x128xbf16> to vector<8x8xbf16>
    %366 = tpu.concatenate %352, %353, %354, %358, %359, %360, %363, %364, %365 in 0 : vector<8x8xbf16>, vector<8x8xbf16>, vector<8x8xbf16>, vector<8x8xbf16>, vector<8x8xbf16>, vector<8x8xbf16>, vector<8x8xbf16>, vector<8x8xbf16>, vector<8x8xbf16> -> vector<72x8xbf16>
    %367 = vector.extract_strided_slice %298 {offsets = [0, 96], sizes = [8, 8], strides = [1, 1]} : vector<8x128xbf16> to vector<8x8xbf16>
    %368 = vector.extract_strided_slice %367 {offsets = [0, 0], sizes = [8, 7], strides = [1, 1]} : vector<8x8xbf16> to vector<8x7xbf16>
    %369 = tpu.concatenate %300, %368 in 1 : vector<8x1xbf16>, vector<8x7xbf16> -> vector<8x8xbf16>
    %370 = vector.extract_strided_slice %295 {offsets = [0, 96], sizes = [8, 8], strides = [1, 1]} : vector<8x128xbf16> to vector<8x8xbf16>
    %371 = vector.extract_strided_slice %298 {offsets = [0, 96], sizes = [8, 8], strides = [1, 1]} : vector<8x128xbf16> to vector<8x8xbf16>
    %372 = vector.extract_strided_slice %298 {offsets = [0, 104], sizes = [8, 8], strides = [1, 1]} : vector<8x128xbf16> to vector<8x8xbf16>
    %373 = vector.extract_strided_slice %372 {offsets = [0, 0], sizes = [8, 7], strides = [1, 1]} : vector<8x8xbf16> to vector<8x7xbf16>
    %374 = tpu.concatenate %300, %373 in 1 : vector<8x1xbf16>, vector<8x7xbf16> -> vector<8x8xbf16>
    %375 = vector.extract_strided_slice %295 {offsets = [0, 104], sizes = [8, 8], strides = [1, 1]} : vector<8x128xbf16> to vector<8x8xbf16>
    %376 = vector.extract_strided_slice %298 {offsets = [0, 104], sizes = [8, 8], strides = [1, 1]} : vector<8x128xbf16> to vector<8x8xbf16>
    %377 = tpu.concatenate %363, %364, %365, %369, %370, %371, %374, %375, %376 in 0 : vector<8x8xbf16>, vector<8x8xbf16>, vector<8x8xbf16>, vector<8x8xbf16>, vector<8x8xbf16>, vector<8x8xbf16>, vector<8x8xbf16>, vector<8x8xbf16>, vector<8x8xbf16> -> vector<72x8xbf16>
    %378 = vector.extract_strided_slice %298 {offsets = [0, 112], sizes = [8, 8], strides = [1, 1]} : vector<8x128xbf16> to vector<8x8xbf16>
    %379 = vector.extract_strided_slice %378 {offsets = [0, 0], sizes = [8, 7], strides = [1, 1]} : vector<8x8xbf16> to vector<8x7xbf16>
    %380 = tpu.concatenate %300, %379 in 1 : vector<8x1xbf16>, vector<8x7xbf16> -> vector<8x8xbf16>
    %381 = vector.extract_strided_slice %295 {offsets = [0, 112], sizes = [8, 8], strides = [1, 1]} : vector<8x128xbf16> to vector<8x8xbf16>
    %382 = vector.extract_strided_slice %298 {offsets = [0, 112], sizes = [8, 8], strides = [1, 1]} : vector<8x128xbf16> to vector<8x8xbf16>
    %383 = vector.extract_strided_slice %298 {offsets = [0, 120], sizes = [8, 8], strides = [1, 1]} : vector<8x128xbf16> to vector<8x8xbf16>
    %384 = vector.extract_strided_slice %383 {offsets = [0, 0], sizes = [8, 7], strides = [1, 1]} : vector<8x8xbf16> to vector<8x7xbf16>
    %385 = tpu.concatenate %300, %384 in 1 : vector<8x1xbf16>, vector<8x7xbf16> -> vector<8x8xbf16>
    %386 = vector.extract_strided_slice %295 {offsets = [0, 120], sizes = [8, 8], strides = [1, 1]} : vector<8x128xbf16> to vector<8x8xbf16>
    %387 = vector.extract_strided_slice %298 {offsets = [0, 120], sizes = [8, 8], strides = [1, 1]} : vector<8x128xbf16> to vector<8x8xbf16>
    %388 = tpu.concatenate %374, %375, %376, %380, %381, %382, %385, %386, %387 in 0 : vector<8x8xbf16>, vector<8x8xbf16>, vector<8x8xbf16>, vector<8x8xbf16>, vector<8x8xbf16>, vector<8x8xbf16>, vector<8x8xbf16>, vector<8x8xbf16>, vector<8x8xbf16> -> vector<72x8xbf16>
    %389 = tpu.concatenate %311, %322, %333, %344, %355, %366, %377, %388 in 1 : vector<72x8xbf16>, vector<72x8xbf16>, vector<72x8xbf16>, vector<72x8xbf16>, vector<72x8xbf16>, vector<72x8xbf16>, vector<72x8xbf16>, vector<72x8xbf16> -> vector<72x64xbf16>
    %cst_24 = arith.constant dense<0.000000e+00> : vector<8x64xf32>
    %390 = tpu.matmul %2, %389, %cst_24 {dimension_numbers = #tpu.dot_dimension_numbers<[1], [0], [0], [1], [0, 0, 1, 1], [], []>} : vector<8x72xbf16>, vector<72x64xbf16>, vector<8x64xf32> -> vector<8x64xf32>
    %391 = tpu.concatenate %196, %390 in 1 : vector<8x64xf32>, vector<8x64xf32> -> vector<8x128xf32>
    %c0_25 = arith.constant 0 : index
    %c0_26 = arith.constant 0 : index
    %c0_27 = arith.constant 0 : index
    %392 = vector.load %arg5[%c0_25, %c0_26, %c0_27] : memref<1x8x128xf32, #tpu.memory_space<vmem>>, vector<1x8x128xf32>
    %393 = vector.shape_cast %392 : vector<1x8x128xf32> to vector<8x128xf32>
    %394 = vector.shape_cast %391 : vector<8x128xf32> to vector<1x8x128xf32>
    tpu.vector_store %arg5[%c0_25, %c0_26, %c0_27], %394 {strides = array<i32>} : memref<1x8x128xf32, #tpu.memory_space<vmem>>, vector<1x8x128xf32>,
    return
  }
  func.func @transform_0(%arg0: i32) -> (i32, i32, i32, i32) {
    %c0_i32 = arith.constant 0 : i32
    %c0_i32_0 = arith.constant 0 : i32
    %c0_i32_1 = arith.constant 0 : i32
    %c0_i32_2 = arith.constant 0 : i32
    return %arg0, %c0_i32, %c0_i32_0, %c0_i32_1 : i32, i32, i32, i32
  }
  func.func @transform_1(%arg0: i32) -> (i32, i32) {
    %c0_i32 = arith.constant 0 : i32
    %c0_i32_0 = arith.constant 0 : i32
    %c0_i32_1 = arith.constant 0 : i32
    return %c0_i32, %c0_i32_0 : i32, i32
  }
  func.func @transform_2(%arg0: i32) -> (i32, i32) {
    %c0_i32 = arith.constant 0 : i32
    %c0_i32_0 = arith.constant 0 : i32
    %c0_i32_1 = arith.constant 0 : i32
    return %c0_i32, %c0_i32_0 : i32, i32
  }
  func.func @transform_3(%arg0: i32) -> (i32, i32) {
    %c0_i32 = arith.constant 0 : i32
    %c0_i32_0 = arith.constant 0 : i32
    %c0_i32_1 = arith.constant 0 : i32
    return %c0_i32, %c0_i32_0 : i32, i32
  }
  func.func @transform_4(%arg0: i32) -> (i32, i32, i32) {
    %c0_i32 = arith.constant 0 : i32
    %c0_i32_0 = arith.constant 0 : i32
    %c0_i32_1 = arith.constant 0 : i32
    return %arg0, %c0_i32, %c0_i32_0 : i32, i32, i32
  }
}

</mosaic_0001>

<bundles_post_ra>
// kernel: tpu_custom_call.1
= control target key start
LH: loop header
LB: loop body
LE: loop exit
PB: predicated region body
PF: predicated region fallthrough
CT: control target
= control target key end

     0   :  { %s6120_s19 = smov 119   ;;  %s13005_s0 = inlined_call_operand.vmem [shape: bf16[2,4,18,18], index: 0, kind: input, shape index: {}]   ;;  %s13006_s1 = inlined_call_operand.vmem [shape: bf16[8,36], index: 1, kind: input, shape index: {}]   ;;  %s13007_s2 = inlined_call_operand.vmem [shape: f32[8,1], index: 2, kind: input, shape index: {}]   ;;  %s13008_s3 = inlined_call_operand.vmem [shape: bf16[8,72], index: 3, kind: input, shape index: {}]   ;;  %s13009_s4 = inlined_call_operand.hbm [shape: f32[1,8,128], index: 4, kind: output, shape index: {}]  }
   0x1   :  { %v6197_v0 = vld [vmem:[%s13005_s0 + $0xc] sm:$0xf]  ;;  %v6202_v1 = vld [vmem:[%s13005_s0] sm:$0xf]  ;;  %v6211_v2 = vld [vmem:[%s13005_s0 + $0x18] sm:$0xf] }
   0x2   :  { %46 = vrot.lane.b32.xlu1 %v6197_v0, %s6120_s19  ;;  %42 = vrot.lane.b32.xlu0 %v6202_v1, %s6120_s19 }
   0x3   :  { %50 = vrot.lane.b32.xlu2 %v6211_v2, %s6120_s19 }
   0x4   :  { %9 = vsyncpa [#allocation3], 0  ;;  %v6218_v3 = vld [vmem:[%s13005_s0 + $0x10] sm:$0xf]  ;;  %v6223_v4 = vld [vmem:[%s13005_s0 + $0x4] sm:$0xf] }
   0x5   :  { %v6228_v5 = vld [vmem:[%s13005_s0 + $0x1c] sm:$0xf]  ;;  %v6239_v6 = vld [vmem:[%s13005_s0 + $0x28] sm:$0xf]  ;;  %v6244_v7 = vld [vmem:[%s13005_s0 + $0x24] sm:$0xf] }
   0x6   :  { %s6121_s6 = smov 127   ;;  %v78_v8 = vshrl.u32 %v6202_v1, 16  ;;  %v81_v9 = vshll.u32 %v6202_v1, 16  ;;  %v91_v10 = vshrl.u32 %v6223_v4, 16  ;;  %v87_v13 = vshll.u32 %v6223_v4, 16  ;;  %s6122_s15 = smov 8  }
   0x7   :  { %v102_v15 = vshrl.u32 %v6197_v0, 16  ;;  %v105_v16 = vshll.u32 %v6197_v0, 16  ;;  %v111_v17 = vshll.u32 %v6218_v3, 16  ;;  %v115_v18 = vshrl.u32 %v6218_v3, 16  ;;  %v6269_v19 = vld [vmem:[%s13005_s0 + $0x8] sm:$0x1] }
   0x8   :  { %v80_v11 = vrot.slane %v78_v8, 4  ;;  %v83_v12 = vrot.slane %v81_v9, 5  ;;  %v93_v14 = vrot.slane %v91_v10, 4  ;;  %v89_v21 = vrot.slane %v87_v13, 5  ;;  %v6281_v31 = vld [vmem:[%s13005_s0 + $0x14] sm:$0x1] }
   0x9   :  { %vm74_vm0 = vsmask.f32 3328  ;;  %vm75_vm1 = vsmask.f32 7440  ;;  %v97_v23 = vshll.u32 %v6269_v19, 16  ;;  %v126_v24 = vshrl.u32 %v6211_v2, 16 }
   0xa   :  { %48 = vrot.lane.b32.xlu1 %v6218_v3, %s6120_s19  ;;  %44 = vrot.lane.b32.xlu0 %v6223_v4, %s6120_s19  ;;  %v84_v20 = vor.u32 %v83_v12, %v80_v11  ;;  %v94_v22 = vor.u32 %v93_v14, %v89_v21  ;;  %v129_v25 = vshll.u32 %v6211_v2, 16  ;;  %v104_v26 = vrot.slane %v102_v15, 4  ;;  %vm6283_vm2 = vmor %vm74_vm0, %vm75_vm1  ;;  %v6311_v56 = vld [vmem:[%s13005_s0 + $0x20] sm:$0x1]  ;;  %v6326_v61 = vld [vmem:[%s13005_s0 + $0x2c] sm:$0x1] }
   0xb   :  { %52 = vrot.lane.b32.xlu2 %v6228_v5, %s6120_s19  ;;  %v107_v27 = vrot.slane %v105_v16, 5  ;;  %v113_v28 = vrot.slane %v111_v17, 5  ;;  %v117_v29 = vrot.slane %v115_v18, 4  ;;  %v13436_v32 = vmov 0  ;;  %s6123_s16 = smov 16   ;;  %s6124_s17 = smov 24  }
   0xc   :  { %v85_v30 = vrot.slane %v84_v20, 4  ;;  %v13437_v32 = vsel %vm6283_vm2, 4294967295, %v13436_v32  ;;  %v95_v33 = vrot.slane %v94_v22, 4  ;;  %v99_v34 = vrot.slane %v97_v23, 5  ;;  %s6125_s18 = smov 32   ;;  %s6126_s20 = smov 40  }
   0xd   :  { %13438 = vst [vmem:[#allocation5_spill] sm:$0xff] %v13437_v32  ;;  %v128_v35 = vrot.slane %v126_v24, 4  ;;  %v131_v36 = vrot.slane %v129_v25, 5  ;;  %v108_v37 = vor.u32 %v107_v27, %v104_v26  ;;  %v118_v38 = vor.u32 %v117_v29, %v113_v28  ;;  %s6127_s21 = smov 48   ;;  %s6128_s22 = smov 56  }
   0xe   :  { %v121_v39 = vshll.u32 %v6281_v31, 16  ;;  %v135_v40 = vshll.u32 %v6228_v5, 16  ;;  %v6293_v41 = vsel %vm6283_vm2, %v85_v30, %v89_v21  ;;  %v139_v42 = vshrl.u32 %v6228_v5, 16  ;;  %s6129_s23 = smov 64   ;;  %s6130_s24 = smov 72  }
   0xf   :  { %v150_v43 = vshrl.u32 %v6244_v7, 16  ;;  %v153_v44 = vshll.u32 %v6244_v7, 16  ;;  %v6300_v45 = vsel %vm6283_vm2, %v95_v33, %v99_v34  ;;  %v132_v46 = vor.u32 %v131_v36, %v128_v35  ;;  %s6131_s25 = smov 80   ;;  %s6132_s26 = smov 88  }
  0x10   :  { %v163_v47 = vshrl.u32 %v6239_v6, 16  ;;  %v109_v48 = vrot.slane %v108_v37, 4  ;;  %v119_v49 = vrot.slane %v118_v38, 4  ;;  %v123_v50 = vrot.slane %v121_v39, 5  ;;  %s6133_s27 = smov 96   ;;  %s6134_s28 = smov 104  }
  0x11   :  { %v137_v51 = vrot.slane %v135_v40, 5  ;;  %v141_v52 = vrot.slane %v139_v42, 4  ;;  %v152_v53 = vrot.slane %v150_v43, 4  ;;  %v155_v54 = vrot.slane %v153_v44, 5  ;;  %s13250_s29 = smov 112   ;;  %s6136_s30 = smov 120  }
  0x12   :  { %56 = vrot.lane.b32.xlu1 %v6239_v6, %s6120_s19  ;;  %54 = vrot.lane.b32.xlu0 %v6244_v7, %s6120_s19  ;;  %v159_v55 = vshll.u32 %v6239_v6, 16  ;;  %v133_v57 = vrot.slane %v132_v46, 4  ;;  %v165_v58 = vrot.slane %v163_v47, 4  ;;  %v6317_v59 = vsel %vm6283_vm2, %v109_v48, %v113_v28  ;;  %s6137_s5 = smov 7   ;;  %s13197_s7 = smov 15  }
  0x13   :  { %58 = vrot.lane.b32.xlu2 %v6202_v1, %s6121_s6  ;;  %v6321_v60 = vsel %vm6283_vm2, %v119_v49, %v123_v50  ;;  %v142_v62 = vor.u32 %v141_v52, %v137_v51  ;;  %v145_v63 = vshll.u32 %v6311_v56, 16  ;;  %v156_v8 = vor.u32 %v155_v54, %v152_v53  ;;  %s13199_s8 = smov 23   ;;  %s6140_s9 = smov 31  }
  0x14   :  { %v161_v9 = vrot.slane %v159_v55, 5  ;;  %v6331_v10 = vsel %vm6283_vm2, %v133_v57, %v137_v51  ;;  %v169_v12 = vshll.u32 %v6326_v61, 16  ;;  %vm209_vm3 = vcmask 1042432   ;;  %s13201_s10 = smov 39   ;;  %s13203_s11 = smov 47  }
  0x15   :  { %v143_v13 = vrot.slane %v142_v62, 4  ;;  %v147_v14 = vrot.slane %v145_v63, 5  ;;  %v157_v15 = vrot.slane %v156_v8, 4  ;;  %vm210_vm4 = vcmask 1046532   ;;  %s13208_s12 = smov 55   ;;  %s6144_s13 = smov 63  }
  0x16   :  { %v166_v11 = vor.u32 %v165_v58, %v161_v9  ;;  %v171_v17 = vrot.slane %v169_v12, 5  ;;  %v5825_v22 = vrot.slane %v6202_v1, 9  ;;  %v214_v23 = vrot.slane %v6223_v4, 5  ;;  %vm6372_vm5 = vmor %vm209_vm3, %vm210_vm4  ;;  %s6145_s14 = smov 71  }
  0x17   :  { %v6342_v18 = vsel %vm6283_vm2, %v143_v13, %v147_v14  ;;  %v6346_v20 = vsel %vm6283_vm2, %v157_v15, %v161_v9  ;;  %v13439_v24 = vmov 0  ;;  %v217_v27 = vrot.slane %v6269_v19, 5 }
  0x18   :  { %v167_v16 = vrot.slane %v166_v11, 4  ;;  %v13440_v24 = vsel %vm6372_vm5, 4294967295, %v13439_v24  ;;  %v6378_v25 = vsel %vm6372_vm5, %v5825_v22, %v214_v23  ;;  %v216_v26 = vrot.slane %v214_v23, 4 }
  0x19   :  { %13441 = vst [vmem:[#allocation6_spill] sm:$0xff] %v13440_v24  ;;  %v5826_v28 = vrot.slane %v6197_v0, 9  ;;  %v221_v29 = vrot.slane %v6218_v3, 5  ;;  %v224_v33 = vrot.slane %v6281_v31, 5  ;;  %v228_v19 = vrot.slane %v6228_v5, 5 }
  0x1a   :  { %62 = vrot.lane.b32.xlu1 %v6197_v0, %s6121_s6  ;;  %60 = vrot.lane.b32.xlu0 %v6223_v4, %s6121_s6  ;;  %v6350_v21 = vsel %vm6283_vm2, %v167_v16, %v171_v17  ;;  %v6392_v34 = vsel %vm6372_vm5, %v216_v26, %v217_v27  ;;  %v5827_v31 = vrot.slane %v6211_v2, 9  ;;  %v231_v38 = vrot.slane %v6311_v56, 5 }
  0x1b   :  { %64 = vrot.lane.b32.xlu2 %v6218_v3, %s6121_s6  ;;  %v223_v30 = vrot.slane %v221_v29, 4  ;;  %v6396_v35 = vsel %vm6372_vm5, %v5826_v28, %v221_v29  ;;  %v230_v37 = vrot.slane %v228_v19, 4  ;;  %v321_v39 = vunpack.c.l.b16 %v6197_v0 }
  0x1c   :  { %v5828_v40 = vrot.slane %v6244_v7, 9  ;;  %v320_v42 = vunpack.c.l.b16 %v6202_v1  ;;  %v1002_v43 = vunpack.c.l.b16 %v6218_v3  ;;  %v1001_v46 = vunpack.c.l.b16 %v6223_v4 }
  0x1d   :  { %v6401_v36 = vsel %vm6372_vm5, %v223_v30, %v224_v33  ;;  %v6420_v47 = vsel %vm6372_vm5, %v5827_v31, %v228_v19  ;;  %v6424_v48 = vsel %vm6372_vm5, %v230_v37, %v231_v38  ;;  %v235_v49 = vrot.slane %v6239_v6, 5 }
  0x1e   :  { %13442 = vst [vmem:[#allocation7_spill] sm:$0xff] %v6424_v48  ;;  %v1004_v50 = vunpack.c.l.b16 %v6239_v6  ;;  %v6428_v51 = vunpack.i.l.s16 %v321_v39  ;;  %v6434_v53 = vunpack.i.l.s16 %v320_v42  ;;  %v6436_v54 = vunpack.i.l.s16 %v1002_v43 }
  0x1f   :  { %v6432_v52 = vsel %vm6372_vm5, %v5828_v40, %v235_v49  ;;  %v323_v55 = vunpack.c.l.b16 %v6244_v7  ;;  %v322_v56 = vunpack.c.l.b16 %v6211_v2  ;;  %v6444_v57 = vunpack.i.l.s16 %v1001_v46 }
  0x20   :  { %13443 = vst [vmem:[#allocation8_spill] sm:$0xff] %v6428_v51  ;;  %v1003_v58 = vunpack.c.l.b16 %v6228_v5  ;;  %v237_v62 = vrot.slane %v235_v49, 4  ;;  %v238_v63 = vrot.slane %v6326_v61, 5  ;;  %v6448_v8 = vunpack.i.l.s16 %v1004_v50 }
  0x21   :  { %13444 = vst [vmem:[#allocation9_spill] sm:$0xff] %v6432_v52  ;;  %v332_v9 = vunpack.c.l.b16 %v6293_v41  ;;  %v333_v11 = vunpack.c.l.b16 %v6317_v59  ;;  %v1014_v12 = vunpack.c.l.b16 %v6321_v60  ;;  %v1015_v13 = vunpack.c.l.b16 %v6342_v18 }
  0x22   :  { %68 = vrot.lane.b32.xlu1 %v6228_v5, %s6121_s6  ;;  %66 = vrot.lane.b32.xlu0 %v6211_v2, %s6121_s6  ;;  %13445 = vst [vmem:[#allocation10_spill] sm:$0xff] %v6434_v53  ;;  %v335_v14 = vunpack.c.l.b16 %v6346_v20  ;;  %v1013_v15 = vunpack.c.l.b16 %v6300_v45  ;;  %v334_v16 = vunpack.c.l.b16 %v6331_v10  ;;  %v6459_v61 = vunpack.i.l.s16 %v323_v55 }
  0x23   :  { %70 = vrot.lane.b32.xlu2 %v6244_v7, %s6121_s6  ;;  %13446 = vst [vmem:[#allocation11_spill] sm:$0xff] %v6436_v54  ;;  %v6461_v17 = vunpack.i.l.s16 %v322_v56  ;;  %v1016_v22 = vunpack.c.l.b16 %v6350_v21  ;;  %v1025_v23 = vunpack.c.l.b16 %v6392_v34  ;;  %v6467_v27 = vunpack.i.l.s16 %v1003_v58 }
  0x24   :  { %13447 = vst [vmem:[#allocation12_spill] sm:$0xff] %v6444_v57  ;;  %v345_v28 = vunpack.c.l.b16 %v6396_v35  ;;  %v6472_v29 = vsel %vm6372_vm5, %v237_v62, %v238_v63  ;;  %v500_v30 = vrot.slane %v6434_v53, 1  ;;  %v6475_v33 = vunpack.i.l.s16 %v332_v9 }
  0x25   :  { %13448 = vst [vmem:[#allocation13_spill] sm:$0xff] %v6448_v8  ;;  %v6477_v19 = vunpack.i.l.s16 %v333_v11  ;;  %v6479_v31 = vunpack.i.l.s16 %v1014_v12  ;;  %vm13217_vm6 = vcmask 1041409   ;;  %v6481_v37 = vunpack.i.l.s16 %v1015_v13 }
  0x26   :  { %13449 = vst [vmem:[#allocation14_spill] sm:$0xff] %v6459_v61  ;;  %v6483_v38 = vunpack.i.l.s16 %v335_v14  ;;  %v6485_v39 = vunpack.i.l.s16 %v1013_v15  ;;  %v6487_v40 = vunpack.i.l.s16 %v334_v16  ;;  %v6489_v42 = vunpack.i.l.s16 %v1016_v22 }
  0x27   :  { %13450 = vst [vmem:[#allocation15_spill] sm:$0xff] %v6461_v17  ;;  %v6491_v43 = vunpack.i.l.s16 %v1025_v23  ;;  %v346_v46 = vunpack.c.l.b16 %v6420_v47  ;;  %v502_v49 = vrot.slane %v6461_v17, 7  ;;  %v6499_v50 = vunpack.i.l.s16 %v345_v28 }
  0x28   :  { %13451 = vst [vmem:[#allocation16_spill] sm:$0xff] %v6472_v29  ;;  %v1027_v55 = vunpack.c.l.b16 %v6424_v48  ;;  %vm13216_vm7 = vcmask 1042434   ;;  %v501_v56 = vsel %vm13217_vm6, %v6428_v51, %v500_v30  ;;  %v344_v58 = vunpack.c.l.b16 %v6378_v25 }
  0x29   :  { %13452 = vst [vmem:[#allocation17_spill] sm:$0xff] %v6475_v33  ;;  %v1028_v62 = vunpack.c.l.b16 %v6472_v29  ;;  %v571_v63 = vrot.slane %v6434_v53, 2  ;;  %v572_v9 = vrot.slane %v6428_v51, 1  ;;  %v1026_v11 = vunpack.c.l.b16 %v6401_v36 }
  0x2a   :  { %72 = vrot.lane.b32.xlu0 %v6239_v6, %s6121_s6  ;;  %173 = vrot.lane.b32.xlu1 %v6293_v41, %s6120_s19  ;;  %13453 = vst [vmem:[#allocation18_spill] sm:$0xff] %v6477_v19  ;;  %v504_v12 = vrot.slane %v6459_v61, 6  ;;  %v642_v13 = vrot.slane %v6434_v53, 3  ;;  %v643_v14 = vrot.slane %v6428_v51, 2  ;;  %v6514_v15 = vunpack.i.l.s16 %v346_v46 }
  0x2b   :  { %175 = vrot.lane.b32.xlu2 %v6300_v45, %s6120_s19  ;;  %13454 = vst [vmem:[#allocation19_spill] sm:$0xff] %v6479_v31  ;;  %v347_v16 = vunpack.c.l.b16 %v6432_v52  ;;  %vm13214_vm8 = vcmask 1043459   ;;  %v503_v23 = vsel %vm13216_vm7, %v502_v49, %v501_v56  ;;  %v713_v28 = vrot.slane %v6434_v53, 4 }
  0x2c   :  { %13455 = vst [vmem:[#allocation20_spill] sm:$0xff] %v6481_v37  ;;  %v714_v30 = vrot.slane %v6428_v51, 3  ;;  %v785_v24 = vrot.slane %v6434_v53, 5  ;;  %v786_v32 = vrot.slane %v6428_v51, 4  ;;  %v573_v46 = vsel %vm13217_vm6, %v572_v9, %v571_v63 }
  0x2d   :  { %13456 = vst [vmem:[#allocation21_spill] sm:$0xff] %v6483_v38  ;;  %v645_v37 = vrot.slane %v6461_v17, 1  ;;  %v6530_v31 = vunpack.i.l.s16 %v1028_v62  ;;  %v6535_v49 = vsel %vm13214_vm8, %v504_v12, %v503_v23  ;;  %v644_v56 = vsel %vm13217_vm6, %v643_v14, %v642_v13 }
  0x2e   :  { %13457 = vst [vmem:[#allocation22_spill] sm:$0xff] %v6485_v39  ;;  %v6532_v39 = vunpack.i.l.s16 %v1026_v11  ;;  %v716_v62 = vrot.slane %v6461_v17, 2  ;;  %v788_v63 = vrot.slane %v6461_v17, 3  ;;  %v6546_v9 = vunpack.i.l.s16 %v347_v16 }
  0x2f   :  { %13458 = vst [vmem:[#allocation23_spill] sm:$0xff] %v6487_v40  ;;  %v574_v11 = vsel %vm13216_vm7, %v6461_v17, %v573_v46  ;;  %v715_v12 = vsel %vm13217_vm6, %v714_v30, %v713_v28  ;;  %v787_v13 = vsel %vm13217_vm6, %v786_v32, %v785_v24  ;;  %v858_v16 = vrot.slane %v6428_v51, 5 }
  0x30   :  { %13459 = vst [vmem:[#allocation24_spill] sm:$0xff] %v6489_v42  ;;  %v6526_v42 = vunpack.i.l.s16 %v344_v58  ;;  %v575_v58 = vrot.slane %v6459_v61, 7  ;;  %vm13229_vm9 = vcmask 1044484   ;;  %v790_v46 = vrot.slane %v6459_v61, 2 }
  0x31   :  { %13460 = vst [vmem:[#allocation25_spill] sm:$0xff] %v6491_v43  ;;  %v6524_v43 = vunpack.i.l.s16 %v1027_v55  ;;  %v929_v28 = vrot.slane %v6434_v53, 7  ;;  %v930_v32 = vrot.slane %v6428_v51, 6  ;;  %vm13228_vm10 = vcmask 1045509  }
  0x32   :  { %177 = vrot.lane.b32.xlu0 %v6317_v59, %s6120_s19  ;;  %179 = vrot.lane.b32.xlu1 %v6321_v60, %s6120_s19  ;;  %13461 = vst [vmem:[#allocation26_spill] sm:$0xff] %v6499_v50  ;;  %v860_v50 = vrot.slane %v6461_v17, 4  ;;  %vm13227_vm11 = vcmask 1046534   ;;  %vm13226_vm12 = vcmask 1047559   ;;  %vm13213_vm13 = vcmask 64512  }
  0x33   :  { %181 = vrot.lane.b32.xlu2 %v6331_v10, %s6120_s19  ;;  %13462 = vst [vmem:[#allocation27_spill] sm:$0xff] %v6514_v15  ;;  %vm13207_vm14 = vcmask 130048   ;;  %vm13205_vm15 = vcmask 195584   ;;  %vm13206_vm0 = vcmask 261120   ;;  %vm13212_vm1 = vcmask 326656  }
  0x34   :  { %13463 = vst [vmem:[#allocation28_spill] sm:$0xff] %v6524_v43  ;;  %v857_v43 = vrot.slane %v6434_v53, 6  ;;  %v1109_v53 = vrot.slane %v6436_v54, 7  ;;  %vm13211_vm3 = vcmask 392192   ;;  %vm13210_vm4 = vcmask 457728  }
  0x35   :  { %13464 = vst [vmem:[#allocation29_spill] sm:$0xff] %v6526_v42 }
  0x36   :  { %13465 = vst [vmem:[#allocation30_spill] sm:$0xff] %v6530_v31  ;;  %v718_v31 = vrot.slane %v6459_v61, 1 }
  0x37   :  { %13466 = vst [vmem:[#allocation31_spill] sm:$0xff] %v6532_v39 }
  0x38   :  { %13467 = vst [vmem:[#allocation32_spill] sm:$0xff] %v6535_v49 }
  0x39   :  { %13468 = vst [vmem:[#allocation33_spill] sm:$0xff] %v6546_v9  ;;  %v6564_v9 = vsel %vm13214_vm8, %v575_v58, %v574_v11  ;;  %v859_v58 = vsel %vm13217_vm6, %v858_v16, %v857_v43  ;;  %v934_v16 = vrot.slane %v6459_v61, 4 }
  0x3a   :  { %183 = vrot.lane.b32.xlu0 %v6342_v18, %s6120_s19  ;;  %185 = vrot.lane.b32.xlu1 %v6346_v20, %s6120_s19  ;;  %13470 = vst [vmem:[#allocation35_spill] sm:$0xff] %v6564_v9 }
  0x3b   :  { %187 = vrot.lane.b32.xlu2 %v6350_v21, %s6120_s19 }
  0x42   :  { %189 = vrot.lane.b32.xlu0 %v6293_v41, %s6121_s6  ;;  %191 = vrot.lane.b32.xlu1 %v6300_v45, %s6121_s6 }
  0x43   :  { %193 = vrot.lane.b32.xlu2 %v6317_v59, %s6121_s6 }
  0x4a   :  { %195 = vrot.lane.b32.xlu0 %v6321_v60, %s6121_s6  ;;  %197 = vrot.lane.b32.xlu1 %v6331_v10, %s6121_s6 }
  0x4b   :  { %199 = vrot.lane.b32.xlu2 %v6342_v18, %s6121_s6 }
  0x52   :  { %201 = vrot.lane.b32.xlu0 %v6346_v20, %s6121_s6  ;;  %203 = vrot.lane.b32.xlu1 %v6350_v21, %s6121_s6 }
  0x53   :  { %240 = vrot.lane.b32.xlu2 %v6378_v25, %s6120_s19 }
  0x5a   :  { %242 = vrot.lane.b32.xlu0 %v6392_v34, %s6120_s19  ;;  %244 = vrot.lane.b32.xlu1 %v6396_v35, %s6120_s19 }
  0x5b   :  { %246 = vrot.lane.b32.xlu2 %v6401_v36, %s6120_s19 }
  0x5d   :  { %v6415_v44 = vpop.permute.xlu2 %50 }
  0x5e   :  { %v326_v55 = vunpack.c.l.b16 %v6415_v44  ;;  %v646_v44 = vsel %vm13216_vm7, %v645_v37, %v644_v56  ;;  %v717_v37 = vsel %vm13216_vm7, %v716_v62, %v715_v12  ;;  %v789_v56 = vsel %vm13216_vm7, %v788_v63, %v787_v13 }
  0x5f   :  { %v932_v62 = vrot.slane %v6461_v17, 5  ;;  %v6580_v63 = vsel %vm13214_vm8, %v718_v31, %v717_v37  ;;  %v6583_v11 = vsel %vm13214_vm8, %v790_v46, %v789_v56  ;;  %v862_v12 = vrot.slane %v6459_v61, 3 }
  0x60   :  { %v6561_v24 = vunpack.i.l.s16 %v326_v55  ;;  %13473 = vst [vmem:[#allocation38_spill] sm:$0xff] %v6580_v63  ;;  %v931_v13 = vsel %vm13217_vm6, %v930_v32, %v929_v28  ;;  %v1110_v46 = vsel %vm13217_vm6, %v1109_v53, %v6444_v57  ;;  %v1113_v31 = vrot.slane %v6448_v8, 5 }
  0x61   :  { %13474 = vst [vmem:[#allocation39_spill] sm:$0xff] %v6583_v11  ;;  %v933_v56 = vsel %vm13216_vm7, %v932_v62, %v931_v13 }
  0x62   :  { %248 = vrot.lane.b32.xlu0 %v6420_v47, %s6120_s19  ;;  %250 = vrot.lane.b32.xlu1 %v6424_v48, %s6120_s19  ;;  %13469 = vst [vmem:[#allocation34_spill] sm:$0xff] %v6561_v24  ;;  %v510_v43 = vrot.slane %v6561_v24, 3  ;;  %v6623_v13 = vsel %vm13214_vm8, %v934_v16, %v933_v56 }
  0x63   :  { %252 = vrot.lane.b32.xlu2 %v6432_v52, %s6120_s19  ;;  %13478 = vst [vmem:[#allocation43_spill] sm:$0xff] %v6623_v13 }
  0x65   :  { %v6465_v26 = vpop.permute.xlu2 %52 }
  0x6a   :  { %254 = vrot.lane.b32.xlu0 %v6472_v29, %s6120_s19  ;;  %256 = vrot.lane.b32.xlu1 %v6378_v25, %s6121_s6 }
  0x6b   :  { %258 = vrot.lane.b32.xlu2 %v6392_v34, %s6121_s6 }
  0x6d   :  { %v6517_v22 = vpop.permute.xlu2 %58 }
  0x6e   :  { %v328_v55 = vunpack.c.l.b16 %v6517_v22  ;;  %v1111_v22 = vrot.slane %v6467_v27, 6 }
  0x72   :  { %260 = vrot.lane.b32.xlu0 %v6396_v35, %s6121_s6  ;;  %262 = vrot.lane.b32.xlu1 %v6401_v36, %s6121_s6 }
  0x73   :  { %264 = vrot.lane.b32.xlu2 %v6420_v47, %s6121_s6 }
  0x74   :  { %v47_v14 = vpop.permute.xlu1 %46  ;;  %v43_v23 = vpop.permute.xlu0 %42 }
  0x75   :  { %v324_v39 = vunpack.c.l.b16 %v43_v23  ;;  %v65_v30 = vpop.permute.xlu2 %64  ;;  %v325_v15 = vunpack.c.l.b16 %v47_v14  ;;  %v6570_v23 = vsel %vm13214_vm8, %v6459_v61, %v646_v44  ;;  %v861_v44 = vsel %vm13216_vm7, %v860_v50, %v859_v58 }
  0x76   :  { %13471 = vst [vmem:[#allocation36_spill] sm:$0xff] %v6570_v23 }
  0x77   :  { %v6574_v51 = vunpack.i.l.s16 %v324_v39  ;;  %v1007_v39 = vunpack.c.l.b16 %v6465_v26  ;;  %v6595_v14 = vunpack.i.l.s16 %v325_v15  ;;  %v6603_v26 = vunpack.i.l.s16 %v328_v55 }
  0x78   :  { %v652_v15 = vrot.slane %v6561_v24, 5  ;;  %v1010_v55 = vunpack.c.l.b16 %v65_v30 }
  0x79   :  { %13472 = vst [vmem:[#allocation37_spill] sm:$0xff] %v6574_v51  ;;  %v506_v37 = vrot.slane %v6574_v51, 5  ;;  %v577_v50 = vrot.slane %v6574_v51, 6  ;;  %v6614_v61 = vunpack.i.l.s16 %v1007_v39  ;;  %v648_v62 = vrot.slane %v6574_v51, 7 }
  0x7a   :  { %266 = vrot.lane.b32.xlu0 %v6424_v48, %s6121_s6  ;;  %268 = vrot.lane.b32.xlu1 %v6432_v52, %s6121_s6  ;;  %13475 = vst [vmem:[#allocation40_spill] sm:$0xff] %v6595_v14  ;;  %v1112_v52 = vsel %vm13216_vm7, %v1111_v22, %v1110_v46  ;;  %v508_v48 = vrot.slane %v6595_v14, 4  ;;  %v579_v58 = vrot.slane %v6595_v14, 5  ;;  %v650_v56 = vrot.slane %v6595_v14, 6 }
  0x7b   :  { %13476 = vst [vmem:[#allocation41_spill] sm:$0xff] %v6603_v26  ;;  %270 = vrot.lane.b32.xlu2 %v6472_v29, %s6121_s6  ;;  %v6617_v29 = vsel %vm13214_vm8, %v862_v12, %v861_v44  ;;  %v507_v39 = vsel %vm13229_vm9, %v506_v37, %v6535_v49  ;;  %v578_v22 = vsel %vm13229_vm9, %v577_v50, %v6564_v9  ;;  %v6642_v37 = vunpack.i.l.s16 %v1010_v55 }
  0x7c   :  { %v49_v28 = vpop.permute.xlu1 %48  ;;  %v6601_v32 = vpop.permute.xlu0 %44  ;;  %13477 = vst [vmem:[#allocation42_spill] sm:$0xff] %v6617_v29  ;;  %v6636_v16 = vsel %vm13214_vm8, %v1113_v31, %v1112_v52  ;;  %v509_v46 = vsel %vm13228_vm10, %v508_v48, %v507_v39  ;;  %v580_v50 = vsel %vm13228_vm10, %v579_v58, %v578_v22  ;;  %v792_v44 = vrot.slane %v6574_v51, 1 }
  0x7d   :  { %v71_v17 = vpop.permute.xlu2 %70  ;;  %13479 = vst [vmem:[#allocation44_spill] sm:$0xff] %v6636_v16  ;;  %v1006_v53 = vunpack.c.l.b16 %v49_v28  ;;  %v1005_v48 = vunpack.c.l.b16 %v6601_v32  ;;  %v721_v31 = vrot.slane %v6595_v14, 7  ;;  %v6661_v28 = vsel %vm13227_vm11, %v510_v43, %v509_v46 }
  0x7e   :  { %v331_v55 = vunpack.c.l.b16 %v71_v17  ;;  %v720_v58 = vsel %vm13229_vm9, %v6574_v51, %v6580_v63  ;;  %v13480_v52 = vrot.slane %v6561_v24, 4  ;;  %v13495_v63 = vrot.slane %v6561_v24, 1 }
  0x7f   :  { %v722_v39 = vsel %vm13228_vm10, %v721_v31, %v720_v58 }
  0x80   :  { %v582_v12 = vsel %vm13227_vm11, %v13480_v52, %v580_v50  ;;  %v6675_v43 = vunpack.i.l.s16 %v331_v55  ;;  %v864_v52 = vrot.slane %v6574_v51, 2  ;;  %v866_v55 = vrot.slane %v6595_v14, 1 }
  0x81   :  { %v936_v50 = vrot.slane %v6574_v51, 3 }
  0x82   :  { %272 = vrot.lane.b32.xlu0 %v6202_v1, %s6122_s15  ;;  %274 = vrot.lane.b32.xlu1 %v6223_v4, %s6122_s15  ;;  %v649_v1 = vsel %vm13229_vm9, %v648_v62, %v6570_v23  ;;  %v6673_v23 = vunpack.i.l.s16 %v1006_v53  ;;  %13482 = vst [vmem:[#allocation46_spill] sm:$0xff] %v6675_v43 }
  0x83   :  { %276 = vrot.lane.b32.xlu2 %v6197_v0, %s6122_s15  ;;  %v651_v0 = vsel %vm13228_vm10, %v650_v56, %v649_v1  ;;  %v793_v56 = vsel %vm13229_vm9, %v792_v44, %v6583_v11  ;;  %v6680_v1 = vunpack.i.l.s16 %v1005_v48  ;;  %v13485_v44 = vrot.slane %v6561_v24, 6 }
  0x84   :  { %v57_v30 = vpop.permute.xlu1 %56  ;;  %v55_v4 = vpop.permute.xlu0 %54  ;;  %13481 = vst [vmem:[#allocation45_spill] sm:$0xff] %v6673_v23  ;;  %v794_v31 = vsel %vm13228_vm10, %v6595_v14, %v793_v56 }
  0x85   :  { %v176_v62 = vpop.permute.xlu2 %175  ;;  %v327_v22 = vunpack.c.l.b16 %v55_v4  ;;  %13483 = vst [vmem:[#allocation47_spill] sm:$0xff] %v6680_v1  ;;  %v653_v4 = vsel %vm13227_vm11, %v652_v15, %v651_v0  ;;  %v1008_v56 = vunpack.c.l.b16 %v57_v30  ;;  %v13486_v0 = vrot.slane %v6561_v24, 7 }
  0x87   :  { %v6693_v15 = vunpack.i.l.s16 %v327_v22  ;;  %v724_v22 = vsel %vm13227_vm11, %v13485_v44, %v722_v39  ;;  %v796_v58 = vsel %vm13227_vm11, %v13486_v0, %v794_v31  ;;  %v865_v39 = vsel %vm13229_vm9, %v864_v52, %v6617_v29 }
  0x88   :  { %v1017_v44 = vunpack.c.l.b16 %v176_v62  ;;  %v6724_v11 = vunpack.i.l.s16 %v1008_v56  ;;  %v867_v52 = vsel %vm13228_vm10, %v866_v55, %v865_v39  ;;  %v938_v56 = vrot.slane %v6595_v14, 2 }
  0x89   :  { %13484 = vst [vmem:[#allocation48_spill] sm:$0xff] %v6693_v15  ;;  %v512_v30 = vrot.slane %v6693_v15, 2  ;;  %v654_v53 = vrot.slane %v6693_v15, 4  ;;  %v725_v31 = vrot.slane %v6693_v15, 5  ;;  %v797_v62 = vrot.slane %v6693_v15, 6 }
  0x8a   :  { %278 = vrot.lane.b32.xlu0 %v6218_v3, %s6122_s15  ;;  %280 = vrot.lane.b32.xlu1 %v6211_v2, %s6122_s15  ;;  %v869_v0 = vrot.slane %v6693_v15, 7  ;;  %v6737_v3 = vunpack.i.l.s16 %v1017_v44 }
  0x8b   :  { %282 = vrot.lane.b32.xlu2 %v6228_v5, %s6122_s15  ;;  %v6741_v29 = vsel %vm13226_vm12, %v512_v30, %v6661_v28  ;;  %v868_v5 = vsel %vm13227_vm11, %v6561_v24, %v867_v52  ;;  %v937_v28 = vsel %vm13229_vm9, %v936_v50, %v6623_v13 }
  0x8c   :  { %v63_v48 = vpop.permute.xlu1 %62  ;;  %v61_v2 = vpop.permute.xlu0 %60  ;;  %13488 = vst [vmem:[#allocation50_spill] sm:$0xff] %v6737_v3 }
  0x8d   :  { %v329_v46 = vunpack.c.l.b16 %v63_v48  ;;  %v182_v32 = vpop.permute.xlu2 %181  ;;  %v583_v48 = vrot.slane %v6693_v15, 3 }
  0x8e   :  { %v338_v30 = vunpack.c.l.b16 %v182_v32  ;;  %v939_v32 = vsel %vm13228_vm10, %v938_v56, %v937_v28 }
  0x8f   :  { %v6719_v17 = vunpack.i.l.s16 %v329_v46  ;;  %v6744_v55 = vsel %vm13226_vm12, %v583_v48, %v582_v12 }
  0x90   :  { %v6784_v52 = vunpack.i.l.s16 %v338_v30 }
  0x91   :  { %13487 = vst [vmem:[#allocation49_spill] sm:$0xff] %v6719_v17  ;;  %v586_v44 = vrot.slane %v6719_v17, 1  ;;  %v728_v30 = vrot.slane %v6719_v17, 3  ;;  %v872_v48 = vrot.slane %v6719_v17, 5 }
  0x92   :  { %284 = vrot.lane.b32.xlu0 %v6244_v7, %s6122_s15  ;;  %286 = vrot.lane.b32.xlu1 %v6239_v6, %s6122_s15  ;;  %v6747_v7 = vsel %vm13226_vm12, %v654_v53, %v653_v4  ;;  %v1009_v6 = vunpack.c.l.b16 %v61_v2  ;;  %v6759_v4 = vsel %vm13226_vm12, %v725_v31, %v724_v22  ;;  %v6762_v53 = vsel %vm13226_vm12, %v797_v62, %v796_v58 }
  0x93   :  { %288 = vrot.lane.b32.xlu2 %v6293_v41, %s6122_s15  ;;  %13489 = vst [vmem:[#allocation51_spill] sm:$0xff] %v6762_v53  ;;  %v6767_v41 = vsel %vm13226_vm12, %v869_v0, %v868_v5  ;;  %v943_v22 = vrot.slane %v6603_v26, 7  ;;  %v13492_v62 = vrot.slane %v6603_v26, 2 }
  0x94   :  { %v6749_v39 = vpop.permute.xlu1 %68  ;;  %v67_v46 = vpop.permute.xlu0 %66  ;;  %13490 = vst [vmem:[#allocation52_spill] sm:$0xff] %v6767_v41  ;;  %v6777_v31 = vunpack.i.l.s16 %v1009_v6  ;;  %v13494_v6 = vrot.slane %v6603_v26, 1 }
  0x95   :  { %v330_v12 = vunpack.c.l.b16 %v67_v46  ;;  %v6764_v2 = vpop.permute.xlu2 %187  ;;  %v587_v5 = vsel %vm13217_vm6, %v586_v44, %v13492_v62  ;;  %v657_v46 = vrot.slane %v6719_v17, 2  ;;  %13493 = vst [vmem:[#allocation54_spill] sm:$0xff] %v6784_v52  ;;  %v800_v62 = vrot.slane %v6719_v17, 4 }
  0x96   :  { %v515_v44 = vsel %vm13217_vm6, %v6719_v17, %v13494_v6  ;;  %v13496_v6 = vrot.slane %v6675_v43, 7 }
  0x97   :  { %v6772_v50 = vunpack.i.l.s16 %v330_v12 }
  0x99   :  { %13491 = vst [vmem:[#allocation53_spill] sm:$0xff] %v6772_v50  ;;  %v516_v12 = vrot.slane %v6772_v50, 7  ;;  %v588_v56 = vsel %vm13216_vm7, %v6772_v50, %v587_v5  ;;  %v659_v28 = vrot.slane %v6772_v50, 1  ;;  %v941_v5 = vsel %vm13227_vm11, %v13495_v63, %v939_v32 }
  0x9a   :  { %290 = vrot.lane.b32.xlu0 %v6300_v45, %s6122_s15  ;;  %292 = vrot.lane.b32.xlu1 %v6317_v59, %s6122_s15  ;;  %v730_v45 = vrot.slane %v6772_v50, 2  ;;  %v590_v9 = vsel %vm13214_vm8, %v13496_v6, %v588_v56  ;;  %v13497_v63 = vrot.slane %v6603_v26, 3  ;;  %v6823_v24 = vsel %vm13226_vm12, %v6693_v15, %v941_v5 }
  0x9b   :  { %v517_v0 = vsel %vm13216_vm7, %v516_v12, %v515_v44  ;;  %294 = vrot.lane.b32.xlu2 %v6321_v60, %s6122_s15  ;;  %v944_v12 = vrot.slane %v6719_v17, 6  ;;  %v1115_v44 = vrot.slane %v6680_v1, 4  ;;  %13498 = vst [vmem:[#allocation55_spill] sm:$0xff] %v6823_v24  ;;  %v13499_v56 = vrot.slane %v6675_v43, 6 }
  0x9c   :  { %v6807_v58 = vpop.permute.xlu0 %72  ;;  %v174_v13 = vpop.permute.xlu1 %173  ;;  %v658_v32 = vsel %vm13217_vm6, %v657_v46, %v13497_v63  ;;  %v13500_v6 = vrot.slane %v6603_v26, 4  ;;  %v802_v49 = vrot.slane %v6772_v50, 3  ;;  %v1011_v5 = vunpack.c.l.b16 %v6749_v39 }
  0x9d   :  { %v660_v59 = vsel %vm13216_vm7, %v659_v28, %v658_v32  ;;  %v6826_v14 = vpop.permute.xlu2 %193  ;;  %v519_v46 = vsel %vm13214_vm8, %v13499_v56, %v517_v0  ;;  %v13501_v28 = vrot.slane %v6603_v26, 5  ;;  %v13502_v60 = vrot.slane %v6475_v33, 6 }
  0x9e   :  { %v729_v63 = vsel %vm13217_vm6, %v728_v30, %v13500_v6  ;;  %v13503_v0 = vrot.slane %v6603_v26, 6  ;;  %v661_v30 = vsel %vm13214_vm8, %v6675_v43, %v660_v59  ;;  %v945_v6 = vsel %vm13217_vm6, %v944_v12, %v943_v22 }
  0x9f   :  { %v801_v32 = vsel %vm13217_vm6, %v800_v62, %v13501_v28  ;;  %v592_v15 = vsel %vm13229_vm9, %v13502_v60, %v590_v9  ;;  %v731_v17 = vsel %vm13216_vm7, %v730_v45, %v729_v63  ;;  %v1116_v62 = vsel %vm13229_vm9, %v1115_v44, %v6636_v16 }
  0xa0   :  { %v873_v56 = vsel %vm13217_vm6, %v872_v48, %v13503_v0  ;;  %v1117_v39 = vrot.slane %v6673_v23, 3  ;;  %v13504_v28 = vrot.slane %v6475_v33, 5  ;;  %v874_v45 = vrot.slane %v6772_v50, 4 }
  0xa1   :  { %v1180_v48 = vrot.slane %v6444_v57, 1  ;;  %v13505_v22 = vrot.slane %v6477_v19, 5  ;;  %v13506_v12 = vrot.slane %v6675_v43, 1  ;;  %v946_v63 = vrot.slane %v6772_v50, 5 }
  0xa2   :  { %v521_v9 = vsel %vm13229_vm9, %v13504_v28, %v519_v46  ;;  %296 = vrot.lane.b32.xlu0 %v6331_v10, %s6122_s15  ;;  %298 = vrot.lane.b32.xlu1 %v6342_v18, %s6122_s15  ;;  %v803_v46 = vsel %vm13216_vm7, %v802_v49, %v801_v32  ;;  %v6870_v0 = vunpack.i.l.s16 %v1011_v5  ;;  %v1020_v28 = vunpack.c.l.b16 %v6764_v2 }
  0xa3   :  { %v594_v59 = vsel %vm13228_vm10, %v13505_v22, %v592_v15  ;;  %v733_v44 = vsel %vm13214_vm8, %v13506_v12, %v731_v17  ;;  %v13507_v10 = vrot.slane %v6475_v33, 7  ;;  %300 = vrot.lane.b32.xlu2 %v6346_v20, %s6122_s15  ;;  %v13508_v17 = vrot.slane %v6477_v19, 4 }
  0xa4   :  { %v178_v16 = vpop.permute.xlu0 %177  ;;  %v180_v15 = vpop.permute.xlu1 %179  ;;  %v13509_v32 = vrot.slane %v6675_v43, 2  ;;  %v673_v2 = vrot.slane %v6784_v52, 1  ;;  %v1118_v22 = vsel %vm13228_vm10, %v1117_v39, %v1116_v62  ;;  %v13510_v12 = vrot.slane %v6487_v40, 4 }
  0xa5   :  { %v663_v18 = vsel %vm13229_vm9, %v13507_v10, %v661_v30  ;;  %v523_v49 = vsel %vm13228_vm10, %v13508_v17, %v521_v9  ;;  %v336_v30 = vunpack.c.l.b16 %v174_v13  ;;  %v734_v20 = vsel %vm13229_vm9, %v6475_v33, %v733_v44  ;;  %v200_v9 = vpop.permute.xlu2 %199 }
  0xa6   :  { %v805_v5 = vsel %vm13214_vm8, %v13509_v32, %v803_v46  ;;  %v596_v10 = vsel %vm13227_vm11, %v13510_v12, %v594_v59  ;;  %v875_v60 = vsel %vm13216_vm7, %v874_v45, %v873_v56  ;;  %v337_v26 = vunpack.c.l.b16 %v178_v16 }
  0xa7   :  { %v13511_v17 = vrot.slane %v6477_v19, 6  ;;  %v13512_v32 = vrot.slane %v6675_v43, 3  ;;  %v947_v13 = vsel %vm13216_vm7, %v946_v63, %v945_v6  ;;  %v1012_v39 = vunpack.c.l.b16 %v6807_v58 }
  0xa8   :  { %v13513_v59 = vrot.slane %v6487_v40, 3  ;;  %v13514_v56 = vrot.slane %v6475_v33, 1  ;;  %v13515_v45 = vrot.slane %v6614_v61, 2  ;;  %v341_v12 = vunpack.c.l.b16 %v6826_v14 }
  0xa9   :  { %v665_v46 = vsel %vm13228_vm10, %v13511_v17, %v663_v18  ;;  %v877_v62 = vsel %vm13214_vm8, %v13512_v32, %v875_v60  ;;  %v13516_v60 = vrot.slane %v6477_v19, 7  ;;  %v13517_v58 = vrot.slane %v6675_v43, 4 }
  0xaa   :  { %v525_v44 = vsel %vm13227_vm11, %v13513_v59, %v523_v49  ;;  %v807_v16 = vsel %vm13229_vm9, %v13514_v56, %v805_v5  ;;  %v6910_v18 = vsel %vm13227_vm11, %v13515_v45, %v1118_v22  ;;  %v6920_v17 = vunpack.i.l.s16 %v336_v30  ;;  %302 = vrot.lane.b32.xlu0 %v6350_v21, %s6122_s15  ;;  %304 = vrot.lane.b32.xlu1 %v6378_v25, %s6122_s15 }
  0xab   :  { %v736_v6 = vsel %vm13228_vm10, %v13516_v60, %v734_v20  ;;  %v949_v63 = vsel %vm13214_vm8, %v13517_v58, %v947_v13  ;;  %v13519_v5 = vrot.slane %v6483_v38, 3  ;;  %v13521_v22 = vrot.slane %v6487_v40, 5  ;;  %306 = vrot.lane.b32.xlu2 %v6392_v34, %s6122_s15 }
  0xac   :  { %13518 = vst [vmem:[#allocation56_spill] sm:$0xff] %v6920_v17  ;;  %v13522_v59 = vrot.slane %v6475_v33, 2  ;;  %v6933_v56 = vunpack.i.l.s16 %v337_v26  ;;  %v13524_v30 = vrot.slane %v6483_v38, 2  ;;  %v13526_v13 = vrot.slane %v6475_v33, 3  ;;  %v186_v58 = vpop.permute.xlu1 %185 }
  0xad   :  { %v6925_v32 = vsel %vm13226_vm12, %v13519_v5, %v596_v10  ;;  %v667_v14 = vsel %vm13227_vm11, %v13521_v22, %v665_v46  ;;  %v808_v46 = vsel %vm13228_vm10, %v6477_v19, %v807_v16  ;;  %v6949_v26 = vunpack.i.l.s16 %v1012_v39 }
  0xae   :  { %13520 = vst [vmem:[#allocation57_spill] sm:$0xff] %v6925_v32  ;;  %v879_v20 = vsel %vm13229_vm9, %v13522_v59, %v877_v62  ;;  %v6942_v10 = vsel %vm13226_vm12, %v13524_v30, %v525_v44  ;;  %v951_v62 = vsel %vm13229_vm9, %v13526_v13, %v949_v63  ;;  %v6951_v45 = vunpack.i.l.s16 %v1020_v28  ;;  %v184_v44 = vpop.permute.xlu0 %183  ;;  %v241_v13 = vpop.permute.xlu2 %240 }
  0xaf   :  { %13523 = vst [vmem:[#allocation58_spill] sm:$0xff] %v6933_v56  ;;  %v13529_v21 = vrot.slane %v6487_v40, 6  ;;  %v6958_v60 = vsel %vm13217_vm6, %v6436_v54, %v1180_v48  ;;  %v6960_v5 = vunpack.i.l.s16 %v341_v12  ;;  %v13531_v28 = vrot.slane %v6483_v38, 4 }
  0xb0   :  { %13525 = vst [vmem:[#allocation59_spill] sm:$0xff] %v6942_v10  ;;  %v1018_v63 = vunpack.c.l.b16 %v180_v15  ;;  %v13534_v22 = vrot.slane %v6487_v40, 7  ;;  %v13535_v59 = vrot.slane %v6477_v19, 2  ;;  %v600_v15 = vrot.slane %v6933_v56, 1 }
  0xb1   :  { %13527 = vst [vmem:[#allocation60_spill] sm:$0xff] %v6949_v26  ;;  %v738_v25 = vsel %vm13227_vm11, %v13529_v21, %v736_v6  ;;  %v6969_v16 = vsel %vm13226_vm12, %v13531_v28, %v667_v14  ;;  %v13533_v6 = vrot.slane %v6477_v19, 1  ;;  %v13536_v14 = vrot.slane %v6483_v38, 5  ;;  %v13554_v19 = vld [vmem:[#allocation27_spill] sm:$0xff] }
  0xb2   :  { %13528 = vst [vmem:[#allocation61_spill] sm:$0xff] %v6951_v45  ;;  %v810_v34 = vsel %vm13227_vm11, %v13534_v22, %v808_v46  ;;  %v953_v30 = vsel %vm13228_vm10, %v13535_v59, %v951_v62  ;;  %v671_v28 = vrot.slane %v6933_v56, 2  ;;  %v13538_v59 = vrot.slane %v6483_v38, 6  ;;  %308 = vrot.lane.b32.xlu0 %v6396_v35, %s6122_s15  ;;  %310 = vrot.lane.b32.xlu1 %v6401_v36, %s6122_s15 }
  0xb3   :  { %13530 = vst [vmem:[#allocation62_spill] sm:$0xff] %v6960_v5  ;;  %v881_v48 = vsel %vm13228_vm10, %v13533_v6, %v879_v20  ;;  %v6985_v21 = vsel %vm13226_vm12, %v13536_v14, %v738_v25  ;;  %v528_v20 = vrot.slane %v6920_v17, 1  ;;  %v1023_v6 = vunpack.c.l.b16 %v200_v9  ;;  %312 = vrot.lane.b32.xlu2 %v6420_v47, %s6122_s15 }
  0xb4   :  { %13532 = vst [vmem:[#allocation63_spill] sm:$0xff] %v6969_v16  ;;  %v882_v62 = vsel %vm13227_vm11, %v6487_v40, %v881_v48  ;;  %v6998_v25 = vsel %vm13226_vm12, %v13538_v59, %v810_v34  ;;  %v599_v14 = vrot.slane %v6920_v17, 2  ;;  %v670_v39 = vrot.slane %v6920_v17, 3 }
  0xb5   :  { %13537 = vst [vmem:[#allocation64_spill] sm:$0xff] %v6985_v21  ;;  %v13540_v12 = vrot.slane %v6487_v40, 1  ;;  %v7005_v49 = vunpack.i.l.s16 %v1018_v63  ;;  %v529_v48 = vsel %vm13217_vm6, %v6933_v56, %v528_v20  ;;  %v339_v34 = vunpack.c.l.b16 %v186_v58 }
  0xb6   :  { %13539 = vst [vmem:[#allocation65_spill] sm:$0xff] %v6998_v25  ;;  %v601_v59 = vsel %vm13217_vm6, %v600_v15, %v599_v14  ;;  %v13542_v63 = vrot.slane %v6483_v38, 7  ;;  %v7023_v46 = vunpack.i.l.s16 %v1023_v6  ;;  %v1019_v36 = vunpack.c.l.b16 %v184_v44  ;;  %v190_v15 = vpop.permute.xlu0 %189  ;;  %v192_v14 = vpop.permute.xlu1 %191 }
  0xb7   :  { %v955_v9 = vsel %vm13227_vm11, %v13540_v12, %v953_v30  ;;  %13541 = vst [vmem:[#allocation66_spill] sm:$0xff] %v7005_v49  ;;  %v672_v30 = vsel %vm13217_vm6, %v671_v28, %v670_v39  ;;  %v741_v28 = vrot.slane %v6920_v17, 4  ;;  %v742_v6 = vrot.slane %v6933_v56, 3  ;;  %v7048_v22 = vpop.permute.xlu2 %246  ;;  %v13560_v49 = vld [vmem:[#allocation33_spill] sm:$0xff] }
  0xb8   :  { %v7020_v12 = vsel %vm13226_vm12, %v13542_v63, %v882_v62  ;;  %13544 = vst [vmem:[#allocation68_spill] sm:$0xff] %v7023_v46  ;;  %v7030_v35 = vsel %vm13226_vm12, %v6483_v38, %v955_v9  ;;  %v13546_v62 = vrot.slane %v6784_v52, 7  ;;  %v348_v63 = vunpack.c.l.b16 %v241_v13 }
  0xb9   :  { %13543 = vst [vmem:[#allocation67_spill] sm:$0xff] %v7020_v12  ;;  %v602_v58 = vsel %vm13216_vm7, %v6784_v52, %v601_v59  ;;  %v674_v9 = vsel %vm13216_vm7, %v673_v2, %v672_v30  ;;  %v7046_v47 = vunpack.i.l.s16 %v339_v34  ;;  %v340_v20 = vunpack.c.l.b16 %v190_v15  ;;  %v13549_v59 = vld [vmem:[#allocation26_spill] sm:$0xff] }
  0xba   :  { %13545 = vst [vmem:[#allocation69_spill] sm:$0xff] %v7030_v35  ;;  %v531_v39 = vsel %vm13216_vm7, %v13546_v62, %v529_v48  ;;  %v542_v48 = vrot.slane %v6526_v42, 1  ;;  %v613_v62 = vrot.slane %v6526_v42, 2  ;;  %v614_v38 = vrot.slane %v13549_v59, 1  ;;  %v13561_v35 = vld [vmem:[#allocation22_spill] sm:$0xff] }
  0xbb   :  { %13547 = vst [vmem:[#allocation70_spill] sm:$0xff] %v7046_v47  ;;  %v744_v44 = vrot.slane %v6784_v52, 2  ;;  %v7057_v40 = vunpack.i.l.s16 %v1019_v36  ;;  %v743_v2 = vsel %vm13217_vm6, %v742_v6, %v741_v28  ;;  %v13551_v34 = vrot.slane %v6724_v11, 1  ;;  %v13557_v6 = vld [vmem:[#allocation7_spill] sm:$0xff] }
  0xbc   :  { %13548 = vst [vmem:[#allocation71_spill] sm:$0xff] %v7048_v22  ;;  %v1125_v15 = vrot.slane %v6870_v0, 6  ;;  %v7067_v13 = vunpack.i.l.s16 %v348_v63  ;;  %v544_v43 = vrot.slane %v13554_v19, 7  ;;  %v13555_v50 = vrot.slane %v6642_v37, 7  ;;  %314 = vrot.lane.b32.xlu0 %v13557_v6, %s6122_s15 }
  0xbd   :  { %13550 = vst [vmem:[#allocation72_spill] sm:$0xff] %v7057_v40  ;;  %v7064_v30 = vsel %vm13226_vm12, %v13551_v34, %v6910_v18  ;;  %v1127_v33 = vrot.slane %v6949_v26, 5  ;;  %v7075_v28 = vunpack.i.l.s16 %v340_v20  ;;  %v13558_v18 = vld [vmem:[#allocation9_spill] sm:$0xff]  ;;  %v532_v63 = vrot.slane %v7046_v47, 6 }
  0xbe   :  { %13552 = vst [vmem:[#allocation73_spill] sm:$0xff] %v7064_v30  ;;  %v1124_v36 = vsel %vm13217_vm6, %v13555_v50, %v6777_v31  ;;  %316 = vrot.lane.b32.xlu1 %v13558_v18, %s6122_s15  ;;  %v543_v34 = vsel %vm13217_vm6, %v13549_v59, %v542_v48  ;;  %v603_v51 = vrot.slane %v7046_v47, 7  ;;  %v615_v46 = vsel %vm13217_vm6, %v614_v38, %v613_v62  ;;  %v196_v45 = vpop.permute.xlu0 %195  ;;  %v198_v40 = vpop.permute.xlu1 %197  ;;  %v13559_v18 = vld [vmem:[#allocation16_spill] sm:$0xff] }
  0xbf   :  { %13553 = vst [vmem:[#allocation74_spill] sm:$0xff] %v7067_v13  ;;  %v675_v50 = vsel %vm13214_vm8, %v7046_v47, %v674_v9  ;;  %v745_v20 = vsel %vm13216_vm7, %v744_v44, %v743_v2  ;;  %v746_v3 = vrot.slane %v7046_v47, 1  ;;  %v1021_v6 = vunpack.c.l.b16 %v192_v14  ;;  %318 = vrot.lane.b32.xlu2 %v13559_v18, %s6122_s15  ;;  %v253_v14 = vpop.permute.xlu2 %252 }
  0xc0   :  { %13556 = vst [vmem:[#allocation75_spill] sm:$0xff] %v7075_v28  ;;  %v546_v24 = vrot.slane %v13560_v49, 6  ;;  %v1126_v48 = vsel %vm13216_vm7, %v1125_v15, %v1124_v36  ;;  %v1129_v41 = vrot.slane %v13561_v35, 4  ;;  %v545_v38 = vsel %vm13216_vm7, %v544_v43, %v543_v34 }
  0xc1   :  { %v617_v9 = vrot.slane %v13560_v49, 7  ;;  %v684_v44 = vrot.slane %v6526_v42, 3  ;;  %v685_v62 = vrot.slane %v13549_v59, 2  ;;  %v533_v2 = vsel %vm13214_vm8, %v532_v63, %v531_v39 }
  0xc2   :  { %v13068_v12 = vrot.slane %v7075_v28, 5  ;;  %v604_v18 = vsel %vm13214_vm8, %v603_v51, %v602_v58  ;;  %v616_v15 = vsel %vm13216_vm7, %v13554_v19, %v615_v46  ;;  %v342_v36 = vunpack.c.l.b16 %v198_v40 }
  0xc3   :  { %v548_v54 = vrot.slane %v7067_v13, 5  ;;  %v13069_v43 = vrot.slane %v7075_v28, 6  ;;  %v1128_v34 = vsel %vm13214_vm8, %v1127_v33, %v1126_v48  ;;  %v7108_v57 = vsel %vm13214_vm8, %v546_v24, %v545_v38 }
  0xc4   :  { %13562 = vst [vmem:[#allocation7_spill] sm:$0xff] %v7108_v57  ;;  %v619_v53 = vrot.slane %v7067_v13, 6  ;;  %v13070_v39 = vrot.slane %v7075_v28, 7  ;;  %v687_v63 = vrot.slane %v13554_v19, 1  ;;  %v7113_v51 = vunpack.i.l.s16 %v1021_v6 }
  0xc5   :  { %v7116_v46 = vsel %vm13214_vm8, %v617_v9, %v616_v15  ;;  %v686_v40 = vsel %vm13217_vm6, %v685_v62, %v684_v44  ;;  %v747_v58 = vsel %vm13214_vm8, %v746_v3, %v745_v20  ;;  %v13565_v33 = vpack.c.b16 %v6942_v10, %v6741_v29 }
  0xc6   :  { %13563 = vst [vmem:[#allocation9_spill] sm:$0xff] %v7113_v51  ;;  %v535_v48 = vsel %vm13229_vm9, %v13068_v12, %v533_v2  ;;  %v755_v6 = vrot.slane %v6526_v42, 4  ;;  %v756_v38 = vrot.slane %v13549_v59, 3  ;;  %v7130_v9 = vunpack.i.l.s16 %v342_v36  ;;  %v202_v62 = vpop.permute.xlu0 %201  ;;  %v204_v15 = vpop.permute.xlu1 %203 }
  0xc7   :  { %13564 = vst [vmem:[#allocation16_spill] sm:$0xff] %v7116_v46  ;;  %565 = vrot.lane.b32.xlu0 %v13565_v33, %s6122_s15  ;;  %v7134_v3 = vsel %vm13229_vm9, %v548_v54, %v7108_v57  ;;  %v606_v29 = vsel %vm13229_vm9, %v13069_v43, %v604_v18  ;;  %v1130_v20 = vsel %vm13229_vm9, %v1129_v41, %v1128_v34  ;;  %v1022_v44 = vunpack.c.l.b16 %v196_v45  ;;  %v7154_v34 = vpop.permute.xlu2 %258  ;;  %v13576_v57 = vld [vmem:[#allocation20_spill] sm:$0xff] }
  0xc8   :  { %13566 = vst [vmem:[#allocation22_spill] sm:$0xff] %v7130_v9  ;;  %v7142_v2 = vsel %vm13229_vm9, %v619_v53, %v7116_v46  ;;  %v677_v36 = vsel %vm13229_vm9, %v13070_v39, %v675_v50  ;;  %v688_v54 = vsel %vm13216_vm7, %v687_v63, %v686_v40  ;;  %v351_v33 = vunpack.c.l.b16 %v253_v14  ;;  %v13570_v14 = vld [vmem:[#allocation19_spill] sm:$0xff] }
  0xc9   :  { %v13567_v12 = vrot.slane %v6960_v5, 4  ;;  %v748_v41 = vsel %vm13229_vm9, %v7075_v28, %v747_v58  ;;  %v758_v45 = vrot.slane %v13554_v19, 2  ;;  %13568 = vst [vmem:[#allocation76_spill] sm:$0xff] %v7154_v34  ;;  %v13569_v53 = vrot.slane %v6960_v5, 5 }
  0xca   :  { %v690_v50 = vrot.slane %v7067_v13, 7  ;;  %v757_v63 = vsel %vm13217_vm6, %v756_v38, %v755_v6  ;;  %v1131_v40 = vrot.slane %v13570_v14, 3  ;;  %v343_v39 = vunpack.c.l.b16 %v202_v62 }
  0xcb   :  { %v537_v18 = vsel %vm13228_vm10, %v13567_v12, %v535_v48  ;;  %v608_v43 = vsel %vm13228_vm10, %v13569_v53, %v606_v29  ;;  %v13571_v48 = vrot.slane %v6960_v5, 6  ;;  %v7168_v24 = vsel %vm13214_vm8, %v13560_v49, %v688_v54 }
  0xcc   :  { %13572 = vst [vmem:[#allocation19_spill] sm:$0xff] %v7168_v24  ;;  %v7170_v46 = vunpack.i.l.s16 %v1022_v44  ;;  %v13574_v53 = vrot.slane %v6960_v5, 7  ;;  %v760_v38 = vrot.slane %v13560_v49, 1  ;;  %v7177_v62 = vunpack.i.l.s16 %v351_v33 }
  0xcd   :  { %v679_v58 = vsel %vm13228_vm10, %v13571_v48, %v677_v36  ;;  %v759_v12 = vsel %vm13216_vm7, %v758_v45, %v757_v63  ;;  %v1133_v36 = vrot.slane %v13576_v57, 2  ;;  %v814_v48 = vrot.slane %v6933_v56, 4 }
  0xce   :  { %13573 = vst [vmem:[#allocation77_spill] sm:$0xff] %v7170_v46  ;;  %v750_v6 = vsel %vm13228_vm10, %v13574_v53, %v748_v41  ;;  %v13577_v44 = vpack.c.b16 %v6925_v32, %v6744_v55  ;;  %v7189_v41 = vsel %vm13229_vm9, %v690_v50, %v7168_v24  ;;  %v1132_v45 = vsel %vm13228_vm10, %v1131_v40, %v1130_v20  ;;  %v245_v54 = vpop.permute.xlu1 %244 }
  0xcf   :  { %13575 = vst [vmem:[#allocation78_spill] sm:$0xff] %v7177_v62  ;;  %v7193_v63 = vunpack.i.l.s16 %v343_v39  ;;  %v13579_v53 = vrot.slane %v7130_v9, 3  ;;  %v813_v55 = vrot.slane %v6920_v17, 5  ;;  %v13581_v50 = vrot.slane %v7130_v9, 4  ;;  %v13583_v39 = vld [vmem:[#allocation24_spill] sm:$0xff]  ;;  %v7213_v46 = vpop.permute.xlu2 %264 }
  0xd0   :  { %636 = vrot.lane.b32.xlu0 %v13577_v44, %s6123_s16  ;;  %v7200_v44 = vpop.permute.xlu0 %242  ;;  %v7206_v33 = vsel %vm13214_vm8, %v760_v38, %v759_v12  ;;  %v1135_v20 = vrot.slane %v13583_v39, 1  ;;  %v816_v40 = vrot.slane %v6784_v52, 3  ;;  %v1024_v32 = vunpack.c.l.b16 %v204_v15 }
  0xd1   :  { %13578 = vst [vmem:[#allocation79_spill] sm:$0xff] %v7193_v63  ;;  %v539_v29 = vsel %vm13227_vm11, %v13579_v53, %v537_v18  ;;  %v610_v24 = vsel %vm13227_vm11, %v13581_v50, %v608_v43  ;;  %v1134_v18 = vsel %vm13227_vm11, %v1133_v36, %v1132_v45  ;;  %v815_v53 = vsel %vm13217_vm6, %v814_v48, %v813_v55 }
  0xd2   :  { %13580 = vst [vmem:[#allocation80_spill] sm:$0xff] %v7200_v44  ;;  %v818_v10 = vrot.slane %v7046_v47, 2  ;;  %v349_v34 = vunpack.c.l.b16 %v245_v54  ;;  %v13584_v43 = vrot.slane %v7130_v9, 5  ;;  %v13079_v38 = vrot.slane %v7075_v28, 1 }
  0xd3   :  { %13582 = vst [vmem:[#allocation81_spill] sm:$0xff] %v7206_v33  ;;  %v13585_v36 = vrot.slane %v7130_v9, 6  ;;  %v7228_v54 = vsel %vm13229_vm9, %v7067_v13, %v7206_v33  ;;  %v13081_v45 = vrot.slane %v7193_v63, 4  ;;  %v7236_v51 = vunpack.i.l.s16 %v1024_v32 }
  0xd4   :  { %v681_v12 = vsel %vm13227_vm11, %v13584_v43, %v679_v58  ;;  %v7233_v58 = vsel %vm13226_vm12, %v1135_v20, %v1134_v18  ;;  %v817_v43 = vsel %vm13216_vm7, %v816_v40, %v815_v53  ;;  %v7241_v50 = vunpack.i.l.s16 %v349_v34 }
  0xd5   :  { %v752_v48 = vsel %vm13227_vm11, %v13585_v36, %v750_v6  ;;  %13586 = vst [vmem:[#allocation24_spill] sm:$0xff] %v7233_v58  ;;  %v819_v15 = vsel %vm13214_vm8, %v818_v10, %v817_v43  ;;  %v827_v6 = vrot.slane %v6526_v42, 5  ;;  %v828_v36 = vrot.slane %v13549_v59, 4 }
  0xd6   :  { %13587 = vst [vmem:[#allocation82_spill] sm:$0xff] %v7236_v51  ;;  %v13589_v55 = vpack.c.b16 %v6969_v16, %v6747_v7  ;;  %v821_v32 = vsel %vm13229_vm9, %v13079_v38, %v819_v15  ;;  %v13590_v40 = vrot.slane %v7193_v63, 2  ;;  %v13591_v34 = vrot.slane %v7193_v63, 3  ;;  %v7263_v20 = vpop.permute.xlu1 %250 }
  0xd7   :  { %13588 = vst [vmem:[#allocation83_spill] sm:$0xff] %v7241_v50  ;;  %v7268_v15 = vsel %vm13226_vm12, %v13081_v45, %v681_v12  ;;  %v822_v33 = vsel %vm13228_vm10, %v6960_v5, %v821_v32  ;;  %v829_v12 = vsel %vm13217_vm6, %v828_v36, %v827_v6  ;;  %v550_v45 = vrot.slane %v7241_v50, 4  ;;  %v7285_v16 = vpop.permute.xlu2 %270 }
  0xd8   :  { %707 = vrot.lane.b32.xlu0 %v13589_v55, %s6124_s17  ;;  %v541_v18 = vsel %vm13226_vm12, %v13590_v40, %v539_v29  ;;  %v7258_v53 = vsel %vm13226_vm12, %v13591_v34, %v610_v24  ;;  %v1184_v55 = vrot.slane %v6448_v8, 6  ;;  %v249_v43 = vpop.permute.xlu0 %248  ;;  %13592 = vst [vmem:[#allocation84_spill] sm:$0xff] %v7263_v20  ;;  %v13593_v29 = vrot.slane %v7193_v63, 5 }
  0xd9   :  { %v830_v24 = vrot.slane %v13554_v19, 3  ;;  %v13594_v34 = vrot.slane %v6467_v27, 7  ;;  %v350_v7 = vunpack.c.l.b16 %v249_v43  ;;  %13595 = vst [vmem:[#allocation85_spill] sm:$0xff] %v7285_v16  ;;  %v1194_v51 = vrot.slane %v6777_v31, 1 }
  0xda   :  { %v7273_v40 = vsel %vm13226_vm12, %v13593_v29, %v752_v48  ;;  %v13596_v48 = vrot.slane %v7130_v9, 7  ;;  %v1186_v6 = vrot.slane %v6680_v1, 5  ;;  %v354_v36 = vunpack.c.l.b16 %v7213_v46 }
  0xdb   :  { %v1183_v38 = vsel %vm13216_vm7, %v13594_v34, %v6958_v60  ;;  %v1196_v60 = vrot.slane %v6870_v0, 7  ;;  %v7292_v43 = vunpack.i.l.s16 %v350_v7  ;;  %v832_v34 = vrot.slane %v13560_v49, 2 }
  0xdc   :  { %v824_v29 = vsel %vm13227_vm11, %v13596_v48, %v822_v33  ;;  %v7296_v32 = vsel %vm13214_vm8, %v1184_v55, %v1183_v38  ;;  %v621_v10 = vrot.slane %v7241_v50, 5  ;;  %v831_v16 = vsel %vm13216_vm7, %v830_v24, %v829_v12 }
  0xdd   :  { %13597 = vst [vmem:[#allocation86_spill] sm:$0xff] %v7292_v43  ;;  %v1198_v33 = vrot.slane %v6949_v26, 6  ;;  %v552_v48 = vrot.slane %v7292_v43, 3  ;;  %v692_v7 = vrot.slane %v7241_v50, 6  ;;  %v763_v22 = vrot.slane %v7241_v50, 7 }
  0xde   :  { %13598 = vst [vmem:[#allocation87_spill] sm:$0xff] %v7296_v32  ;;  %v1195_v38 = vsel %vm13217_vm6, %v6642_v37, %v1194_v51  ;;  %v13599_v46 = vpack.c.b16 %v6985_v21, %v6759_v4  ;;  %v551_v55 = vsel %vm13228_vm10, %v550_v45, %v7134_v3  ;;  %v834_v24 = vrot.slane %v7067_v13, 1 }
  0xdf   :  { %v1197_v12 = vsel %vm13216_vm7, %v1196_v60, %v1195_v38  ;;  %v1200_v20 = vrot.slane %v13561_v35, 5  ;;  %v553_v44 = vsel %vm13227_vm11, %v552_v48, %v551_v55  ;;  %v623_v30 = vrot.slane %v7292_v43, 4 }
  0xe0   :  { %779 = vrot.lane.b32.xlu0 %v13599_v46, %s6125_s18  ;;  %v7320_v51 = vsel %vm13214_vm8, %v832_v34, %v831_v16  ;;  %v1199_v58 = vsel %vm13214_vm8, %v1198_v33, %v1197_v12  ;;  %v7323_v4 = vpop.permute.xlu0 %254  ;;  %v257_v46 = vpop.permute.xlu1 %256  ;;  %v13602_v3 = vrot.slane %v7177_v62, 2  ;;  %v1188_v38 = vrot.slane %v6673_v23, 4 }
  0xe1   :  { %13600 = vst [vmem:[#allocation88_spill] sm:$0xff] %v7320_v51  ;;  %v1202_v48 = vrot.slane %v13570_v14, 4  ;;  %v7331_v21 = vunpack.i.l.s16 %v354_v36  ;;  %v694_v16 = vrot.slane %v7292_v43, 5  ;;  %v1187_v34 = vsel %vm13229_vm9, %v1186_v6, %v7296_v32 }
  0xe2   :  { %13601 = vst [vmem:[#allocation89_spill] sm:$0xff] %v7323_v4  ;;  %v555_v45 = vsel %vm13226_vm12, %v13602_v3, %v553_v44  ;;  %v622_v33 = vsel %vm13228_vm10, %v621_v10, %v7142_v2  ;;  %v765_v12 = vrot.slane %v7292_v43, 6  ;;  %v835_v44 = vsel %vm13229_vm9, %v834_v24, %v7320_v51  ;;  %v7349_v10 = vpop.permute.xlu2 %276 }
  0xe3   :  { %v563_v55 = vpack.c.b16 %v555_v45, %v541_v18  ;;  %13603 = vst [vmem:[#allocation90_spill] sm:$0xff] %v7331_v21  ;;  %v1201_v3 = vsel %vm13229_vm9, %v1200_v20, %v1199_v58  ;;  %v624_v18 = vsel %vm13227_vm11, %v623_v30, %v622_v33  ;;  %v693_v36 = vsel %vm13228_vm10, %v692_v7, %v7189_v41 }
  0xe4   :  { %v764_v6 = vsel %vm13228_vm10, %v763_v22, %v7228_v54  ;;  %v837_v45 = vrot.slane %v7292_v43, 7  ;;  %v352_v2 = vunpack.c.l.b16 %v257_v46  ;;  %13604 = vst [vmem:[#allocation91_spill] sm:$0xff] %v7349_v10  ;;  %v1190_v60 = vrot.slane %v6614_v61, 3  ;;  %v13605_v54 = vld [vmem:[#allocation51_spill] sm:$0xff] }
  0xe5   :  { %567 = vrot.lane.b32.xlu1 %v563_v55, %s6122_s15  ;;  %v1203_v24 = vsel %vm13228_vm10, %v1202_v48, %v1201_v3  ;;  %v1204_v58 = vrot.slane %v13576_v57, 3  ;;  %v695_v20 = vsel %vm13227_vm11, %v694_v16, %v693_v36  ;;  %v836_v30 = vsel %vm13228_vm10, %v7241_v50, %v835_v44 }
  0xe6   :  { %v1189_v41 = vsel %vm13228_vm10, %v1188_v38, %v1187_v34  ;;  %v1192_v22 = vrot.slane %v6724_v11, 2  ;;  %v13606_v7 = vpack.c.b16 %v6998_v25, %v13605_v54  ;;  %v13607_v46 = vrot.slane %v7177_v62, 3 }
  0xe7   :  { %v766_v55 = vsel %vm13227_vm11, %v765_v12, %v764_v6  ;;  %v839_v16 = vrot.slane %v7177_v62, 6  ;;  %v1206_v33 = vrot.slane %v13583_v39, 2  ;;  %v13608_v38 = vrot.slane %v7193_v63, 6 }
  0xe8   :  { %851 = vrot.lane.b32.xlu0 %v13606_v7, %s6126_s20  ;;  %v626_v48 = vsel %vm13226_vm12, %v13607_v46, %v624_v18  ;;  %v838_v44 = vsel %vm13227_vm11, %v837_v45, %v836_v30  ;;  %v1205_v3 = vsel %vm13227_vm11, %v1204_v58, %v1203_v24  ;;  %v886_v36 = vrot.slane %v6933_v56, 5  ;;  %v261_v18 = vpop.permute.xlu0 %260  ;;  %v7379_v7 = vpop.permute.xlu1 %262 }
  0xe9   :  { %v7372_v34 = vsel %vm13226_vm12, %v13608_v38, %v824_v29  ;;  %v7377_v54 = vunpack.i.l.s16 %v352_v2  ;;  %13610 = vst [vmem:[#allocation92_spill] sm:$0xff] %v7379_v7  ;;  %v13611_v12 = vrot.slane %v7177_v62, 4  ;;  %v1191_v29 = vsel %vm13227_vm11, %v1190_v60, %v1189_v41 }
  0xea   :  { %v353_v38 = vunpack.c.l.b16 %v261_v18  ;;  %v634_v45 = vpack.c.b16 %v626_v48, %v7258_v53  ;;  %v13612_v24 = vrot.slane %v7177_v62, 5  ;;  %v885_v2 = vrot.slane %v6920_v17, 6  ;;  %v13614_v48 = vld [vmem:[#allocation12_spill] sm:$0xff]  ;;  %v13615_v18 = vld [vmem:[#allocation11_spill] sm:$0xff] }
  0xeb   :  { %13609 = vst [vmem:[#allocation51_spill] sm:$0xff] %v7377_v54  ;;  %v697_v6 = vsel %vm13226_vm12, %v13611_v12, %v695_v20  ;;  %v7394_v30 = vsel %vm13226_vm12, %v839_v16, %v838_v44  ;;  %v7397_v32 = vsel %vm13226_vm12, %v1192_v22, %v1191_v29  ;;  %v7400_v20 = vsel %vm13226_vm12, %v1206_v33, %v1205_v3 }
  0xec   :  { %v7390_v58 = vsel %vm13226_vm12, %v13612_v24, %v766_v55  ;;  %13613 = vst [vmem:[#allocation93_spill] sm:$0xff] %v7400_v20  ;;  %v888_v60 = vrot.slane %v6784_v52, 4  ;;  %v887_v53 = vsel %vm13217_vm6, %v886_v36, %v885_v2  ;;  %v890_v41 = vrot.slane %v7046_v47, 3  ;;  %v13618_v24 = vld [vmem:[#allocation52_spill] sm:$0xff] }
  0xed   :  { %638 = vrot.lane.b32.xlu1 %v634_v45, %s6123_s16  ;;  %v1251_v55 = vrot.slane %v13614_v48, 2  ;;  %v1252_v12 = vrot.slane %v13615_v18, 1  ;;  %v7408_v16 = vunpack.i.l.s16 %v353_v38  ;;  %v705_v22 = vpack.c.b16 %v697_v6, %v7268_v15  ;;  %v13617_v38 = vld [vmem:[#allocation67_spill] sm:$0xff]  ;;  %v283_v6 = vpop.permute.xlu2 %282 }
  0xee   :  { %v556_v44 = vrot.slane %v7377_v54, 1  ;;  %v627_v3 = vrot.slane %v7377_v54, 2  ;;  %v13619_v15 = vpack.c.b16 %v13617_v38, %v13618_v24  ;;  %v889_v2 = vsel %vm13216_vm7, %v888_v60, %v887_v53 }
  0xef   :  { %13616 = vst [vmem:[#allocation12_spill] sm:$0xff] %v7408_v16  ;;  %v899_v33 = vrot.slane %v6526_v42, 6  ;;  %v900_v46 = vrot.slane %v13549_v59, 5  ;;  %v1255_v36 = vrot.slane %v6448_v8, 7  ;;  %v2097_v51 = vunpack.c.l.b16 %v283_v6 }
  0xf0   :  { %923 = vrot.lane.b32.xlu0 %v13619_v15, %s6127_s21  ;;  %v891_v29 = vsel %vm13214_vm8, %v890_v41, %v889_v2  ;;  %v902_v45 = vrot.slane %v13554_v19, 4  ;;  %v1253_v25 = vsel %vm13217_vm6, %v1252_v12, %v1251_v55  ;;  %v7431_v7 = vpop.permute.xlu0 %266  ;;  %v269_v24 = vpop.permute.xlu1 %268  ;;  %v628_v15 = vrot.slane %v7408_v16, 1 }
  0xf1   :  { %13620 = vst [vmem:[#allocation11_spill] sm:$0xff] %v7431_v7  ;;  %v699_v60 = vrot.slane %v7408_v16, 2  ;;  %v901_v38 = vsel %vm13217_vm6, %v900_v46, %v899_v33  ;;  %v355_v10 = vunpack.c.l.b16 %v269_v24  ;;  %v13621_v6 = vrot.slane %v7075_v28, 2 }
  0xf2   :  { %v1257_v2 = vrot.slane %v6680_v1, 6  ;;  %v1259_v55 = vrot.slane %v6673_v23, 5  ;;  %v698_v12 = vrot.slane %v7377_v54, 3  ;;  %v701_v7 = vrot.slane %v7331_v21, 1 }
  0xf3   :  { %v893_v41 = vsel %vm13229_vm9, %v13621_v6, %v891_v29  ;;  %v904_v8 = vrot.slane %v13560_v49, 3  ;;  %v7446_v53 = vunpack.i.l.s16 %v355_v10  ;;  %v557_v46 = vsel %vm13217_vm6, %v7408_v16, %v556_v44 }
  0xf4   :  { %v903_v33 = vsel %vm13216_vm7, %v902_v45, %v901_v38  ;;  %v1254_v29 = vsel %vm13216_vm7, %v6467_v27, %v1253_v25  ;;  %v7454_v24 = vunpack.i.l.s16 %v2097_v51  ;;  %v629_v6 = vsel %vm13217_vm6, %v628_v15, %v627_v3  ;;  %v13624_v25 = vld [vmem:[#allocation69_spill] sm:$0xff]  ;;  %v13625_v51 = vld [vmem:[#allocation55_spill] sm:$0xff] }
  0xf5   :  { %13622 = vst [vmem:[#allocation52_spill] sm:$0xff] %v7446_v53  ;;  %709 = vrot.lane.b32.xlu1 %v705_v22, %s6124_s17  ;;  %v700_v4 = vsel %vm13217_vm6, %v699_v60, %v698_v12  ;;  %v13623_v23 = vrot.slane %v6960_v5, 1  ;;  %v560_v22 = vrot.slane %v7446_v53, 6  ;;  %v631_v1 = vrot.slane %v7446_v53, 7 }
  0xf6   :  { %v906_v44 = vrot.slane %v7067_v13, 2  ;;  %v7465_v45 = vsel %vm13214_vm8, %v1255_v36, %v1254_v29  ;;  %v13626_v3 = vpack.c.b16 %v13624_v25, %v13625_v51  ;;  %v13627_v38 = vrot.slane %v7331_v21, 7 }
  0xf7   :  { %v895_v10 = vsel %vm13228_vm10, %v13623_v23, %v893_v41  ;;  %v7477_v60 = vsel %vm13214_vm8, %v904_v8, %v903_v33  ;;  %v908_v41 = vrot.slane %v7241_v50, 1  ;;  %v630_v12 = vsel %vm13216_vm7, %v7331_v21, %v629_v6 }
  0xf8   :  { %995 = vrot.lane.b32.xlu0 %v13626_v3, %s6128_s22  ;;  %v559_v15 = vsel %vm13216_vm7, %v13627_v38, %v557_v46  ;;  %v896_v23 = vsel %vm13227_vm11, %v7130_v9, %v895_v10  ;;  %13628 = vst [vmem:[#allocation55_spill] sm:$0xff] %v7477_v60  ;;  %v702_v29 = vsel %vm13216_vm7, %v701_v7, %v700_v4  ;;  %v13629_v51 = vrot.slane %v7193_v63, 7  ;;  %v7489_v46 = vpop.permute.xlu0 %272  ;;  %v275_v10 = vpop.permute.xlu1 %274 }
  0xf9   :  { %v561_v36 = vsel %vm13214_vm8, %v560_v22, %v559_v15  ;;  %13630 = vst [vmem:[#allocation94_spill] sm:$0xff] %v7489_v46  ;;  %v911_v8 = vrot.slane %v7177_v62, 7  ;;  %v1258_v33 = vsel %vm13229_vm9, %v1257_v2, %v7465_v45  ;;  %v1265_v22 = vrot.slane %v6777_v31, 2 }
  0xfa   :  { %v7487_v3 = vsel %vm13226_vm12, %v13629_v51, %v896_v23  ;;  %v7491_v38 = vpack.c.b16 %v561_v36, %v561_v36  ;;  %v2095_v6 = vunpack.c.l.b16 %v275_v10  ;;  %v632_v4 = vsel %vm13214_vm8, %v631_v1, %v630_v12 }
  0xfb   :  { %v907_v7 = vsel %vm13229_vm9, %v906_v44, %v7477_v60  ;;  %v1261_v15 = vrot.slane %v6614_v61, 4  ;;  %v1263_v36 = vrot.slane %v6724_v11, 3  ;;  %v1266_v51 = vrot.slane %v6642_v37, 1 }
  0xfc   :  { %13631 = vst [vmem:[#allocation95_spill] sm:$0xff] %v7491_v38  ;;  %569 = vrot.lane.b32.xlu2 %v7491_v38, %s6122_s15  ;;  %v909_v23 = vsel %vm13228_vm10, %v908_v41, %v907_v7  ;;  %v1269_v2 = vrot.slane %v6949_v26, 7  ;;  %v13632_v1 = vpack.c.b16 %v7390_v58, %v7273_v40  ;;  %v703_v44 = vsel %vm13214_vm8, %v7446_v53, %v702_v29 }
  0xfd   :  { %v910_v12 = vsel %vm13227_vm11, %v7292_v43, %v909_v23  ;;  %v1260_v10 = vsel %vm13228_vm10, %v1259_v55, %v1258_v33  ;;  %v1271_v41 = vrot.slane %v13561_v35, 6  ;;  %v7517_v7 = vunpack.i.l.s16 %v2095_v6  ;;  %v13634_v55 = vld [vmem:[#allocation24_spill] sm:$0xff]  ;;  %v13635_v33 = vld [vmem:[#allocation73_spill] sm:$0xff] }
  0xfe   :  { %781 = vrot.lane.b32.xlu1 %v13632_v1, %s6125_s18  ;;  %v7519_v60 = vpack.c.b16 %v632_v4, %v632_v4  ;;  %v1267_v38 = vsel %vm13217_vm6, %v1266_v51, %v1265_v22  ;;  %v1273_v25 = vrot.slane %v13570_v14, 5  ;;  %v1275_v58 = vrot.slane %v13576_v57, 4 }
  0xff   :  { %v1268_v40 = vsel %vm13216_vm7, %v6870_v0, %v1267_v38  ;;  %v769_v29 = vrot.slane %v7377_v54, 4  ;;  %v770_v23 = vrot.slane %v7408_v16, 3  ;;  %v13636_v6 = vpack.c.b16 %v13634_v55, %v13635_v33 }
 0x100   :  { %13633 = vst [vmem:[#allocation96_spill] sm:$0xff] %v7519_v60  ;;  %v912_v4 = vsel %vm13226_vm12, %v911_v8, %v910_v12  ;;  %v1270_v22 = vsel %vm13214_vm8, %v1269_v2, %v1268_v40  ;;  %v1277_v51 = vrot.slane %v13583_v39, 3  ;;  %v2199_v38 = vrot.slane %v7517_v7, 6  ;;  %v279_v26 = vpop.permute.xlu0 %278  ;;  %v7540_v57 = vpop.permute.xlu1 %280 }
 0x101   :  { %1174 = vrot.lane.b32.xlu0 %v13636_v6, %s6129_s23  ;;  %v1272_v1 = vsel %vm13229_vm9, %v1271_v41, %v1270_v22  ;;  %v771_v46 = vsel %vm13217_vm6, %v770_v23, %v769_v29  ;;  %v772_v16 = vrot.slane %v7331_v21, 2  ;;  %v774_v54 = vrot.slane %v7446_v53, 1  ;;  %13637 = vst [vmem:[#allocation73_spill] sm:$0xff] %v7540_v57 }
 0x102   :  { %v1274_v33 = vsel %vm13228_vm10, %v1273_v25, %v1272_v1  ;;  %v957_v8 = vrot.slane %v6920_v17, 7  ;;  %v958_v2 = vrot.slane %v6933_v56, 6  ;;  %v960_v12 = vrot.slane %v6784_v52, 5 }
 0x103   :  { %v2096_v40 = vunpack.c.l.b16 %v279_v26  ;;  %v7546_v6 = vpack.c.b16 %v703_v44, %v703_v44  ;;  %v1262_v41 = vsel %vm13227_vm11, %v1261_v15, %v1260_v10  ;;  %v1276_v29 = vsel %vm13227_vm11, %v1275_v58, %v1274_v33 }
 0x104   :  { %640 = vrot.lane.b32.xlu2 %v7519_v60, %s6123_s16  ;;  %v921_v23 = vpack.c.b16 %v912_v4, %v7487_v3  ;;  %v1264_v25 = vsel %vm13226_vm12, %v1263_v36, %v1262_v41  ;;  %v959_v22 = vsel %vm13217_vm6, %v958_v2, %v957_v8  ;;  %v962_v1 = vrot.slane %v7046_v47, 4 }
 0x105   :  { %13638 = vst [vmem:[#allocation97_spill] sm:$0xff] %v7546_v6  ;;  %v7556_v55 = vunpack.i.l.s16 %v2096_v40  ;;  %v13639_v26 = vpack.c.b16 %v7394_v30, %v7372_v34  ;;  %v2200_v15 = vsel %vm13229_vm9, %v2199_v38, %v7465_v45  ;;  %v2203_v44 = vrot.slane %v7454_v24, 4 }
 0x106   :  { %v773_v3 = vsel %vm13216_vm7, %v772_v16, %v771_v46  ;;  %v7567_v36 = vsel %vm13226_vm12, %v1277_v51, %v1276_v29  ;;  %v961_v58 = vsel %vm13216_vm7, %v960_v12, %v959_v22  ;;  %v13111_v4 = vrot.slane %v7075_v28, 3 }
 0x107   :  { %853 = vrot.lane.b32.xlu1 %v13639_v26, %s6126_s20  ;;  %13640 = vst [vmem:[#allocation98_spill] sm:$0xff] %v7567_v36  ;;  %v775_v10 = vsel %vm13214_vm8, %v774_v54, %v773_v3  ;;  %v2201_v33 = vrot.slane %v7556_v55, 5  ;;  %v971_v34 = vrot.slane %v6526_v42, 7  ;;  %v972_v30 = vrot.slane %v13549_v59, 6  ;;  %v13668_v42 = vld [vmem:[#allocation31_spill] sm:$0xff] }
 0x108   :  { %v974_v45 = vrot.slane %v13554_v19, 5  ;;  %v13641_v16 = vpack.c.b16 %v7400_v20, %v7397_v32  ;;  %v963_v54 = vsel %vm13214_vm8, %v962_v1, %v961_v58  ;;  %v13110_v46 = vrot.slane %v6960_v5, 2  ;;  %v287_v32 = vpop.permute.xlu1 %286 }
 0x109   :  { %v976_v51 = vrot.slane %v13560_v49, 4  ;;  %v978_v38 = vrot.slane %v7067_v13, 3  ;;  %v965_v8 = vsel %vm13229_vm9, %v13111_v4, %v963_v54  ;;  %v13109_v2 = vrot.slane %v7130_v9, 1  ;;  %v13644_v54 = vld [vmem:[#allocation47_spill] sm:$0xff]  ;;  %v13649_v4 = vld [vmem:[#allocation80_spill] sm:$0xff] }
 0x10a   :  { %1245 = vrot.lane.b32.xlu0 %v13641_v16, %s6130_s24  ;;  %v973_v12 = vsel %vm13217_vm6, %v972_v30, %v971_v34  ;;  %v980_v40 = vrot.slane %v7241_v50, 2  ;;  %v2202_v41 = vsel %vm13228_vm10, %v2201_v33, %v2200_v15  ;;  %v982_v22 = vrot.slane %v7292_v43, 1 }
 0x10b   :  { %v975_v29 = vsel %vm13216_vm7, %v974_v45, %v973_v12  ;;  %v1322_v1 = vrot.slane %v13614_v48, 3  ;;  %v2098_v26 = vunpack.c.l.b16 %v287_v32  ;;  %v1313_v3 = vpack.c.b16 %v7567_v36, %v1264_v25  ;;  %v13645_v32 = vld [vmem:[#allocation45_spill] sm:$0xff]  ;;  %v13652_v36 = vld [vmem:[#allocation51_spill] sm:$0xff] }
 0x10c   :  { %v7595_v58 = vpack.c.b16 %v775_v10, %v775_v10  ;;  %v7598_v16 = vsel %vm13214_vm8, %v976_v51, %v975_v29  ;;  %711 = vrot.lane.b32.xlu2 %v7546_v6, %s6124_s17  ;;  %v967_v15 = vsel %vm13228_vm10, %v13110_v46, %v965_v8  ;;  %v1323_v34 = vrot.slane %v13615_v18, 2  ;;  %v13650_v6 = vld [vmem:[#allocation60_spill] sm:$0xff] }
 0x10d   :  { %13643 = vst [vmem:[#allocation100_spill] sm:$0xff] %v7598_v16  ;;  %v979_v33 = vsel %vm13229_vm9, %v978_v38, %v7598_v16  ;;  %v1325_v30 = vrot.slane %v6467_v27, 1  ;;  %v7609_v25 = vunpack.i.l.s16 %v2098_v26  ;;  %v2204_v10 = vsel %vm13227_vm11, %v2203_v44, %v2202_v41 }
 0x10e   :  { %13642 = vst [vmem:[#allocation99_spill] sm:$0xff] %v7595_v58  ;;  %v981_v45 = vsel %vm13228_vm10, %v980_v40, %v979_v33  ;;  %v1328_v51 = vrot.slane %v13644_v54, 7  ;;  %v969_v8 = vsel %vm13227_vm11, %v13109_v2, %v967_v15  ;;  %v1324_v12 = vsel %vm13217_vm6, %v1323_v34, %v1322_v1 }
 0x10f   :  { %925 = vrot.lane.b32.xlu1 %v921_v23, %s6127_s21  ;;  %v983_v38 = vsel %vm13227_vm11, %v982_v22, %v981_v45  ;;  %v1330_v29 = vrot.slane %v13645_v32, 6  ;;  %v2205_v26 = vrot.slane %v7609_v25, 3  ;;  %v970_v23 = vsel %vm13226_vm12, %v7193_v63, %v969_v8  ;;  %v13646_v22 = vld [vmem:[#allocation13_spill] sm:$0xff] }
 0x110   :  { %v1326_v44 = vsel %vm13216_vm7, %v1325_v30, %v1324_v12  ;;  %v1336_v40 = vrot.slane %v6777_v31, 3  ;;  %v984_v41 = vsel %vm13226_vm12, %v7177_v62, %v983_v38  ;;  %v1337_v15 = vrot.slane %v6642_v37, 2  ;;  %v13664_v62 = vld [vmem:[#allocation77_spill] sm:$0xff] }
 0x111   :  { %v1327_v1 = vsel %vm13214_vm8, %v13646_v22, %v1326_v44  ;;  %v1339_v33 = vrot.slane %v6870_v0, 1  ;;  %v7634_v34 = vsel %vm13226_vm12, %v2205_v26, %v2204_v10  ;;  %v1332_v45 = vrot.slane %v6614_v61, 5  ;;  %v13648_v26 = vld [vmem:[#allocation20_spill] sm:$0xff] }
 0x112   :  { %1316 = vrot.lane.b32.xlu0 %v1313_v3, %s6131_s25  ;;  %13647 = vst [vmem:[#allocation45_spill] sm:$0xff] %v7634_v34  ;;  %v1329_v30 = vsel %vm13229_vm9, %v1328_v51, %v1327_v1  ;;  %v1342_v8 = vrot.slane %v13561_v35, 7  ;;  %v1338_v12 = vsel %vm13217_vm6, %v1337_v15, %v1336_v40  ;;  %v1344_v44 = vrot.slane %v13570_v14, 6  ;;  %v13651_v15 = vld [vmem:[#allocation84_spill] sm:$0xff] }
 0x113   :  { %v1331_v38 = vsel %vm13228_vm10, %v1330_v29, %v1329_v30  ;;  %v993_v2 = vpack.c.b16 %v984_v41, %v970_v23  ;;  %v1334_v46 = vrot.slane %v6724_v11, 4  ;;  %v1340_v10 = vsel %vm13216_vm7, %v1339_v33, %v1338_v12 }
 0x114   :  { %v1346_v51 = vrot.slane %v13648_v26, 5  ;;  %v1029_v16 = vunpack.c.l.b16 %v13649_v4  ;;  %783 = vrot.lane.b32.xlu2 %v7595_v58, %s6125_s18  ;;  %v1341_v3 = vsel %vm13214_vm8, %v13650_v6, %v1340_v10  ;;  %v1348_v29 = vrot.slane %v13583_v39, 4 }
 0x115   :  { %v2233_v40 = vrot.slane %v7517_v7, 7  ;;  %v1031_v23 = vunpack.c.l.b16 %v13651_v15  ;;  %v1333_v41 = vsel %vm13227_vm11, %v1332_v45, %v1331_v38  ;;  %v1343_v33 = vsel %vm13229_vm9, %v1342_v8, %v1341_v3  ;;  %v13654_v38 = vld [vmem:[#allocation12_spill] sm:$0xff] }
 0x116   :  { %v2235_v4 = vrot.slane %v7556_v55, 6  ;;  %v1345_v30 = vsel %vm13228_vm10, %v1344_v44, %v1343_v33  ;;  %v2237_v10 = vrot.slane %v7454_v24, 5  ;;  %v2239_v58 = vrot.slane %v7609_v25, 4 }
 0x117   :  { %997 = vrot.lane.b32.xlu1 %v993_v2, %s6128_s22  ;;  %v2234_v12 = vsel %vm13229_vm9, %v2233_v40, %v1327_v1  ;;  %v1335_v34 = vsel %vm13226_vm12, %v1334_v46, %v1333_v41  ;;  %v1347_v15 = vsel %vm13227_vm11, %v1346_v51, %v1345_v30  ;;  %v841_v45 = vrot.slane %v13652_v36, 5  ;;  %v13655_v40 = vld [vmem:[#allocation89_spill] sm:$0xff] }
 0x118   :  { %v2236_v2 = vsel %vm13228_vm10, %v2235_v4, %v2234_v12  ;;  %v7668_v8 = vsel %vm13226_vm12, %v1348_v29, %v1347_v15  ;;  %v842_v44 = vrot.slane %v13654_v38, 4  ;;  %v844_v1 = vrot.slane %v7331_v21, 3  ;;  %v13657_v4 = vld [vmem:[#allocation66_spill] sm:$0xff]  ;;  %v13658_v12 = vld [vmem:[#allocation72_spill] sm:$0xff]  ;;  %v13659_v15 = vld [vmem:[#allocation71_spill] sm:$0xff] }
 0x119   :  { %13653 = vst [vmem:[#allocation13_spill] sm:$0xff] %v7668_v8  ;;  %v2238_v3 = vsel %vm13227_vm11, %v2237_v10, %v2236_v2  ;;  %v1032_v33 = vunpack.c.l.b16 %v13655_v40  ;;  %v1384_v20 = vpack.c.b16 %v7668_v8, %v1335_v34  ;;  %v846_v51 = vrot.slane %v7446_v53, 2  ;;  %v13661_v34 = vld [vmem:[#allocation61_spill] sm:$0xff] }
 0x11a   :  { %v7676_v46 = vsel %vm13226_vm12, %v2239_v58, %v2238_v3  ;;  %v843_v29 = vsel %vm13217_vm6, %v842_v44, %v841_v45  ;;  %v1137_v30 = vrot.slane %v13657_v4, 7  ;;  %v1139_v10 = vrot.slane %v13658_v12, 6  ;;  %v13662_v45 = vld [vmem:[#allocation50_spill] sm:$0xff] }
 0x11b   :  { %13656 = vst [vmem:[#allocation20_spill] sm:$0xff] %v7676_v46  ;;  %v13660_v2 = vunpack.c.l.b16 %v13659_v15  ;;  %v7688_v40 = vunpack.i.l.s16 %v1029_v16  ;;  %1387 = vrot.lane.b32.xlu0 %v1384_v20, %s6132_s26  ;;  %v845_v58 = vsel %vm13216_vm7, %v844_v1, %v843_v29  ;;  %v1141_v3 = vrot.slane %v13661_v34, 5  ;;  %v13663_v46 = vld [vmem:[#allocation9_spill] sm:$0xff]  ;;  %v13666_v29 = vld [vmem:[#allocation68_spill] sm:$0xff]  ;;  %v13670_v15 = vld [vmem:[#allocation30_spill] sm:$0xff] }
 0x11c   :  { %v847_v41 = vsel %vm13214_vm8, %v846_v51, %v845_v58  ;;  %v1138_v44 = vsel %vm13217_vm6, %v1137_v30, %v13662_v45  ;;  %v13128_v8 = vrot.slane %v13663_v46, 4  ;;  %v7700_v16 = vunpack.i.l.s16 %v1032_v33  ;;  %v13667_v51 = vld [vmem:[#allocation82_spill] sm:$0xff]  ;;  %v13669_v33 = vld [vmem:[#allocation28_spill] sm:$0xff] }
 0x11d   :  { %v7686_v60 = vunpack.i.l.s16 %v13660_v2  ;;  %v7698_v2 = vunpack.i.l.s16 %v1031_v23  ;;  %v7702_v43 = vpack.c.b16 %v847_v41, %v847_v41  ;;  %v1140_v20 = vsel %vm13216_vm7, %v1139_v10, %v1138_v44 }
 0x11e   :  { %v1142_v1 = vsel %vm13214_vm8, %v1141_v3, %v1140_v20  ;;  %v1151_v30 = vrot.slane %v13668_v42, 7  ;;  %v1153_v41 = vrot.slane %v13669_v33, 6  ;;  %v1155_v13 = vrot.slane %v13670_v15, 5  ;;  %v13672_v20 = vld [vmem:[#allocation25_spill] sm:$0xff] }
 0x11f   :  { %13665 = vst [vmem:[#allocation80_spill] sm:$0xff] %v7702_v43  ;;  %855 = vrot.lane.b32.xlu2 %v7702_v43, %s6126_s20  ;;  %v1144_v23 = vsel %vm13229_vm9, %v13128_v8, %v1142_v1  ;;  %v1157_v10 = vrot.slane %v7688_v40, 4  ;;  %v13671_v3 = vrot.slane %v13664_v62, 3  ;;  %v1159_v50 = vrot.slane %v7686_v60, 3 }
 0x120   :  { %v1152_v58 = vsel %vm13217_vm6, %v1151_v30, %v13672_v20  ;;  %v13673_v43 = vrot.slane %v13666_v29, 2  ;;  %v1161_v8 = vrot.slane %v7698_v2, 2  ;;  %v1393_v19 = vrot.slane %v13614_v48, 4 }
 0x121   :  { %v1146_v44 = vsel %vm13228_vm10, %v13671_v3, %v1144_v23  ;;  %v1154_v1 = vsel %vm13216_vm7, %v1153_v41, %v1152_v58  ;;  %v1163_v23 = vrot.slane %v7700_v16, 1  ;;  %v1394_v3 = vrot.slane %v13615_v18, 3 }
 0x122   :  { %v1148_v49 = vsel %vm13227_vm11, %v13673_v43, %v1146_v44  ;;  %v7730_v59 = vsel %vm13214_vm8, %v1155_v13, %v1154_v1  ;;  %v1396_v30 = vrot.slane %v6467_v27, 2  ;;  %v13675_v63 = vrot.slane %v13667_v51, 1 }
 0x123   :  { %13674 = vst [vmem:[#allocation60_spill] sm:$0xff] %v7730_v59  ;;  %v1158_v43 = vsel %vm13229_vm9, %v1157_v10, %v7730_v59  ;;  %v1398_v58 = vrot.slane %v13646_v22, 1  ;;  %v1401_v41 = vrot.slane %v13645_v32, 7  ;;  %v1395_v44 = vsel %vm13217_vm6, %v1394_v3, %v1393_v19 }
 0x124   :  { %v1150_v9 = vsel %vm13226_vm12, %v13675_v63, %v1148_v49  ;;  %v1160_v13 = vsel %vm13228_vm10, %v1159_v50, %v1158_v43  ;;  %v1403_v1 = vrot.slane %v6614_v61, 6  ;;  %v1407_v5 = vrot.slane %v6777_v31, 4 }
 0x125   :  { %v1162_v28 = vsel %vm13227_vm11, %v1161_v8, %v1160_v13  ;;  %v1397_v47 = vsel %vm13216_vm7, %v1396_v30, %v1395_v44  ;;  %v1408_v49 = vrot.slane %v6642_v37, 3  ;;  %v1410_v63 = vrot.slane %v6870_v0, 2 }
 0x126   :  { %v1164_v10 = vsel %vm13226_vm12, %v1163_v23, %v1162_v28  ;;  %v1399_v59 = vsel %vm13214_vm8, %v1398_v58, %v1397_v47  ;;  %v1405_v50 = vrot.slane %v6724_v11, 5  ;;  %v1412_v19 = vrot.slane %v13650_v6, 1 }
 0x127   :  { %v1172_v3 = vpack.c.b16 %v1164_v10, %v1150_v9  ;;  %v1400_v43 = vsel %vm13229_vm9, %v13644_v54, %v1399_v59  ;;  %v1409_v8 = vsel %vm13217_vm6, %v1408_v49, %v1407_v5  ;;  %v1415_v30 = vrot.slane %v13570_v14, 7 }
 0x128   :  { %v1402_v13 = vsel %vm13228_vm10, %v1401_v41, %v1400_v43  ;;  %v1411_v44 = vsel %vm13216_vm7, %v1410_v63, %v1409_v8  ;;  %v1417_v28 = vrot.slane %v13648_v26, 6  ;;  %v2267_v47 = vsel %vm13229_vm9, %v7517_v7, %v1399_v59  ;;  %v13676_v63 = vld [vmem:[#allocation76_spill] sm:$0xff]  ;;  %v13677_v43 = vld [vmem:[#allocation85_spill] sm:$0xff] }
 0x129   :  { %1176 = vrot.lane.b32.xlu1 %v1172_v3, %s6129_s23  ;;  %v1413_v9 = vsel %vm13214_vm8, %v1412_v19, %v1411_v44  ;;  %v1419_v23 = vrot.slane %v13583_v39, 5  ;;  %v2268_v58 = vrot.slane %v7556_v55, 7  ;;  %v2270_v5 = vrot.slane %v7454_v24, 6  ;;  %v13678_v19 = vld [vmem:[#allocation91_spill] sm:$0xff] }
 0x12a   :  { %v1414_v41 = vsel %vm13229_vm9, %v13561_v35, %v1413_v9  ;;  %v2272_v49 = vrot.slane %v7609_v25, 5  ;;  %v1404_v17 = vsel %vm13227_vm11, %v1403_v1, %v1402_v13  ;;  %v914_v1 = vrot.slane %v13654_v38, 5 }
 0x12b   :  { %v1416_v59 = vsel %vm13228_vm10, %v1415_v30, %v1414_v41  ;;  %v2269_v3 = vsel %vm13228_vm10, %v2268_v58, %v2267_v47  ;;  %v1406_v9 = vsel %vm13226_vm12, %v1405_v50, %v1404_v17  ;;  %v913_v30 = vrot.slane %v13652_v36, 6 }
 0x12c   :  { %v1418_v52 = vsel %vm13227_vm11, %v1417_v28, %v1416_v59  ;;  %v2271_v56 = vsel %vm13227_vm11, %v2270_v5, %v2269_v3  ;;  %v916_v13 = vrot.slane %v7331_v21, 4  ;;  %v918_v28 = vrot.slane %v7446_v53, 3 }
 0x12d   :  { %v7781_v57 = vsel %vm13226_vm12, %v1419_v23, %v1418_v52  ;;  %v7784_v10 = vsel %vm13226_vm12, %v2272_v49, %v2271_v56  ;;  %v1208_v17 = vrot.slane %v13662_v45, 1  ;;  %v1210_v52 = vrot.slane %v13658_v12, 7 }
 0x12e   :  { %13679 = vst [vmem:[#allocation84_spill] sm:$0xff] %v7781_v57  ;;  %v1456_v47 = vpack.c.b16 %v7781_v57, %v1406_v9  ;;  %v1212_v56 = vrot.slane %v13661_v34, 6  ;;  %v915_v50 = vsel %vm13217_vm6, %v914_v1, %v913_v30  ;;  %v13145_v23 = vrot.slane %v13663_v46, 5 }
 0x12f   :  { %13680 = vst [vmem:[#allocation89_spill] sm:$0xff] %v7784_v10  ;;  %v13146_v5 = vrot.slane %v13664_v62, 4  ;;  %v13150_v41 = vrot.slane %v13666_v29, 3  ;;  %v917_v49 = vsel %vm13216_vm7, %v916_v13, %v915_v50  ;;  %v1209_v59 = vsel %vm13217_vm6, %v13657_v4, %v1208_v17 }
 0x130   :  { %1459 = vrot.lane.b32.xlu0 %v1456_v47, %s6133_s27  ;;  %v13153_v3 = vrot.slane %v13667_v51, 2  ;;  %v1222_v9 = vrot.slane %v13672_v20, 1  ;;  %v919_v58 = vsel %vm13214_vm8, %v918_v28, %v917_v49  ;;  %v1211_v47 = vsel %vm13216_vm7, %v1210_v52, %v1209_v59 }
 0x131   :  { %v1224_v30 = vrot.slane %v13669_v33, 7  ;;  %v1226_v1 = vrot.slane %v13670_v15, 6  ;;  %v7810_v44 = vpack.c.b16 %v919_v58, %v919_v58  ;;  %v1213_v8 = vsel %vm13214_vm8, %v1212_v56, %v1211_v47 }
 0x132   :  { %v1223_v13 = vsel %vm13217_vm6, %v13668_v42, %v1222_v9  ;;  %v1228_v17 = vrot.slane %v7688_v40, 5  ;;  %v1215_v50 = vsel %vm13229_vm9, %v13145_v23, %v1213_v8  ;;  %v1230_v52 = vrot.slane %v7686_v60, 4  ;;  %v13683_v9 = vld [vmem:[#allocation92_spill] sm:$0xff] }
 0x133   :  { %13681 = vst [vmem:[#allocation66_spill] sm:$0xff] %v7810_v44  ;;  %v1225_v28 = vsel %vm13216_vm7, %v1224_v30, %v1223_v13  ;;  %v1232_v49 = vrot.slane %v7698_v2, 3  ;;  %927 = vrot.lane.b32.xlu2 %v7810_v44, %s6127_s21  ;;  %v1217_v58 = vsel %vm13228_vm10, %v13146_v5, %v1215_v50  ;;  %v1234_v59 = vrot.slane %v7700_v16, 2 }
 0x134   :  { %v7828_v56 = vsel %vm13214_vm8, %v1226_v1, %v1225_v28  ;;  %v1465_v8 = vrot.slane %v13614_v48, 5  ;;  %v1034_v47 = vunpack.c.l.b16 %v13683_v9  ;;  %v1466_v13 = vrot.slane %v13615_v18, 4 }
 0x135   :  { %13682 = vst [vmem:[#allocation72_spill] sm:$0xff] %v7828_v56  ;;  %v1229_v30 = vsel %vm13229_vm9, %v1228_v17, %v7828_v56  ;;  %v1468_v23 = vrot.slane %v6467_v27, 3  ;;  %v1219_v50 = vsel %vm13227_vm11, %v13150_v41, %v1217_v58  ;;  %v1470_v28 = vrot.slane %v13646_v22, 2 }
 0x136   :  { %v1231_v1 = vsel %vm13228_vm10, %v1230_v52, %v1229_v30  ;;  %v1472_v5 = vrot.slane %v13644_v54, 1  ;;  %v1221_v9 = vsel %vm13226_vm12, %v13153_v3, %v1219_v50  ;;  %v1467_v44 = vsel %vm13217_vm6, %v1466_v13, %v1465_v8 }
 0x137   :  { %v1233_v17 = vsel %vm13227_vm11, %v1232_v49, %v1231_v1  ;;  %v1475_v10 = vrot.slane %v6614_v61, 7  ;;  %v1469_v58 = vsel %vm13216_vm7, %v1468_v23, %v1467_v44  ;;  %v1479_v52 = vrot.slane %v6777_v31, 5  ;;  %v7860_v44 = vpop.permute.xlu0 %284 }
 0x138   :  { %v1235_v57 = vsel %vm13226_vm12, %v1234_v59, %v1233_v17  ;;  %v1480_v30 = vrot.slane %v6642_v37, 4  ;;  %v1471_v56 = vsel %vm13214_vm8, %v1470_v28, %v1469_v58  ;;  %v1482_v54 = vrot.slane %v6870_v0, 3 }
 0x139   :  { %v1243_v41 = vpack.c.b16 %v1235_v57, %v1221_v9  ;;  %v1484_v50 = vrot.slane %v13650_v6, 2  ;;  %v1473_v49 = vsel %vm13229_vm9, %v1472_v5, %v1471_v56  ;;  %v1477_v8 = vrot.slane %v6724_v11, 6 }
 0x13a   :  { %v1481_v13 = vsel %vm13217_vm6, %v1480_v30, %v1479_v52  ;;  %v1486_v59 = vrot.slane %v13561_v35, 1  ;;  %v1474_v57 = vsel %vm13228_vm10, %v13645_v32, %v1473_v49  ;;  %v1489_v1 = vrot.slane %v13648_v26, 7 }
 0x13b   :  { %1247 = vrot.lane.b32.xlu1 %v1243_v41, %s6130_s24  ;;  %v1483_v23 = vsel %vm13216_vm7, %v1482_v54, %v1481_v13  ;;  %v2300_v28 = vrot.slane %v7517_v7, 1  ;;  %v1491_v9 = vrot.slane %v13583_v39, 6  ;;  %v2303_v17 = vrot.slane %v7454_v24, 7 }
 0x13c   :  { %v1485_v5 = vsel %vm13214_vm8, %v1484_v50, %v1483_v23  ;;  %v2305_v58 = vrot.slane %v7609_v25, 6  ;;  %v13684_v52 = vunpack.c.l.b16 %v13676_v63  ;;  %v13685_v49 = vunpack.c.l.b16 %v13677_v43 }
 0x13d   :  { %v1487_v30 = vsel %vm13229_vm9, %v1486_v59, %v1485_v5  ;;  %v2301_v54 = vsel %vm13229_vm9, %v2300_v28, %v1471_v56  ;;  %v13686_v50 = vunpack.c.l.b16 %v13678_v19  ;;  %v1476_v59 = vsel %vm13227_vm11, %v1475_v10, %v1474_v57 }
 0x13e   :  { %v7874_v41 = vunpack.i.l.s16 %v13684_v52  ;;  %v7880_v13 = vunpack.i.l.s16 %v13685_v49  ;;  %v1488_v3 = vsel %vm13228_vm10, %v13570_v14, %v1487_v30  ;;  %v2302_v63 = vsel %vm13228_vm10, %v7556_v55, %v2301_v54 }
 0x13f   :  { %v7884_v23 = vunpack.i.l.s16 %v13686_v50  ;;  %v7890_v52 = vunpack.i.l.s16 %v1034_v47  ;;  %v1490_v56 = vsel %vm13227_vm11, %v1489_v1, %v1488_v3  ;;  %v2304_v43 = vsel %vm13227_vm11, %v2303_v17, %v2302_v63  ;;  %v13689_v17 = vld [vmem:[#allocation11_spill] sm:$0xff]  ;;  %v7921_v47 = vpop.permute.xlu0 %290 }
 0x140   :  { %v1478_v28 = vsel %vm13226_vm12, %v1477_v8, %v1476_v59  ;;  %v7897_v19 = vsel %vm13226_vm12, %v1491_v9, %v1490_v56  ;;  %v7900_v5 = vsel %vm13226_vm12, %v2305_v58, %v2304_v43  ;;  %v985_v30 = vrot.slane %v13652_v36, 7  ;;  %13690 = vst [vmem:[#allocation50_spill] sm:$0xff] %v7921_v47 }
 0x141   :  { %13687 = vst [vmem:[#allocation71_spill] sm:$0xff] %v7897_v19  ;;  %v1528_v54 = vpack.c.b16 %v7897_v19, %v1478_v28  ;;  %v986_v10 = vrot.slane %v13654_v38, 6  ;;  %v988_v3 = vrot.slane %v7331_v21, 5  ;;  %v990_v57 = vrot.slane %v7446_v53, 4 }
 0x142   :  { %13688 = vst [vmem:[#allocation61_spill] sm:$0xff] %v7900_v5  ;;  %v1279_v8 = vrot.slane %v13662_v45, 2  ;;  %v1280_v1 = vrot.slane %v13657_v4, 1  ;;  %v1283_v9 = vrot.slane %v13661_v34, 7  ;;  %v1035_v58 = vunpack.c.l.b16 %v13689_v17  ;;  %v13695_v5 = vld [vmem:[#allocation47_spill] sm:$0xff] }
 0x143   :  { %1531 = vrot.lane.b32.xlu0 %v1528_v54, %s6134_s28  ;;  %v987_v49 = vsel %vm13217_vm6, %v986_v10, %v985_v30  ;;  %v13154_v50 = vrot.slane %v13663_v46, 6  ;;  %v1293_v28 = vrot.slane %v13672_v20, 2  ;;  %v1294_v30 = vrot.slane %v13668_v42, 1 }
 0x144   :  { %v989_v59 = vsel %vm13216_vm7, %v988_v3, %v987_v49  ;;  %v1281_v56 = vsel %vm13217_vm6, %v1280_v1, %v1279_v8  ;;  %v1297_v10 = vrot.slane %v13670_v15, 7  ;;  %v1299_v1 = vrot.slane %v7688_v40, 6 }
 0x145   :  { %v991_v17 = vsel %vm13214_vm8, %v990_v57, %v989_v59  ;;  %v1282_v54 = vsel %vm13216_vm7, %v13658_v12, %v1281_v56  ;;  %v1295_v57 = vsel %vm13217_vm6, %v1294_v30, %v1293_v28  ;;  %v1301_v59 = vrot.slane %v7686_v60, 5 }
 0x146   :  { %v7928_v63 = vpack.c.b16 %v991_v17, %v991_v17  ;;  %v1284_v3 = vsel %vm13214_vm8, %v1283_v9, %v1282_v54  ;;  %v1303_v56 = vrot.slane %v7698_v2, 4  ;;  %v13692_v17 = vrot.slane %v13664_v62, 5 }
 0x147   :  { %v1286_v49 = vsel %vm13229_vm9, %v13154_v50, %v1284_v3  ;;  %v1296_v54 = vsel %vm13216_vm7, %v13669_v33, %v1295_v57  ;;  %v1537_v8 = vrot.slane %v13614_v48, 6  ;;  %v1538_v3 = vrot.slane %v13615_v18, 5 }
 0x148   :  { %13691 = vst [vmem:[#allocation9_spill] sm:$0xff] %v7928_v63  ;;  %999 = vrot.lane.b32.xlu2 %v7928_v63, %s6128_s22  ;;  %v1288_v9 = vsel %vm13228_vm10, %v13692_v17, %v1286_v49  ;;  %v7949_v28 = vsel %vm13214_vm8, %v1297_v10, %v1296_v54  ;;  %v1305_v30 = vrot.slane %v7700_v16, 3  ;;  %v1540_v50 = vrot.slane %v6467_v27, 4 }
 0x149   :  { %13693 = vst [vmem:[#allocation77_spill] sm:$0xff] %v7949_v28  ;;  %v1542_v43 = vrot.slane %v13646_v22, 3  ;;  %v13694_v63 = vrot.slane %v13666_v29, 4  ;;  %v1300_v57 = vsel %vm13229_vm9, %v1299_v1, %v7949_v28  ;;  %v1539_v17 = vsel %vm13217_vm6, %v1538_v3, %v1537_v8  ;;  %v13698_v28 = vld [vmem:[#allocation73_spill] sm:$0xff] }
 0x14a   :  { %v1544_v19 = vrot.slane %v13695_v5, 2  ;;  %v13696_v10 = vrot.slane %v13667_v51, 3  ;;  %v1302_v47 = vsel %vm13228_vm10, %v1301_v59, %v1300_v57  ;;  %v1541_v36 = vsel %vm13216_vm7, %v1540_v50, %v1539_v17  ;;  %v13697_v57 = vld [vmem:[#allocation94_spill] sm:$0xff] }
 0x14b   :  { %v1290_v49 = vsel %vm13227_vm11, %v13694_v63, %v1288_v9  ;;  %v1546_v53 = vrot.slane %v13645_v32, 1  ;;  %v1304_v21 = vsel %vm13227_vm11, %v1303_v56, %v1302_v47  ;;  %v1543_v63 = vsel %vm13214_vm8, %v1542_v43, %v1541_v36  ;;  %v7978_v36 = vpop.permute.xlu0 %296 }
 0x14c   :  { %v1292_v54 = vsel %vm13226_vm12, %v13696_v10, %v1290_v49  ;;  %v1551_v1 = vrot.slane %v6777_v31, 6  ;;  %v1552_v8 = vrot.slane %v6642_v37, 5  ;;  %v1306_v9 = vsel %vm13226_vm12, %v1305_v30, %v1304_v21  ;;  %v7984_v30 = vpop.permute.xlu2 %288 }
 0x14d   :  { %v1545_v3 = vsel %vm13229_vm9, %v1544_v19, %v1543_v63  ;;  %v1554_v49 = vrot.slane %v6870_v0, 4  ;;  %v1556_v59 = vrot.slane %v13650_v6, 3  ;;  %v1791_v50 = vunpack.c.l.b16 %v13697_v57 }
 0x14e   :  { %v1314_v17 = vpack.c.b16 %v1306_v9, %v1292_v54  ;;  %v1553_v10 = vsel %vm13217_vm6, %v1552_v8, %v1551_v1  ;;  %v1558_v47 = vrot.slane %v13561_v35, 2  ;;  %v1547_v43 = vsel %vm13228_vm10, %v1546_v53, %v1545_v3 }
 0x14f   :  { %v1549_v56 = vrot.slane %v6724_v11, 7  ;;  %v1555_v21 = vsel %vm13216_vm7, %v1554_v49, %v1553_v10  ;;  %v1560_v19 = vrot.slane %v13570_v14, 1  ;;  %v1563_v1 = vrot.slane %v13583_v39, 7 }
 0x150   :  { %1318 = vrot.lane.b32.xlu1 %v1314_v17, %s6131_s25  ;;  %v1557_v54 = vsel %vm13214_vm8, %v1556_v59, %v1555_v21  ;;  %v2333_v8 = vrot.slane %v7517_v7, 2  ;;  %v2335_v9 = vrot.slane %v7556_v55, 1  ;;  %v7991_v57 = vunpack.i.l.s16 %v1035_v58 }
 0x151   :  { %v1559_v3 = vsel %vm13229_vm9, %v1558_v47, %v1557_v54  ;;  %v2338_v49 = vrot.slane %v7609_v25, 7  ;;  %v7996_v10 = vunpack.i.l.s16 %v1791_v50  ;;  %v1165_v21 = vrot.slane %v7890_v52, 7 }
 0x152   :  { %v1561_v17 = vsel %vm13228_vm10, %v1560_v19, %v1559_v3  ;;  %v2334_v59 = vsel %vm13229_vm9, %v2333_v8, %v1543_v63  ;;  %v1548_v58 = vsel %vm13227_vm11, %v6614_v61, %v1547_v43  ;;  %v1167_v3 = vrot.slane %v7991_v57, 6 }
 0x153   :  { %v1562_v53 = vsel %vm13227_vm11, %v13648_v26, %v1561_v17  ;;  %v2336_v47 = vsel %vm13228_vm10, %v2335_v9, %v2334_v59  ;;  %v1550_v54 = vsel %vm13226_vm12, %v1549_v56, %v1548_v58  ;;  %v1166_v19 = vsel %vm13217_vm6, %v1165_v21, %v7874_v41  ;;  %v8035_v38 = vpop.permute.xlu0 %302 }
 0x154   :  { %v8009_v50 = vsel %vm13226_vm12, %v1563_v1, %v1562_v53  ;;  %v2337_v63 = vsel %vm13227_vm11, %v7454_v24, %v2336_v47  ;;  %v1169_v9 = vrot.slane %v7880_v13, 5  ;;  %v1350_v1 = vrot.slane %v13662_v45, 3  ;;  %13701 = vst [vmem:[#allocation31_spill] sm:$0xff] %v8035_v38 }
 0x155   :  { %13699 = vst [vmem:[#allocation68_spill] sm:$0xff] %v8009_v50  ;;  %v1600_v8 = vpack.c.b16 %v8009_v50, %v1550_v54  ;;  %v8017_v43 = vsel %vm13226_vm12, %v2338_v49, %v2337_v63  ;;  %v1351_v53 = vrot.slane %v13657_v4, 2  ;;  %v1353_v17 = vrot.slane %v13658_v12, 1 }
 0x156   :  { %13700 = vst [vmem:[#allocation82_spill] sm:$0xff] %v8017_v43  ;;  %v1168_v59 = vsel %vm13216_vm7, %v1167_v3, %v1166_v19  ;;  %v13167_v49 = vrot.slane %v13663_v46, 7  ;;  %v13166_v21 = vrot.slane %v13664_v62, 6  ;;  %v1364_v56 = vrot.slane %v13672_v20, 3 }
 0x157   :  { %1603 = vrot.lane.b32.xlu0 %v1600_v8, %s13250_s29  ;;  %v1170_v47 = vsel %vm13214_vm8, %v1169_v9, %v1168_v59  ;;  %v1352_v54 = vsel %vm13217_vm6, %v1351_v53, %v1350_v1  ;;  %v1365_v8 = vrot.slane %v13668_v42, 2  ;;  %v1367_v3 = vrot.slane %v13669_v33, 1 }
 0x158   :  { %v8037_v43 = vpack.c.b16 %v1170_v47, %v1170_v47  ;;  %v1354_v19 = vsel %vm13216_vm7, %v1353_v17, %v1352_v54  ;;  %v1370_v9 = vrot.slane %v7688_v40, 7  ;;  %v1372_v1 = vrot.slane %v7686_v60, 6 }
 0x159   :  { %v1355_v58 = vsel %vm13214_vm8, %v13661_v34, %v1354_v19  ;;  %v1374_v53 = vrot.slane %v7698_v2, 5  ;;  %v1366_v59 = vsel %vm13217_vm6, %v1365_v8, %v1364_v56  ;;  %v1376_v47 = vrot.slane %v7700_v16, 4 }
 0x15a   :  { %13702 = vst [vmem:[#allocation28_spill] sm:$0xff] %v8037_v43  ;;  %1178 = vrot.lane.b32.xlu2 %v8037_v43, %s6129_s23  ;;  %v1357_v17 = vsel %vm13229_vm9, %v13167_v49, %v1355_v58  ;;  %v1609_v54 = vrot.slane %v13614_v48, 7  ;;  %v1368_v63 = vsel %vm13216_vm7, %v1367_v3, %v1366_v59  ;;  %v1610_v50 = vrot.slane %v13615_v18, 6 }
 0x15b   :  { %v1359_v19 = vsel %vm13228_vm10, %v13166_v21, %v1357_v17  ;;  %v1612_v43 = vrot.slane %v6467_v27, 5  ;;  %v13703_v38 = vrot.slane %v13666_v29, 5  ;;  %v8066_v56 = vsel %vm13214_vm8, %v13670_v15, %v1368_v63  ;;  %v8083_v21 = vpop.permute.xlu2 %294 }
 0x15c   :  { %13704 = vst [vmem:[#allocation30_spill] sm:$0xff] %v8066_v56  ;;  %v1614_v48 = vrot.slane %v13646_v22, 4  ;;  %v1616_v8 = vrot.slane %v13695_v5, 3  ;;  %v13705_v17 = vrot.slane %v13667_v51, 4  ;;  %v1371_v18 = vsel %vm13229_vm9, %v1370_v9, %v8066_v56 }
 0x15d   :  { %v1361_v58 = vsel %vm13227_vm11, %v13703_v38, %v1359_v19  ;;  %v1611_v27 = vsel %vm13217_vm6, %v1610_v50, %v1609_v54  ;;  %v1618_v59 = vrot.slane %v13645_v32, 2  ;;  %v8077_v38 = vpop.permute.xlu1 %292  ;;  %v1373_v63 = vsel %vm13228_vm10, %v1372_v1, %v1371_v18 }
 0x15e   :  { %v1363_v3 = vsel %vm13226_vm12, %v13705_v17, %v1361_v58  ;;  %v1613_v19 = vsel %vm13216_vm7, %v1612_v43, %v1611_v27  ;;  %v1620_v22 = vrot.slane %v6614_v61, 1  ;;  %v1623_v5 = vrot.slane %v6777_v31, 7 }
 0x15f   :  { %v1375_v58 = vsel %vm13227_vm11, %v1374_v53, %v1373_v63  ;;  %v1615_v9 = vsel %vm13214_vm8, %v1614_v48, %v1613_v19  ;;  %v1624_v50 = vrot.slane %v6642_v37, 6  ;;  %v1626_v32 = vrot.slane %v6870_v0, 5  ;;  %v8097_v37 = vpop.permute.xlu0 %308  ;;  %v13707_v19 = vld [vmem:[#allocation15_spill] sm:$0xff] }
 0x160   :  { %v1377_v54 = vsel %vm13226_vm12, %v1376_v47, %v1375_v58  ;;  %v1617_v1 = vsel %vm13229_vm9, %v1616_v8, %v1615_v9  ;;  %v1628_v43 = vrot.slane %v13650_v6, 4  ;;  %v1630_v61 = vrot.slane %v13561_v35, 3 }
 0x161   :  { %v1385_v17 = vpack.c.b16 %v1377_v54, %v1363_v3  ;;  %v1619_v31 = vsel %vm13228_vm10, %v1618_v59, %v1617_v1  ;;  %v1625_v18 = vsel %vm13217_vm6, %v1624_v50, %v1623_v5  ;;  %v1632_v53 = vrot.slane %v13570_v14, 2  ;;  %v13706_v59 = vld [vmem:[#allocation8_spill] sm:$0xff]  ;;  %v13708_v50 = vld [vmem:[#allocation14_spill] sm:$0xff] }
 0x162   :  { %v1794_v48 = vunpack.c.l.b16 %v7860_v44  ;;  %v1627_v0 = vsel %vm13216_vm7, %v1626_v32, %v1625_v18  ;;  %v1634_v47 = vrot.slane %v13648_v26, 1  ;;  %v2366_v8 = vrot.slane %v7517_v7, 3  ;;  %v13709_v32 = vld [vmem:[#allocation37_spill] sm:$0xff] }
 0x163   :  { %1389 = vrot.lane.b32.xlu1 %v1385_v17, %s6132_s26  ;;  %v1621_v35 = vsel %vm13227_vm11, %v1620_v22, %v1619_v31  ;;  %v1629_v6 = vsel %vm13214_vm8, %v1628_v43, %v1627_v0  ;;  %v2368_v3 = vrot.slane %v7556_v55, 2  ;;  %v2370_v14 = vrot.slane %v7454_v24, 1  ;;  %v13710_v17 = vld [vmem:[#allocation10_spill] sm:$0xff] }
 0x164   :  { %v1631_v44 = vsel %vm13229_vm9, %v1630_v61, %v1629_v6  ;;  %v2367_v27 = vsel %vm13229_vm9, %v2366_v8, %v1615_v9  ;;  %v428_v63 = vrot.slane %v13706_v59, 7  ;;  %v431_v26 = vrot.slane %v13707_v19, 6  ;;  %v13711_v9 = vld [vmem:[#allocation40_spill] sm:$0xff]  ;;  %v13717_v19 = vld [vmem:[#allocation46_spill] sm:$0xff] }
 0x165   :  { %v1633_v5 = vsel %vm13228_vm10, %v1632_v53, %v1631_v44  ;;  %v2369_v58 = vsel %vm13228_vm10, %v2368_v3, %v2367_v27  ;;  %v434_v22 = vrot.slane %v13708_v50, 5  ;;  %v437_v54 = vrot.slane %v13709_v32, 4  ;;  %v8135_v3 = vpop.permute.xlu1 %298  ;;  %v13715_v27 = vld [vmem:[#allocation49_spill] sm:$0xff]  ;;  %v13718_v50 = vld [vmem:[#allocation34_spill] sm:$0xff]  ;;  %v13719_v32 = vld [vmem:[#allocation48_spill] sm:$0xff] }
 0x166   :  { %v1635_v1 = vsel %vm13227_vm11, %v1634_v47, %v1633_v5  ;;  %v2371_v43 = vsel %vm13227_vm11, %v2370_v14, %v2369_v58  ;;  %v430_v61 = vsel %vm13217_vm6, %v428_v63, %v13710_v17  ;;  %v440_v31 = vrot.slane %v13711_v9, 3  ;;  %v13721_v17 = vld [vmem:[#allocation18_spill] sm:$0xff]  ;;  %v13722_v9 = vld [vmem:[#allocation23_spill] sm:$0xff] }
 0x167   :  { %v1622_v18 = vsel %vm13226_vm12, %v6724_v11, %v1621_v35  ;;  %v8124_v53 = vsel %vm13226_vm12, %v13583_v39, %v1635_v1  ;;  %v8128_v0 = vsel %vm13226_vm12, %v7609_v25, %v2371_v43  ;;  %v433_v47 = vsel %vm13216_vm7, %v431_v26, %v430_v61  ;;  %v8143_v35 = vpop.permute.xlu2 %300  ;;  %v13720_v43 = vld [vmem:[#allocation41_spill] sm:$0xff] }
 0x168   :  { %13712 = vst [vmem:[#allocation25_spill] sm:$0xff] %v8124_v53  ;;  %v13714_v8 = vunpack.c.l.b16 %v13698_v28  ;;  %v1672_v14 = vpack.c.b16 %v8124_v53, %v1622_v18  ;;  %v8141_v39 = vsel %vm13214_vm8, %v434_v22, %v433_v47  ;;  %v449_v59 = vrot.slane %v13715_v27, 7  ;;  %v13716_v28 = vld [vmem:[#allocation53_spill] sm:$0xff] }
 0x169   :  { %13713 = vst [vmem:[#allocation76_spill] sm:$0xff] %v8128_v0  ;;  %v439_v44 = vsel %vm13229_vm9, %v437_v54, %v8141_v39  ;;  %v451_v63 = vrot.slane %v13716_v28, 6  ;;  %v453_v26 = vrot.slane %v13717_v19, 5  ;;  %v8150_v5 = vunpack.i.l.s16 %v1794_v48  ;;  %v13723_v47 = vld [vmem:[#allocation17_spill] sm:$0xff]  ;;  %v8161_v48 = vpop.permute.xlu0 %314 }
 0x16a   :  { %v8133_v6 = vunpack.i.l.s16 %v13714_v8  ;;  %1675 = vrot.lane.b32.xlu0 %v1672_v14, %s6136_s30  ;;  %v442_v58 = vsel %vm13228_vm10, %v440_v31, %v439_v44  ;;  %v443_v22 = vrot.slane %v13718_v50, 2  ;;  %v446_v1 = vrot.slane %v13719_v32, 1  ;;  %v13724_v14 = vld [vmem:[#allocation21_spill] sm:$0xff] }
 0x16b   :  { %v450_v54 = vsel %vm13217_vm6, %v449_v59, %v13720_v43  ;;  %v457_v61 = vrot.slane %v13721_v17, 3  ;;  %v459_v18 = vrot.slane %v13722_v9, 2  ;;  %v455_v8 = vrot.slane %v13723_v47, 4 }
 0x16c   :  { %v452_v27 = vsel %vm13216_vm7, %v451_v63, %v450_v54  ;;  %v461_v28 = vrot.slane %v13724_v14, 1  ;;  %v1236_v31 = vrot.slane %v7874_v41, 1  ;;  %v1238_v44 = vrot.slane %v7991_v57, 7 }
 0x16d   :  { %v454_v19 = vsel %vm13214_vm8, %v453_v26, %v452_v27  ;;  %v1240_v59 = vrot.slane %v7880_v13, 6  ;;  %v1421_v50 = vrot.slane %v13662_v45, 4  ;;  %v1422_v32 = vrot.slane %v13657_v4, 3 }
 0x16e   :  { %v456_v43 = vsel %vm13229_vm9, %v455_v8, %v454_v19  ;;  %v1237_v17 = vsel %vm13217_vm6, %v7890_v52, %v1236_v31  ;;  %v1424_v63 = vrot.slane %v13658_v12, 2  ;;  %v1426_v54 = vrot.slane %v13661_v34, 1 }
 0x16f   :  { %v445_v9 = vsel %vm13227_vm11, %v443_v22, %v442_v58  ;;  %v458_v47 = vsel %vm13228_vm10, %v457_v61, %v456_v43  ;;  %v1239_v26 = vsel %vm13216_vm7, %v1238_v44, %v1237_v17  ;;  %v1423_v27 = vsel %vm13217_vm6, %v1422_v32, %v1421_v50  ;;  %v8193_v61 = vpop.permute.xlu1 %304 }
 0x170   :  { %v460_v14 = vsel %vm13227_vm11, %v459_v18, %v458_v47  ;;  %v1241_v11 = vsel %vm13214_vm8, %v1240_v59, %v1239_v26  ;;  %v1425_v8 = vsel %vm13216_vm7, %v1424_v63, %v1423_v27  ;;  %v13168_v31 = vrot.slane %v13664_v62, 7 }
 0x171   :  { %v1796_v19 = vunpack.c.l.b16 %v8077_v38  ;;  %v8186_v49 = vsel %vm13226_vm12, %v446_v1, %v445_v9  ;;  %v8189_v58 = vsel %vm13226_vm12, %v461_v28, %v460_v14  ;;  %v8191_v22 = vpack.c.b16 %v1241_v11, %v1241_v11  ;;  %v8200_v38 = vpop.permute.xlu2 %306  ;;  %v8219_v14 = vpop.permute.xlu0 %565 }
 0x172   :  { %13725 = vst [vmem:[#allocation85_spill] sm:$0xff] %v8186_v49  ;;  %v1427_v44 = vsel %vm13214_vm8, %v1426_v54, %v1425_v8  ;;  %v1435_v59 = vrot.slane %v13672_v20, 4  ;;  %v1436_v50 = vrot.slane %v13668_v42, 3  ;;  %v13170_v1 = vrot.slane %v13666_v29, 6 }
 0x173   :  { %13726 = vst [vmem:[#allocation91_spill] sm:$0xff] %v8191_v22  ;;  %1249 = vrot.lane.b32.xlu2 %v8191_v22, %s6130_s24  ;;  %v1428_v11 = vsel %vm13229_vm9, %v13663_v46, %v1427_v44  ;;  %v1438_v28 = vrot.slane %v13669_v33, 2  ;;  %v1440_v32 = vrot.slane %v13670_v15, 1  ;;  %v13173_v17 = vrot.slane %v13667_v51, 5 }
 0x174   :  { %v1430_v43 = vsel %vm13228_vm10, %v13168_v31, %v1428_v11  ;;  %v1437_v63 = vsel %vm13217_vm6, %v1436_v50, %v1435_v59  ;;  %v1443_v54 = vrot.slane %v7686_v60, 7  ;;  %v1445_v47 = vrot.slane %v7698_v2, 6 }
 0x175   :  { %v1439_v9 = vsel %vm13216_vm7, %v1438_v28, %v1437_v63  ;;  %v1447_v26 = vrot.slane %v7700_v16, 5  ;;  %v1827_v27 = vrot.slane %v7996_v10, 4  ;;  %v1829_v44 = vrot.slane %v7884_v23, 3 }
 0x176   :  { %v8222_v8 = vsel %vm13214_vm8, %v1440_v32, %v1439_v9  ;;  %v1831_v11 = vrot.slane %v8133_v6, 2  ;;  %v1833_v59 = vrot.slane %v8150_v5, 1  ;;  %v1432_v50 = vsel %vm13227_vm11, %v13170_v1, %v1430_v43 }
 0x177   :  { %13727 = vst [vmem:[#allocation92_spill] sm:$0xff] %v8222_v8  ;;  %v1442_v28 = vsel %vm13229_vm9, %v7688_v40, %v8222_v8  ;;  %v1828_v63 = vsel %vm13229_vm9, %v1827_v27, %v8141_v39  ;;  %v1307_v32 = vrot.slane %v7874_v41, 2  ;;  %v1434_v9 = vsel %vm13226_vm12, %v13173_v17, %v1432_v50 }
 0x178   :  { %v1444_v31 = vsel %vm13228_vm10, %v1443_v54, %v1442_v28  ;;  %v1830_v18 = vsel %vm13228_vm10, %v1829_v44, %v1828_v63  ;;  %v1308_v22 = vrot.slane %v7890_v52, 1  ;;  %v1311_v0 = vrot.slane %v7880_v13, 7 }
 0x179   :  { %v1446_v43 = vsel %vm13227_vm11, %v1445_v47, %v1444_v31  ;;  %v1832_v1 = vsel %vm13227_vm11, %v1831_v11, %v1830_v18  ;;  %v1493_v39 = vrot.slane %v13662_v45, 5  ;;  %v1494_v54 = vrot.slane %v13657_v4, 4  ;;  %v8254_v47 = vpop.permute.xlu1 %310 }
 0x17a   :  { %v1448_v27 = vsel %vm13226_vm12, %v1447_v26, %v1446_v43  ;;  %v1834_v53 = vsel %vm13226_vm12, %v1833_v59, %v1832_v1  ;;  %v1309_v50 = vsel %vm13217_vm6, %v1308_v22, %v1307_v32  ;;  %v1496_v18 = vrot.slane %v13658_v12, 3  ;;  %v8266_v32 = vpop.permute.xlu2 %312 }
 0x17b   :  { %v1457_v28 = vpack.c.b16 %v1448_v27, %v1434_v9  ;;  %v1853_v44 = vpack.c.b16 %v8189_v58, %v1834_v53  ;;  %v1310_v31 = vsel %vm13216_vm7, %v7991_v57, %v1309_v50  ;;  %v1495_v26 = vsel %vm13217_vm6, %v1494_v54, %v1493_v39 }
 0x17c   :  { %v1312_v11 = vsel %vm13214_vm8, %v1311_v0, %v1310_v31  ;;  %v1498_v1 = vrot.slane %v13661_v34, 2  ;;  %v13174_v22 = vrot.slane %v13663_v46, 1  ;;  %v13728_v59 = vunpack.c.l.b16 %v7984_v30 }
 0x17d   :  { %v8264_v53 = vunpack.i.l.s16 %v1796_v19  ;;  %1461 = vrot.lane.b32.xlu1 %v1457_v28, %s6133_s27  ;;  %1855 = vrot.lane.b32.xlu0 %v1853_v44, %s6120_s19  ;;  %v8270_v9 = vpack.c.b16 %v1312_v11, %v1312_v11  ;;  %v1497_v0 = vsel %vm13216_vm7, %v1496_v18, %v1495_v26  ;;  %v1507_v39 = vrot.slane %v13672_v20, 5  ;;  %v8285_v44 = vpop.permute.xlu0 %636 }
 0x17e   :  { %v8262_v63 = vunpack.i.l.s16 %v13728_v59  ;;  %v1499_v43 = vsel %vm13214_vm8, %v1498_v1, %v1497_v0  ;;  %v1508_v30 = vrot.slane %v13668_v42, 4  ;;  %v1510_v27 = vrot.slane %v13669_v33, 3  ;;  %13730 = vst [vmem:[#allocation47_spill] sm:$0xff] %v8285_v44 }
 0x17f   :  { %13729 = vst [vmem:[#allocation11_spill] sm:$0xff] %v8270_v9  ;;  %1320 = vrot.lane.b32.xlu2 %v8270_v9, %s6131_s25  ;;  %v1501_v19 = vsel %vm13229_vm9, %v13174_v22, %v1499_v43  ;;  %v13177_v50 = vrot.slane %v13666_v29, 7  ;;  %v1512_v54 = vrot.slane %v13670_v15, 2  ;;  %v1514_v28 = vrot.slane %v7688_v40, 1 }
 0x180   :  { %v1502_v31 = vsel %vm13228_vm10, %v13664_v62, %v1501_v19  ;;  %v1509_v11 = vsel %vm13217_vm6, %v1508_v30, %v1507_v39  ;;  %v1861_v26 = vrot.slane %v7996_v10, 5  ;;  %v1517_v59 = vrot.slane %v7698_v2, 7  ;;  %v13732_v19 = vld [vmem:[#allocation32_spill] sm:$0xff] }
 0x181   :  { %v1511_v1 = vsel %vm13216_vm7, %v1510_v27, %v1509_v11  ;;  %v1863_v0 = vrot.slane %v7884_v23, 4  ;;  %v1865_v43 = vrot.slane %v8133_v6, 3  ;;  %v1519_v22 = vrot.slane %v7700_v16, 6 }
 0x182   :  { %v8297_v17 = vsel %vm13214_vm8, %v1512_v54, %v1511_v1  ;;  %v1862_v18 = vsel %vm13229_vm9, %v1861_v26, %v13732_v19  ;;  %v1867_v39 = vrot.slane %v8150_v5, 2  ;;  %v1504_v30 = vsel %vm13227_vm11, %v13177_v50, %v1502_v31 }
 0x183   :  { %13731 = vst [vmem:[#allocation94_spill] sm:$0xff] %v8297_v17  ;;  %v1515_v27 = vsel %vm13229_vm9, %v1514_v28, %v8297_v17  ;;  %v1864_v11 = vsel %vm13228_vm10, %v1863_v0, %v1862_v18  ;;  %v1378_v9 = vrot.slane %v7874_v41, 3  ;;  %v13733_v54 = vrot.slane %v13667_v51, 6  ;;  %v8321_v0 = vpop.permute.xlu1 %316 }
 0x184   :  { %v1516_v26 = vsel %vm13228_vm10, %v7686_v60, %v1515_v27  ;;  %v1866_v19 = vsel %vm13227_vm11, %v1865_v43, %v1864_v11  ;;  %v1379_v8 = vrot.slane %v7890_v52, 2  ;;  %v1381_v28 = vrot.slane %v7991_v57, 1  ;;  %v8327_v11 = vpop.permute.xlu2 %318 }
 0x185   :  { %v1506_v1 = vsel %vm13226_vm12, %v13733_v54, %v1504_v30  ;;  %v1518_v31 = vsel %vm13227_vm11, %v1517_v59, %v1516_v26  ;;  %v1868_v50 = vsel %vm13226_vm12, %v1867_v39, %v1866_v19  ;;  %v1565_v18 = vrot.slane %v13662_v45, 6  ;;  %v13734_v30 = vld [vmem:[#allocation59_spill] sm:$0xff] }
 0x186   :  { %v1520_v17 = vsel %vm13226_vm12, %v1519_v22, %v1518_v31  ;;  %v1887_v54 = vpack.c.b16 %v13734_v30, %v1868_v50  ;;  %v1380_v27 = vsel %vm13217_vm6, %v1379_v8, %v1378_v9  ;;  %v1566_v43 = vrot.slane %v13657_v4, 5 }
 0x187   :  { %v1529_v56 = vpack.c.b16 %v1520_v17, %v1506_v1  ;;  %v1382_v59 = vsel %vm13216_vm7, %v1381_v28, %v1380_v27  ;;  %v1568_v39 = vrot.slane %v13658_v12, 4  ;;  %v1570_v26 = vrot.slane %v13661_v34, 3  ;;  %v8344_v28 = vpop.permute.xlu0 %707 }
 0x188   :  { %1889 = vrot.lane.b32.xlu0 %v1887_v54, %s6121_s6  ;;  %v1383_v22 = vsel %vm13214_vm8, %v7880_v13, %v1382_v59  ;;  %v1567_v50 = vsel %vm13217_vm6, %v1566_v43, %v1565_v18  ;;  %v13180_v8 = vrot.slane %v13663_v46, 2  ;;  %v13182_v9 = vrot.slane %v13664_v62, 1  ;;  %13736 = vst [vmem:[#allocation8_spill] sm:$0xff] %v8344_v28 }
 0x189   :  { %v1798_v19 = vunpack.c.l.b16 %v8143_v35  ;;  %1533 = vrot.lane.b32.xlu1 %v1529_v56, %s6134_s28  ;;  %v8340_v17 = vpack.c.b16 %v1383_v22, %v1383_v22  ;;  %v1569_v1 = vsel %vm13216_vm7, %v1568_v39, %v1567_v50  ;;  %v1579_v31 = vrot.slane %v13672_v20, 6 }
 0x18a   :  { %v1571_v30 = vsel %vm13214_vm8, %v1570_v26, %v1569_v1  ;;  %v1580_v18 = vrot.slane %v13668_v42, 5  ;;  %v1582_v54 = vrot.slane %v13669_v33, 4  ;;  %v1584_v27 = vrot.slane %v13670_v15, 3 }
 0x18b   :  { %13735 = vst [vmem:[#allocation73_spill] sm:$0xff] %v8340_v17  ;;  %1391 = vrot.lane.b32.xlu2 %v8340_v17, %s6132_s26  ;;  %v1573_v56 = vsel %vm13229_vm9, %v13180_v8, %v1571_v30  ;;  %v1586_v43 = vrot.slane %v7688_v40, 2  ;;  %v1588_v59 = vrot.slane %v7686_v60, 1  ;;  %v1895_v22 = vrot.slane %v7996_v10, 6 }
 0x18c   :  { %v1575_v39 = vsel %vm13228_vm10, %v13182_v9, %v1573_v56  ;;  %v1581_v26 = vsel %vm13217_vm6, %v1580_v18, %v1579_v31  ;;  %v1897_v50 = vrot.slane %v7884_v23, 5  ;;  %v1797_v1 = vunpack.c.l.b16 %v7978_v36  ;;  %v13738_v18 = vld [vmem:[#allocation35_spill] sm:$0xff]  ;;  %v8376_v9 = vpop.permute.xlu1 %567 }
 0x18d   :  { %v1583_v30 = vsel %vm13216_vm7, %v1582_v54, %v1581_v26  ;;  %v1899_v8 = vrot.slane %v8133_v6, 4  ;;  %v1901_v35 = vrot.slane %v8150_v5, 3  ;;  %v1576_v17 = vsel %vm13227_vm11, %v13666_v29, %v1575_v39  ;;  %13739 = vst [vmem:[#allocation14_spill] sm:$0xff] %v8376_v9 }
 0x18e   :  { %v8371_v28 = vsel %vm13214_vm8, %v1584_v27, %v1583_v30  ;;  %v1591_v31 = vrot.slane %v7700_v16, 7  ;;  %v1896_v56 = vsel %vm13229_vm9, %v1895_v22, %v13738_v18  ;;  %v13740_v36 = vrot.slane %v13667_v51, 7  ;;  %v8385_v27 = vpop.permute.xlu2 %569 }
 0x18f   :  { %13737 = vst [vmem:[#allocation15_spill] sm:$0xff] %v8371_v28  ;;  %v1587_v26 = vsel %vm13229_vm9, %v1586_v43, %v8371_v28  ;;  %v1898_v44 = vsel %vm13228_vm10, %v1897_v50, %v1896_v56  ;;  %v1449_v39 = vrot.slane %v7874_v41, 4  ;;  %v1450_v22 = vrot.slane %v7890_v52, 3  ;;  %v13742_v28 = vld [vmem:[#allocation57_spill] sm:$0xff] }
 0x190   :  { %v1578_v54 = vsel %vm13226_vm12, %v13740_v36, %v1576_v17  ;;  %13741 = vst [vmem:[#allocation37_spill] sm:$0xff] %v8385_v27  ;;  %v1589_v30 = vsel %vm13228_vm10, %v1588_v59, %v1587_v26  ;;  %v1900_v49 = vsel %vm13227_vm11, %v1899_v8, %v1898_v44  ;;  %v1452_v18 = vrot.slane %v7991_v57, 2 }
 0x191   :  { %v1590_v17 = vsel %vm13227_vm11, %v7698_v2, %v1589_v30  ;;  %v1902_v36 = vsel %vm13226_vm12, %v1901_v35, %v1900_v49  ;;  %v1454_v43 = vrot.slane %v7880_v13, 1  ;;  %v1637_v50 = vrot.slane %v13662_v45, 7  ;;  %v8406_v45 = vpop.permute.xlu0 %779 }
 0x192   :  { %v1592_v56 = vsel %vm13226_vm12, %v1591_v31, %v1590_v17  ;;  %v1921_v9 = vpack.c.b16 %v13742_v28, %v1902_v36  ;;  %v1451_v59 = vsel %vm13217_vm6, %v1450_v22, %v1449_v39  ;;  %v1638_v44 = vrot.slane %v13657_v4, 6 }
 0x193   :  { %v1601_v8 = vpack.c.b16 %v1592_v56, %v1578_v54  ;;  %v1453_v26 = vsel %vm13216_vm7, %v1452_v18, %v1451_v59  ;;  %v1640_v27 = vrot.slane %v13658_v12, 5  ;;  %v1642_v30 = vrot.slane %v13661_v34, 4 }
 0x194   :  { %v8403_v49 = vunpack.i.l.s16 %v1798_v19  ;;  %1923 = vrot.lane.b32.xlu0 %v1921_v9, %s6137_s5  ;;  %v1455_v28 = vsel %vm13214_vm8, %v1454_v43, %v1453_v26  ;;  %v1639_v35 = vsel %vm13217_vm6, %v1638_v44, %v1637_v50  ;;  %v13187_v4 = vrot.slane %v13663_v46, 3  ;;  %v13744_v43 = vld [vmem:[#allocation58_spill] sm:$0xff] }
 0x195   :  { %1605 = vrot.lane.b32.xlu1 %v1601_v8, %s13250_s29  ;;  %v8412_v31 = vpack.c.b16 %v1455_v28, %v1455_v28  ;;  %v1641_v12 = vsel %vm13216_vm7, %v1640_v27, %v1639_v35  ;;  %v13186_v34 = vrot.slane %v13664_v62, 2  ;;  %v1651_v19 = vrot.slane %v13672_v20, 7  ;;  %v13746_v8 = vld [vmem:[#allocation54_spill] sm:$0xff]  ;;  %v13747_v35 = vld [vmem:[#allocation56_spill] sm:$0xff] }
 0x196   :  { %v1799_v9 = vunpack.c.l.b16 %v8193_v61  ;;  %v1652_v54 = vrot.slane %v13668_v42, 6  ;;  %v1654_v39 = vrot.slane %v13669_v33, 5  ;;  %v1656_v22 = vrot.slane %v13670_v15, 4  ;;  %v8434_v61 = vpop.permute.xlu1 %638  ;;  %v8442_v56 = vpop.permute.xlu2 %640 }
 0x197   :  { %13743 = vst [vmem:[#allocation10_spill] sm:$0xff] %v8412_v31  ;;  %v8421_v18 = vunpack.i.l.s16 %v1797_v1  ;;  %v1801_v17 = vunpack.c.l.b16 %v8266_v32  ;;  %1463 = vrot.lane.b32.xlu2 %v8412_v31, %s6133_s27  ;;  %v1643_v27 = vsel %vm13214_vm8, %v1642_v30, %v1641_v12  ;;  %v1658_v36 = vrot.slane %v7688_v40, 3  ;;  %v13748_v12 = vld [vmem:[#allocation70_spill] sm:$0xff] }
 0x198   :  { %v1645_v20 = vsel %vm13229_vm9, %v13187_v4, %v1643_v27  ;;  %v13185_v42 = vrot.slane %v13666_v29, 1  ;;  %v1653_v33 = vsel %vm13217_vm6, %v1652_v54, %v1651_v19  ;;  %v1660_v15 = vrot.slane %v7686_v60, 2  ;;  %v13761_v4 = vld [vmem:[#allocation78_spill] sm:$0xff] }
 0x199   :  { %v1647_v32 = vsel %vm13228_vm10, %v13186_v34, %v1645_v20  ;;  %v1655_v1 = vsel %vm13216_vm7, %v1654_v39, %v1653_v33  ;;  %v1662_v40 = vrot.slane %v7698_v2, 1  ;;  %v463_v50 = vrot.slane %v13744_v43, 7  ;;  %v13749_v39 = vld [vmem:[#allocation75_spill] sm:$0xff]  ;;  %v13750_v20 = vld [vmem:[#allocation62_spill] sm:$0xff] }
 0x19a   :  { %v8444_v59 = vunpack.i.l.s16 %v1799_v9  ;;  %v1800_v44 = vunpack.c.l.b16 %v8097_v37  ;;  %v8448_v60 = vsel %vm13214_vm8, %v1656_v22, %v1655_v1  ;;  %v465_v26 = vrot.slane %v13746_v8, 6 }
 0x19b   :  { %13745 = vst [vmem:[#allocation40_spill] sm:$0xff] %v8448_v60  ;;  %v8451_v30 = vunpack.i.l.s16 %v1801_v17  ;;  %v1659_v28 = vsel %vm13229_vm9, %v1658_v36, %v8448_v60  ;;  %v464_v2 = vsel %vm13217_vm6, %v463_v50, %v13747_v35  ;;  %v467_v19 = vrot.slane %v13748_v12, 5  ;;  %v13752_v50 = vld [vmem:[#allocation79_spill] sm:$0xff] }
 0x19c   :  { %v1649_v9 = vsel %vm13227_vm11, %v13185_v42, %v1647_v32  ;;  %v1661_v37 = vsel %vm13228_vm10, %v1660_v15, %v1659_v28  ;;  %v466_v54 = vsel %vm13216_vm7, %v465_v26, %v464_v2  ;;  %v13191_v22 = vrot.slane %v13749_v39, 4  ;;  %v13751_v32 = vld [vmem:[#allocation22_spill] sm:$0xff]  ;;  %v8476_v26 = vpop.permute.xlu0 %851 }
 0x19d   :  { %v1650_v17 = vsel %vm13226_vm12, %v13667_v51, %v1649_v9  ;;  %v1663_v27 = vsel %vm13227_vm11, %v1662_v40, %v1661_v37  ;;  %v468_v36 = vsel %vm13214_vm8, %v467_v19, %v466_v54  ;;  %v13190_v33 = vrot.slane %v13750_v20, 3  ;;  %v13753_v2 = vld [vmem:[#allocation26_spill] sm:$0xff]  ;;  %v13754_v19 = vld [vmem:[#allocation27_spill] sm:$0xff]  ;;  %v13755_v37 = vld [vmem:[#allocation33_spill] sm:$0xff] }
 0x19e   :  { %v1664_v1 = vsel %vm13226_vm12, %v7700_v16, %v1663_v27  ;;  %v470_v15 = vsel %vm13229_vm9, %v13191_v22, %v468_v36  ;;  %v13189_v43 = vrot.slane %v13751_v32, 2  ;;  %v13188_v8 = vrot.slane %v13752_v50, 1  ;;  %v13756_v27 = vld [vmem:[#allocation74_spill] sm:$0xff]  ;;  %v8504_v34 = vpop.permute.xlu1 %709 }
 0x19f   :  { %v1802_v28 = vunpack.c.l.b16 %v8321_v0  ;;  %v1673_v40 = vpack.c.b16 %v1664_v1, %v1650_v17  ;;  %v472_v35 = vsel %vm13228_vm10, %v13190_v33, %v470_v15  ;;  %v477_v12 = vrot.slane %v13753_v2, 7  ;;  %v13757_v17 = vld [vmem:[#allocation29_spill] sm:$0xff]  ;;  %v13758_v15 = vld [vmem:[#allocation83_spill] sm:$0xff]  ;;  %13760 = vst [vmem:[#allocation49_spill] sm:$0xff] %v8504_v34  ;;  %v13778_v34 = vld [vmem:[#allocation90_spill] sm:$0xff] }
 0x1a0   :  { %v474_v16 = vsel %vm13227_vm11, %v13189_v43, %v472_v35  ;;  %v479_v9 = vrot.slane %v13754_v19, 6  ;;  %v481_v54 = vrot.slane %v13755_v37, 5  ;;  %v483_v36 = vrot.slane %v13756_v27, 4  ;;  %v13759_v19 = vld [vmem:[#allocation86_spill] sm:$0xff] }
 0x1a1   :  { %v8489_v42 = vunpack.i.l.s16 %v1800_v44  ;;  %1677 = vrot.lane.b32.xlu1 %v1673_v40, %s6136_s30  ;;  %v8495_v0 = vsel %vm13226_vm12, %v13188_v8, %v474_v16  ;;  %v478_v1 = vsel %vm13217_vm6, %v477_v12, %v13757_v17  ;;  %v485_v35 = vrot.slane %v13758_v15, 3  ;;  %v8510_v17 = vpop.permute.xlu2 %711 }
 0x1a2   :  { %v480_v2 = vsel %vm13216_vm7, %v479_v9, %v478_v1  ;;  %v487_v37 = vrot.slane %v13759_v19, 2  ;;  %v1929_v27 = vrot.slane %v7996_v10, 7  ;;  %v1931_v44 = vrot.slane %v7884_v23, 6  ;;  %13762 = vst [vmem:[#allocation53_spill] sm:$0xff] %v8510_v17  ;;  %v13763_v1 = vld [vmem:[#allocation36_spill] sm:$0xff] }
 0x1a3   :  { %v482_v40 = vsel %vm13214_vm8, %v481_v54, %v480_v2  ;;  %v489_v16 = vrot.slane %v13761_v4, 1  ;;  %v1933_v8 = vrot.slane %v8133_v6, 5  ;;  %v1935_v12 = vrot.slane %v8150_v5, 4 }
 0x1a4   :  { %v8512_v15 = vunpack.i.l.s16 %v1802_v28  ;;  %v484_v9 = vsel %vm13229_vm9, %v483_v36, %v482_v40  ;;  %v1930_v19 = vsel %vm13229_vm9, %v1929_v27, %v13763_v1  ;;  %v1521_v43 = vrot.slane %v7874_v41, 5 }
 0x1a5   :  { %v486_v33 = vsel %vm13228_vm10, %v485_v35, %v484_v9  ;;  %v1932_v54 = vsel %vm13228_vm10, %v1931_v44, %v1930_v19  ;;  %v1522_v4 = vrot.slane %v7890_v52, 4  ;;  %v1524_v2 = vrot.slane %v7991_v57, 3  ;;  %v13764_v19 = vld [vmem:[#allocation63_spill] sm:$0xff] }
 0x1a6   :  { %v488_v22 = vsel %vm13227_vm11, %v487_v37, %v486_v33  ;;  %v1934_v28 = vsel %vm13227_vm11, %v1933_v8, %v1932_v54  ;;  %v1526_v31 = vrot.slane %v7880_v13, 2  ;;  %v1835_v36 = vrot.slane %v8264_v53, 7  ;;  %v8538_v54 = vpop.permute.xlu0 %923 }
 0x1a7   :  { %v8527_v27 = vsel %vm13226_vm12, %v489_v16, %v488_v22  ;;  %v1936_v1 = vsel %vm13226_vm12, %v1935_v12, %v1934_v28  ;;  %v1523_v35 = vsel %vm13217_vm6, %v1522_v4, %v1521_v43  ;;  %v1837_v44 = vrot.slane %v8421_v18, 6 }
 0x1a8   :  { %v1955_v33 = vpack.c.b16 %v13764_v19, %v1936_v1  ;;  %v1525_v8 = vsel %vm13216_vm7, %v1524_v2, %v1523_v35  ;;  %v1836_v37 = vsel %vm13217_vm6, %v1835_v36, %v8262_v63  ;;  %v1839_v43 = vrot.slane %v8403_v49, 5 }
 0x1a9   :  { %v1527_v22 = vsel %vm13214_vm8, %v1526_v31, %v1525_v8  ;;  %v1838_v16 = vsel %vm13216_vm7, %v1837_v44, %v1836_v37  ;;  %v1845_v12 = vrot.slane %v8444_v59, 4  ;;  %v1847_v2 = vrot.slane %v8489_v42, 3  ;;  %v8561_v37 = vpop.permute.xlu1 %781  ;;  %v8569_v9 = vpop.permute.xlu2 %783 }
 0x1aa   :  { %1957 = vrot.lane.b32.xlu0 %v1955_v33, %s13197_s7  ;;  %v8545_v4 = vpack.c.b16 %v1527_v22, %v1527_v22  ;;  %v1849_v28 = vrot.slane %v8451_v30, 2  ;;  %v1840_v36 = vsel %vm13214_vm8, %v1839_v43, %v1838_v16  ;;  %v1851_v31 = vrot.slane %v8512_v15, 1  ;;  %v13767_v33 = vld [vmem:[#allocation38_spill] sm:$0xff]  ;;  %13768 = vst [vmem:[#allocation34_spill] sm:$0xff] %v8561_v37 }
 0x1ab   :  { %v1846_v1 = vsel %vm13229_vm9, %v1845_v12, %v482_v40  ;;  %v13766_v35 = vrot.slane %v13749_v39, 4  ;;  %v1963_v8 = vsel %vm13229_vm9, %v7996_v10, %v13767_v33  ;;  %v13769_v22 = vrot.slane %v13750_v20, 3  ;;  %13770 = vst [vmem:[#allocation48_spill] sm:$0xff] %v8569_v9 }
 0x1ac   :  { %13765 = vst [vmem:[#allocation46_spill] sm:$0xff] %v8545_v4  ;;  %1535 = vrot.lane.b32.xlu2 %v8545_v4, %s6134_s28  ;;  %v1848_v19 = vsel %vm13228_vm10, %v1847_v2, %v1846_v1  ;;  %v1964_v43 = vrot.slane %v7884_v23, 7  ;;  %v1966_v12 = vrot.slane %v8133_v6, 6  ;;  %v13771_v2 = vrot.slane %v13751_v32, 2 }
 0x1ad   :  { %v1841_v44 = vsel %vm13229_vm9, %v13766_v35, %v1840_v36  ;;  %v1850_v16 = vsel %vm13227_vm11, %v1849_v28, %v1848_v19  ;;  %v1968_v35 = vrot.slane %v8150_v5, 5  ;;  %v13772_v33 = vrot.slane %v13752_v50, 1 }
 0x1ae   :  { %v1842_v40 = vsel %vm13228_vm10, %v13769_v22, %v1841_v44  ;;  %v1852_v1 = vsel %vm13226_vm12, %v1851_v31, %v1850_v16  ;;  %v1965_v28 = vsel %vm13228_vm10, %v1964_v43, %v1963_v8  ;;  %v1593_v19 = vrot.slane %v7874_v41, 6  ;;  %v13773_v8 = vld [vmem:[#allocation64_spill] sm:$0xff] }
 0x1af   :  { %v1843_v36 = vsel %vm13227_vm11, %v13771_v2, %v1842_v40  ;;  %v1967_v4 = vsel %vm13227_vm11, %v1966_v12, %v1965_v28  ;;  %v1594_v60 = vrot.slane %v7890_v52, 5  ;;  %v1596_v37 = vrot.slane %v7991_v57, 4 }
 0x1b0   :  { %v1844_v44 = vsel %vm13226_vm12, %v13772_v33, %v1843_v36  ;;  %v1969_v40 = vsel %vm13226_vm12, %v1968_v35, %v1967_v4  ;;  %v1598_v31 = vrot.slane %v7880_v13, 3  ;;  %v1869_v16 = vrot.slane %v8262_v63, 1  ;;  %v8593_v33 = vpop.permute.xlu0 %995 }
 0x1b1   :  { %v1854_v22 = vpack.c.b16 %v1852_v1, %v1844_v44  ;;  %v1871_v2 = vrot.slane %v8421_v18, 7  ;;  %v1988_v43 = vpack.c.b16 %v13773_v8, %v1969_v40  ;;  %v1595_v36 = vsel %vm13217_vm6, %v1594_v60, %v1593_v19  ;;  %13774 = vst [vmem:[#allocation41_spill] sm:$0xff] %v8593_v33 }
 0x1b2   :  { %v1873_v12 = vrot.slane %v8403_v49, 6  ;;  %v1879_v1 = vrot.slane %v8444_v59, 5  ;;  %v1597_v4 = vsel %vm13216_vm7, %v1596_v37, %v1595_v36  ;;  %v1870_v35 = vsel %vm13217_vm6, %v8264_v53, %v1869_v16  ;;  %v13776_v37 = vld [vmem:[#allocation12_spill] sm:$0xff] }
 0x1b3   :  { %1857 = vrot.lane.b32.xlu1 %v1854_v22, %s6120_s19  ;;  %v1881_v44 = vrot.slane %v8489_v42, 4  ;;  %v1883_v28 = vrot.slane %v8451_v30, 3  ;;  %1990 = vrot.lane.b32.xlu0 %v1988_v43, %s13199_s8  ;;  %v1599_v60 = vsel %vm13214_vm8, %v1598_v31, %v1597_v4  ;;  %v1872_v19 = vsel %vm13216_vm7, %v1871_v2, %v1870_v35  ;;  %v13775_v22 = vld [vmem:[#allocation7_spill] sm:$0xff]  ;;  %v8617_v4 = vpop.permute.xlu1 %853 }
 0x1b4   :  { %v1880_v40 = vsel %vm13229_vm9, %v1879_v1, %v13775_v22  ;;  %v1885_v8 = vrot.slane %v8512_v15, 2  ;;  %v491_v36 = vrot.slane %v13776_v37, 7  ;;  %v8607_v9 = vpack.c.b16 %v1599_v60, %v1599_v60  ;;  %13780 = vst [vmem:[#allocation23_spill] sm:$0xff] %v8617_v4  ;;  %v13784_v37 = vld [vmem:[#allocation39_spill] sm:$0xff] }
 0x1b5   :  { %v1874_v16 = vsel %vm13214_vm8, %v1873_v12, %v1872_v19  ;;  %v1882_v33 = vsel %vm13228_vm10, %v1881_v44, %v1880_v40  ;;  %v493_v17 = vrot.slane %v13778_v34, 6  ;;  %v13779_v43 = vrot.slane %v13749_v39, 5  ;;  %v8627_v19 = vpop.permute.xlu2 %855 }
 0x1b6   :  { %13777 = vst [vmem:[#allocation18_spill] sm:$0xff] %v8607_v9  ;;  %v1884_v2 = vsel %vm13227_vm11, %v1883_v28, %v1882_v33  ;;  %v1996_v1 = vrot.slane %v7996_v10, 1  ;;  %1607 = vrot.lane.b32.xlu2 %v8607_v9, %s13250_s29  ;;  %v13781_v35 = vrot.slane %v13750_v20, 4  ;;  %v1999_v34 = vrot.slane %v8133_v6, 7  ;;  %v13782_v33 = vld [vmem:[#allocation52_spill] sm:$0xff] }
 0x1b7   :  { %v1875_v31 = vsel %vm13229_vm9, %v13779_v43, %v1874_v16  ;;  %v1886_v44 = vsel %vm13226_vm12, %v1885_v8, %v1884_v2  ;;  %v2001_v60 = vrot.slane %v8150_v5, 6  ;;  %v495_v28 = vrot.slane %v13782_v33, 5 }
 0x1b8   :  { %v1876_v12 = vsel %vm13228_vm10, %v13781_v35, %v1875_v31  ;;  %v13783_v22 = vrot.slane %v13751_v32, 3  ;;  %v1997_v16 = vsel %vm13229_vm9, %v1996_v1, %v13784_v37  ;;  %v1665_v43 = vrot.slane %v7874_v41, 7  ;;  %v13785_v31 = vld [vmem:[#allocation51_spill] sm:$0xff] }
 0x1b9   :  { %v492_v8 = vsel %vm13217_vm6, %v491_v36, %v13785_v31  ;;  %v13786_v2 = vrot.slane %v13752_v50, 2  ;;  %v1998_v9 = vsel %vm13228_vm10, %v7884_v23, %v1997_v16  ;;  %v1666_v33 = vrot.slane %v7890_v52, 6  ;;  %v13787_v16 = vld [vmem:[#allocation65_spill] sm:$0xff] }
 0x1ba   :  { %v1877_v40 = vsel %vm13227_vm11, %v13783_v22, %v1876_v12  ;;  %v2000_v12 = vsel %vm13227_vm11, %v1999_v34, %v1998_v9  ;;  %v1668_v22 = vrot.slane %v7991_v57, 5  ;;  %v1670_v1 = vrot.slane %v7880_v13, 4 }
 0x1bb   :  { %v1878_v35 = vsel %vm13226_vm12, %v13786_v2, %v1877_v40  ;;  %v2002_v41 = vsel %vm13226_vm12, %v2001_v60, %v2000_v12  ;;  %v1667_v36 = vsel %vm13217_vm6, %v1666_v33, %v1665_v43  ;;  %v1903_v37 = vrot.slane %v8262_v63, 2 }
 0x1bc   :  { %v1888_v4 = vpack.c.b16 %v1886_v44, %v1878_v35  ;;  %v1904_v40 = vrot.slane %v8264_v53, 1  ;;  %v2021_v31 = vpack.c.b16 %v13787_v16, %v2002_v41  ;;  %v1669_v52 = vsel %vm13216_vm7, %v1668_v22, %v1667_v36  ;;  %v8656_v44 = vpop.permute.xlu0 %1174  ;;  %v13789_v35 = vld [vmem:[#allocation16_spill] sm:$0xff] }
 0x1bd   :  { %v1907_v9 = vrot.slane %v8403_v49, 7  ;;  %v1913_v57 = vrot.slane %v8444_v59, 6  ;;  %v1671_v13 = vsel %vm13214_vm8, %v1670_v1, %v1669_v52  ;;  %v1915_v60 = vrot.slane %v8489_v42, 5 }
 0x1be   :  { %1891 = vrot.lane.b32.xlu1 %v1888_v4, %s6121_s6  ;;  %v1905_v34 = vsel %vm13217_vm6, %v1904_v40, %v1903_v37  ;;  %v1917_v43 = vrot.slane %v8451_v30, 4  ;;  %2023 = vrot.lane.b32.xlu0 %v2021_v31, %s6140_s9  ;;  %v8663_v4 = vpack.c.b16 %v1671_v13, %v1671_v13  ;;  %v1919_v12 = vrot.slane %v8512_v15, 3  ;;  %v8680_v31 = vpop.permute.xlu1 %925 }
 0x1bf   :  { %v1906_v2 = vsel %vm13216_vm7, %v8421_v18, %v1905_v34  ;;  %v1914_v33 = vsel %vm13229_vm9, %v1913_v57, %v13789_v35  ;;  %v13790_v41 = vrot.slane %v13749_v39, 6  ;;  %v2029_v40 = vrot.slane %v7996_v10, 2 }
 0x1c0   :  { %13788 = vst [vmem:[#allocation17_spill] sm:$0xff] %v8663_v4  ;;  %v1908_v22 = vsel %vm13214_vm8, %v1907_v9, %v1906_v2  ;;  %v1916_v1 = vsel %vm13228_vm10, %v1915_v60, %v1914_v33  ;;  %1679 = vrot.lane.b32.xlu2 %v8663_v4, %s6136_s30  ;;  %v2031_v16 = vrot.slane %v7884_v23, 1  ;;  %v494_v52 = vsel %vm13216_vm7, %v493_v17, %v492_v8  ;;  %v8688_v60 = vpop.permute.xlu2 %927  ;;  %v13793_v33 = vld [vmem:[#allocation42_spill] sm:$0xff] }
 0x1c1   :  { %v1909_v36 = vsel %vm13229_vm9, %v13790_v41, %v1908_v22  ;;  %v1918_v37 = vsel %vm13227_vm11, %v1917_v43, %v1916_v1  ;;  %v13791_v9 = vrot.slane %v13750_v20, 5  ;;  %v2034_v34 = vrot.slane %v8150_v5, 7 }
 0x1c2   :  { %v1920_v13 = vsel %vm13226_vm12, %v1919_v12, %v1918_v37  ;;  %v496_v43 = vsel %vm13214_vm8, %v495_v28, %v494_v52  ;;  %v13792_v2 = vrot.slane %v13751_v32, 4  ;;  %v2030_v22 = vsel %vm13229_vm9, %v2029_v40, %v13793_v33 }
 0x1c3   :  { %v1910_v57 = vsel %vm13228_vm10, %v13791_v9, %v1909_v36  ;;  %v1937_v17 = vrot.slane %v8262_v63, 3  ;;  %v13794_v8 = vrot.slane %v13752_v50, 3  ;;  %v2032_v12 = vsel %vm13228_vm10, %v2031_v16, %v2030_v22 }
 0x1c4   :  { %v1911_v35 = vsel %vm13227_vm11, %v13792_v2, %v1910_v57  ;;  %v1938_v41 = vrot.slane %v8264_v53, 2  ;;  %v1940_v36 = vrot.slane %v8421_v18, 1  ;;  %v2033_v37 = vsel %vm13227_vm11, %v8133_v6, %v2032_v12  ;;  %v8718_v12 = vpop.permute.xlu0 %1245 }
 0x1c5   :  { %v1912_v1 = vsel %vm13226_vm12, %v13794_v8, %v1911_v35  ;;  %v1947_v52 = vrot.slane %v8444_v59, 7  ;;  %v1949_v40 = vrot.slane %v8489_v42, 6  ;;  %v2035_v9 = vsel %vm13226_vm12, %v2034_v34, %v2033_v37  ;;  %v13796_v8 = vld [vmem:[#allocation19_spill] sm:$0xff] }
 0x1c6   :  { %v1922_v28 = vpack.c.b16 %v1920_v13, %v1912_v1  ;;  %v1939_v57 = vsel %vm13217_vm6, %v1938_v41, %v1937_v17  ;;  %v1951_v2 = vrot.slane %v8451_v30, 5  ;;  %v1953_v16 = vrot.slane %v8512_v15, 4  ;;  %v13795_v13 = vld [vmem:[#allocation67_spill] sm:$0xff] }
 0x1c7   :  { %v8711_v35 = vpack.c.b16 %v496_v43, %v496_v43  ;;  %v2054_v33 = vpack.c.b16 %v13795_v13, %v2035_v9  ;;  %v1941_v22 = vsel %vm13216_vm7, %v1940_v36, %v1939_v57  ;;  %v1948_v1 = vsel %vm13229_vm9, %v1947_v52, %v13796_v8  ;;  %v13799_v57 = vld [vmem:[#allocation43_spill] sm:$0xff] }
 0x1c8   :  { %1925 = vrot.lane.b32.xlu1 %v1922_v28, %s6137_s5  ;;  %v1942_v34 = vsel %vm13214_vm8, %v8403_v49, %v1941_v22  ;;  %v1950_v17 = vsel %vm13228_vm10, %v1949_v40, %v1948_v1  ;;  %v2062_v41 = vrot.slane %v7996_v10, 3  ;;  %v13797_v43 = vrot.slane %v13749_v39, 7 }
 0x1c9   :  { %2056 = vrot.lane.b32.xlu0 %v2054_v33, %s13201_s10  ;;  %1859 = vrot.lane.b32.xlu2 %v8711_v35, %s6120_s19  ;;  %v1952_v28 = vsel %vm13227_vm11, %v1951_v2, %v1950_v17  ;;  %v2064_v37 = vrot.slane %v7884_v23, 2  ;;  %v2066_v52 = vrot.slane %v8133_v6, 1  ;;  %v13798_v40 = vrot.slane %v13750_v20, 6  ;;  %v8744_v23 = vpop.permute.xlu1 %997 }
 0x1ca   :  { %v1943_v36 = vsel %vm13229_vm9, %v13797_v43, %v1942_v34  ;;  %v1954_v9 = vsel %vm13226_vm12, %v1953_v16, %v1952_v28  ;;  %v2063_v13 = vsel %vm13229_vm9, %v2062_v41, %v13799_v57  ;;  %v13800_v33 = vrot.slane %v13751_v32, 5  ;;  %v8752_v41 = vpop.permute.xlu2 %999 }
 0x1cb   :  { %v1944_v10 = vsel %vm13228_vm10, %v13798_v40, %v1943_v36  ;;  %v2065_v8 = vsel %vm13228_vm10, %v2064_v37, %v2063_v13  ;;  %v1970_v2 = vrot.slane %v8262_v63, 4  ;;  %v13801_v6 = vrot.slane %v13752_v50, 4  ;;  %v13802_v37 = vld [vmem:[#allocation81_spill] sm:$0xff] }
 0x1cc   :  { %v1945_v22 = vsel %vm13227_vm11, %v13800_v33, %v1944_v10  ;;  %v2067_v34 = vsel %vm13227_vm11, %v2066_v52, %v2065_v8  ;;  %v1971_v16 = vrot.slane %v8264_v53, 3  ;;  %v1973_v17 = vrot.slane %v8421_v18, 2 }
 0x1cd   :  { %v1946_v1 = vsel %vm13226_vm12, %v13801_v6, %v1945_v22  ;;  %v2068_v36 = vsel %vm13226_vm12, %v8150_v5, %v2067_v34  ;;  %v1975_v28 = vrot.slane %v8403_v49, 1  ;;  %v1981_v40 = vsel %vm13229_vm9, %v8444_v59, %v13802_v37 }
 0x1ce   :  { %v1956_v43 = vpack.c.b16 %v1954_v9, %v1946_v1  ;;  %v1972_v10 = vsel %vm13217_vm6, %v1971_v16, %v1970_v2  ;;  %v1982_v52 = vrot.slane %v8489_v42, 7  ;;  %v1984_v57 = vrot.slane %v8451_v30, 6  ;;  %v13803_v9 = vld [vmem:[#allocation69_spill] sm:$0xff] }
 0x1cf   :  { %v2100_v13 = vunpack.c.l.b16 %v8083_v21  ;;  %v2087_v33 = vpack.c.b16 %v13803_v9, %v2068_v36  ;;  %v1974_v5 = vsel %vm13216_vm7, %v1973_v17, %v1972_v10  ;;  %v1986_v22 = vrot.slane %v8512_v15, 5  ;;  %v13804_v21 = vld [vmem:[#allocation95_spill] sm:$0xff]  ;;  %v8780_v36 = vpop.permute.xlu0 %1316  ;;  %v13807_v10 = vld [vmem:[#allocation44_spill] sm:$0xff] }
 0x1d0   :  { %1959 = vrot.lane.b32.xlu1 %v1956_v43, %s13197_s7  ;;  %v1976_v8 = vsel %vm13214_vm8, %v1975_v28, %v1974_v5  ;;  %v1983_v6 = vsel %vm13228_vm10, %v1982_v52, %v1981_v40  ;;  %v2131_v2 = vrot.slane %v7517_v7, 4  ;;  %v2133_v1 = vrot.slane %v7556_v55, 3  ;;  %13805 = vst [vmem:[#allocation21_spill] sm:$0xff] %v8780_v36 }
 0x1d1   :  { %2089 = vrot.lane.b32.xlu0 %v2087_v33, %s13203_s11  ;;  %1893 = vrot.lane.b32.xlu2 %v13804_v21, %s6121_s6  ;;  %v1977_v34 = vsel %vm13229_vm9, %v13749_v39, %v1976_v8  ;;  %v1985_v16 = vsel %vm13227_vm11, %v1984_v57, %v1983_v6  ;;  %v2135_v17 = vrot.slane %v7454_v24, 2  ;;  %v2137_v43 = vrot.slane %v7609_v25, 1 }
 0x1d2   :  { %v13806_v28 = vrot.slane %v13750_v20, 7  ;;  %v1987_v40 = vsel %vm13226_vm12, %v1986_v22, %v1985_v16  ;;  %v2132_v52 = vsel %vm13229_vm9, %v2131_v2, %v13807_v10  ;;  %v8788_v9 = vunpack.i.l.s16 %v2100_v13  ;;  %v13810_v10 = vld [vmem:[#allocation50_spill] sm:$0xff] }
 0x1d3   :  { %v13808_v33 = vrot.slane %v13751_v32, 6  ;;  %v2134_v5 = vsel %vm13228_vm10, %v2133_v1, %v2132_v52  ;;  %v2003_v8 = vrot.slane %v8262_v63, 5  ;;  %v13809_v6 = vrot.slane %v13752_v50, 5  ;;  %v8804_v1 = vpop.permute.xlu1 %1176 }
 0x1d4   :  { %v1978_v37 = vsel %vm13228_vm10, %v13806_v28, %v1977_v34  ;;  %v2136_v34 = vsel %vm13227_vm11, %v2135_v17, %v2134_v5  ;;  %v2004_v22 = vrot.slane %v8264_v53, 4  ;;  %v2006_v2 = vrot.slane %v8421_v18, 3  ;;  %v8810_v5 = vpop.permute.xlu2 %1178 }
 0x1d5   :  { %v1979_v57 = vsel %vm13227_vm11, %v13808_v33, %v1978_v37  ;;  %v2138_v16 = vsel %vm13226_vm12, %v2137_v43, %v2136_v34  ;;  %v2008_v28 = vrot.slane %v8403_v49, 2  ;;  %v2014_v37 = vrot.slane %v8444_v59, 1  ;;  %v13811_v43 = vld [vmem:[#allocation24_spill] sm:$0xff] }
 0x1d6   :  { %v1980_v21 = vsel %vm13226_vm12, %v13809_v6, %v1979_v57  ;;  %v2099_v52 = vunpack.c.l.b16 %v13810_v10  ;;  %v2005_v33 = vsel %vm13217_vm6, %v2004_v22, %v2003_v8  ;;  %v2017_v57 = vrot.slane %v8451_v30, 7  ;;  %v13812_v34 = vld [vmem:[#allocation88_spill] sm:$0xff] }
 0x1d7   :  { %v1989_v13 = vpack.c.b16 %v1987_v40, %v1980_v21  ;;  %v2019_v17 = vrot.slane %v8512_v15, 6  ;;  %v2101_v40 = vunpack.c.l.b16 %v8135_v3  ;;  %v2157_v6 = vpack.c.b16 %v13811_v43, %v2138_v16  ;;  %v13813_v3 = vld [vmem:[#allocation96_spill] sm:$0xff] }
 0x1d8   :  { %v2007_v21 = vsel %vm13216_vm7, %v2006_v2, %v2005_v33  ;;  %v2015_v4 = vsel %vm13229_vm9, %v2014_v37, %v13812_v34  ;;  %v2165_v22 = vrot.slane %v7517_v7, 5  ;;  %v2167_v36 = vrot.slane %v7556_v55, 4  ;;  %v13815_v33 = vld [vmem:[#allocation87_spill] sm:$0xff]  ;;  %v8845_v34 = vpop.permute.xlu0 %1387 }
 0x1d9   :  { %1992 = vrot.lane.b32.xlu1 %v1989_v13, %s13199_s8  ;;  %v2009_v10 = vsel %vm13214_vm8, %v2008_v28, %v2007_v21  ;;  %v2016_v8 = vsel %vm13228_vm10, %v8489_v42, %v2015_v4  ;;  %2159 = vrot.lane.b32.xlu0 %v2157_v6, %s13208_s12  ;;  %v13814_v2 = vrot.slane %v13749_v39, 1  ;;  %v2169_v28 = vrot.slane %v7454_v24, 3 }
 0x1da   :  { %1927 = vrot.lane.b32.xlu2 %v13813_v3, %s6137_s5  ;;  %v2018_v16 = vsel %vm13227_vm11, %v2017_v57, %v2016_v8  ;;  %v2171_v4 = vrot.slane %v7609_v25, 2  ;;  %v8832_v37 = vunpack.i.l.s16 %v2099_v52  ;;  %v2166_v43 = vsel %vm13229_vm9, %v2165_v22, %v13815_v33 }
 0x1db   :  { %v2010_v13 = vsel %vm13229_vm9, %v13814_v2, %v2009_v10  ;;  %v2020_v55 = vsel %vm13226_vm12, %v2019_v17, %v2018_v16  ;;  %v8839_v6 = vunpack.i.l.s16 %v2101_v40  ;;  %v13816_v21 = vrot.slane %v13751_v32, 7 }
 0x1dc   :  { %v2011_v7 = vsel %vm13228_vm10, %v13750_v20, %v2010_v13  ;;  %v2168_v24 = vsel %vm13228_vm10, %v2167_v36, %v2166_v43  ;;  %v2036_v25 = vrot.slane %v8262_v63, 6  ;;  %v13817_v52 = vrot.slane %v13752_v50, 6 }
 0x1dd   :  { %v2012_v57 = vsel %vm13227_vm11, %v13816_v21, %v2011_v7  ;;  %v2170_v17 = vsel %vm13227_vm11, %v2169_v28, %v2168_v24  ;;  %v2037_v8 = vrot.slane %v8264_v53, 5  ;;  %v2039_v40 = vrot.slane %v8421_v18, 4  ;;  %v13818_v28 = vld [vmem:[#allocation31_spill] sm:$0xff]  ;;  %v13819_v21 = vld [vmem:[#allocation93_spill] sm:$0xff] }
 0x1de   :  { %v2013_v10 = vsel %vm13226_vm12, %v13817_v52, %v2012_v57  ;;  %v2172_v3 = vsel %vm13226_vm12, %v2171_v4, %v2170_v17  ;;  %v2041_v2 = vrot.slane %v8403_v49, 3  ;;  %v2047_v36 = vrot.slane %v8444_v59, 2  ;;  %v13820_v57 = vld [vmem:[#allocation55_spill] sm:$0xff]  ;;  %v8867_v52 = vpop.permute.xlu1 %1247 }
 0x1df   :  { %v2022_v22 = vpack.c.b16 %v2020_v55, %v2013_v10  ;;  %v2103_v13 = vunpack.c.l.b16 %v8200_v38  ;;  %v2038_v16 = vsel %vm13217_vm6, %v2037_v8, %v2036_v25  ;;  %v2049_v7 = vrot.slane %v8489_v42, 1  ;;  %v8873_v8 = vpop.permute.xlu2 %1249 }
 0x1e0   :  { %v2052_v33 = vrot.slane %v8512_v15, 7  ;;  %v2102_v43 = vunpack.c.l.b16 %v13818_v28  ;;  %v2191_v55 = vpack.c.b16 %v13819_v21, %v2172_v3  ;;  %v2040_v4 = vsel %vm13216_vm7, %v2039_v40, %v2038_v16  ;;  %v13821_v40 = vld [vmem:[#allocation97_spill] sm:$0xff] }
 0x1e1   :  { %2025 = vrot.lane.b32.xlu1 %v2022_v22, %s6140_s9  ;;  %v2048_v24 = vsel %vm13229_vm9, %v2047_v36, %v13820_v57  ;;  %v2104_v38 = vunpack.c.l.b16 %v8254_v47  ;;  %v2042_v25 = vsel %vm13214_vm8, %v2041_v2, %v2040_v4  ;;  %v2069_v17 = vrot.slane %v8262_v63, 7 }
 0x1e2   :  { %v2050_v10 = vsel %vm13228_vm10, %v2049_v7, %v2048_v24  ;;  %v2105_v22 = vunpack.c.l.b16 %v8161_v48  ;;  %2193 = vrot.lane.b32.xlu0 %v2191_v55, %s6144_s13  ;;  %1961 = vrot.lane.b32.xlu2 %v13821_v40, %s13197_s7  ;;  %v13822_v3 = vrot.slane %v13749_v39, 2  ;;  %v2070_v36 = vrot.slane %v8264_v53, 6  ;;  %v8905_v40 = vpop.permute.xlu0 %1459  ;;  %s6146_s7 = smov 79  }
 0x1e3   :  { %v2051_v2 = vsel %vm13227_vm11, %v8451_v30, %v2050_v10  ;;  %v13823_v63 = vrot.slane %v13750_v20, 1  ;;  %v2072_v7 = vrot.slane %v8421_v18, 5  ;;  %v2074_v28 = vrot.slane %v8403_v49, 4 }
 0x1e4   :  { %v2043_v47 = vsel %vm13229_vm9, %v13822_v3, %v2042_v25  ;;  %v2053_v48 = vsel %vm13226_vm12, %v2052_v33, %v2051_v2  ;;  %v2071_v55 = vsel %vm13217_vm6, %v2070_v36, %v2069_v17  ;;  %v2080_v4 = vrot.slane %v8444_v59, 3  ;;  %v13825_v59 = vld [vmem:[#allocation100_spill] sm:$0xff] }
 0x1e5   :  { %v2044_v16 = vsel %vm13228_vm10, %v13823_v63, %v2043_v47  ;;  %v2082_v57 = vrot.slane %v8489_v42, 2  ;;  %v8896_v53 = vunpack.i.l.s16 %v2102_v43  ;;  %v13824_v24 = vrot.slane %v13752_v50, 7 }
 0x1e6   :  { %v2045_v21 = vsel %vm13227_vm11, %v13751_v32, %v2044_v16  ;;  %v2073_v33 = vsel %vm13216_vm7, %v2072_v7, %v2071_v55  ;;  %v2084_v18 = vrot.slane %v8451_v30, 1  ;;  %v8903_v49 = vunpack.i.l.s16 %v2103_v13 }
 0x1e7   :  { %v2046_v25 = vsel %vm13226_vm12, %v13824_v24, %v2045_v21  ;;  %v2075_v17 = vsel %vm13214_vm8, %v2074_v28, %v2073_v33  ;;  %v2081_v42 = vsel %vm13229_vm9, %v2080_v4, %v13825_v59  ;;  %v8910_v43 = vunpack.i.l.s16 %v2104_v38  ;;  %v13829_v28 = vld [vmem:[#allocation45_spill] sm:$0xff]  ;;  %v13834_v59 = vld [vmem:[#allocation60_spill] sm:$0xff] }
 0x1e8   :  { %v2055_v10 = vpack.c.b16 %v2053_v48, %v2046_v25  ;;  %v13826_v3 = vrot.slane %v13749_v39, 3  ;;  %v2083_v2 = vsel %vm13228_vm10, %v2082_v57, %v2081_v42  ;;  %v2139_v30 = vrot.slane %v8788_v9, 7  ;;  %v8941_v25 = vpop.permute.xlu1 %1318 }
 0x1e9   :  { %v8917_v13 = vunpack.i.l.s16 %v2105_v22  ;;  %v13827_v36 = vrot.slane %v13750_v20, 2  ;;  %v2085_v16 = vsel %vm13227_vm11, %v2084_v18, %v2083_v2  ;;  %v2141_v38 = vrot.slane %v8839_v6, 6  ;;  %v13828_v22 = vld [vmem:[#allocation98_spill] sm:$0xff]  ;;  %v13831_v20 = vld [vmem:[#allocation99_spill] sm:$0xff] }
 0x1ea   :  { %v2076_v47 = vsel %vm13229_vm9, %v13826_v3, %v2075_v17  ;;  %2058 = vrot.lane.b32.xlu1 %v2055_v10, %s13201_s10  ;;  %v2106_v39 = vunpack.c.l.b16 %v8327_v11  ;;  %v2140_v48 = vsel %vm13217_vm6, %v2139_v30, %v8832_v37  ;;  %v2143_v7 = vrot.slane %v8896_v53, 5  ;;  %1994 = vrot.lane.b32.xlu2 %v13831_v20, %s13199_s8  ;;  %v8946_v10 = vpop.permute.xlu2 %1320  ;;  %s13222_s8 = smov 87  }
 0x1eb   :  { %v2077_v63 = vsel %vm13228_vm10, %v13827_v36, %v2076_v47  ;;  %v13830_v21 = vpack.c.b16 %v13828_v22, %v13829_v28  ;;  %v13832_v55 = vrot.slane %v13751_v32, 1  ;;  %v2142_v11 = vsel %vm13216_vm7, %v2141_v38, %v2140_v48 }
 0x1ec   :  { %v2149_v57 = vrot.slane %v8903_v49, 4  ;;  %v2151_v24 = vrot.slane %v8910_v43, 3  ;;  %v2086_v33 = vsel %vm13226_vm12, %v8512_v15, %v2085_v16  ;;  %v2144_v18 = vsel %vm13214_vm8, %v2143_v7, %v2142_v11  ;;  %v13837_v11 = vld [vmem:[#allocation20_spill] sm:$0xff] }
 0x1ed   :  { %2227 = vrot.lane.b32.xlu0 %v13830_v21, %s6145_s14  ;;  %v2078_v4 = vsel %vm13227_vm11, %v13832_v55, %v2077_v63  ;;  %v13833_v17 = vrot.slane %v13663_v46, 4  ;;  %v2153_v3 = vrot.slane %v8917_v13, 2  ;;  %v8954_v47 = vunpack.i.l.s16 %v2106_v39 }
 0x1ee   :  { %v2150_v42 = vsel %vm13229_vm9, %v2149_v57, %v13834_v59  ;;  %v2079_v2 = vsel %vm13226_vm12, %v13752_v50, %v2078_v4  ;;  %v2173_v30 = vrot.slane %v8832_v37, 1  ;;  %v2175_v63 = vrot.slane %v8839_v6, 7  ;;  %v8969_v50 = vpop.permute.xlu0 %1531  ;;  %v13836_v4 = vld [vmem:[#allocation13_spill] sm:$0xff] }
 0x1ef   :  { %v2145_v32 = vsel %vm13229_vm9, %v13833_v17, %v2144_v18  ;;  %v2152_v15 = vsel %vm13228_vm10, %v2151_v24, %v2150_v42  ;;  %v2088_v36 = vpack.c.b16 %v2086_v33, %v2079_v2  ;;  %v13835_v16 = vrot.slane %v13664_v62, 3  ;;  %v13839_v24 = vld [vmem:[#allocation80_spill] sm:$0xff] }
 0x1f0   :  { %v2155_v48 = vrot.slane %v8954_v47, 1  ;;  %v2174_v39 = vsel %vm13217_vm6, %v8788_v9, %v2173_v30  ;;  %v2177_v7 = vrot.slane %v8896_v53, 6  ;;  %v2154_v22 = vsel %vm13227_vm11, %v2153_v3, %v2152_v15  ;;  %v13841_v17 = vld [vmem:[#allocation72_spill] sm:$0xff] }
 0x1f1   :  { %v2146_v38 = vsel %vm13228_vm10, %v13835_v16, %v2145_v32  ;;  %v2176_v28 = vsel %vm13216_vm7, %v2175_v63, %v2174_v39  ;;  %v2183_v21 = vrot.slane %v8903_v49, 5  ;;  %v2185_v55 = vrot.slane %v8910_v43, 4 }
 0x1f2   :  { %2091 = vrot.lane.b32.xlu1 %v2088_v36, %s13203_s11  ;;  %v2178_v20 = vsel %vm13214_vm8, %v2177_v7, %v2176_v28  ;;  %v13838_v57 = vpack.c.b16 %v13836_v4, %v13837_v11  ;;  %2027 = vrot.lane.b32.xlu2 %v13839_v24, %s6140_s9  ;;  %v13840_v33 = vrot.slane %v13666_v29, 2  ;;  %v2207_v59 = vrot.slane %v8832_v37, 2  ;;  %v8994_v36 = vpop.permute.xlu1 %1389  ;;  %v9000_v39 = vpop.permute.xlu2 %1391 }
 0x1f3   :  { %v2184_v32 = vsel %vm13229_vm9, %v2183_v21, %v13841_v17  ;;  %v2156_v42 = vsel %vm13226_vm12, %v2155_v48, %v2154_v22  ;;  %v2208_v3 = vrot.slane %v8788_v9, 1  ;;  %v13842_v2 = vrot.slane %v13663_v46, 5  ;;  %v13845_v17 = vld [vmem:[#allocation84_spill] sm:$0xff] }
 0x1f4   :  { %v2147_v18 = vsel %vm13227_vm11, %v13840_v33, %v2146_v38  ;;  %v2187_v30 = vrot.slane %v8917_v13, 3  ;;  %v13843_v63 = vrot.slane %v13667_v51, 1  ;;  %v2186_v38 = vsel %vm13228_vm10, %v2185_v55, %v2184_v32  ;;  %v13846_v32 = vld [vmem:[#allocation89_spill] sm:$0xff] }
 0x1f5   :  { %2261 = vrot.lane.b32.xlu0 %v13838_v57, %s6146_s7  ;;  %v2179_v15 = vsel %vm13229_vm9, %v13842_v2, %v2178_v20  ;;  %v2209_v48 = vsel %vm13217_vm6, %v2208_v3, %v2207_v59  ;;  %v2211_v7 = vrot.slane %v8896_v53, 7  ;;  %v2217_v21 = vrot.slane %v8903_v49, 6  ;;  %v13848_v3 = vld [vmem:[#allocation66_spill] sm:$0xff] }
 0x1f6   :  { %v2148_v16 = vsel %vm13226_vm12, %v13843_v63, %v2147_v18  ;;  %v2210_v28 = vsel %vm13216_vm7, %v8839_v6, %v2209_v48  ;;  %v13844_v20 = vrot.slane %v13664_v62, 4  ;;  %v2189_v11 = vrot.slane %v8954_v47, 2 }
 0x1f7   :  { %v2158_v22 = vpack.c.b16 %v2156_v42, %v2148_v16  ;;  %v2188_v55 = vsel %vm13227_vm11, %v2187_v30, %v2186_v38  ;;  %v2241_v57 = vrot.slane %v8832_v37, 3  ;;  %v2242_v24 = vrot.slane %v8788_v9, 2  ;;  %v9021_v42 = vpop.permute.xlu0 %1603  ;;  %v13850_v30 = vld [vmem:[#allocation77_spill] sm:$0xff] }
 0x1f8   :  { %v2180_v4 = vsel %vm13228_vm10, %v13844_v20, %v2179_v15  ;;  %v2212_v33 = vsel %vm13214_vm8, %v2211_v7, %v2210_v28  ;;  %v2219_v18 = vrot.slane %v8910_v43, 5  ;;  %v13847_v59 = vpack.c.b16 %v13845_v17, %v13846_v32 }
 0x1f9   :  { %v13849_v2 = vrot.slane %v13666_v29, 3  ;;  %v2218_v63 = vsel %vm13229_vm9, %v2217_v21, %v13850_v30  ;;  %v2244_v16 = vrot.slane %v8839_v6, 1  ;;  %v2190_v38 = vsel %vm13226_vm12, %v2189_v11, %v2188_v55 }
 0x1fa   :  { %2161 = vrot.lane.b32.xlu1 %v2158_v22, %s13208_s12  ;;  %2060 = vrot.lane.b32.xlu2 %v13848_v3, %s13201_s10  ;;  %v2243_v48 = vsel %vm13217_vm6, %v2242_v24, %v2241_v57  ;;  %v13851_v7 = vrot.slane %v13663_v46, 6  ;;  %v2221_v28 = vrot.slane %v8917_v13, 4  ;;  %v13852_v20 = vrot.slane %v13667_v51, 2  ;;  %v9041_v32 = vpop.permute.xlu1 %1461  ;;  %s13224_s10 = smov 95  }
 0x1fb   :  { %v2181_v15 = vsel %vm13227_vm11, %v13849_v2, %v2180_v4  ;;  %v2220_v17 = vsel %vm13228_vm10, %v2219_v18, %v2218_v63  ;;  %v2245_v11 = vsel %vm13216_vm7, %v2244_v16, %v2243_v48  ;;  %v2251_v55 = vrot.slane %v8903_v49, 7  ;;  %v13856_v48 = vld [vmem:[#allocation47_spill] sm:$0xff] }
 0x1fc   :  { %v2213_v22 = vsel %vm13229_vm9, %v13851_v7, %v2212_v33  ;;  %v2182_v4 = vsel %vm13226_vm12, %v13852_v20, %v2181_v15  ;;  %v13853_v57 = vrot.slane %v13664_v62, 5  ;;  %v2223_v33 = vrot.slane %v8954_v47, 3  ;;  %v13854_v15 = vld [vmem:[#allocation85_spill] sm:$0xff] }
 0x1fd   :  { %2294 = vrot.lane.b32.xlu0 %v13847_v59, %s13222_s8  ;;  %v2192_v21 = vpack.c.b16 %v2190_v38, %v2182_v4  ;;  %v9049_v59 = vpop.permute.xlu2 %1463  ;;  %v2274_v3 = vrot.slane %v8832_v37, 4  ;;  %v2275_v18 = vrot.slane %v8788_v9, 3  ;;  %v2222_v2 = vsel %vm13227_vm11, %v2221_v28, %v2220_v17  ;;  %v13858_v20 = vld [vmem:[#allocation61_spill] sm:$0xff]  ;;  %v13862_v17 = vld [vmem:[#allocation30_spill] sm:$0xff] }
 0x1fe   :  { %v2214_v24 = vsel %vm13228_vm10, %v13853_v57, %v2213_v22  ;;  %v13855_v30 = vpack.c.b16 %v8189_v58, %v13854_v15  ;;  %v2246_v16 = vsel %vm13214_vm8, %v8896_v53, %v2245_v11  ;;  %v2253_v38 = vrot.slane %v8910_v43, 6  ;;  %v13857_v22 = vld [vmem:[#allocation71_spill] sm:$0xff]  ;;  %v13860_v4 = vld [vmem:[#allocation9_spill] sm:$0xff]  ;;  %v13863_v57 = vld [vmem:[#allocation8_spill] sm:$0xff] }
 0x1ff   :  { %v13859_v28 = vpack.c.b16 %v13857_v22, %v13858_v20  ;;  %v13861_v58 = vrot.slane %v13666_v29, 4  ;;  %v2277_v11 = vrot.slane %v8839_v6, 2  ;;  %v9083_v22 = vpop.permute.xlu0 %1675 }
 0x200   :  { %v1684_v63 = vsel %vm13213_vm13, %v13855_v30, %v8219_v14  ;;  %v2224_v30 = vsel %vm13226_vm12, %v2223_v33, %v2222_v2 }
 0x201   :  { %v1693_v7 = vsel %vm13207_vm14, %v1684_v63, %v13856_v48  ;;  %v2215_v14 = vsel %vm13227_vm11, %v13861_v58, %v2214_v24  ;;  %v2276_v63 = vsel %vm13217_vm6, %v2275_v18, %v2274_v3  ;;  %v13864_v24 = vrot.slane %v13663_v46, 7 }
 0x202   :  { %2195 = vrot.lane.b32.xlu1 %v2192_v21, %s6144_s13  ;;  %2093 = vrot.lane.b32.xlu2 %v13860_v4, %s13203_s11  ;;  %v2252_v21 = vsel %vm13229_vm9, %v2251_v55, %v13862_v17  ;;  %v1700_v15 = vsel %vm13205_vm15, %v1693_v7, %v13863_v57  ;;  %v2255_v55 = vrot.slane %v8917_v13, 5  ;;  %v13866_v4 = vrot.slane %v13667_v51, 3  ;;  %s13220_s11 = smov 103  }
 0x203   :  { %v1707_v48 = vsel %vm13206_vm0, %v1700_v15, %v8406_v45  ;;  %v2247_v20 = vsel %vm13229_vm9, %v13864_v24, %v2246_v16  ;;  %v2254_v3 = vsel %vm13228_vm10, %v2253_v38, %v2252_v21  ;;  %v2279_v45 = vrot.slane %v8896_v53, 1  ;;  %v13868_v38 = vld [vmem:[#allocation14_spill] sm:$0xff] }
 0x204   :  { %v2216_v33 = vsel %vm13226_vm12, %v13866_v4, %v2215_v14  ;;  %v1714_v18 = vsel %vm13212_vm1, %v1707_v48, %v8476_v26  ;;  %v2278_v16 = vsel %vm13216_vm7, %v2277_v11, %v2276_v63  ;;  %v13867_v58 = vrot.slane %v13664_v62, 6 }
 0x205   :  { %2327 = vrot.lane.b32.xlu0 %v13859_v28, %s13224_s10  ;;  %v13865_v28 = vld [vmem:[#allocation37_spill] sm:$0xff]  ;;  %v2226_v2 = vpack.c.b16 %v2224_v30, %v2216_v33  ;;  %v2307_v57 = vrot.slane %v8832_v37, 5  ;;  %v2308_v14 = vrot.slane %v8788_v9, 4  ;;  %v13869_v21 = vpack.c.b16 %v8527_v27, %v8495_v0  ;;  %v9115_v30 = vpop.permute.xlu1 %1533  ;;  %v13876_v33 = vld [vmem:[#allocation92_spill] sm:$0xff] }
 0x206   :  { %v1690_v7 = vsel %vm13213_vm13, %v8711_v35, %v13865_v28  ;;  %v2248_v17 = vsel %vm13228_vm10, %v13867_v58, %v2247_v20  ;;  %v2257_v35 = vrot.slane %v8954_v47, 4  ;;  %v2256_v11 = vsel %vm13227_vm11, %v2255_v55, %v2254_v3  ;;  %v9121_v24 = vpop.permute.xlu2 %1535  ;;  %v13871_v55 = vld [vmem:[#allocation68_spill] sm:$0xff]  ;;  %v13872_v28 = vld [vmem:[#allocation82_spill] sm:$0xff] }
 0x207   :  { %v1687_v26 = vsel %vm13213_vm13, %v13869_v21, %v13868_v38  ;;  %v1697_v15 = vsel %vm13207_vm14, %v1690_v7, %v8442_v56  ;;  %v1721_v48 = vsel %vm13211_vm3, %v1714_v18, %v8538_v54  ;;  %v2280_v0 = vsel %vm13214_vm8, %v2279_v45, %v2278_v16  ;;  %v13870_v56 = vld [vmem:[#allocation53_spill] sm:$0xff] }
 0x208   :  { %v1695_v63 = vsel %vm13207_vm14, %v1687_v26, %v8434_v61  ;;  %v2286_v27 = vrot.slane %v8910_v43, 7  ;;  %v1704_v20 = vsel %vm13205_vm15, %v1697_v15, %v13870_v56  ;;  %v13873_v7 = vpack.c.b16 %v13871_v55, %v13872_v28  ;;  %v13874_v61 = vld [vmem:[#allocation28_spill] sm:$0xff]  ;;  %v13877_v18 = vld [vmem:[#allocation49_spill] sm:$0xff]  ;;  %v13880_v15 = vld [vmem:[#allocation34_spill] sm:$0xff] }
 0x209   :  { %v13875_v54 = vrot.slane %v13666_v29, 5  ;;  %v2285_v3 = vsel %vm13229_vm9, %v8903_v49, %v13876_v33  ;;  %v2310_v45 = vrot.slane %v8839_v6, 3  ;;  %v13878_v16 = vld [vmem:[#allocation41_spill] sm:$0xff]  ;;  %v2258_v38 = vsel %vm13226_vm12, %v2257_v35, %v2256_v11  ;;  %v13879_v26 = vld [vmem:[#allocation48_spill] sm:$0xff]  ;;  %v9162_v11 = vpop.permute.xlu0 %1855 }
 0x20a   :  { %2229 = vrot.lane.b32.xlu1 %v2226_v2, %s6145_s14  ;;  %2163 = vrot.lane.b32.xlu2 %v13874_v61, %s13208_s12  ;;  %v1702_v2 = vsel %vm13205_vm15, %v1695_v63, %v13877_v18  ;;  %v9144_v58 = vsel %vm13210_vm4, %v1721_v48, %v13878_v16  ;;  %v2309_v21 = vsel %vm13217_vm6, %v2308_v14, %v2307_v57  ;;  %v2288_v28 = vrot.slane %v8917_v13, 6  ;;  %s13218_s12 = smov 111  }
 0x20b   :  { %v2249_v4 = vsel %vm13227_vm11, %v13875_v54, %v2248_v17  ;;  %v1711_v17 = vsel %vm13206_vm0, %v1704_v20, %v13879_v26  ;;  %v1709_v56 = vsel %vm13206_vm0, %v1702_v2, %v13880_v15  ;;  %v2281_v55 = vsel %vm13229_vm9, %v13663_v46, %v2280_v0  ;;  %v13884_v26 = vld [vmem:[#allocation25_spill] sm:$0xff]  ;;  %v13887_v15 = vld [vmem:[#allocation91_spill] sm:$0xff] }
 0x20c   :  { %vm1733_vm15 = vcmask 523264   ;;  %v13881_v63 = vrot.slane %v13667_v51, 4  ;;  %v2287_v35 = vsel %vm13228_vm10, %v2286_v27, %v2285_v3  ;;  %v2312_v57 = vrot.slane %v8896_v53, 2  ;;  %v13883_v3 = vld [vmem:[#allocation23_spill] sm:$0xff] }
 0x20d   :  { %2360 = vrot.lane.b32.xlu0 %v13873_v7, %s13220_s11  ;;  %v1718_v14 = vsel %vm13212_vm1, %v1711_v17, %v8627_v19  ;;  %v2311_v7 = vsel %vm13216_vm7, %v2310_v45, %v2309_v21  ;;  %v2318_v0 = vrot.slane %v8903_v49, 1  ;;  %v13882_v61 = vrot.slane %v13664_v62, 7 }
 0x20e   :  { %v2250_v48 = vsel %vm13226_vm12, %v13881_v63, %v2249_v4  ;;  %v2290_v4 = vrot.slane %v8954_v47, 5  ;;  %v2340_v27 = vrot.slane %v8832_v37, 6  ;;  %v2341_v33 = vrot.slane %v8788_v9, 5 }
 0x20f   :  { %v2260_v20 = vpack.c.b16 %v2258_v38, %v2250_v48  ;;  %v2282_v54 = vsel %vm13228_vm10, %v13882_v61, %v2281_v55  ;;  %v1716_v19 = vsel %vm13212_vm1, %v1709_v56, %v13883_v3  ;;  %vm1740_vm0 = vcmask 588800   ;;  %v9194_v55 = vpop.permute.xlu1 %1605 }
 0x210   :  { %v1725_v18 = vsel %vm13211_vm3, %v1718_v14, %v8688_v60  ;;  %v2289_v45 = vsel %vm13227_vm11, %v2288_v28, %v2287_v35  ;;  %v1723_v2 = vsel %vm13211_vm3, %v1716_v19, %v8680_v31  ;;  %vm13215_vm14 = vcmask 654336   ;;  %v13885_v60 = vld [vmem:[#allocation76_spill] sm:$0xff]  ;;  %v1608_v35 = vpop.permute.xlu2 %1607 }
 0x211   :  { %v1732_v16 = vsel %vm13210_vm4, %v1725_v18, %v8752_v41  ;;  %v2313_v38 = vsel %vm13214_vm8, %v2312_v57, %v2311_v7  ;;  %v1730_v21 = vsel %vm13210_vm4, %v1723_v2, %v8744_v23  ;;  %v13886_v17 = vpack.c.b16 %v13884_v26, %v13885_v60  ;;  %v13889_v41 = vld [vmem:[#allocation94_spill] sm:$0xff]  ;;  %v13892_v60 = vld [vmem:[#allocation11_spill] sm:$0xff] }
 0x212   :  { %2263 = vrot.lane.b32.xlu1 %v2260_v20, %s6146_s7  ;;  %2197 = vrot.lane.b32.xlu2 %v13887_v15, %s6144_s13  ;;  %v13888_v31 = vrot.slane %v13666_v29, 6  ;;  %v2319_v28 = vsel %vm13229_vm9, %v2318_v0, %v13889_v41  ;;  %v2343_v23 = vrot.slane %v8839_v6, 4  ;;  %vm1754_vm4 = vcmask 719872   ;;  %v13894_v15 = vld [vmem:[#allocation15_spill] sm:$0xff] }
 0x213   :  { %v1739_v63 = vsel %vm1733_vm15, %v1732_v16, %v8810_v5  ;;  %v2291_v48 = vsel %vm13226_vm12, %v2290_v4, %v2289_v45  ;;  %v2342_v57 = vsel %vm13217_vm6, %v2341_v33, %v2340_v27  ;;  %v1737_v14 = vsel %vm1733_vm15, %v1730_v21, %v8804_v1 }
 0x214   :  { %v2283_v56 = vsel %vm13227_vm11, %v13888_v31, %v2282_v54  ;;  %vm1761_vm3 = vcmask 785408   ;;  %v13890_v20 = vrot.slane %v13663_v46, 1  ;;  %v2321_v0 = vrot.slane %v8917_v13, 7 }
 0x215   :  { %2393 = vrot.lane.b32.xlu0 %v13886_v17, %s13218_s12  ;;  %v1746_v61 = vsel %vm1740_vm0, %v1739_v63, %v8873_v8  ;;  %v13891_v5 = vrot.slane %v13667_v51, 5  ;;  %v2320_v4 = vsel %vm13228_vm10, %v8910_v43, %v2319_v28  ;;  %v2345_v27 = vrot.slane %v8896_v53, 3 }
 0x216   :  { %v2314_v7 = vsel %vm13229_vm9, %v13890_v20, %v2313_v38  ;;  %v1744_v1 = vsel %vm1740_vm0, %v1737_v14, %v8867_v52  ;;  %v2344_v3 = vsel %vm13216_vm7, %v2343_v23, %v2342_v57  ;;  %v2351_v19 = vrot.slane %v8903_v49, 2  ;;  %v9230_v38 = vpop.permute.xlu0 %1889 }
 0x217   :  { %v2284_v54 = vsel %vm13226_vm12, %v13891_v5, %v2283_v56  ;;  %v2315_v8 = vsel %vm13228_vm10, %v13664_v62, %v2314_v7  ;;  %v2323_v18 = vrot.slane %v8954_v47, 6  ;;  %v2373_v45 = vrot.slane %v8832_v37, 7 }
 0x218   :  { %v2293_v33 = vpack.c.b16 %v2291_v48, %v2284_v54  ;;  %v2374_v2 = vrot.slane %v8788_v9, 6  ;;  %vm1768_vm1 = vcmask 850944   ;;  %v1753_v16 = vsel %vm13215_vm14, %v1746_v61, %v8946_v10  ;;  %v1678_v48 = vpop.permute.xlu1 %1677 }
 0x219   :  { %v1751_v52 = vsel %vm13215_vm14, %v1744_v1, %v8941_v25  ;;  %v2322_v21 = vsel %vm13227_vm11, %v2321_v0, %v2320_v4  ;;  %vm13233_vm13 = vcmask 916480   ;;  %v1760_v26 = vsel %vm1754_vm4, %v1753_v16, %v9000_v39  ;;  %v13902_v16 = vld [vmem:[#allocation40_spill] sm:$0xff] }
 0x21a   :  { %2296 = vrot.lane.b32.xlu1 %v2293_v33, %s13222_s8  ;;  %v2346_v37 = vsel %vm13214_vm8, %v2345_v27, %v2344_v3  ;;  %v2353_v9 = vrot.slane %v8910_v43, 1  ;;  %v1767_v10 = vsel %vm1761_vm3, %v1760_v26, %v9049_v59  ;;  %2231 = vrot.lane.b32.xlu2 %v13892_v60, %s6145_s14  ;;  %v13893_v25 = vrot.slane %v13666_v29, 7  ;;  %v1680_v63 = vpop.permute.xlu2 %1679 }
 0x21b   :  { %v2352_v31 = vsel %vm13229_vm9, %v2351_v19, %v13894_v15  ;;  %v2376_v56 = vrot.slane %v8839_v6, 5  ;;  %v1774_v39 = vsel %vm1768_vm1, %v1767_v10, %v9121_v24  ;;  %v2324_v41 = vsel %vm13226_vm12, %v2323_v18, %v2322_v21 }
 0x21c   :  { %v2316_v17 = vsel %vm13227_vm11, %v13893_v25, %v2315_v8  ;;  %vm13231_vm8 = vcmask 1041408   ;;  %v2375_v59 = vsel %vm13217_vm6, %v2374_v2, %v2373_v45  ;;  %v1758_v28 = vsel %vm1754_vm4, %v1751_v52, %v8994_v36 }
 0x21d   :  { %v1781_v23 = vsel %vm13233_vm13, %v1774_v39, %v1608_v35  ;;  %vm13232_vm14 = vcmask 982016   ;;  %v13895_v57 = vrot.slane %v13663_v46, 2  ;;  %v13896_v14 = vrot.slane %v13667_v51, 6 }
 0x21e   :  { %v1790_v20 = vsel %vm13232_vm14, %v1781_v23, %v1680_v63  ;;  %v2354_v7 = vsel %vm13228_vm10, %v2353_v9, %v2352_v31  ;;  %v2378_v0 = vrot.slane %v8896_v53, 4  ;;  %v2377_v61 = vsel %vm13216_vm7, %v2376_v56, %v2375_v59  ;;  %v9291_v18 = vpop.permute.xlu0 %1923  ;;  %v13906_v31 = vld [vmem:[#allocation10_spill] sm:$0xff] }
 0x21f   :  { %v2347_v6 = vsel %vm13229_vm9, %v13895_v57, %v2346_v37  ;;  %v2317_v24 = vsel %vm13226_vm12, %v13896_v14, %v2316_v17  ;;  %v2504_v35 = vsel %vm13231_vm8, %v1790_v20, 0  ;;  %v2384_v5 = vrot.slane %v8903_v49, 3  ;;  %v13908_v63 = vld [vmem:[#allocation46_spill] sm:$0xff] }
 0x220   :  { %v2326_v36 = vpack.c.b16 %v2324_v41, %v2317_v24  ;;  %v1735_v54 = vsel %vm1733_vm15, %v9144_v58, %v8656_v44  ;;  %v1765_v4 = vsel %vm1761_vm3, %v1758_v28, %v9041_v32  ;;  %2511 = vmatpush.bf16.msra.mxu0 %v2504_v35  ;;  %v13897_v27 = vrot.slane %v13664_v62, 1  ;;  %v13898_v58 = vld [vmem:[#allocation21_spill] sm:$0xff] }
 0x221   :  { %v2356_v53 = vrot.slane %v8954_v47, 7  ;;  %v1742_v33 = vsel %vm1740_vm0, %v1735_v54, %v8718_v12  ;;  %v1772_v49 = vsel %vm1768_vm1, %v1765_v4, %v9115_v30  ;;  %v2355_v44 = vsel %vm13227_vm11, %v8917_v13, %v2354_v7  ;;  %v13901_v30 = vld [vmem:[#allocation73_spill] sm:$0xff] }
 0x222   :  { %v2348_v1 = vsel %vm13228_vm10, %v13897_v27, %v2347_v6  ;;  %2329 = vrot.lane.b32.xlu1 %v2326_v36, %s13224_s10  ;;  %vm13899_vm7 = vcmask 654336   ;;  %v1779_v3 = vsel %vm13233_vm13, %v1772_v49, %v9194_v55  ;;  %vm13900_vm6 = vcmask 1043459   ;;  %2265 = vrot.lane.b32.xlu2 %v13901_v30, %s6146_s7  ;;  %v13909_v6 = vld [vmem:[#allocation18_spill] sm:$0xff] }
 0x223   :  { %v1749_v32 = vsel %vm13899_vm7, %v1742_v33, %v13898_v58  ;;  %v2379_v19 = vsel %vm13900_vm6, %v2378_v0, %v2377_v61  ;;  %v2386_v8 = vrot.slane %v8910_v43, 2  ;;  %v2349_v45 = vsel %vm13227_vm11, %v13666_v29, %v2348_v1  ;;  %v9305_v21 = vpop.permute.xlu2 %1859 }
 0x224   :  { %v1756_v12 = vsel %vm1754_vm4, %v1749_v32, %v8845_v34  ;;  %v1787_v2 = vsel %vm13232_vm14, %v1779_v3, %v1678_v48  ;;  %v2385_v55 = vsel %vm13229_vm9, %v2384_v5, %v13902_v16  ;;  %v2357_v43 = vsel %vm13226_vm12, %v2356_v53, %v2355_v44  ;;  %v9363_v16 = vld [vmem:[%s13006_s1] sm:$0xf] }
 0x225   :  { %v1763_v52 = vsel %vm1761_vm3, %v1756_v12, %v8905_v40  ;;  %2512 = vmatpush.bf16.msra.mxu0 %v1787_v2  ;;  %v13903_v26 = vrot.slane %v13663_v46, 3  ;;  %v2388_v9 = vrot.slane %v8917_v13, 1  ;;  %v13904_v60 = vrot.slane %v13667_v51, 7  ;;  %v9317_v15 = vpop.permute.xlu1 %1857 }
 0x226   :  { %v1770_v34 = vsel %vm1768_vm1, %v1763_v52, %v8969_v50  ;;  %v2387_v25 = vsel %vm13228_vm10, %v2386_v8, %v2385_v55  ;;  %v13905_v46 = vrot.slane %v13664_v62, 2  ;;  %v13907_v56 = vrot.slane %v13666_v29, 1  ;;  %v20_v52 = vld [vmem:[%s13007_s2] sm:$0xff]  ;;  %s13238_s2 = smov 113  }
 0x227   :  { %v2380_v37 = vsel %vm13229_vm9, %v13903_v26, %v2379_v19  ;;  %v1777_v10 = vsel %vm13233_vm13, %v1770_v34, %v9021_v42  ;;  %v2350_v40 = vsel %vm13226_vm12, %v13904_v60, %v2349_v45  ;;  %v2389_v42 = vsel %vm13227_vm11, %v2388_v9, %v2387_v25 }
 0x228   :  { %v2359_v17 = vpack.c.b16 %v2357_v43, %v2350_v40  ;;  %v1784_v50 = vsel %vm13232_vm14, %v1777_v10, %v9083_v22  ;;  %v2381_v13 = vsel %vm13228_vm10, %v13905_v46, %v2380_v37  ;;  %v2390_v41 = vsel %vm13226_vm12, %v8954_v47, %v2389_v42  ;;  %v9333_v22 = vpop.permute.xlu0 %1957 }
 0x229   :  { %2513 = vmatpush.bf16.msra.mxu0 %v1784_v50  ;;  %v2382_v39 = vsel %vm13227_vm11, %v13907_v56, %v2381_v13  ;;  %vm13230_vm6 = vcmask 293888   ;;  %v6151_v34 = vmov 0   ;;  %vm13911_vm7 = vcmask 64512  }
 0x22a   :  { %2362 = vrot.lane.b32.xlu1 %v2359_v17, %s13220_s11  ;;  %2298 = vrot.lane.b32.xlu2 %v13906_v31, %s13222_s8  ;;  %v2383_v62 = vsel %vm13226_vm12, %v13667_v51, %v2382_v39  ;;  %v13910_v51 = vld [vmem:[#allocation17_spill] sm:$0xff]  ;;  %vm13912_vm12 = vcmask 130048   ;;  %vm13913_vm11 = vcmask 195584   ;;  %vm13914_vm10 = vcmask 261120   ;;  %vm13917_vm8 = vmmov %vm13911_vm7  ;;  %s13235_s8 = smov 121  }
 0x22b   :  { %v1894_v59 = vpop.permute.xlu2 %1893  ;;  %v2392_v28 = vpack.c.b16 %v2390_v41, %v2383_v62  ;;  %6092 = vset.pattern.permute.xlu0 %v6151_v34  ;;  %vm13915_vm9 = vcmask 326656   ;;  %vm13918_vm14 = vcmask 457728   ;;  %vm13919_vm13 = vmmov %vm13912_vm12 }
 0x22c   :  { %5925 = vmatmul.msk.bf16.vlgmr.msra.gmra.mxu0 %vm13230_vm6, %v9363_v16  ;;  %2496 = vperm.xlu0 %6092, %v20_v52   ;;  %v2407_v26 = vsel %vm13911_vm7, %v9305_v21, %v1894_v59  ;;  %vm13916_vm6 = vcmask 392192  }
 0x230   :  { %v1892_v23 = vpop.permute.xlu1 %1891  ;;  %v9340_v29 = vpop.permute.xlu0 %1990 }
 0x231   :  { %v2404_v46 = vsel %vm13917_vm8, %v9317_v15, %v1892_v23  ;;  %vm13924_vm8 = vmmov %vm13919_vm13 }
 0x232   :  { %2395 = vrot.lane.b32.xlu1 %v2392_v28, %s13218_s12  ;;  %2331 = vrot.lane.b32.xlu2 %v13908_v63, %s13224_s10  ;;  %s13234_s10 = smov 1  }
 0x234   :  { %v1928_v48 = vpop.permute.xlu2 %1927 }
 0x235   :  { %v2413_v37 = vsel %vm13912_vm12, %v2407_v26, %v1928_v48  ;;  %vm13920_vm12 = vmmov %vm13913_vm11 }
 0x238   :  { %v9344_v14 = vpop.permute.xlu0 %2023 }
 0x23a   :  { %v1926_v57 = vpop.permute.xlu1 %1925  ;;  %2364 = vrot.lane.b32.xlu2 %v13909_v6, %s13220_s11  ;;  %s13236_s11 = smov 97  }
 0x23b   :  { %v2411_v21 = vsel %vm13919_vm13, %v2404_v46, %v1926_v57  ;;  %vm13925_vm13 = vcmask 392192  }
 0x23c   :  { %v1962_v47 = vpop.permute.xlu2 %1961 }
 0x23d   :  { %v2419_v10 = vsel %vm13913_vm11, %v2413_v37, %v1962_v47  ;;  %vm13921_vm11 = vcmask 654336  }
 0x240   :  { %v9348_v7 = vpop.permute.xlu0 %2056 }
 0x242   :  { %v1960_v24 = vpop.permute.xlu1 %1959  ;;  %2397 = vrot.lane.b32.xlu2 %v13910_v51, %s13218_s12  ;;  %s13249_s12 = smov 105  }
 0x243   :  { %v2417_v31 = vsel %vm13920_vm12, %v2411_v21, %v1960_v24 }
 0x244   :  { %v1995_v20 = vpop.permute.xlu2 %1994 }
 0x245   :  { %v2425_v60 = vsel %vm13914_vm10, %v2419_v10, %v1995_v20 }
 0x248   :  { %v9350_v61 = vpop.permute.xlu0 %2089 }
 0x24b   :  { %v1993_v0 = vpop.permute.xlu1 %1992 }
 0x24c   :  { %v2028_v36 = vpop.permute.xlu2 %2027  ;;  %v2423_v39 = vsel %vm13914_vm10, %v2417_v31, %v1993_v0 }
 0x24d   :  { %v2431_v25 = vsel %vm13915_vm9, %v2425_v60, %v2028_v36  ;;  %vm13922_vm9 = vmmov %vm13911_vm7  ;;  %vm13927_vm7 = vcmask 457728  }
 0x24e   :  { %v2401_v59 = vsel %vm13922_vm9, %v9162_v11, %v9230_v38  ;;  %vm13931_vm9 = vcmask 982016  }
 0x24f   :  { %v2409_v28 = vsel %vm13924_vm8, %v2401_v59, %v9291_v18  ;;  %vm13933_vm8 = vcmask 654336  }
 0x250   :  { %v9352_v27 = vpop.permute.xlu0 %2159 }
 0x253   :  { %v2026_v35 = vpop.permute.xlu1 %2025 }
 0x254   :  { %v2061_v5 = vpop.permute.xlu2 %2060 }
 0x255   :  { %v2437_v17 = vsel %vm13916_vm6, %v2431_v25, %v2061_v5  ;;  %vm13923_vm6 = vcmask 326656  }
 0x256   :  { %v2429_v15 = vsel %vm13923_vm6, %v2423_v39, %v2026_v35 }
 0x258   :  { %v9354_v33 = vpop.permute.xlu0 %2193 }
 0x25c   :  { %v2059_v54 = vpop.permute.xlu1 %2058  ;;  %v2094_v4 = vpop.permute.xlu2 %2093 }
 0x25d   :  { %v2443_v13 = vsel %vm13918_vm14, %v2437_v17, %v2094_v4  ;;  %v2435_v23 = vsel %vm13925_vm13, %v2429_v15, %v2059_v54  ;;  %vm13926_vm14 = vmmov %vm13920_vm12 }
 0x25e   :  { %v2415_v6 = vsel %vm13926_vm14, %v2409_v28, %v9333_v22  ;;  %vm13928_vm12 = vmmov %vm13914_vm10  ;;  %vm13929_vm10 = vcmask 916480  }
 0x25f   :  { %v2421_v38 = vsel %vm13928_vm12, %v2415_v6, %v9340_v29  ;;  %vm13935_vm14 = vmmov %vm13927_vm7 }
 0x260   :  { %v9356_v58 = vpop.permute.xlu0 %2227  ;;  %vm13937_vm12 = vmmov %vm13929_vm10 }
 0x264   :  { %v2092_v1 = vpop.permute.xlu1 %2091  ;;  %v2164_v53 = vpop.permute.xlu2 %2163 }
 0x265   :  { %v2449_v42 = vsel %vm1733_vm15, %v2443_v13, %v2164_v53  ;;  %v2441_v47 = vsel %vm13927_vm7, %v2435_v23, %v2092_v1  ;;  %vm13936_vm7 = vmmov %vm13933_vm8 }
 0x268   :  { %v9358_v8 = vpop.permute.xlu0 %2261 }
 0x26c   :  { %v2162_v49 = vpop.permute.xlu1 %2161  ;;  %v2198_v44 = vpop.permute.xlu2 %2197 }
 0x26d   :  { %v2455_v56 = vsel %vm1740_vm0, %v2449_v42, %v2198_v44  ;;  %v2447_v24 = vsel %vm1733_vm15, %v2441_v47, %v2162_v49 }
 0x270   :  { %v2295_v2 = vpop.permute.xlu0 %2294 }
 0x274   :  { %v2196_v32 = vpop.permute.xlu1 %2195  ;;  %v2232_v3 = vpop.permute.xlu2 %2231 }
 0x275   :  { %v2461_v41 = vsel %vm13921_vm11, %v2455_v56, %v2232_v3  ;;  %vm13930_vm11 = vmmov %vm13923_vm6  ;;  %v2453_v0 = vsel %vm1740_vm0, %v2447_v24, %v2196_v32 }
 0x276   :  { %v2427_v20 = vsel %vm13930_vm11, %v2421_v38, %v9344_v14  ;;  %vm13932_vm6 = vmmov %vm13925_vm13  ;;  %vm13934_vm13 = vcmask 1041408  }
 0x277   :  { %v2433_v22 = vsel %vm13932_vm6, %v2427_v20, %v9348_v7  ;;  %vm13939_vm11 = vmmov %vm13937_vm12  ;;  %vm13940_vm6 = vcmask 293888  }
 0x278   :  { %v2328_v9 = vpop.permute.xlu0 %2327  ;;  %v2439_v29 = vsel %vm13935_vm14, %v2433_v22, %v9350_v61  ;;  %vm13953_vm14 = vcmask 130048  }
 0x279   :  { %v2445_v14 = vsel %vm1733_vm15, %v2439_v29, %v9352_v27 }
 0x27a   :  { %v2451_v1 = vsel %vm1740_vm0, %v2445_v14, %v9354_v33 }
 0x27b   :  { %v2457_v53 = vsel %vm13936_vm7, %v2451_v1, %v9356_v58 }
 0x27c   :  { %v2230_v19 = vpop.permute.xlu1 %2229  ;;  %v2266_v12 = vpop.permute.xlu2 %2265  ;;  %v2463_v61 = vsel %vm1754_vm4, %v2457_v53, %v9358_v8 }
 0x27d   :  { %v2467_v62 = vsel %vm1754_vm4, %v2461_v41, %v2266_v12  ;;  %v2459_v35 = vsel %vm13933_vm8, %v2453_v0, %v2230_v19  ;;  %v2469_v27 = vsel %vm1761_vm3, %v2463_v61, %v2295_v2  ;;  %vm2543_vm8 = vcmask 7168  }
 0x27e   :  { %v2475_v19 = vsel %vm1768_vm1, %v2469_v27, %v2328_v9 }
 0x280   :  { %v2361_v63 = vpop.permute.xlu0 %2360 }
 0x281   :  { %v2481_v33 = vsel %vm13939_vm11, %v2475_v19, %v2361_v63  ;;  %vm13958_vm11 = vmmov %vm13953_vm14 }
 0x284   :  { %v2264_v30 = vpop.permute.xlu1 %2263  ;;  %v2299_v45 = vpop.permute.xlu2 %2298 }
 0x285   :  { %v2473_v48 = vsel %vm1761_vm3, %v2467_v62, %v2299_v45  ;;  %v2465_v54 = vsel %vm1754_vm4, %v2459_v35, %v2264_v30 }
 0x288   :  { %v2394_v3 = vpop.permute.xlu0 %2393 }
 0x289   :  { %v2487_v12 = vsel %vm13931_vm9, %v2481_v33, %v2394_v3 }
 0x28c   :  { %v2297_v55 = vpop.permute.xlu1 %2296  ;;  %v2332_v43 = vpop.permute.xlu2 %2331 }
 0x28d   :  { %v2479_v11 = vsel %vm1768_vm1, %v2473_v48, %v2332_v43  ;;  %v2471_v4 = vsel %vm1761_vm3, %v2465_v54, %v2297_v55 }
 0x294   :  { %v2330_v40 = vpop.permute.xlu1 %2329  ;;  %v2365_v50 = vpop.permute.xlu2 %2364 }
 0x295   :  { %v2485_v18 = vsel %vm13929_vm10, %v2479_v11, %v2365_v50  ;;  %v2477_v7 = vsel %vm1768_vm1, %v2471_v4, %v2330_v40  ;;  %vm13938_vm10 = vmmov %vm13931_vm9 }
 0x29c   :  { %v2363_v57 = vpop.permute.xlu1 %2362  ;;  %v2398_v51 = vpop.permute.xlu2 %2397 }
 0x29d   :  { %v2493_v36 = vsel %vm13931_vm9, %v2485_v18, %v2398_v51  ;;  %v2483_v49 = vsel %vm13937_vm12, %v2477_v7, %v2363_v57  ;;  %vm13956_vm12 = vcmask 261120  }
 0x29e   :  { %v2519_v5 = vsel %vm13934_vm13, %v2493_v36, 0  ;;  %v9432_v45 = vpop.permute.xlu0 %2496  ;;  %vm2560_vm13 = vcmask 1043456  }
 0x29f   :  { %2526 = vmatpush.bf16.msra.mxu3 %v2519_v5  ;;  %13941 = vst [vmem:[#allocation32_spill] sm:$0xff] %v9432_v45 }
 0x2a4   :  { %v2396_v44 = vpop.permute.xlu1 %2395 }
 0x2a5   :  { %v2490_v32 = vsel %vm13938_vm10, %v2483_v49, %v2396_v44  ;;  %vm13957_vm10 = vcmask 326656  }
 0x2a6   :  { %2527 = vmatpush.bf16.msra.mxu3 %v2490_v32 }
 0x2a9   :  { %v2515_v58 = vpop.f32.mrf.mxu0 }
 0x2aa   :  { %2528 = vmatpush.bf16.msra.mxu3 %v2487_v12  ;;  %v2516_v2 = vadd.f32 %v2515_v58, %v9432_v45 }
 0x2ac   :  { %v2534_v34 = vmax.f32 %v2516_v2, 0.0 }
 0x2ad   :  { %5926 = vmatmul.msk.bf16.vlgmr.msra.gmra.mxu3 %vm13940_vm6, %v9363_v16 }
 0x2ae   :  { %v9438_v10 = vpack.c.bf16 %v2534_v34, %v2534_v34 }
 0x2b0   :  { %v2554_v16 = vunpack.c.l.b16 %v9438_v10 }
 0x2b1   :  { %v2517_v30 = vpop.f32.mrf.mxu0 }
 0x2b2   :  { %v9447_v60 = vpack.c.b16 %v2554_v16, %v2554_v16 }
 0x330   :  { %v2530_v8 = vpop.f32.mrf.mxu3 }
 0x331   :  { %v2531_v55 = vadd.f32 %v2530_v8, %v9432_v45 }
 0x333   :  { %v2536_v52 = vmax.f32 %v2531_v55, 0.0 }
 0x335   :  { %v2537_v43 = vpack.c.bf16 %v2536_v52, %v2536_v52 }
 0x337   :  { %v2539_v26 = vunpack.c.l.b16 %v2537_v43 }
 0x338   :  { %v2532_v37 = vpop.f32.mrf.mxu3 }
 0x339   :  { %v9436_v9 = vpack.c.b16 %v2539_v26, %v2539_v26 }
 0x33b   :  { %2568 = vrot.lane.b32.xlu0 %v9436_v9, %s13238_s2  ;;  %2547 = vrot.lane.b32.xlu2 %v9436_v9, %s13235_s8  ;;  %s13248_s8 = smov 89   ;;  %s13241_s2 = smov 49  }
 0x33c   :  { %2541 = vrot.lane.b32.xlu1 %v9436_v9, %s13234_s10  ;;  %s13237_s10 = smov 81  }
 0x343   :  { %2580 = vrot.lane.b32.xlu0 %v9436_v9, %s13250_s29  ;;  %2558 = vrot.lane.b32.xlu2 %v9436_v9, %s6136_s30 }
 0x344   :  { %2556 = vrot.lane.b32.xlu1 %v9447_v60, %s6136_s30 }
 0x34b   :  { %2594 = vrot.lane.b32.xlu0 %v9436_v9, %s13236_s11  ;;  %2578 = vrot.lane.b32.xlu2 %v9447_v60, %s13250_s29  ;;  %s13239_s11 = smov 65   ;;  %s14797_s29 = smov 111  }
 0x34c   :  { %2572 = vrot.lane.b32.xlu1 %v9436_v9, %s13249_s12  ;;  %s15109_s12 = smov 113  }
 0x353   :  { %2606 = vrot.lane.b32.xlu0 %v9436_v9, %s6133_s27  ;;  %2584 = vrot.lane.b32.xlu2 %v9436_v9, %s6134_s28 }
 0x354   :  { %2582 = vrot.lane.b32.xlu1 %v9447_v60, %s6134_s28 }
 0x35b   :  { %2620 = vrot.lane.b32.xlu0 %v9436_v9, %s13237_s10  ;;  %2604 = vrot.lane.b32.xlu2 %v9447_v60, %s6133_s27  ;;  %s13240_s10 = smov 73  }
 0x35c   :  { %2598 = vrot.lane.b32.xlu1 %v9436_v9, %s13248_s8  ;;  %s14361_s8 = smov 55  }
 0x363   :  { %2632 = vrot.lane.b32.xlu0 %v9436_v9, %s6131_s25  ;;  %2610 = vrot.lane.b32.xlu2 %v9436_v9, %s6132_s26 }
 0x364   :  { %2608 = vrot.lane.b32.xlu1 %v9447_v60, %s6132_s26 }
 0x36b   :  { %2646 = vrot.lane.b32.xlu0 %v9436_v9, %s13239_s11  ;;  %2630 = vrot.lane.b32.xlu2 %v9447_v60, %s6131_s25  ;;  %s13242_s11 = smov 57  }
 0x36c   :  { %2624 = vrot.lane.b32.xlu1 %v9436_v9, %s13240_s10  ;;  %s13243_s10 = smov 33  }
 0x373   :  { %2658 = vrot.lane.b32.xlu0 %v9436_v9, %s6129_s23  ;;  %2636 = vrot.lane.b32.xlu2 %v9436_v9, %s6130_s24 }
 0x374   :  { %2634 = vrot.lane.b32.xlu1 %v9447_v60, %s6130_s24 }
 0x37b   :  { %2672 = vrot.lane.b32.xlu0 %v9436_v9, %s13241_s2  ;;  %2656 = vrot.lane.b32.xlu2 %v9447_v60, %s6129_s23  ;;  %s13247_s2 = smov 41  }
 0x37c   :  { %2650 = vrot.lane.b32.xlu1 %v9436_v9, %s13242_s11  ;;  %s13244_s11 = smov 17  }
 0x383   :  { %2684 = vrot.lane.b32.xlu0 %v9436_v9, %s6127_s21  ;;  %2662 = vrot.lane.b32.xlu2 %v9436_v9, %s6128_s22 }
 0x384   :  { %2660 = vrot.lane.b32.xlu1 %v9447_v60, %s6128_s22 }
 0x38b   :  { %2698 = vrot.lane.b32.xlu0 %v9436_v9, %s13243_s10  ;;  %2682 = vrot.lane.b32.xlu2 %v9447_v60, %s6127_s21  ;;  %s13246_s10 = smov 25  }
 0x38c   :  { %2676 = vrot.lane.b32.xlu1 %v9436_v9, %s13247_s2  ;;  %s14339_s2 = smov 47  }
 0x393   :  { %2710 = vrot.lane.b32.xlu0 %v9436_v9, %s6125_s18  ;;  %2688 = vrot.lane.b32.xlu2 %v9436_v9, %s6126_s20 }
 0x394   :  { %2686 = vrot.lane.b32.xlu1 %v9447_v60, %s6126_s20 }
 0x395   :  { %v2548_v40 = vpop.permute.xlu2 %2547 }
 0x396   :  { %v2550_v56 = vsel %vm2543_vm8, 0, %v2548_v40 }
 0x39b   :  { %2724 = vrot.lane.b32.xlu0 %v9436_v9, %s13244_s11  ;;  %2708 = vrot.lane.b32.xlu2 %v9447_v60, %s6125_s18  ;;  %s13245_s11 = smov 9  }
 0x39c   :  { %2702 = vrot.lane.b32.xlu1 %v9436_v9, %s13246_s10  ;;  %s14313_s10 = smov 39  }
 0x39d   :  { %v9521_v25 = vpop.permute.xlu2 %2558 }
 0x3a3   :  { %2736 = vrot.lane.b32.xlu0 %v9436_v9, %s6123_s16  ;;  %2714 = vrot.lane.b32.xlu2 %v9436_v9, %s6124_s17 }
 0x3a4   :  { %2712 = vrot.lane.b32.xlu1 %v9447_v60, %s6124_s17 }
 0x3a5   :  { %v2579_v17 = vpop.permute.xlu2 %2578 }
 0x3ab   :  { %2734 = vrot.lane.b32.xlu2 %v9447_v60, %s6123_s16 }
 0x3ac   :  { %2728 = vrot.lane.b32.xlu1 %v9436_v9, %s13245_s11  ;;  %s14315_s11 = smov 15  }
 0x3ad   :  { %v2569_v50 = vpop.permute.xlu0 %2568  ;;  %v2585_v46 = vpop.permute.xlu2 %2584 }
 0x3ae   :  { %v9533_v13 = vpop.permute.xlu1 %2541  ;;  %v2571_v21 = vsel %vm2543_vm8, 0, %v2569_v50 }
 0x3af   :  { %v2577_v41 = vrot.slane %v2571_v21, 4 }
 0x3b1   :  { %v2588_v62 = vsel %vm2560_vm13, %v9521_v25, %v2577_v41 }
 0x3b3   :  { %2740 = vrot.lane.b32.xlu2 %v9436_v9, %s6122_s15 }
 0x3b4   :  { %2738 = vrot.lane.b32.xlu1 %v9447_v60, %s6122_s15 }
 0x3b5   :  { %v2581_v42 = vpop.permute.xlu0 %2580  ;;  %v2605_v31 = vpop.permute.xlu2 %2604 }
 0x3b6   :  { %v2557_v39 = vpop.permute.xlu1 %2556  ;;  %v2591_v15 = vsel %vm2560_vm13, %v2579_v17, %v2581_v42 }
 0x3b7   :  { %v9542_v59 = vsel %vm2560_vm13, %v2550_v56, %v2557_v39 }
 0x3b8   :  { %2754 = vrot.lane.b32.xlu0 %v9542_v59, %s6122_s15 }
 0x3bb   :  { %2758 = vrot.lane.b32.xlu2 %v2591_v15, %s6122_s15 }
 0x3bc   :  { %2756 = vrot.lane.b32.xlu1 %v2588_v62, %s6122_s15 }
 0x3bd   :  { %v2595_v28 = vpop.permute.xlu0 %2594  ;;  %v2611_v23 = vpop.permute.xlu2 %2610 }
 0x3be   :  { %v2573_v63 = vpop.permute.xlu1 %2572  ;;  %v2597_v38 = vsel %vm2543_vm8, 0, %v2595_v28 }
 0x3bf   :  { %v2575_v6 = vsel %vm2543_vm8, 0, %v2573_v63  ;;  %v2603_v24 = vrot.slane %v2597_v38, 4 }
 0x3c1   :  { %v2614_v36 = vsel %vm2560_vm13, %v2585_v46, %v2603_v24 }
 0x3c4   :  { %2762 = vrot.lane.b32.xlu1 %v2585_v46, %s6122_s15 }
 0x3c5   :  { %v2607_v48 = vpop.permute.xlu0 %2606  ;;  %v2631_v57 = vpop.permute.xlu2 %2630 }
 0x3c6   :  { %v2583_v47 = vpop.permute.xlu1 %2582  ;;  %v2617_v18 = vsel %vm2560_vm13, %v2605_v31, %v2607_v48 }
 0x3c7   :  { %v2593_v11 = vsel %vm2560_vm13, %v2575_v6, %v2583_v47 }
 0x3c8   :  { %2767 = vrot.lane.b32.xlu2 %v2593_v11, %s6123_s16  ;;  %2760 = vrot.lane.b32.xlu0 %v2593_v11, %s6122_s15 }
 0x3cc   :  { %2771 = vrot.lane.b32.xlu1 %v2617_v18, %s6123_s16 }
 0x3cd   :  { %v2621_v51 = vpop.permute.xlu0 %2620  ;;  %v2637_v20 = vpop.permute.xlu2 %2636 }
 0x3ce   :  { %v2599_v0 = vpop.permute.xlu1 %2598  ;;  %v2623_v14 = vsel %vm2543_vm8, 0, %v2621_v51 }
 0x3cf   :  { %v2601_v5 = vsel %vm2543_vm8, 0, %v2599_v0  ;;  %v2629_v4 = vrot.slane %v2623_v14, 4  ;;  %v9629_v14 = vld [vmem:[%s13005_s0 + $0x3c] sm:$0xf] }
 0x3d0   :  { %2769 = vrot.lane.b32.xlu0 %v2614_v36, %s6123_s16 }
 0x3d1   :  { %v2640_v44 = vsel %vm2560_vm13, %v2611_v23, %v2629_v4  ;;  %v9634_v4 = vld [vmem:[%s13005_s0 + $0x34] sm:$0xf] }
 0x3d5   :  { %v2633_v22 = vpop.permute.xlu0 %2632  ;;  %v2657_v35 = vpop.permute.xlu2 %2656 }
 0x3d6   :  { %v2609_v29 = vpop.permute.xlu1 %2608  ;;  %v2643_v49 = vsel %vm2560_vm13, %v2631_v57, %v2633_v22 }
 0x3d7   :  { %v2619_v54 = vsel %vm2560_vm13, %v2601_v5, %v2609_v29  ;;  %v9617_v5 = vld [vmem:[%s13005_s0 + $0x30] sm:$0xf] }
 0x3d8   :  { %2775 = vrot.lane.b32.xlu0 %v2611_v23, %s6123_s16  ;;  %2780 = vrot.lane.b32.xlu1 %v2619_v54, %s6124_s17 }
 0x3d9   :  { %2773 = vrot.lane.b32.xlu2 %v2619_v54, %s6123_s16 }
 0x3dd   :  { %v2647_v1 = vpop.permute.xlu0 %2646  ;;  %v2663_v7 = vpop.permute.xlu2 %2662 }
 0x3de   :  { %v2625_v53 = vpop.permute.xlu1 %2624  ;;  %v2649_v33 = vsel %vm2543_vm8, 0, %v2647_v1  ;;  %v9639_v1 = vld [vmem:[%s13005_s0 + $0x40] sm:$0xf] }
 0x3df   :  { %v2627_v32 = vsel %vm2543_vm8, 0, %v2625_v53  ;;  %v2655_v12 = vrot.slane %v2649_v33, 4 }
 0x3e0   :  { %2784 = vrot.lane.b32.xlu0 %v2643_v49, %s6124_s17  ;;  %v9654_v49 = vld [vmem:[%s13005_s0 + $0x4c] sm:$0xf] }
 0x3e1   :  { %2782 = vrot.lane.b32.xlu2 %v2640_v44, %s6124_s17  ;;  %v2666_v8 = vsel %vm2560_vm13, %v2637_v20, %v2655_v12  ;;  %v9659_v44 = vld [vmem:[%s13005_s0 + $0x48] sm:$0xf]  ;;  %v2997_v12 = vshll.u32 %v9634_v4, 16 }
 0x3e5   :  { %v2659_v61 = vpop.permute.xlu0 %2658  ;;  %v2683_v3 = vpop.permute.xlu2 %2682 }
 0x3e6   :  { %v2635_v27 = vpop.permute.xlu1 %2634  ;;  %v2669_v55 = vsel %vm2560_vm13, %v2657_v35, %v2659_v61 }
 0x3e7   :  { %v2645_v19 = vsel %vm2560_vm13, %v2627_v32, %v2635_v27  ;;  %v9666_v32 = vld [vmem:[%s13005_s0 + $0x54] sm:$0xf] }
 0x3e8   :  { %2793 = vrot.lane.b32.xlu0 %v2645_v19, %s6125_s18  ;;  %2786 = vrot.lane.b32.xlu1 %v2645_v19, %s6124_s17  ;;  %v9681_v19 = vld [vmem:[%s13005_s0 + $0x58] sm:$0xf] }
 0x3e9   :  { %2788 = vrot.lane.b32.xlu2 %v2637_v20, %s6124_s17 }
 0x3ed   :  { %v2673_v58 = vpop.permute.xlu0 %2672  ;;  %v2689_v2 = vpop.permute.xlu2 %2688 }
 0x3ee   :  { %v2651_v30 = vpop.permute.xlu1 %2650  ;;  %v2675_v37 = vsel %vm2543_vm8, 0, %v2673_v58  ;;  %v3001_v58 = vshrl.u32 %v9634_v4, 16 }
 0x3ef   :  { %v2653_v43 = vsel %vm2543_vm8, 0, %v2651_v30  ;;  %v2681_v16 = vrot.slane %v2675_v37, 4  ;;  %v9708_v37 = vld [vmem:[%s13005_s0 + $0x38] sm:$0x1] }
 0x3f0   :  { %2795 = vrot.lane.b32.xlu1 %v2666_v8, %s6125_s18  ;;  %v2988_v8 = vshrl.u32 %v9617_v5, 16 }
 0x3f1   :  { %2797 = vrot.lane.b32.xlu2 %v2669_v55, %s6125_s18  ;;  %v2692_v46 = vsel %vm2560_vm13, %v2663_v7, %v2681_v16  ;;  %v2991_v55 = vshll.u32 %v9617_v5, 16 }
 0x3f2   :  { %v2990_v16 = vrot.slane %v2988_v8, 4 }
 0x3f5   :  { %v2685_v52 = vpop.permute.xlu0 %2684  ;;  %v2709_v60 = vpop.permute.xlu2 %2708 }
 0x3f6   :  { %v2661_v34 = vpop.permute.xlu1 %2660  ;;  %v2695_v17 = vsel %vm2560_vm13, %v2683_v3, %v2685_v52  ;;  %v3015_v52 = vshll.u32 %v9629_v14, 16 }
 0x3f7   :  { %v2671_v26 = vsel %vm2560_vm13, %v2653_v43, %v2661_v34  ;;  %v2999_v34 = vrot.slane %v2997_v12, 5  ;;  %v9745_v12 = vld [vmem:[%s13005_s0 + $0x50] sm:$0x1] }
 0x3f8   :  { %2801 = vrot.lane.b32.xlu1 %v2663_v7, %s6125_s18  ;;  %2799 = vrot.lane.b32.xlu0 %v2671_v26, %s6125_s18 }
 0x3f9   :  { %2806 = vrot.lane.b32.xlu2 %v2671_v26, %s6126_s20  ;;  %v3003_v26 = vrot.slane %v3001_v58, 4 }
 0x3fd   :  { %v2699_v50 = vpop.permute.xlu0 %2698  ;;  %v2715_v21 = vpop.permute.xlu2 %2714 }
 0x3fe   :  { %v2677_v40 = vpop.permute.xlu1 %2676  ;;  %v2701_v39 = vsel %vm2543_vm8, 0, %v2699_v50  ;;  %v3017_v50 = vrot.slane %v3015_v52, 5  ;;  %v3069_v52 = vshll.u32 %v9681_v19, 16 }
 0x3ff   :  { %v2679_v42 = vsel %vm2543_vm8, 0, %v2677_v40  ;;  %v2707_v15 = vrot.slane %v2701_v39, 4  ;;  %v3025_v39 = vshrl.u32 %v9639_v1, 16 }
 0x400   :  { %2810 = vrot.lane.b32.xlu1 %v2695_v17, %s6126_s20  ;;  %2808 = vrot.lane.b32.xlu0 %v2692_v46, %s6126_s20  ;;  %v3004_v46 = vor.u32 %v3003_v26, %v2999_v34  ;;  %v3073_v26 = vshrl.u32 %v9681_v19, 16 }
 0x401   :  { %v2718_v63 = vsel %vm2560_vm13, %v2689_v2, %v2707_v15 }
 0x405   :  { %v2711_v41 = vpop.permute.xlu0 %2710  ;;  %v2735_v23 = vpop.permute.xlu2 %2734 }
 0x406   :  { %v2687_v31 = vpop.permute.xlu1 %2686  ;;  %v2721_v28 = vsel %vm2560_vm13, %v2709_v60, %v2711_v41  ;;  %v2993_v60 = vrot.slane %v2991_v55, 5 }
 0x407   :  { %v2697_v56 = vsel %vm2560_vm13, %v2679_v42, %v2687_v31  ;;  %v3036_v31 = vshrl.u32 %v9659_v44, 16 }
 0x408   :  { %2814 = vrot.lane.b32.xlu0 %v2689_v2, %s6126_s20  ;;  %2819 = vrot.lane.b32.xlu1 %v2697_v56, %s6127_s21  ;;  %v3012_v2 = vshrl.u32 %v9629_v14, 16  ;;  %v2994_v42 = vor.u32 %v2993_v60, %v2990_v16  ;;  %v3060_v16 = vshrl.u32 %v9666_v32, 16  ;;  %v3063_v60 = vshll.u32 %v9666_v32, 16 }
 0x409   :  { %2812 = vrot.lane.b32.xlu2 %v2697_v56, %s6126_s20  ;;  %v3039_v56 = vshll.u32 %v9659_v44, 16 }
 0x40a   :  { %v3014_v17 = vrot.slane %v3012_v2, 4 }
 0x40c   :  { %v3018_v15 = vor.u32 %v3017_v50, %v3014_v17 }
 0x40d   :  { %v2725_v48 = vpop.permute.xlu0 %2724  ;;  %v2741_v38 = vpop.permute.xlu2 %2740 }
 0x40e   :  { %v2703_v62 = vpop.permute.xlu1 %2702  ;;  %v2727_v11 = vsel %vm2543_vm8, 0, %v2725_v48 }
 0x40f   :  { %v2705_v57 = vsel %vm2543_vm8, 0, %v2703_v62  ;;  %v2733_v24 = vrot.slane %v2727_v11, 4  ;;  %v3021_v62 = vshll.u32 %v9639_v1, 16  ;;  %v3027_v11 = vrot.slane %v3025_v39, 4 }
 0x410   :  { %2823 = vrot.lane.b32.xlu0 %v2721_v28, %s6127_s21  ;;  %v3045_v28 = vshll.u32 %v9654_v49, 16  ;;  %v3075_v39 = vrot.slane %v3073_v26, 4 }
 0x411   :  { %2821 = vrot.lane.b32.xlu2 %v2718_v63, %s6127_s21  ;;  %v2744_v20 = vsel %vm2560_vm13, %v2715_v21, %v2733_v24  ;;  %v3005_v63 = vrot.slane %v3004_v46, 4  ;;  %v9734_v24 = vld [vmem:[%s13005_s0 + $0x44] sm:$0x1] }
 0x412   :  { %v3031_v2 = vshll.u32 %v9734_v24, 16 }
 0x415   :  { %v2737_v18 = vpop.permute.xlu0 %2736  ;;  %v9611_v36 = vpop.permute.xlu2 %2758 }
 0x416   :  { %v2713_v6 = vpop.permute.xlu1 %2712  ;;  %v2747_v0 = vsel %vm2560_vm13, %v2735_v23, %v2737_v18  ;;  %v3049_v23 = vshrl.u32 %v9654_v49, 16 }
 0x417   :  { %v2723_v47 = vsel %vm2560_vm13, %v2705_v57, %v2713_v6  ;;  %v2995_v57 = vrot.slane %v2994_v42, 4  ;;  %v3038_v6 = vrot.slane %v3036_v31, 4  ;;  %v3033_v31 = vrot.slane %v3031_v2, 5 }
 0x418   :  { %2832 = vrot.lane.b32.xlu0 %v2723_v47, %s6128_s22  ;;  %2825 = vrot.lane.b32.xlu1 %v2723_v47, %s6127_s21  ;;  %v3041_v47 = vrot.slane %v3039_v56, 5  ;;  %v3071_v56 = vrot.slane %v3069_v52, 5 }
 0x419   :  { %2827 = vrot.lane.b32.xlu2 %v2715_v21, %s6127_s21  ;;  %v3007_v21 = vshll.u32 %v9708_v37, 16  ;;  %v9749_v58 = vsel %vm6283_vm2, %v2995_v57, %v2999_v34  ;;  %v3055_v34 = vshll.u32 %v9745_v12, 16 }
 0x41a   :  { %13944 = vst [vmem:[#allocation35_spill] sm:$0xff] %v9749_v58  ;;  %v3042_v8 = vor.u32 %v3041_v47, %v3038_v6 }
 0x41b   :  { %v3009_v48 = vrot.slane %v3007_v21, 5 }
 0x41c   :  { %v3043_v21 = vrot.slane %v3042_v8, 4 }
 0x41e   :  { %v2729_v51 = vpop.permute.xlu1 %2728 }
 0x41f   :  { %v2731_v22 = vsel %vm2543_vm8, 0, %v2729_v51  ;;  %v3019_v51 = vrot.slane %v3018_v15, 4  ;;  %v3062_v15 = vrot.slane %v3060_v16, 4 }
 0x420   :  { %2834 = vrot.lane.b32.xlu1 %v2744_v20, %s6128_s22  ;;  %v3023_v20 = vrot.slane %v3021_v62, 5  ;;  %v3065_v62 = vrot.slane %v3063_v60, 5 }
 0x421   :  { %2836 = vrot.lane.b32.xlu2 %v2747_v0, %s6128_s22  ;;  %v3047_v0 = vrot.slane %v3045_v28, 5 }
 0x422   :  { %v9624_v54 = vpop.permute.xlu2 %2767  ;;  %v3028_v55 = vor.u32 %v3027_v11, %v3023_v20  ;;  %v9758_v17 = vsel %vm6283_vm2, %v3019_v51, %v3023_v20  ;;  %v3076_v11 = vor.u32 %v3075_v39, %v3071_v56  ;;  %v3066_v20 = vor.u32 %v3065_v62, %v3062_v15 }
 0x423   :  { %v9780_v6 = vsel %vm6283_vm2, %v3043_v21, %v3047_v0  ;;  %v5940_v39 = vrot.slane %v9617_v5, 9  ;;  %v3124_v62 = vrot.slane %v9708_v37, 5 }
 0x424   :  { %v3029_v42 = vrot.slane %v3028_v55, 4  ;;  %13945 = vst [vmem:[#allocation57_spill] sm:$0xff] %v9780_v6  ;;  %v3067_v55 = vrot.slane %v3066_v20, 4 }
 0x426   :  { %v2739_v35 = vpop.permute.xlu1 %2738  ;;  %v9784_v47 = vsel %vm6283_vm2, %v3029_v42, %v3033_v31  ;;  %v9809_v60 = vsel %vm6283_vm2, %v3067_v55, %v3071_v56  ;;  %v3121_v31 = vrot.slane %v9634_v4, 5  ;;  %v5941_v55 = vrot.slane %v9629_v14, 9 }
 0x427   :  { %v2749_v29 = vsel %vm2560_vm13, %v2731_v22, %v2739_v35  ;;  %v3051_v22 = vrot.slane %v3049_v23, 4  ;;  %13946 = vst [vmem:[#allocation58_spill] sm:$0xff] %v9784_v47 }
 0x428   :  { %2840 = vrot.lane.b32.xlu1 %v2741_v38, %s6128_s22  ;;  %2838 = vrot.lane.b32.xlu0 %v2749_v29, %s6128_s22  ;;  %v9740_v29 = vsel %vm6283_vm2, %v3005_v63, %v3009_v48  ;;  %v3057_v63 = vrot.slane %v3055_v34, 5  ;;  %v9774_v48 = vld [vmem:[%s13005_s0 + $0x5c] sm:$0x1]  ;;  %13949 = vst [vmem:[#allocation70_spill] sm:$0xff] %v9809_v60  ;;  %v3123_v15 = vrot.slane %v3121_v31, 4  ;;  %s14277_s0 = smov 23  }
 0x429   :  { %2955 = vrot.lane.b32.xlu2 %v9617_v5, %s6120_s19  ;;  %13943 = vst [vmem:[#allocation59_spill] sm:$0xff] %v9740_v29  ;;  %v3052_v50 = vor.u32 %v3051_v22, %v3047_v0  ;;  %v3079_v51 = vshll.u32 %v9774_v48, 16  ;;  %v3077_v0 = vrot.slane %v3076_v11, 4  ;;  %v9846_v11 = vsel %vm6372_vm5, %v5940_v39, %v3121_v31 }
 0x42a   :  { %v9647_v7 = vpop.permute.xlu0 %2754  ;;  %v5942_v39 = vrot.slane %v9659_v44, 9 }
 0x42b   :  { %v3053_v23 = vrot.slane %v3052_v50, 4  ;;  %v3081_v8 = vrot.slane %v3079_v51, 5  ;;  %v3128_v51 = vrot.slane %v9639_v1, 5 }
 0x42d   :  { %v9789_v22 = vsel %vm6283_vm2, %v3053_v23, %v3057_v63  ;;  %v9805_v16 = vsel %vm6283_vm2, %v3077_v0, %v3081_v8  ;;  %v9851_v0 = vsel %vm6372_vm5, %v3123_v15, %v3124_v62  ;;  %v3130_v37 = vrot.slane %v3128_v51, 4 }
 0x42e   :  { %v9661_v61 = vpop.permute.xlu1 %2756  ;;  %13947 = vst [vmem:[#allocation54_spill] sm:$0xff] %v9789_v22  ;;  %v3131_v8 = vrot.slane %v9734_v24, 5  ;;  %v3135_v15 = vrot.slane %v9654_v49, 5  ;;  %vm13952_vm2 = vcmask 64512  }
 0x42f   :  { %13948 = vst [vmem:[#allocation56_spill] sm:$0xff] %v9805_v16  ;;  %vm13955_vm7 = vmmov %vm13952_vm2 }
 0x430   :  { %2959 = vrot.lane.b32.xlu1 %v9629_v14, %s6120_s19  ;;  %2957 = vrot.lane.b32.xlu0 %v9634_v4, %s6120_s19  ;;  %v9869_v45 = vsel %vm6372_vm5, %v3130_v37, %v3131_v8  ;;  %v9877_v24 = vsel %vm6372_vm5, %v5942_v39, %v3135_v15  ;;  %v5943_v37 = vrot.slane %v9666_v32, 9  ;;  %v3138_v8 = vrot.slane %v9745_v12, 5  ;;  %vm13959_vm9 = vmmov %vm13952_vm2 }
 0x431   :  { %2961 = vrot.lane.b32.xlu2 %v9639_v1, %s6120_s19 }
 0x433   :  { %v9649_v53 = vpop.permute.xlu2 %2773 }
 0x436   :  { %v9683_v33 = vpop.permute.xlu1 %2762 }
 0x437   :  { %v2851_v12 = vsel %vm13952_vm2, %v9521_v25, %v9683_v33  ;;  %vm13961_vm2 = vcmask 392192  }
 0x438   :  { %2965 = vrot.lane.b32.xlu1 %v9654_v49, %s6120_s19  ;;  %2963 = vrot.lane.b32.xlu0 %v9659_v44, %s6120_s19 }
 0x439   :  { %2967 = vrot.lane.b32.xlu2 %v9666_v32, %s6120_s19 }
 0x43a   :  { %v9674_v27 = vpop.permute.xlu0 %2760 }
 0x43b   :  { %v9676_v3 = vpop.permute.xlu2 %2782  ;;  %v2849_v25 = vsel %vm13955_vm7, %v9542_v59, %v9674_v27  ;;  %vm13964_vm7 = vcmask 457728  }
 0x43e   :  { %v9712_v40 = vpop.permute.xlu1 %2771 }
 0x440   :  { %2971 = vrot.lane.b32.xlu1 %v9617_v5, %s6121_s6  ;;  %2969 = vrot.lane.b32.xlu0 %v9681_v19, %s6120_s19 }
 0x441   :  { %2973 = vrot.lane.b32.xlu2 %v9634_v4, %s6121_s6 }
 0x442   :  { %v9693_v30 = vpop.permute.xlu0 %2769 }
 0x443   :  { %v9699_v43 = vpop.permute.xlu2 %2788 }
 0x448   :  { %2977 = vrot.lane.b32.xlu1 %v9639_v1, %s6121_s6  ;;  %2975 = vrot.lane.b32.xlu0 %v9629_v14, %s6121_s6 }
 0x449   :  { %2979 = vrot.lane.b32.xlu2 %v9659_v44, %s6121_s6 }
 0x44a   :  { %v9718_v41 = vpop.permute.xlu0 %2775  ;;  %v9736_v18 = vpop.permute.xlu1 %2780 }
 0x44b   :  { %v9727_v38 = vpop.permute.xlu2 %2797 }
 0x450   :  { %2983 = vrot.lane.b32.xlu1 %v9666_v32, %s6121_s6  ;;  %2981 = vrot.lane.b32.xlu0 %v9654_v49, %s6121_s6 }
 0x451   :  { %2985 = vrot.lane.b32.xlu2 %v9681_v19, %s6121_s6 }
 0x452   :  { %v9761_v46 = vpop.permute.xlu0 %2784 }
 0x453   :  { %v9776_v57 = vpop.permute.xlu2 %2806 }
 0x458   :  { %3085 = vrot.lane.b32.xlu1 %v9740_v29, %s6120_s19  ;;  %3083 = vrot.lane.b32.xlu0 %v9749_v58, %s6120_s19 }
 0x459   :  { %3087 = vrot.lane.b32.xlu2 %v9758_v17, %s6120_s19 }
 0x45a   :  { %v9769_v28 = vpop.permute.xlu1 %2786  ;;  %v9797_v2 = vpop.permute.xlu0 %2793 }
 0x460   :  { %3091 = vrot.lane.b32.xlu1 %v9780_v6, %s6120_s19  ;;  %3089 = vrot.lane.b32.xlu0 %v9784_v47, %s6120_s19 }
 0x461   :  { %3093 = vrot.lane.b32.xlu2 %v9789_v22, %s6120_s19 }
 0x462   :  { %v9801_v26 = vpop.permute.xlu1 %2795 }
 0x463   :  { %v9799_v52 = vpop.permute.xlu2 %2812 }
 0x468   :  { %3097 = vrot.lane.b32.xlu1 %v9805_v16, %s6120_s19  ;;  %3095 = vrot.lane.b32.xlu0 %v9809_v60, %s6120_s19 }
 0x469   :  { %3099 = vrot.lane.b32.xlu2 %v9749_v58, %s6121_s6 }
 0x46a   :  { %v9817_v50 = vpop.permute.xlu0 %2799  ;;  %v2802_v21 = vpop.permute.xlu1 %2801 }
 0x46b   :  { %v9819_v34 = vpop.permute.xlu2 %2821 }
 0x470   :  { %3103 = vrot.lane.b32.xlu1 %v9758_v17, %s6121_s6  ;;  %3101 = vrot.lane.b32.xlu0 %v9740_v29, %s6121_s6 }
 0x471   :  { %3105 = vrot.lane.b32.xlu2 %v9784_v47, %s6121_s6 }
 0x472   :  { %v9829_v42 = vpop.permute.xlu0 %2808  ;;  %v9832_v56 = vpop.permute.xlu1 %2810 }
 0x473   :  { %v9827_v35 = vpop.permute.xlu2 %2827 }
 0x478   :  { %3109 = vrot.lane.b32.xlu1 %v9789_v22, %s6121_s6  ;;  %3107 = vrot.lane.b32.xlu0 %v9780_v6, %s6121_s6 }
 0x479   :  { %3111 = vrot.lane.b32.xlu2 %v9809_v60, %s6121_s6  ;;  %v9873_v60 = vsel %vm6372_vm5, %v5941_v55, %v3128_v51  ;;  %v3137_v51 = vrot.slane %v3135_v15, 4 }
 0x47a   :  { %v2815_v20 = vpop.permute.xlu0 %2814  ;;  %v9861_v31 = vpop.permute.xlu1 %2819 }
 0x47b   :  { %v9842_v23 = vpop.permute.xlu2 %2836  ;;  %v9897_v58 = vsel %vm6372_vm5, %v3137_v51, %v3138_v8 }
 0x480   :  { %3147 = vrot.lane.b32.xlu1 %v9846_v11, %s6120_s19  ;;  %3113 = vrot.lane.b32.xlu0 %v9805_v16, %s6121_s6  ;;  %v3142_v16 = vrot.slane %v9681_v19, 5 }
 0x481   :  { %3149 = vrot.lane.b32.xlu2 %v9851_v0, %s6120_s19 }
 0x482   :  { %v2824_v47 = vpop.permute.xlu0 %2823  ;;  %v3144_v39 = vrot.slane %v3142_v16, 4  ;;  %v9893_v22 = vsel %vm6372_vm5, %v5943_v37, %v3142_v16  ;;  %v2546_v37 = vsel %vm2543_vm8, 0, %v9533_v13  ;;  %v2859_v13 = vsel %vm13958_vm11, %v2849_v25, %v9649_v53 }
 0x483   :  { %v9865_v62 = vpop.permute.xlu2 %2955 }
 0x484   :  { %13951 = vst [vmem:[#allocation75_spill] sm:$0xff] %v9865_v62  ;;  %v3145_v62 = vrot.slane %v9774_v48, 5  ;;  %v2861_v48 = vsel %vm13953_vm14, %v2851_v12, %v9718_v41  ;;  %v2552_v41 = vrot.slane %v2546_v37, 4  ;;  %vm13962_vm14 = vmmov %vm13958_vm11  ;;  %vm13967_vm11 = vcmask 326656  }
 0x486   :  { %v9901_v29 = vsel %vm6372_vm5, %v3144_v39, %v3145_v62  ;;  %vm13954_vm5 = vcmask 195584   ;;  %v2562_v12 = vsel %vm2560_vm13, 0, %v2552_v41 }
 0x487   :  { %v2871_v62 = vsel %vm13954_vm5, %v2861_v48, %v9699_v43  ;;  %v2565_v43 = vsel %vm2560_vm13, %v9438_v10, %v9436_v9  ;;  %vm13960_vm6 = vmmov %vm13954_vm5 }
 0x488   :  { %3153 = vrot.lane.b32.xlu1 %v9869_v45, %s6120_s19  ;;  %3151 = vrot.lane.b32.xlu0 %v9873_v60, %s6120_s19  ;;  %v2881_v33 = vsel %vm13956_vm12, %v2871_v62, %v2802_v21  ;;  %v2847_v59 = vsel %vm13959_vm9, %v2565_v43, %v9611_v36  ;;  %v2869_v27 = vsel %vm13960_vm6, %v2859_v13, %v9769_v28  ;;  %vm13963_vm5 = vmmov %vm13956_vm12  ;;  %v3902_v43 = vunpack.c.l.b16 %v9639_v1 }
 0x489   :  { %3155 = vrot.lane.b32.xlu2 %v9877_v24, %s6120_s19  ;;  %v2891_v51 = vsel %vm13957_vm10, %v2881_v33, %v2815_v20  ;;  %v2857_v9 = vsel %vm13962_vm14, %v2847_v59, %v9712_v40  ;;  %v2879_v10 = vsel %vm13963_vm5, %v2869_v27, %v9817_v50  ;;  %vm13965_vm12 = vmmov %vm13960_vm6  ;;  %v3901_v13 = vunpack.c.l.b16 %v9634_v4 }
 0x48a   :  { %v2826_v55 = vpop.permute.xlu1 %2825  ;;  %v9914_v16 = vpop.permute.xlu0 %2832  ;;  %v2901_v8 = vsel %vm13961_vm2, %v2891_v51, %v9827_v35  ;;  %v2867_v36 = vsel %vm13965_vm12, %v2857_v9, %v9761_v46  ;;  %vm13966_vm10 = vmmov %vm13959_vm9  ;;  %v2889_v40 = vsel %vm13967_vm11, %v2879_v10, %v9799_v52  ;;  %v3230_v27 = vunpack.c.l.b16 %v9666_v32 }
 0x48b   :  { %v9889_v6 = vpop.permute.xlu2 %2961  ;;  %v2845_v35 = vsel %vm13966_vm10, %v2562_v12, %v9661_v61  ;;  %vm13968_vm9 = vmmov %vm13962_vm14  ;;  %v2899_v62 = vsel %vm13961_vm2, %v2889_v40, %v2826_v55  ;;  %v10041_v10 = vunpack.i.l.s16 %v3901_v13  ;;  %v13991_v12 = vld [vmem:[#allocation54_spill] sm:$0xff]  ;;  %v13992_v40 = vld [vmem:[#allocation57_spill] sm:$0xff] }
 0x48c   :  { %v2855_v50 = vsel %vm13968_vm9, %v2845_v35, %v9693_v30  ;;  %vm13969_vm6 = vmmov %vm13963_vm5  ;;  %v3915_v35 = vunpack.c.l.b16 %v13991_v12 }
 0x48d   :  { %v2877_v48 = vsel %vm13969_vm6, %v2867_v36, %v9727_v38  ;;  %vm13970_vm14 = vmmov %vm13967_vm11  ;;  %13988 = vst [vmem:[#allocation26_spill] sm:$0xff] %v10041_v10  ;;  %v13990_v36 = vld [vmem:[#allocation35_spill] sm:$0xff] }
 0x48e   :  { %v2887_v46 = vsel %vm13970_vm14, %v2877_v48, %v9832_v56  ;;  %vm13971_vm5 = vmmov %vm13964_vm7  ;;  %v13993_v48 = vld [vmem:[#allocation58_spill] sm:$0xff] }
 0x48f   :  { %vm13973_vm12 = vmmov %vm13966_vm10  ;;  %vm13974_vm10 = vcmask 195584  }
 0x490   :  { %3159 = vrot.lane.b32.xlu1 %v9893_v22, %s6120_s19  ;;  %3157 = vrot.lane.b32.xlu0 %v9897_v58, %s6120_s19  ;;  %v2843_v30 = vsel %vm13973_vm12, 0, %v9647_v7  ;;  %v2865_v38 = vsel %vm13974_vm10, %v2855_v50, %v9676_v3  ;;  %vm13975_vm11 = vmmov %vm13969_vm6  ;;  %v3241_v50 = vunpack.c.l.b16 %v13992_v40 }
 0x491   :  { %3161 = vrot.lane.b32.xlu2 %v9901_v29, %s6120_s19  ;;  %v2875_v37 = vsel %vm13975_vm11, %v2865_v38, %v9801_v26  ;;  %vm13976_vm9 = vmmov %vm13970_vm14 }
 0x492   :  { %v2835_v63 = vpop.permute.xlu1 %2834  ;;  %vm13977_vm6 = vmmov %vm13971_vm5 }
 0x493   :  { %v9916_v15 = vpop.permute.xlu2 %2967  ;;  %vm13979_vm14 = vmmov %vm13974_vm10 }
 0x494   :  { %vm13981_vm12 = vmmov %vm13977_vm6 }
 0x495   :  { %vm13982_vm10 = vmmov %vm13976_vm9 }
 0x498   :  { %3165 = vrot.lane.b32.xlu1 %v9851_v0, %s6121_s6  ;;  %3163 = vrot.lane.b32.xlu0 %v9846_v11, %s6121_s6 }
 0x499   :  { %3167 = vrot.lane.b32.xlu2 %v9873_v60, %s6121_s6 }
 0x49a   :  { %v2839_v21 = vpop.permute.xlu0 %2838  ;;  %v2841_v20 = vpop.permute.xlu1 %2840 }
 0x49b   :  { %v9948_v53 = vpop.permute.xlu2 %2973  ;;  %v2915_v39 = vsel %vm13964_vm7, %v2901_v8, %v2841_v20  ;;  %v2912_v61 = vsel %vm13971_vm5, %v2899_v62, %v2839_v21  ;;  %vm13972_vm7 = vmmov %vm13961_vm2  ;;  %vm13978_vm2 = vcmask 130048   ;;  %v3903_v21 = vunpack.c.l.b16 %v9654_v49 }
 0x49c   :  { %v2919_v28 = vsel %vm2560_vm13, %v2915_v39, 0  ;;  %v2897_v52 = vsel %vm13972_vm7, %v2887_v46, %v2824_v47  ;;  %v2885_v47 = vsel %vm13976_vm9, %v2875_v37, %v9829_v42  ;;  %v2853_v7 = vsel %vm13978_vm2, %v2843_v30, %v9624_v54  ;;  %vm13980_vm5 = vmmov %vm13975_vm11  ;;  %v13997_v30 = vld [vmem:[#allocation70_spill] sm:$0xff] }
 0x49d   :  { %2924 = vmatpush.bf16.msra.mxu2 %v2919_v28  ;;  %v2909_v33 = vsel %vm13977_vm6, %v2897_v52, %v9842_v23  ;;  %v2863_v3 = vsel %vm13979_vm14, %v2853_v7, %v9736_v18  ;;  %v2895_v26 = vsel %vm13972_vm7, %v2885_v47, %v9819_v34  ;;  %vm13983_vm11 = vmmov %vm13972_vm7  ;;  %v10037_v8 = vunpack.i.l.s16 %v3902_v43  ;;  %v13996_v52 = vld [vmem:[#allocation56_spill] sm:$0xff] }
 0x49e   :  { %v2873_v51 = vsel %vm13980_vm5, %v2863_v3, %v9797_v2  ;;  %v2906_v42 = vsel %vm13981_vm12, %v2895_v26, %v2835_v63  ;;  %vm13984_vm9 = vmmov %vm13977_vm6  ;;  %v3239_v28 = vunpack.c.l.b16 %v13990_v36  ;;  %v3914_v62 = vunpack.c.l.b16 %v13993_v48 }
 0x49f   :  { %v2883_v54 = vsel %vm13982_vm10, %v2873_v51, %v9776_v57  ;;  %13986 = vst [vmem:[#allocation22_spill] sm:$0xff] %v10037_v8  ;;  %v10057_v46 = vunpack.i.l.s16 %v3230_v27  ;;  %v3242_v38 = vunpack.c.l.b16 %v13997_v30  ;;  %v3925_v47 = vunpack.c.l.b16 %v9851_v0 }
 0x4a0   :  { %3171 = vrot.lane.b32.xlu1 %v9877_v24, %s6121_s6  ;;  %3169 = vrot.lane.b32.xlu0 %v9869_v45, %s6121_s6  ;;  %v2893_v34 = vsel %vm13983_vm11, %v2883_v54, %v9861_v31  ;;  %v3227_v31 = vunpack.c.l.b16 %v9617_v5  ;;  %v3253_v7 = vunpack.c.l.b16 %v9877_v24  ;;  %v3252_v3 = vunpack.c.l.b16 %v9873_v60 }
 0x4a1   :  { %3173 = vrot.lane.b32.xlu2 %v9897_v58, %s6121_s6  ;;  %2925 = vmatpush.bf16.msra.mxu2 %v2912_v61  ;;  %v2903_v41 = vsel %vm13984_vm9, %v2893_v34, %v9914_v16  ;;  %v3228_v16 = vunpack.c.l.b16 %v9629_v14  ;;  %13994 = vst [vmem:[#allocation27_spill] sm:$0xff] %v10057_v46  ;;  %v10059_v61 = vunpack.i.l.s16 %v3903_v21  ;;  %v10079_v34 = vunpack.i.l.s16 %v3239_v28  ;;  %v14009_v28 = vld [vmem:[#allocation75_spill] sm:$0xff] }
 0x4a2   :  { %v9978_v56 = vpop.permute.xlu0 %2957  ;;  %v9980_v55 = vpop.permute.xlu1 %2959  ;;  %v10035_v20 = vunpack.i.l.s16 %v3227_v31  ;;  %v10083_v31 = vunpack.i.l.s16 %v3241_v50  ;;  %v10085_v43 = vunpack.i.l.s16 %v3914_v62  ;;  %v10089_v13 = vunpack.i.l.s16 %v3242_v38 }
 0x4a3   :  { %v9984_v25 = vpop.permute.xlu2 %2979  ;;  %v10039_v9 = vunpack.i.l.s16 %v3228_v16  ;;  %13995 = vst [vmem:[#allocation33_spill] sm:$0xff] %v10059_v61  ;;  %v3926_v27 = vunpack.c.l.b16 %v9869_v45  ;;  %v3928_v21 = vunpack.c.l.b16 %v9901_v29  ;;  %v3906_v50 = vunpack.c.l.b16 %v9889_v6 }
 0x4a4   :  { %13985 = vst [vmem:[#allocation62_spill] sm:$0xff] %v10035_v20  ;;  %v3254_v62 = vunpack.c.l.b16 %v9893_v22  ;;  %v3234_v38 = vunpack.c.l.b16 %v9916_v15  ;;  %vm14025_vm6 = vcmask 1041409   ;;  %vm14026_vm2 = vcmask 1042434  }
 0x4a5   :  { %2926 = vmatpush.bf16.msra.mxu2 %v2909_v33  ;;  %13987 = vst [vmem:[#allocation79_spill] sm:$0xff] %v10039_v9  ;;  %v3251_v33 = vunpack.c.l.b16 %v9846_v11  ;;  %v10115_v6 = vunpack.i.l.s16 %v3926_v27  ;;  %vm14027_vm14 = vmmov %vm14025_vm6  ;;  %vm14029_vm5 = vcmask 1043459   ;;  %vm14036_vm10 = vcmask 1044484  }
 0x4a6   :  { %14002 = vst [vmem:[#allocation78_spill] sm:$0xff] %v10079_v34  ;;  %v10127_v27 = vunpack.i.l.s16 %v3254_v62  ;;  %vm14031_vm7 = vmmov %vm14026_vm2  ;;  %vm14039_vm9 = vcmask 1045509  }
 0x4a7   :  { %14004 = vst [vmem:[#allocation63_spill] sm:$0xff] %v10083_v31  ;;  %vm14033_vm12 = vmmov %vm14029_vm5 }
 0x4a8   :  { %3177 = vrot.lane.b32.xlu1 %v9901_v29, %s6121_s6  ;;  %3175 = vrot.lane.b32.xlu0 %v9893_v22, %s6121_s6  ;;  %14005 = vst [vmem:[#allocation38_spill] sm:$0xff] %v10085_v43  ;;  %vm14037_vm11 = vmmov %vm14036_vm10 }
 0x4a9   :  { %3179 = vrot.lane.b32.xlu2 %v9617_v5, %s6122_s15  ;;  %2927 = vmatpush.bf16.msra.mxu2 %v2906_v42  ;;  %v3229_v5 = vunpack.c.l.b16 %v9659_v44  ;;  %14007 = vst [vmem:[#allocation7_spill] sm:$0xff] %v10089_v13 }
 0x4aa   :  { %v10007_v18 = vpop.permute.xlu0 %2963  ;;  %v10009_v2 = vpop.permute.xlu1 %2965  ;;  %14010 = vst [vmem:[#allocation90_spill] sm:$0xff] %v10115_v6 }
 0x4ab   :  { %v10013_v23 = vpop.permute.xlu2 %2985  ;;  %v10071_v51 = vunpack.i.l.s16 %v3229_v5  ;;  %v10093_v5 = vunpack.i.l.s16 %v3925_v47  ;;  %v3909_v47 = vunpack.c.l.b16 %v9948_v53  ;;  %v3233_v15 = vunpack.c.l.b16 %v10007_v18 }
 0x4ac   :  { %v3907_v53 = vunpack.c.l.b16 %v10009_v2 }
 0x4ad   :  { %2928 = vmatpush.bf16.msra.mxu2 %v2903_v41  ;;  %13998 = vst [vmem:[#allocation74_spill] sm:$0xff] %v10071_v51  ;;  %v10081_v41 = vunpack.i.l.s16 %v3915_v35  ;;  %v3231_v35 = vunpack.c.l.b16 %v14009_v28  ;;  %v3232_v28 = vunpack.c.l.b16 %v9980_v55  ;;  %v10133_v55 = vunpack.i.l.s16 %v3909_v47 }
 0x4ae   :  { %14008 = vst [vmem:[#allocation12_spill] sm:$0xff] %v10093_v5  ;;  %v10148_v62 = vunpack.i.l.s16 %v3907_v53 }
 0x4af   :  { %14003 = vst [vmem:[#allocation36_spill] sm:$0xff] %v10081_v41  ;;  %v10123_v43 = vunpack.i.l.s16 %v3231_v35 }
 0x4b0   :  { %3183 = vrot.lane.b32.xlu1 %v9629_v14, %s6122_s15  ;;  %3181 = vrot.lane.b32.xlu0 %v9634_v4, %s6122_s15  ;;  %v3904_v14 = vunpack.c.l.b16 %v9681_v19  ;;  %v3240_v4 = vunpack.c.l.b16 %v9758_v17  ;;  %14016 = vst [vmem:[#allocation42_spill] sm:$0xff] %v10133_v55 }
 0x4b1   :  { %3185 = vrot.lane.b32.xlu2 %v9639_v1, %s6122_s15  ;;  %v13989_v1 = vld [vmem:[#allocation59_spill] sm:$0xff]  ;;  %14012 = vst [vmem:[#allocation39_spill] sm:$0xff] %v10123_v43 }
 0x4b2   :  { %v10023_v57 = vpop.permute.xlu0 %2969  ;;  %v10025_v63 = vpop.permute.xlu1 %2971  ;;  %v3913_v39 = vunpack.c.l.b16 %v13989_v1  ;;  %v10073_v26 = vunpack.i.l.s16 %v3904_v14  ;;  %v10075_v42 = vunpack.i.l.s16 %v3240_v4  ;;  %v10095_v14 = vunpack.i.l.s16 %v3251_v33  ;;  %14023 = vst [vmem:[#allocation44_spill] sm:$0xff] %v10148_v62 }
 0x4b3   :  { %v10031_v59 = vpop.permute.xlu2 %3087  ;;  %v10097_v4 = vunpack.i.l.s16 %v3253_v7  ;;  %v3905_v33 = vunpack.c.l.b16 %v9978_v56  ;;  %v3235_v7 = vunpack.c.l.b16 %v10025_v63 }
 0x4b4   :  { %13999 = vst [vmem:[#allocation29_spill] sm:$0xff] %v10073_v26  ;;  %v10077_v54 = vunpack.i.l.s16 %v3913_v39  ;;  %v10099_v39 = vunpack.i.l.s16 %v3252_v3  ;;  %v10117_v3 = vunpack.i.l.s16 %v3928_v21  ;;  %v3244_v47 = vunpack.c.l.b16 %v10031_v59 }
 0x4b5   :  { %14000 = vst [vmem:[#allocation83_spill] sm:$0xff] %v10075_v42  ;;  %v10137_v18 = vunpack.i.l.s16 %v3235_v7  ;;  %v3404_v7 = vrot.slane %v10057_v46, 6  ;;  %v3406_v59 = vrot.slane %v10123_v43, 5  ;;  %v3422_v10 = vrot.slane %v10075_v42, 4 }
 0x4b6   :  { %14001 = vst [vmem:[#allocation86_spill] sm:$0xff] %v10077_v54  ;;  %v10135_v54 = vunpack.i.l.s16 %v3905_v33  ;;  %v3402_v33 = vrot.slane %v10071_v51, 7  ;;  %v10182_v26 = vunpack.i.l.s16 %v3244_v47  ;;  %v3471_v47 = vrot.slane %v10035_v20, 2 }
 0x4b7   :  { %14011 = vst [vmem:[#allocation52_spill] sm:$0xff] %v10117_v3 }
 0x4b8   :  { %3189 = vrot.lane.b32.xlu1 %v9654_v49, %s6122_s15  ;;  %3187 = vrot.lane.b32.xlu0 %v9659_v44, %s6122_s15  ;;  %v3916_v49 = vunpack.c.l.b16 %v13996_v52  ;;  %14017 = vst [vmem:[#allocation67_spill] sm:$0xff] %v10135_v54 }
 0x4b9   :  { %3191 = vrot.lane.b32.xlu2 %v9666_v32, %s6122_s15  ;;  %14018 = vst [vmem:[#allocation19_spill] sm:$0xff] %v10137_v18 }
 0x4ba   :  { %v2976_v44 = vpop.permute.xlu0 %2975  ;;  %v10063_v37 = vpop.permute.xlu1 %2977  ;;  %v10087_v16 = vunpack.i.l.s16 %v3916_v49  ;;  %v3927_v49 = vunpack.c.l.b16 %v9897_v58 }
 0x4bb   :  { %v10069_v32 = vpop.permute.xlu2 %3093  ;;  %v3236_v56 = vunpack.c.l.b16 %v2976_v44  ;;  %v10141_v44 = vunpack.i.l.s16 %v3232_v28 }
 0x4bc   :  { %14006 = vst [vmem:[#allocation64_spill] sm:$0xff] %v10087_v16  ;;  %v10129_v21 = vunpack.i.l.s16 %v3927_v49  ;;  %v3908_v49 = vunpack.c.l.b16 %v10023_v57  ;;  %v3910_v57 = vunpack.c.l.b16 %v10063_v37 }
 0x4bd   :  { %14020 = vst [vmem:[#allocation81_spill] sm:$0xff] %v10141_v44 }
 0x4be   :  { %14014 = vst [vmem:[#allocation65_spill] sm:$0xff] %v10129_v21  ;;  %v10184_v61 = vunpack.i.l.s16 %v3908_v49  ;;  %v3424_v49 = vrot.slane %v10083_v31, 3 }
 0x4c0   :  { %3195 = vrot.lane.b32.xlu1 %v13990_v36, %s6122_s15  ;;  %3193 = vrot.lane.b32.xlu0 %v9681_v19, %s6122_s15  ;;  %v3237_v36 = vunpack.c.l.b16 %v9984_v25  ;;  %v10131_v25 = vunpack.i.l.s16 %v3234_v38  ;;  %v10151_v38 = vunpack.i.l.s16 %v3236_v56  ;;  %14032 = vst [vmem:[#allocation96_spill] sm:$0xff] %v10184_v61  ;;  %v3550_v61 = vrot.slane %v10141_v44, 6 }
 0x4c1   :  { %3197 = vrot.lane.b32.xlu2 %v13989_v1, %s6122_s15  ;;  %v10125_v1 = vunpack.i.l.s16 %v3906_v50  ;;  %v10146_v50 = vunpack.i.l.s16 %v3233_v15 }
 0x4c2   :  { %v2982_v19 = vpop.permute.xlu0 %2981  ;;  %v2984_v16 = vpop.permute.xlu1 %2983  ;;  %14015 = vst [vmem:[#allocation16_spill] sm:$0xff] %v10131_v25  ;;  %v10139_v2 = vunpack.i.l.s16 %v3237_v36  ;;  %v3919_v36 = vunpack.c.l.b16 %v10069_v32  ;;  %v3420_v32 = vrot.slane %v10079_v34, 5 }
 0x4c3   :  { %v3100_v41 = vpop.permute.xlu2 %3099  ;;  %v3238_v63 = vunpack.c.l.b16 %v2984_v16  ;;  %14013 = vst [vmem:[#allocation51_spill] sm:$0xff] %v10125_v1  ;;  %v3912_v16 = vunpack.c.l.b16 %v10013_v23  ;;  %v3400_v23 = vrot.slane %v10035_v20, 1  ;;  %v3911_v37 = vunpack.c.l.b16 %v2982_v19 }
 0x4c4   :  { %14019 = vst [vmem:[#allocation43_spill] sm:$0xff] %v10139_v2  ;;  %v3416_v53 = vrot.slane %v10139_v2, 7 }
 0x4c5   :  { %v10144_v35 = vunpack.i.l.s16 %v3238_v63  ;;  %14022 = vst [vmem:[#allocation95_spill] sm:$0xff] %v10146_v50  ;;  %v3247_v63 = vunpack.c.l.b16 %v3100_v41  ;;  %v10175_v1 = vunpack.i.l.s16 %v3912_v16  ;;  %v3408_v41 = vrot.slane %v10141_v44, 4 }
 0x4c6   :  { %14024 = vst [vmem:[#allocation50_spill] sm:$0xff] %v10151_v38 }
 0x4c7   :  { %14021 = vst [vmem:[#allocation69_spill] sm:$0xff] %v10144_v35  ;;  %v3418_v56 = vrot.slane %v10144_v35, 6 }
 0x4c8   :  { %3201 = vrot.lane.b32.xlu1 %v13993_v48, %s6122_s15  ;;  %3199 = vrot.lane.b32.xlu0 %v9758_v17, %s6122_s15  ;;  %v3414_v48 = vrot.slane %v10137_v18, 1  ;;  %v3401_v17 = vsel %vm14025_vm6, %v10039_v9, %v3400_v23  ;;  %14028 = vst [vmem:[#allocation24_spill] sm:$0xff] %v10175_v1  ;;  %vm14040_vm6 = vmmov %vm14039_vm9 }
 0x4c9   :  { %3203 = vrot.lane.b32.xlu2 %v13992_v40, %s6122_s15  ;;  %v3403_v40 = vsel %vm14026_vm2, %v3402_v33, %v3401_v17  ;;  %v10188_v33 = vunpack.i.l.s16 %v3919_v36  ;;  %v10197_v17 = vunpack.i.l.s16 %v3911_v37  ;;  %v3410_v36 = vrot.slane %v10146_v50, 3  ;;  %vm14041_vm2 = vmmov %vm14027_vm14 }
 0x4ca   :  { %v3084_v28 = vpop.permute.xlu0 %3083  ;;  %v3086_v15 = vpop.permute.xlu1 %3085  ;;  %v3415_v62 = vsel %vm14027_vm14, %v10151_v38, %v3414_v48  ;;  %v10178_v54 = vsel %vm14029_vm5, %v3404_v7, %v3403_v40  ;;  %v10190_v48 = vunpack.i.l.s16 %v3910_v57  ;;  %vm14042_vm14 = vcmask 1046534   ;;  %vm14043_vm5 = vmmov %vm14031_vm7 }
 0x4cb   :  { %v3106_v55 = vpop.permute.xlu2 %3105  ;;  %14030 = vst [vmem:[#allocation88_spill] sm:$0xff] %v10178_v54  ;;  %v3417_v23 = vsel %vm14031_vm7, %v3416_v53, %v3415_v62  ;;  %v3407_v16 = vsel %vm14036_vm10, %v3406_v59, %v10178_v54  ;;  %v10195_v62 = vunpack.i.l.s16 %v3247_v63  ;;  %v3472_v59 = vrot.slane %v10039_v9, 1  ;;  %vm14044_vm7 = vmmov %vm14042_vm14 }
 0x4cc   :  { %v3419_v19 = vsel %vm14033_vm12, %v3418_v56, %v3417_v23  ;;  %14034 = vst [vmem:[#allocation87_spill] sm:$0xff] %v10188_v33  ;;  %v3475_v53 = vrot.slane %v10057_v46, 7  ;;  %v3922_v56 = vunpack.c.l.b16 %v3106_v55  ;;  %v3917_v63 = vunpack.c.l.b16 %v3086_v15  ;;  %vm14049_vm10 = vmmov %vm14041_vm2 }
 0x4cd   :  { %14035 = vst [vmem:[#allocation31_spill] sm:$0xff] %v10190_v48  ;;  %v3421_v7 = vsel %vm14037_vm11, %v3420_v32, %v3419_v19  ;;  %v3243_v32 = vunpack.c.l.b16 %v3084_v28  ;;  %v3409_v37 = vsel %vm14040_vm6, %v3408_v41, %v3407_v16  ;;  %v3426_v23 = vrot.slane %v10089_v13, 2 }
 0x4ce   :  { %14038 = vst [vmem:[#allocation93_spill] sm:$0xff] %v10197_v17  ;;  %v3423_v57 = vsel %vm14039_vm9, %v3422_v10, %v3421_v7  ;;  %v3473_v10 = vsel %vm14041_vm2, %v3472_v59, %v3471_v47  ;;  %v3485_v19 = vrot.slane %v10137_v18, 2  ;;  %v3477_v28 = vrot.slane %v10123_v43, 6  ;;  %vm14052_vm9 = vmmov %vm14043_vm5 }
 0x4cf   :  { %v3425_v55 = vsel %vm14042_vm14, %v3424_v49, %v3423_v57  ;;  %v3486_v15 = vrot.slane %v10151_v38, 1  ;;  %v3411_v41 = vsel %vm14044_vm7, %v3410_v36, %v3409_v37  ;;  %v3489_v47 = vrot.slane %v10144_v35, 7  ;;  %vm14055_vm14 = vmmov %vm14033_vm12 }
 0x4d0   :  { %3207 = vrot.lane.b32.xlu1 %v13997_v30, %s6122_s15  ;;  %3205 = vrot.lane.b32.xlu0 %v13991_v12, %s6122_s15  ;;  %v3412_v12 = vrot.slane %v10131_v25, 2  ;;  %v3491_v59 = vrot.slane %v10079_v34, 6  ;;  %v10231_v1 = vunpack.i.l.s16 %v3922_v56  ;;  %v10233_v17 = vunpack.i.l.s16 %v3243_v32 }
 0x4d1   :  { %3209 = vrot.lane.b32.xlu2 %v13996_v52, %s6122_s15  ;;  %v3474_v52 = vsel %vm14043_vm5, %v10071_v51, %v3473_v10  ;;  %v10235_v49 = vunpack.i.l.s16 %v3917_v63  ;;  %v3487_v57 = vsel %vm14049_vm10, %v3486_v15, %v3485_v19  ;;  %vm14050_vm11 = vcmask 1047559  }
 0x4d2   :  { %v3090_v30 = vpop.permute.xlu0 %3089  ;;  %v10212_v40 = vpop.permute.xlu1 %3091  ;;  %v10227_v16 = vsel %vm14033_vm12, %v3475_v53, %v3474_v52  ;;  %14046 = vst [vmem:[#allocation97_spill] sm:$0xff] %v10231_v1  ;;  %v10239_v10 = vsel %vm14050_vm11, %v3426_v23, %v3425_v55  ;;  %v3479_v36 = vrot.slane %v10141_v44, 5  ;;  %v3488_v53 = vsel %vm14052_vm9, %v10139_v2, %v3487_v57  ;;  %vm14053_vm6 = vmmov %vm14050_vm11 }
 0x4d3   :  { %v10218_v7 = vpop.permute.xlu2 %3111  ;;  %14045 = vst [vmem:[#allocation55_spill] sm:$0xff] %v10227_v16  ;;  %v3493_v37 = vrot.slane %v10075_v42, 5  ;;  %v10246_v52 = vsel %vm14053_vm6, %v3412_v12, %v3411_v41  ;;  %vm14054_vm2 = vcmask 1044484   ;;  %v3481_v32 = vrot.slane %v10146_v50, 4  ;;  %vm14059_vm11 = vmmov %vm14052_vm9 }
 0x4d4   :  { %14047 = vst [vmem:[#allocation100_spill] sm:$0xff] %v10233_v17  ;;  %v3478_v56 = vsel %vm14054_vm2, %v3477_v28, %v10227_v16  ;;  %v3490_v63 = vsel %vm14055_vm14, %v3489_v47, %v3488_v53  ;;  %v3918_v19 = vunpack.c.l.b16 %v3090_v30  ;;  %vm14056_vm5 = vmmov %vm14054_vm2  ;;  %v3542_v55 = vrot.slane %v10035_v20, 3 }
 0x4d5   :  { %14048 = vst [vmem:[#allocation98_spill] sm:$0xff] %v10235_v49  ;;  %v3492_v23 = vsel %vm14056_vm5, %v3491_v59, %v3490_v63  ;;  %v3543_v12 = vrot.slane %v10039_v9, 2  ;;  %v3495_v30 = vrot.slane %v10083_v31, 4  ;;  %v3545_v15 = vrot.slane %v10071_v51, 1  ;;  %vm14061_vm9 = vmmov %vm14055_vm14 }
 0x4d6   :  { %14051 = vst [vmem:[#allocation45_spill] sm:$0xff] %v10239_v10  ;;  %vm14057_vm7 = vcmask 1045509   ;;  %v3483_v59 = vrot.slane %v10131_v25, 3  ;;  %v3245_v63 = vunpack.c.l.b16 %v10212_v40  ;;  %v10274_v8 = vunpack.i.l.s16 %v3918_v19  ;;  %vm14065_vm14 = vmmov %vm14056_vm5 }
 0x4d7   :  { %v3480_v47 = vsel %vm14057_vm7, %v3479_v36, %v3478_v56  ;;  %vm14058_vm12 = vmmov %vm14057_vm7  ;;  %v3544_v53 = vsel %vm14049_vm10, %v3543_v12, %v3542_v55  ;;  %v3497_v54 = vrot.slane %v10089_v13, 3  ;;  %vm14063_vm6 = vcmask 1046534  }
 0x4d8   :  { %3213 = vrot.lane.b32.xlu1 %v9851_v0, %s6122_s15  ;;  %3211 = vrot.lane.b32.xlu0 %v9846_v11, %s6122_s15  ;;  %v3548_v0 = vrot.slane %v10123_v43, 7  ;;  %v3494_v57 = vsel %vm14058_vm12, %v3493_v37, %v3492_v23  ;;  %v3546_v48 = vsel %vm14059_vm11, %v3545_v15, %v3544_v53  ;;  %14060 = vst [vmem:[#allocation99_spill] sm:$0xff] %v10274_v8  ;;  %v3556_v37 = vrot.slane %v10137_v18, 3  ;;  %vm14064_vm2 = vmmov %vm14063_vm6 }
 0x4d9   :  { %3215 = vrot.lane.b32.xlu2 %v9873_v60, %s6122_s15  ;;  %v3250_v60 = vunpack.c.l.b16 %v10218_v7  ;;  %v10279_v36 = vsel %vm14061_vm9, %v10057_v46, %v3546_v48  ;;  %v3482_v56 = vsel %vm14063_vm6, %v3481_v32, %v3480_v47  ;;  %v3496_v7 = vsel %vm14064_vm2, %v3495_v30, %v3494_v57  ;;  %vm14066_vm5 = vmmov %vm14057_vm7 }
 0x4da   :  { %v3096_v41 = vpop.permute.xlu0 %3095  ;;  %v3098_v11 = vpop.permute.xlu1 %3097  ;;  %14062 = vst [vmem:[#allocation60_spill] sm:$0xff] %v10279_v36  ;;  %v3549_v40 = vsel %vm14065_vm14, %v3548_v0, %v10279_v36  ;;  %v3557_v23 = vrot.slane %v10151_v38, 2  ;;  %v3552_v19 = vrot.slane %v10146_v50, 5  ;;  %v3554_v55 = vrot.slane %v10131_v25, 4  ;;  %vm14067_vm7 = vmmov %vm14049_vm10 }
 0x4db   :  { %v3150_v28 = vpop.permute.xlu2 %3149  ;;  %v3559_v12 = vrot.slane %v10139_v2, 1  ;;  %v3562_v48 = vrot.slane %v10079_v34, 7  ;;  %v3246_v15 = vunpack.c.l.b16 %v3096_v41  ;;  %v3920_v53 = vunpack.c.l.b16 %v3098_v11  ;;  %vm14070_vm10 = vmmov %vm14059_vm11 }
 0x4dc   :  { %v3551_v3 = vsel %vm14066_vm5, %v3550_v61, %v3549_v40  ;;  %v3558_v32 = vsel %vm14067_vm7, %v3557_v23, %v3556_v37  ;;  %v3929_v30 = vunpack.c.l.b16 %v3150_v28  ;;  %vm14068_vm12 = vcmask 1047559   ;;  %vm14071_vm11 = vmmov %vm14061_vm9 }
 0x4dd   :  { %v10298_v0 = vsel %vm14068_vm12, %v3497_v54, %v3496_v7  ;;  %v3560_v47 = vsel %vm14070_vm10, %v3559_v12, %v3558_v32  ;;  %v3613_v57 = vrot.slane %v10035_v20, 4  ;;  %v3564_v28 = vrot.slane %v10075_v42, 6  ;;  %vm14073_vm9 = vmmov %vm14068_vm12 }
 0x4de   :  { %14069 = vst [vmem:[#allocation13_spill] sm:$0xff] %v10298_v0  ;;  %v3561_v61 = vsel %vm14071_vm11, %v10144_v35, %v3560_v47  ;;  %v3616_v41 = vrot.slane %v10071_v51, 2  ;;  %v10312_v37 = vsel %vm14073_vm9, %v3483_v59, %v3482_v56  ;;  %vm14074_vm6 = vmmov %vm14064_vm2  ;;  %v10316_v40 = vunpack.i.l.s16 %v3250_v60 }
 0x4df   :  { %v3553_v7 = vsel %vm14074_vm6, %v3552_v19, %v3551_v3  ;;  %vm14075_vm2 = vmmov %vm14065_vm14  ;;  %v3533_v12 = vpack.c.b16 %v10298_v0, %v10312_v37  ;;  %v10322_v47 = vunpack.i.l.s16 %v3246_v15  ;;  %v3566_v36 = vrot.slane %v10083_v31, 5 }
 0x4e0   :  { %3219 = vrot.lane.b32.xlu1 %v9877_v24, %s6122_s15  ;;  %3217 = vrot.lane.b32.xlu0 %v9869_v45, %s6122_s15  ;;  %v3614_v24 = vrot.slane %v10039_v9, 3  ;;  %v10309_v45 = vunpack.i.l.s16 %v3245_v63  ;;  %vm14076_vm14 = vmmov %vm14067_vm7  ;;  %v3618_v63 = vrot.slane %v10057_v46, 1  ;;  %v3627_v3 = vrot.slane %v10137_v18, 4 }
 0x4e1   :  { %3221 = vrot.lane.b32.xlu2 %v9897_v58, %s6122_s15  ;;  %v3563_v58 = vsel %vm14075_vm2, %v3562_v48, %v3561_v61  ;;  %14077 = vst [vmem:[#allocation80_spill] sm:$0xff] %v10322_v47  ;;  %vm14078_vm5 = vmmov %vm14070_vm10  ;;  %v10327_v56 = vunpack.i.l.s16 %v3929_v30  ;;  %v10329_v60 = vunpack.i.l.s16 %v3920_v53  ;;  %vm14082_vm12 = vcmask 1045509  }
 0x4e2   :  { %14072 = vst [vmem:[#allocation20_spill] sm:$0xff] %v10309_v45  ;;  %v3102_v54 = vpop.permute.xlu0 %3101  ;;  %v3104_v11 = vpop.permute.xlu1 %3103  ;;  %v3615_v32 = vsel %vm14076_vm14, %v3614_v24, %v3613_v57  ;;  %vm14081_vm7 = vmmov %vm14073_vm9  ;;  %v3565_v48 = vsel %vm14082_vm12, %v3564_v28, %v3563_v58  ;;  %v3568_v57 = vrot.slane %v10089_v13, 4  ;;  %v3621_v15 = vrot.slane %v10141_v44, 7 }
 0x4e3   :  { %v3156_v23 = vpop.permute.xlu2 %3155  ;;  %v3617_v59 = vsel %vm14078_vm5, %v3616_v41, %v3615_v32  ;;  %14079 = vst [vmem:[#allocation72_spill] sm:$0xff] %v10327_v56  ;;  %v10332_v19 = vsel %vm14081_vm7, %v3554_v55, %v3553_v7  ;;  %v3623_v61 = vrot.slane %v10146_v50, 6  ;;  %v3628_v24 = vrot.slane %v10151_v38, 3  ;;  %vm14083_vm10 = vmmov %vm14071_vm11 }
 0x4e4   :  { %14080 = vst [vmem:[#allocation84_spill] sm:$0xff] %v10329_v60  ;;  %v3921_v41 = vunpack.c.l.b16 %v3102_v54  ;;  %v10340_v37 = vsel %vm14083_vm10, %v3618_v63, %v3617_v59  ;;  %v3630_v53 = vrot.slane %v10139_v2, 2  ;;  %v3632_v30 = vrot.slane %v10144_v35, 1  ;;  %vm14085_vm11 = vmmov %vm14074_vm6 }
 0x4e5   :  { %14084 = vst [vmem:[#allocation89_spill] sm:$0xff] %v10340_v37  ;;  %v3257_v55 = vunpack.c.l.b16 %v3156_v23  ;;  %v3248_v7 = vunpack.c.l.b16 %v3104_v11  ;;  %v3567_v28 = vsel %vm14085_vm11, %v3566_v36, %v3565_v48  ;;  %vm14086_vm9 = vmmov %vm14076_vm14  ;;  %v14087_v54 = vpack.c.b16 %v10239_v10, %v10246_v52 }
 0x4e6   :  { %v3629_v58 = vsel %vm14086_vm9, %v3628_v24, %v3627_v3  ;;  %vm14088_vm6 = vmmov %vm14078_vm5  ;;  %v3635_v23 = vrot.slane %v10075_v42, 7  ;;  %v3685_v11 = vrot.slane %v10035_v20, 5  ;;  %v3688_v3 = vrot.slane %v10071_v51, 3 }
 0x4e7   :  { %v3631_v32 = vsel %vm14088_vm6, %v3630_v53, %v3629_v58  ;;  %vm14089_vm14 = vmmov %vm14083_vm10  ;;  %v3690_v52 = vrot.slane %v10057_v46, 2  ;;  %v3625_v24 = vrot.slane %v10131_v25, 5  ;;  %v10369_v10 = vunpack.i.l.s16 %v3921_v41 }
 0x4e8   :  { %3225 = vrot.lane.b32.xlu1 %v9901_v29, %s6122_s15  ;;  %3223 = vrot.lane.b32.xlu0 %v9893_v22, %s6122_s15  ;;  %v3686_v29 = vrot.slane %v10039_v9, 4  ;;  %v3620_v22 = vsel %vm14075_vm2, %v10123_v43, %v10340_v37  ;;  %v3633_v36 = vsel %vm14089_vm14, %v3632_v30, %v3631_v32  ;;  %vm14090_vm5 = vmmov %vm14075_vm2  ;;  %v10371_v56 = vunpack.i.l.s16 %v3248_v7 }
 0x4e9   :  { %3465 = vrot.lane.b32.xlu2 %v14087_v54, %s6122_s15  ;;  %v3634_v53 = vsel %vm14090_vm5, %v10079_v34, %v3633_v36  ;;  %vm14091_vm7 = vmmov %vm14086_vm9  ;;  %v3692_v54 = vrot.slane %v10123_v43, 1  ;;  %14092 = vst [vmem:[#allocation66_spill] sm:$0xff] %v10369_v10  ;;  %v3637_v30 = vrot.slane %v10083_v31, 6  ;;  %vm14094_vm10 = vcmask 1047559  }
 0x4ea   :  { %v3108_v63 = vpop.permute.xlu0 %3107  ;;  %v3110_v59 = vpop.permute.xlu1 %3109  ;;  %v3687_v58 = vsel %vm14091_vm7, %v3686_v29, %v3685_v11  ;;  %vm14093_vm12 = vmmov %vm14088_vm6  ;;  %v10376_v37 = vsel %vm14094_vm10, %v3568_v57, %v3567_v28  ;;  %vm14096_vm11 = vcmask 1045509   ;;  %v10383_v11 = vunpack.i.l.s16 %v3257_v55 }
 0x4eb   :  { %v3162_v48 = vpop.permute.xlu2 %3161  ;;  %v3689_v32 = vsel %vm14093_vm12, %v3688_v3, %v3687_v58  ;;  %14095 = vst [vmem:[#allocation77_spill] sm:$0xff] %v10376_v37  ;;  %v3622_v6 = vsel %vm14096_vm11, %v3621_v15, %v3620_v22  ;;  %vm14097_vm9 = vmmov %vm14096_vm11  ;;  %v3249_v41 = vunpack.c.l.b16 %v3108_v63  ;;  %vm14100_vm2 = vcmask 1046534  }
 0x4ec   :  { %v3636_v21 = vsel %vm14097_vm9, %v3635_v23, %v3634_v53  ;;  %vm14098_vm6 = vmmov %vm14089_vm14  ;;  %v3624_v7 = vsel %vm14100_vm2, %v3623_v61, %v3622_v6  ;;  %v3639_v29 = vrot.slane %v10089_v13, 5  ;;  %v3695_v57 = vrot.slane %v10146_v50, 7 }
 0x4ed   :  { %v10381_v36 = vsel %vm14098_vm6, %v3690_v52, %v3689_v32  ;;  %vm14101_vm14 = vmmov %vm14090_vm5  ;;  %v3699_v28 = vrot.slane %v10137_v18, 5  ;;  %v3700_v15 = vrot.slane %v10151_v38, 4  ;;  %v3702_v22 = vrot.slane %v10139_v2, 3 }
 0x4ee   :  { %14099 = vst [vmem:[#allocation85_spill] sm:$0xff] %v10381_v36  ;;  %v3693_v3 = vsel %vm14101_vm14, %v3692_v54, %v10381_v36  ;;  %vm14102_vm5 = vmmov %vm14100_vm2  ;;  %v3704_v55 = vrot.slane %v10144_v35, 2  ;;  %v3706_v63 = vrot.slane %v10079_v34, 1  ;;  %v3923_v6 = vunpack.c.l.b16 %v3110_v59 }
 0x4ef   :  { %v3638_v23 = vsel %vm14102_vm5, %v3637_v30, %v3636_v21  ;;  %v3604_v61 = vpack.c.b16 %v10376_v37, %v10332_v19  ;;  %vm14103_vm7 = vmmov %vm14094_vm10  ;;  %vm14104_vm12 = vcmask 1041409   ;;  %v3932_v58 = vunpack.c.l.b16 %v3162_v48 }
 0x4f0   :  { %v10400_v52 = vsel %vm14103_vm7, %v3625_v24, %v3624_v7  ;;  %v3701_v53 = vsel %vm14104_vm12, %v3700_v15, %v3699_v28  ;;  %vm14105_vm10 = vmmov %vm14097_vm9  ;;  %v3697_v32 = vrot.slane %v10131_v25, 6  ;;  %vm14106_vm11 = vcmask 1042434  }
 0x4f1   :  { %3536 = vrot.lane.b32.xlu2 %v3533_v12, %s6123_s16  ;;  %v3694_v30 = vsel %vm14105_vm10, %v10141_v44, %v3693_v3  ;;  %v3703_v59 = vsel %vm14106_vm11, %v3702_v22, %v3701_v53  ;;  %vm14107_vm9 = vmmov %vm14103_vm7  ;;  %v3428_v7 = vrot.slane %v10233_v17, 1  ;;  %v10413_v48 = vunpack.i.l.s16 %v3249_v41 }
 0x4f2   :  { %v3114_v54 = vpop.permute.xlu0 %3113  ;;  %v3148_v21 = vpop.permute.xlu1 %3147  ;;  %v10408_v12 = vsel %vm14107_vm9, %v3639_v29, %v3638_v23  ;;  %vm14109_vm6 = vmmov %vm14100_vm2  ;;  %vm14110_vm2 = vcmask 1043459   ;;  %v3709_v3 = vrot.slane %v10083_v31, 7  ;;  %v3430_v15 = vrot.slane %v10309_v45, 7 }
 0x4f3   :  { %v3168_v36 = vpop.permute.xlu2 %3167  ;;  %14108 = vst [vmem:[#allocation47_spill] sm:$0xff] %v10408_v12  ;;  %v3696_v19 = vsel %vm14109_vm6, %v3695_v57, %v3694_v30  ;;  %v3705_v24 = vsel %vm14110_vm2, %v3704_v55, %v3703_v59  ;;  %v10418_v37 = vunpack.i.l.s16 %v3923_v6  ;;  %v3924_v22 = vunpack.c.l.b16 %v3114_v54  ;;  %vm14112_vm5 = vmmov %vm14105_vm10 }
 0x4f4   :  { %v3707_v28 = vsel %vm14101_vm14, %v3706_v63, %v3705_v24  ;;  %v3432_v57 = vrot.slane %v10322_v47, 6  ;;  %v10423_v23 = vunpack.i.l.s16 %v3932_v58  ;;  %v3255_v55 = vunpack.c.l.b16 %v3148_v21  ;;  %vm14114_vm10 = vmmov %vm14109_vm6 }
 0x4f5   :  { %14111 = vst [vmem:[#allocation71_spill] sm:$0xff] %v10418_v37  ;;  %v3708_v29 = vsel %vm14112_vm5, %v10075_v42, %v3707_v28  ;;  %v3676_v41 = vpack.c.b16 %v10408_v12, %v10400_v52  ;;  %v10428_v63 = vsel %vm14103_vm7, %v3697_v32, %v3696_v19  ;;  %v3711_v53 = vrot.slane %v10089_v13, 6  ;;  %vm14116_vm9 = vmmov %vm14110_vm2 }
 0x4f6   :  { %14113 = vst [vmem:[#allocation61_spill] sm:$0xff] %v10423_v23  ;;  %v3429_v6 = vsel %vm14104_vm12, %v10182_v26, %v3428_v7  ;;  %v3442_v30 = vrot.slane %v10095_v14, 1  ;;  %v3260_v59 = vunpack.c.l.b16 %v3168_v36  ;;  %v3710_v58 = vsel %vm14114_vm10, %v3709_v3, %v3708_v29  ;;  %vm14117_vm6 = vmmov %vm14104_vm12 }
 0x4f7   :  { %v3431_v21 = vsel %vm14106_vm11, %v3430_v15, %v3429_v6  ;;  %v3444_v24 = vrot.slane %v10097_v4, 7  ;;  %v10438_v52 = vunpack.i.l.s16 %v3924_v22  ;;  %v10445_v28 = vunpack.i.l.s16 %v3255_v55  ;;  %vm14119_vm2 = vmmov %vm14103_vm7 }
 0x4f8   :  { %v3433_v32 = vsel %vm14116_vm9, %v3432_v57, %v3431_v21  ;;  %v3443_v7 = vsel %vm14117_vm6, %v10099_v39, %v3442_v30  ;;  %v3757_v15 = vrot.slane %v10035_v20, 6  ;;  %v3758_v22 = vrot.slane %v10039_v9, 5  ;;  %vm14122_vm5 = vmmov %vm14106_vm11 }
 0x4f9   :  { %14115 = vst [vmem:[#allocation9_spill] sm:$0xff] %v10438_v52  ;;  %3607 = vrot.lane.b32.xlu2 %v3604_v61, %s6124_s17  ;;  %v10455_v57 = vsel %vm14119_vm2, %v3711_v53, %v3710_v58  ;;  %v3446_v6 = vrot.slane %v10127_v27, 6  ;;  %v3760_v55 = vrot.slane %v10071_v51, 4  ;;  %v14121_v30 = vrot.slane %v10195_v62, 5  ;;  %vm14123_vm7 = vmmov %vm14117_vm6 }
 0x4fa   :  { %14118 = vst [vmem:[#allocation30_spill] sm:$0xff] %v10445_v28  ;;  %v3152_v36 = vpop.permute.xlu0 %3151  ;;  %v10447_v54 = vpop.permute.xlu1 %3153  ;;  %v3445_v3 = vsel %vm14122_vm5, %v3444_v24, %v3443_v7  ;;  %v3759_v19 = vsel %vm14123_vm7, %v3758_v22, %v3757_v15  ;;  %v3762_v12 = vrot.slane %v10057_v46, 3  ;;  %v10465_v23 = vunpack.i.l.s16 %v3260_v59  ;;  %vm14127_vm10 = vmmov %vm14122_vm5 }
 0x4fb   :  { %v10452_v29 = vpop.permute.xlu2 %3173  ;;  %v3256_v61 = vunpack.c.l.b16 %v3152_v36  ;;  %14120 = vst [vmem:[#allocation8_spill] sm:$0xff] %v10455_v57  ;;  %v3435_v21 = vsel %vm14101_vm14, %v14121_v30, %v3433_v32  ;;  %v14125_v53 = vrot.slane %v10371_v56, 4  ;;  %vm14126_vm12 = vcmask 1045509   ;;  %vm14131_vm6 = vmmov %vm14116_vm9 }
 0x4fc   :  { %v3761_v52 = vsel %vm14127_vm10, %v3760_v55, %v3759_v19  ;;  %v3748_v37 = vpack.c.b16 %v10455_v57, %v10428_v63  ;;  %v14128_v32 = vrot.slane %v10413_v48, 3  ;;  %vm14129_vm11 = vcmask 1046534   ;;  %vm14133_vm2 = vmmov %vm14123_vm7 }
 0x4fd   :  { %v10467_v36 = vunpack.i.l.s16 %v3256_v61  ;;  %v3437_v58 = vsel %vm14126_vm12, %v14125_v53, %v3435_v21  ;;  %v13304_v7 = vrot.slane %v10316_v40, 2  ;;  %v3448_v59 = vrot.slane %v10445_v28, 5  ;;  %vm14136_vm7 = vmmov %vm14127_vm10 }
 0x4fe   :  { %v3439_v24 = vsel %vm14129_vm11, %v14128_v32, %v3437_v58  ;;  %v10481_v15 = vsel %vm14116_vm9, %v3446_v6, %v3445_v3  ;;  %v3764_v22 = vrot.slane %v10123_v43, 2  ;;  %v3771_v61 = vrot.slane %v10137_v18, 6  ;;  %vm14138_vm10 = vmmov %vm14131_vm6 }
 0x4ff   :  { %14124 = vst [vmem:[#allocation37_spill] sm:$0xff] %v10467_v36  ;;  %v3772_v19 = vrot.slane %v10151_v38, 5  ;;  %v10487_v55 = vsel %vm14131_vm6, %v3762_v12, %v3761_v52  ;;  %v3774_v63 = vrot.slane %v10139_v2, 4  ;;  %v3776_v30 = vrot.slane %v10144_v35, 3 }
 0x500   :  { %14130 = vst [vmem:[#allocation14_spill] sm:$0xff] %v10481_v15  ;;  %v3778_v21 = vrot.slane %v10079_v34, 2  ;;  %v3450_v3 = vrot.slane %v10467_v36, 4  ;;  %v3452_v6 = vrot.slane %v10383_v11, 3  ;;  %v3780_v58 = vrot.slane %v10075_v42, 1 }
 0x501   :  { %14132 = vst [vmem:[#allocation53_spill] sm:$0xff] %v10487_v55  ;;  %3679 = vrot.lane.b32.xlu2 %v3676_v41, %s6125_s18  ;;  %v3773_v53 = vsel %vm14133_vm2, %v3772_v19, %v3771_v61  ;;  %vm14134_vm14 = vcmask 1047559   ;;  %vm14135_vm5 = vcmask 1044484   ;;  %v3766_v41 = vrot.slane %v10141_v44, 1 }
 0x502   :  { %v10497_v32 = vpop.permute.xlu0 %3157  ;;  %v3160_v12 = vpop.permute.xlu1 %3159  ;;  %v3441_v52 = vsel %vm14134_vm14, %v13304_v7, %v3439_v24  ;;  %v3449_v57 = vsel %vm14135_vm5, %v3448_v59, %v10481_v15  ;;  %v3775_v5 = vsel %vm14136_vm7, %v3774_v63, %v3773_v53  ;;  %vm14137_vm12 = vmmov %vm14135_vm5  ;;  %v3499_v0 = vrot.slane %v10233_v17, 2 }
 0x503   :  { %v10506_v1 = vpop.permute.xlu2 %3179  ;;  %v3258_v8 = vunpack.c.l.b16 %v3160_v12  ;;  %v3765_v61 = vsel %vm14137_vm12, %v3764_v22, %v10487_v55  ;;  %v3777_v19 = vsel %vm14138_vm10, %v3776_v30, %v3775_v5  ;;  %vm14139_vm11 = vmmov %vm14135_vm5  ;;  %v3500_v59 = vrot.slane %v10182_v26, 1 }
 0x504   :  { %v3779_v24 = vsel %vm14139_vm11, %v3778_v21, %v3777_v19  ;;  %v3503_v7 = vrot.slane %v10322_v47, 7  ;;  %vm14141_vm9 = vcmask 1045509   ;;  %v3769_v53 = vrot.slane %v10131_v25, 7 }
 0x505   :  { %v10516_v60 = vunpack.i.l.s16 %v3258_v8  ;;  %v3451_v63 = vsel %vm14141_vm9, %v3450_v3, %v3449_v57  ;;  %vm14142_vm6 = vmmov %vm14141_vm9  ;;  %v3783_v30 = vrot.slane %v10089_v13, 7  ;;  %vm14144_vm14 = vcmask 1041409  }
 0x506   :  { %v3781_v22 = vsel %vm14142_vm6, %v3780_v58, %v3779_v24  ;;  %vm14143_vm2 = vmmov %vm14142_vm6  ;;  %v3501_v12 = vsel %vm14144_vm14, %v3500_v59, %v3499_v0  ;;  %v13306_v21 = vrot.slane %v10195_v62, 6  ;;  %vm14145_vm5 = vcmask 1046534  }
 0x507   :  { %14140 = vst [vmem:[#allocation68_spill] sm:$0xff] %v10516_v60  ;;  %v3767_v5 = vsel %vm14143_vm2, %v3766_v41, %v3765_v61  ;;  %v3454_v19 = vrot.slane %v10516_v60, 2  ;;  %v3782_v8 = vsel %vm14145_vm5, %v10083_v31, %v3781_v22  ;;  %v3502_v57 = vsel %vm14136_vm7, %v10309_v45, %v3501_v12  ;;  %vm14146_vm12 = vmmov %vm14145_vm5 }
 0x508   :  { %v3453_v58 = vsel %vm14146_vm12, %v3452_v6, %v3451_v63  ;;  %v3504_v41 = vsel %vm14138_vm10, %v3503_v7, %v3502_v57  ;;  %v3513_v0 = vrot.slane %v10095_v14, 2  ;;  %vm14147_vm11 = vcmask 1047559   ;;  %vm14148_vm9 = vmmov %vm14145_vm5 }
 0x509   :  { %3751 = vrot.lane.b32.xlu2 %v3748_v37, %s6126_s20  ;;  %v3455_v24 = vsel %vm14147_vm11, %v3454_v19, %v3453_v58  ;;  %v3768_v59 = vsel %vm14148_vm9, %v10146_v50, %v3767_v5  ;;  %v3514_v22 = vrot.slane %v10099_v39, 1  ;;  %v3517_v12 = vrot.slane %v10127_v27, 7  ;;  %vm14149_vm6 = vmmov %vm14147_vm11 }
 0x50a   :  { %v3164_v10 = vpop.permute.xlu0 %3163  ;;  %v10541_v3 = vpop.permute.xlu1 %3165  ;;  %v3463_v6 = vpack.c.b16 %v3455_v24, %v3441_v52  ;;  %v10544_v7 = vsel %vm14149_vm6, %v3783_v30, %v3782_v8  ;;  %vm14151_vm2 = vcmask 1044484   ;;  %v3519_v63 = vrot.slane %v10445_v28, 6  ;;  %vm14155_vm7 = vmmov %vm14149_vm6 }
 0x50b   :  { %14150 = vst [vmem:[#allocation82_spill] sm:$0xff] %v10544_v7  ;;  %v3506_v37 = vsel %vm14151_vm2, %v13306_v21, %v3504_v41  ;;  %v10550_v19 = vpop.permute.xlu2 %3185  ;;  %v14152_v5 = vrot.slane %v10371_v56, 5  ;;  %vm14153_vm14 = vcmask 1045509   ;;  %v13308_v58 = vrot.slane %v10316_v40, 3  ;;  %vm14157_vm12 = vmmov %vm14148_vm9 }
 0x50c   :  { %vm14154_vm5 = vcmask 1041409   ;;  %v3521_v52 = vrot.slane %v10467_v36, 5  ;;  %3467 = vrot.lane.b32.xlu0 %v3463_v6, %s6122_s15  ;;  %v3770_v30 = vsel %vm14155_vm7, %v3769_v53, %v3768_v59  ;;  %v14156_v8 = vrot.slane %v10413_v48, 4  ;;  %vm14161_vm9 = vmmov %vm14151_vm2 }
 0x50d   :  { %v3508_v57 = vsel %vm14153_vm14, %v14152_v5, %v3506_v37  ;;  %v3515_v61 = vsel %vm14154_vm5, %v3514_v22, %v3513_v0  ;;  %vm14158_vm10 = vcmask 1042434   ;;  %v3523_v21 = vrot.slane %v10383_v11, 4  ;;  %vm14162_vm2 = vmmov %vm14153_vm14 }
 0x50e   :  { %v3510_v41 = vsel %vm14157_vm12, %v14156_v8, %v3508_v57  ;;  %v3516_v24 = vsel %vm14158_vm10, %v10097_v4, %v3515_v61  ;;  %v3820_v5 = vpack.c.b16 %v10544_v7, %v3770_v30  ;;  %vm14159_vm11 = vcmask 1043459   ;;  %vm14163_vm14 = vmmov %vm14157_vm12 }
 0x50f   :  { %v10569_v0 = vsel %vm14159_vm11, %v3517_v12, %v3516_v24  ;;  %v3525_v22 = vrot.slane %v10516_v60, 3  ;;  %v3259_v6 = vunpack.c.l.b16 %v3164_v10  ;;  %v3570_v59 = vrot.slane %v10233_v17, 3  ;;  %vm14164_vm7 = vmmov %vm14149_vm6 }
 0x510   :  { %14160 = vst [vmem:[#allocation28_spill] sm:$0xff] %v10569_v0  ;;  %v3520_v53 = vsel %vm14161_vm9, %v3519_v63, %v10569_v0  ;;  %v3571_v57 = vrot.slane %v10182_v26, 2  ;;  %v3512_v61 = vsel %vm14149_vm6, %v13308_v58, %v3510_v41  ;;  %v3573_v30 = vrot.slane %v10309_v45, 1  ;;  %vm14165_vm12 = vmmov %vm14158_vm10 }
 0x511   :  { %v3522_v8 = vsel %vm14162_vm2, %v3521_v52, %v3520_v53  ;;  %v13309_v63 = vrot.slane %v10371_v56, 6  ;;  %3823 = vrot.lane.b32.xlu2 %v3820_v5, %s6127_s21  ;;  %v3584_v52 = vrot.slane %v10095_v14, 3  ;;  %v3585_v53 = vrot.slane %v10099_v39, 2  ;;  %vm14166_vm10 = vmmov %vm14159_vm11 }
 0x512   :  { %v3524_v24 = vsel %vm14163_vm14, %v3523_v21, %v3522_v8  ;;  %v3572_v10 = vsel %vm14154_vm5, %v3571_v57, %v3570_v59  ;;  %v10591_v58 = vpop.permute.xlu0 %3169  ;;  %v3172_v12 = vpop.permute.xlu1 %3171  ;;  %v3587_v57 = vrot.slane %v10097_v4, 1  ;;  %v3590_v8 = vrot.slane %v10445_v28, 7  ;;  %vm14169_vm11 = vmmov %vm14154_vm5 }
 0x513   :  { %v3526_v7 = vsel %vm14164_vm7, %v3525_v22, %v3524_v24  ;;  %v3574_v41 = vsel %vm14165_vm12, %v3573_v30, %v3572_v10  ;;  %v14167_v5 = vunpack.c.l.b16 %v10447_v54  ;;  %v10603_v10 = vpop.permute.xlu2 %3191  ;;  %v3586_v37 = vsel %vm14169_vm11, %v3585_v53, %v3584_v52  ;;  %vm14171_vm6 = vmmov %vm14165_vm12 }
 0x514   :  { %v3534_v21 = vpack.c.b16 %v3526_v7, %v3512_v61  ;;  %v3575_v59 = vsel %vm14166_vm10, %v10322_v47, %v3574_v41  ;;  %v14170_v61 = vrot.slane %v10195_v62, 7  ;;  %v3588_v54 = vsel %vm14171_vm6, %v3587_v57, %v3586_v37  ;;  %vm14172_vm14 = vmmov %vm14166_vm10 }
 0x515   :  { %v10599_v22 = vunpack.i.l.s16 %v14167_v5  ;;  %v3592_v5 = vrot.slane %v10467_v36, 6  ;;  %v10620_v53 = vsel %vm14172_vm14, %v10127_v27, %v3588_v54  ;;  %vm14175_vm5 = vcmask 1046534   ;;  %vm14176_vm7 = vmmov %vm14161_vm9 }
 0x516   :  { %3538 = vrot.lane.b32.xlu0 %v3534_v21, %s6123_s16  ;;  %v3577_v41 = vsel %vm14161_vm9, %v14170_v61, %v3575_v59  ;;  %14173 = vst [vmem:[#allocation49_spill] sm:$0xff] %v10620_v53  ;;  %v10622_v21 = vunpack.i.l.s16 %v3259_v6  ;;  %v14174_v59 = vrot.slane %v10413_v48, 5  ;;  %v3591_v57 = vsel %vm14176_vm7, %v3590_v8, %v10620_v53  ;;  %vm14177_vm12 = vmmov %vm14162_vm2 }
 0x517   :  { %14168 = vst [vmem:[#allocation92_spill] sm:$0xff] %v10599_v22  ;;  %v3579_v24 = vsel %vm14162_vm2, %v13309_v63, %v3577_v41  ;;  %v3594_v61 = vrot.slane %v10383_v11, 5  ;;  %v3593_v7 = vsel %vm14177_vm12, %v3592_v5, %v3591_v57  ;;  %v3596_v41 = vrot.slane %v10516_v60, 4  ;;  %vm14178_vm10 = vmmov %vm14175_vm5 }
 0x518   :  { %v3581_v37 = vsel %vm14175_vm5, %v14174_v59, %v3579_v24  ;;  %v3641_v63 = vrot.slane %v10233_v17, 4  ;;  %v3642_v54 = vrot.slane %v10182_v26, 3  ;;  %v3261_v30 = vunpack.c.l.b16 %v3172_v12 }
 0x519   :  { %v3595_v6 = vsel %vm14178_vm10, %v3594_v61, %v3593_v7  ;;  %v3644_v52 = vrot.slane %v10309_v45, 2  ;;  %v3646_v24 = vrot.slane %v10322_v47, 1  ;;  %v14179_v59 = vrot.slane %v10316_v40, 4 }
 0x51a   :  { %vm14180_vm11 = vcmask 1047559   ;;  %vm14182_vm6 = vcmask 1041409   ;;  %v13317_v57 = vrot.slane %v10371_v56, 7  ;;  %v3176_v22 = vpop.permute.xlu0 %3175  ;;  %v10643_v33 = vpop.permute.xlu1 %3177  ;;  %vm14183_vm2 = vcmask 1042434  }
 0x51b   :  { %v3583_v8 = vsel %vm14180_vm11, %v14179_v59, %v3581_v37  ;;  %vm14181_vm9 = vmmov %vm14180_vm11  ;;  %v3643_v5 = vsel %vm14182_vm6, %v3642_v54, %v3641_v63  ;;  %v3655_v61 = vrot.slane %v10095_v14, 4  ;;  %v3656_v49 = vrot.slane %v10099_v39, 3  ;;  %v10658_v59 = vpop.permute.xlu2 %3197 }
 0x51c   :  { %v3597_v55 = vsel %vm14181_vm9, %v3596_v41, %v3595_v6  ;;  %v3645_v7 = vsel %vm14183_vm2, %v3644_v52, %v3643_v5  ;;  %v3262_v16 = vunpack.c.l.b16 %v3176_v22  ;;  %v13316_v37 = vrot.slane %v10413_v48, 6  ;;  %vm14184_vm5 = vmmov %vm14182_vm6 }
 0x51d   :  { %v3605_v12 = vpack.c.b16 %v3597_v55, %v3583_v8  ;;  %v3647_v53 = vsel %vm14172_vm14, %v3646_v24, %v3645_v7  ;;  %v3658_v41 = vrot.slane %v10097_v4, 2  ;;  %v3934_v63 = vunpack.c.l.b16 %v10591_v58  ;;  %vm14185_vm12 = vmmov %vm14183_vm2 }
 0x51e   :  { %v10652_v54 = vunpack.i.l.s16 %v3261_v30  ;;  %v3657_v55 = vsel %vm14184_vm5, %v3656_v49, %v3655_v61  ;;  %v3660_v52 = vrot.slane %v10127_v27, 1  ;;  %v4679_v6 = vunpack.c.l.b16 %v10603_v10  ;;  %vm14187_vm11 = vmmov %vm14172_vm14 }
 0x51f   :  { %3609 = vrot.lane.b32.xlu0 %v3605_v12, %s6124_s17  ;;  %v10660_v22 = vunpack.i.l.s16 %v3262_v16  ;;  %v3648_v24 = vsel %vm14176_vm7, %v10195_v62, %v3647_v53  ;;  %v3659_v8 = vsel %vm14185_vm12, %v3658_v41, %v3657_v55  ;;  %vm14186_vm10 = vcmask 1045509   ;;  %vm14190_vm6 = vmmov %vm14176_vm7 }
 0x520   :  { %v3650_v58 = vsel %vm14186_vm10, %v13317_v57, %v3648_v24  ;;  %v13327_v30 = vrot.slane %v10316_v40, 5  ;;  %v10670_v49 = vsel %vm14187_vm11, %v3660_v52, %v3659_v8  ;;  %v3663_v10 = vrot.slane %v10467_v36, 7  ;;  %vm14191_vm2 = vmmov %vm14186_vm10 }
 0x521   :  { %14188 = vst [vmem:[#allocation41_spill] sm:$0xff] %v10670_v49  ;;  %vm14189_vm9 = vcmask 1046534   ;;  %v3662_v53 = vsel %vm14190_vm6, %v10445_v28, %v10670_v49  ;;  %v3665_v5 = vrot.slane %v10383_v11, 6  ;;  %v3667_v12 = vrot.slane %v10516_v60, 5 }
 0x522   :  { %v3652_v16 = vsel %vm14189_vm9, %v13316_v37, %v3650_v58  ;;  %v3664_v7 = vsel %vm14191_vm2, %v3663_v10, %v3662_v53  ;;  %v3456_v61 = vrot.slane %v10622_v21, 1  ;;  %v3458_v41 = vrot.slane %v10652_v54, 7  ;;  %vm14192_vm14 = vmmov %vm14189_vm9  ;;  %v10689_v37 = vpop.permute.xlu0 %3181  ;;  %v10691_v57 = vpop.permute.xlu1 %3183 }
 0x523   :  { %v3460_v55 = vrot.slane %v10660_v22, 6  ;;  %v3666_v52 = vsel %vm14192_vm14, %v3665_v5, %v3664_v7  ;;  %v3713_v24 = vrot.slane %v10233_v17, 5  ;;  %v3714_v8 = vrot.slane %v10182_v26, 4  ;;  %vm14208_vm2 = vmmov %vm14187_vm11 }
 0x524   :  { %v3716_v58 = vrot.slane %v10309_v45, 3  ;;  %vm14193_vm5 = vcmask 1047559   ;;  %vm14195_vm12 = vcmask 1041409   ;;  %v3718_v5 = vrot.slane %v10322_v47, 2 }
 0x525   :  { %v3654_v10 = vsel %vm14193_vm5, %v13327_v30, %v3652_v16  ;;  %vm14194_vm7 = vmmov %vm14193_vm5  ;;  %v3457_v49 = vsel %vm14195_vm12, %v10465_v23, %v3456_v61  ;;  %v14196_v7 = vunpack.c.l.b16 %v10452_v29  ;;  %v14197_v15 = vunpack.c.l.b16 %v10497_v32 }
 0x526   :  { %v3668_v53 = vsel %vm14194_vm7, %v3667_v12, %v3666_v52  ;;  %vm14199_vm10 = vcmask 1042434   ;;  %v14200_v16 = vunpack.c.l.b16 %v10506_v1  ;;  %vm14202_vm9 = vmmov %vm14195_vm12  ;;  %v13328_v52 = vrot.slane %v10195_v62, 1 }
 0x527   :  { %v10702_v0 = vunpack.i.l.s16 %v14196_v7  ;;  %v10706_v13 = vunpack.i.l.s16 %v14197_v15  ;;  %v3677_v31 = vpack.c.b16 %v3668_v53, %v3654_v10  ;;  %v3459_v35 = vsel %vm14199_vm10, %v3458_v41, %v3457_v49  ;;  %vm14206_vm6 = vmmov %vm14199_vm10 }
 0x528   :  { %v10711_v30 = vunpack.i.l.s16 %v14200_v16  ;;  %v3461_v12 = vsel %vm14187_vm11, %v3460_v55, %v3459_v35  ;;  %v3715_v61 = vsel %vm14202_vm9, %v3714_v8, %v3713_v24  ;;  %v14203_v29 = vunpack.c.l.b16 %v10550_v19  ;;  %v10732_v19 = vpop.permute.xlu2 %3203  ;;  %vm14211_vm7 = vmmov %vm14202_vm9 }
 0x529   :  { %14198 = vst [vmem:[#allocation48_spill] sm:$0xff] %v10706_v13  ;;  %v14205_v15 = vunpack.c.l.b16 %v10541_v3  ;;  %3681 = vrot.lane.b32.xlu0 %v3677_v31, %s6125_s18  ;;  %v3464_v49 = vpack.c.b16 %v3461_v12, %v3461_v12  ;;  %v3717_v1 = vsel %vm14206_vm6, %v3716_v58, %v3715_v61  ;;  %v10726_v41 = vunpack.i.l.s16 %v4679_v6  ;;  %vm14212_vm12 = vmmov %vm14206_vm6 }
 0x52a   :  { %14201 = vst [vmem:[#allocation34_spill] sm:$0xff] %v10711_v30  ;;  %v10718_v7 = vunpack.i.l.s16 %v14203_v29  ;;  %v10728_v35 = vunpack.i.l.s16 %v3934_v63  ;;  %v3719_v55 = vsel %vm14208_vm2, %v3718_v5, %v3717_v1  ;;  %v3727_v24 = vrot.slane %v10095_v14, 5  ;;  %v10751_v29 = vpop.permute.xlu0 %3187  ;;  %vm14214_vm11 = vmmov %vm14208_vm2 }
 0x52b   :  { %v10722_v32 = vunpack.i.l.s16 %v14205_v15  ;;  %14207 = vst [vmem:[#allocation25_spill] sm:$0xff] %v10726_v41  ;;  %4778 = vrot.lane.b32.xlu2 %v3464_v49, %s6121_s6  ;;  %3469 = vrot.lane.b32.xlu1 %v3464_v49, %s6122_s15  ;;  %v13331_v3 = vrot.slane %v10413_v48, 7  ;;  %v3728_v31 = vrot.slane %v10099_v39, 4  ;;  %v3730_v8 = vrot.slane %v10097_v4, 3  ;;  %vm14216_vm9 = vmmov %vm14211_vm7 }
 0x52c   :  { %14204 = vst [vmem:[#allocation23_spill] sm:$0xff] %v10718_v7  ;;  %v3732_v6 = vrot.slane %v10127_v27, 2  ;;  %v3936_v63 = vunpack.c.l.b16 %v10643_v33  ;;  %vm14209_vm14 = vcmask 1044484   ;;  %v3734_v53 = vrot.slane %v10445_v28, 1  ;;  %v10753_v33 = vpop.permute.xlu1 %3189  ;;  %vm14218_vm2 = vmmov %vm14212_vm12 }
 0x52d   :  { %v3721_v58 = vsel %vm14209_vm14, %v13328_v52, %v3719_v55  ;;  %vm14210_vm5 = vcmask 1045509   ;;  %v3729_v16 = vsel %vm14211_vm7, %v3728_v31, %v3727_v24  ;;  %v3813_v12 = vrot.slane %v10622_v21, 6  ;;  %vm14217_vm6 = vmmov %vm14209_vm14 }
 0x52e   :  { %v3722_v5 = vsel %vm14210_vm5, %v10371_v56, %v3721_v58  ;;  %v3814_v61 = vrot.slane %v10465_v23, 5  ;;  %v3731_v15 = vsel %vm14212_vm12, %v3730_v8, %v3729_v16  ;;  %v3737_v49 = vrot.slane %v10383_v11, 7  ;;  %vm14219_vm14 = vmmov %vm14210_vm5 }
 0x52f   :  { %v3816_v1 = vrot.slane %v10652_v54, 4  ;;  %v3818_v55 = vrot.slane %v10660_v22, 3  ;;  %vm14213_vm10 = vcmask 1046534   ;;  %v10763_v31 = vsel %vm14214_vm11, %v3732_v6, %v3731_v15  ;;  %vm14220_vm5 = vmmov %vm14214_vm11 }
 0x530   :  { %v3724_v24 = vsel %vm14213_vm10, %v13331_v3, %v3722_v5  ;;  %14215 = vst [vmem:[#allocation76_spill] sm:$0xff] %v10763_v31  ;;  %v3739_v58 = vrot.slane %v10516_v60, 6  ;;  %v3815_v52 = vsel %vm14216_vm9, %v3814_v61, %v3813_v12  ;;  %v4984_v10 = vunpack.c.l.b16 %v10658_v59  ;;  %vm14223_vm12 = vmmov %vm14213_vm10 }
 0x531   :  { %v3735_v8 = vsel %vm14217_vm6, %v3734_v53, %v10763_v31  ;;  %v3817_v16 = vsel %vm14218_vm2, %v3816_v1, %v3815_v52  ;;  %v3527_v7 = vrot.slane %v10622_v21, 2  ;;  %v4980_v13 = vunpack.c.l.b16 %v10689_v37  ;;  %vm14225_vm11 = vmmov %vm14216_vm9 }
 0x532   :  { %v4677_v5 = vunpack.c.l.b16 %v10691_v57  ;;  %v3736_v6 = vsel %vm14219_vm14, %v10467_v36, %v3735_v8  ;;  %v3819_v15 = vsel %vm14220_vm5, %v3818_v55, %v3817_v16  ;;  %v14221_v12 = vrot.slane %v10316_v40, 6  ;;  %vm14226_vm9 = vmmov %vm14218_vm2 }
 0x533   :  { %vm14222_vm7 = vcmask 1047559   ;;  %v3738_v61 = vsel %vm14223_vm12, %v3737_v49, %v3736_v6  ;;  %v10781_v53 = vpack.c.b16 %v3819_v15, %v3819_v15  ;;  %v3528_v52 = vrot.slane %v10465_v23, 1  ;;  %v10794_v6 = vpop.permute.xlu2 %3209  ;;  %vm14227_vm6 = vmmov %vm14225_vm11 }
 0x534   :  { %v3726_v59 = vsel %vm14222_vm7, %v14221_v12, %v3724_v24  ;;  %vm14224_vm10 = vmmov %vm14222_vm7  ;;  %v3531_v37 = vrot.slane %v10660_v22, 7  ;;  %v3785_v57 = vrot.slane %v10233_v17, 6  ;;  %v3786_v8 = vrot.slane %v10182_v26, 5 }
 0x535   :  { %v3740_v1 = vsel %vm14224_vm10, %v3739_v58, %v3738_v61  ;;  %3827 = vrot.lane.b32.xlu2 %v10781_v53, %s6127_s21  ;;  %v3529_v55 = vsel %vm14225_vm11, %v3528_v52, %v3527_v7  ;;  %v3788_v49 = vrot.slane %v10309_v45, 4  ;;  %v3790_v24 = vrot.slane %v10322_v47, 3  ;;  %vm14228_vm2 = vmmov %vm14220_vm5  ;;  %v10802_v7 = vpop.permute.xlu0 %3193  ;;  %v10804_v61 = vpop.permute.xlu1 %3195 }
 0x536   :  { %v3749_v3 = vpack.c.b16 %v3740_v1, %v3726_v59  ;;  %v4682_v16 = vunpack.c.l.b16 %v10732_v19  ;;  %v3530_v58 = vsel %vm14226_vm9, %v10652_v54, %v3529_v55  ;;  %v3787_v15 = vsel %vm14227_vm6, %v3786_v8, %v3785_v57  ;;  %vm14229_vm14 = vmmov %vm14226_vm9 }
 0x537   :  { %v13334_v12 = vrot.slane %v10195_v62, 2  ;;  %v3532_v59 = vsel %vm14228_vm2, %v3531_v37, %v3530_v58  ;;  %v3789_v52 = vsel %vm14229_vm14, %v3788_v49, %v3787_v15  ;;  %v3799_v1 = vrot.slane %v10095_v14, 6  ;;  %vm14231_vm5 = vmmov %vm14228_vm2 }
 0x538   :  { %3753 = vrot.lane.b32.xlu0 %v3749_v3, %s6126_s20  ;;  %v10809_v31 = vunpack.i.l.s16 %v4984_v10  ;;  %v10811_v55 = vunpack.i.l.s16 %v3936_v63  ;;  %v10813_v57 = vpack.c.b16 %v3532_v59, %v3532_v59  ;;  %v3791_v3 = vsel %vm14231_vm5, %v3790_v24, %v3789_v52  ;;  %vm14237_vm10 = vmmov %vm14227_vm6 }
 0x539   :  { %v10816_v8 = vunpack.i.l.s16 %v4980_v13  ;;  %v10818_v37 = vunpack.i.l.s16 %v4677_v5  ;;  %v3800_v58 = vrot.slane %v10099_v39, 5  ;;  %v3802_v49 = vrot.slane %v10097_v4, 4  ;;  %vm14239_vm6 = vmmov %vm14228_vm2 }
 0x53a   :  { %14230 = vst [vmem:[#allocation91_spill] sm:$0xff] %v10809_v31  ;;  %v10822_v15 = vunpack.i.l.s16 %v4682_v16  ;;  %v4678_v19 = vunpack.c.l.b16 %v10751_v29  ;;  %3540 = vrot.lane.b32.xlu1 %v10813_v57, %s6123_s16  ;;  %vm14234_vm7 = vcmask 1044484   ;;  %v3804_v13 = vrot.slane %v10127_v27, 3  ;;  %vm14243_vm5 = vmmov %vm14237_vm10 }
 0x53b   :  { %14232 = vst [vmem:[#allocation94_spill] sm:$0xff] %v10816_v8  ;;  %v3793_v63 = vsel %vm14234_vm7, %v13334_v12, %v3791_v3  ;;  %v14235_v10 = vrot.slane %v10371_v56, 1  ;;  %vm14236_vm12 = vcmask 1045509   ;;  %v3801_v16 = vsel %vm14237_vm10, %v3800_v58, %v3799_v1  ;;  %vm14241_vm2 = vmmov %vm14234_vm7  ;;  %v10866_v17 = vpop.permute.xlu2 %3215 }
 0x53c   :  { %14233 = vst [vmem:[#allocation11_spill] sm:$0xff] %v10818_v37  ;;  %v3806_v59 = vrot.slane %v10445_v28, 2  ;;  %vm14238_vm11 = vcmask 1046534   ;;  %v3803_v52 = vsel %vm14226_vm9, %v3802_v49, %v3801_v16  ;;  %v3808_v8 = vrot.slane %v10467_v36, 1  ;;  %vm14242_vm14 = vmmov %vm14236_vm12 }
 0x53d   :  { %v3795_v5 = vsel %vm14236_vm12, %v14235_v10, %v3793_v63  ;;  %v3811_v3 = vrot.slane %v10516_v60, 7  ;;  %v10843_v12 = vsel %vm14239_vm6, %v3804_v13, %v3803_v52  ;;  %v3741_v63 = vrot.slane %v10622_v21, 5  ;;  %v3200_v60 = vpop.permute.xlu0 %3199  ;;  %v10857_v36 = vpop.permute.xlu1 %3201  ;;  %vm14246_vm12 = vmmov %vm14238_vm11 }
 0x53e   :  { %v3796_v29 = vsel %vm14238_vm11, %v10413_v48, %v3795_v5  ;;  %14240 = vst [vmem:[#allocation15_spill] sm:$0xff] %v10843_v12  ;;  %v3742_v10 = vrot.slane %v10465_v23, 4  ;;  %v3744_v1 = vrot.slane %v10652_v54, 3  ;;  %v3807_v58 = vsel %vm14241_vm2, %v3806_v59, %v10843_v12  ;;  %vm14247_vm10 = vmmov %vm14226_vm9 }
 0x53f   :  { %v3746_v5 = vrot.slane %v10660_v22, 2  ;;  %v3598_v49 = vrot.slane %v10622_v21, 3  ;;  %v3599_v16 = vrot.slane %v10465_v23, 2  ;;  %v4982_v24 = vunpack.c.l.b16 %v10753_v33  ;;  %vm14248_vm11 = vmmov %vm14243_vm5 }
 0x540   :  { %v3809_v13 = vsel %vm14242_vm14, %v3808_v8, %v3807_v58  ;;  %v3743_v52 = vsel %vm14243_vm5, %v3742_v10, %v3741_v63  ;;  %v3601_v31 = vrot.slane %v10652_v54, 1  ;;  %v14244_v28 = vrot.slane %v10316_v40, 7  ;;  %vm14250_vm2 = vmmov %vm14247_vm10 }
 0x541   :  { %vm14245_vm7 = vcmask 1047559   ;;  %v3810_v12 = vsel %vm14246_vm12, %v10383_v11, %v3809_v13  ;;  %v3745_v47 = vsel %vm14247_vm10, %v3744_v1, %v3743_v52  ;;  %v3600_v33 = vsel %vm14248_vm11, %v3599_v16, %v3598_v49  ;;  %vm14251_vm14 = vmmov %vm14239_vm6 }
 0x542   :  { %v3798_v59 = vsel %vm14245_vm7, %v14244_v28, %v3796_v29  ;;  %vm14249_vm9 = vmmov %vm14245_vm7  ;;  %v3747_v63 = vsel %vm14239_vm6, %v3746_v5, %v3745_v47  ;;  %v3602_v10 = vsel %vm14250_vm2, %v3601_v31, %v3600_v33  ;;  %v3669_v58 = vrot.slane %v10622_v21, 4 }
 0x543   :  { %v3812_v8 = vsel %vm14249_vm9, %v3811_v3, %v3810_v12  ;;  %v4987_v45 = vunpack.c.l.b16 %v10794_v6  ;;  %v10873_v29 = vpack.c.b16 %v3747_v63, %v3747_v63  ;;  %v3603_v1 = vsel %vm14251_vm14, %v10660_v22, %v3602_v10  ;;  %vm14255_vm7 = vmmov %vm14250_vm2 }
 0x544   :  { %v3821_v28 = vpack.c.b16 %v3812_v8, %v3798_v59  ;;  %v10877_v13 = vunpack.i.l.s16 %v4678_v19  ;;  %v10879_v49 = vunpack.i.l.s16 %v4982_v24  ;;  %v10881_v16 = vpack.c.b16 %v3603_v1, %v3603_v1  ;;  %vm14256_vm12 = vmmov %vm14243_vm5 }
 0x545   :  { %v3670_v47 = vrot.slane %v10465_v23, 3  ;;  %4912 = vrot.lane.b32.xlu2 %v10873_v29, %s6140_s9  ;;  %v3672_v31 = vrot.slane %v10652_v54, 2  ;;  %v3674_v6 = vrot.slane %v10660_v22, 1  ;;  %v3335_v12 = vrot.slane %v10039_v9, 7  ;;  %vm14257_vm10 = vmmov %vm14239_vm6  ;;  %v10904_v10 = vpop.permute.xlu0 %3205  ;;  %v14449_v9 = vld [vmem:[#allocation48_spill] sm:$0xff] }
 0x546   :  { %14252 = vst [vmem:[#allocation21_spill] sm:$0xff] %v10877_v13  ;;  %3825 = vrot.lane.b32.xlu0 %v3821_v28, %s6127_s21  ;;  %v3337_v19 = vrot.slane %v10071_v51, 6  ;;  %v4680_v24 = vunpack.c.l.b16 %v10804_v61  ;;  %3611 = vrot.lane.b32.xlu1 %v10881_v16, %s6124_s17  ;;  %v3339_v5 = vrot.slane %v10057_v46, 5  ;;  %v3341_v52 = vrot.slane %v10123_v43, 4  ;;  %vm14258_vm11 = vmmov %vm14250_vm2 }
 0x547   :  { %14253 = vst [vmem:[#allocation73_spill] sm:$0xff] %v10879_v49  ;;  %v3671_v3 = vsel %vm14243_vm5, %v3670_v47, %v3669_v58  ;;  %v10897_v59 = vunpack.i.l.s16 %v4987_v45  ;;  %v3336_v8 = vsel %vm14256_vm12, %v3335_v12, %v10035_v20  ;;  %v3343_v63 = vrot.slane %v10141_v44, 3  ;;  %v3208_v47 = vpop.permute.xlu1 %3207  ;;  %vm14259_vm9 = vmmov %vm14239_vm6 }
 0x548   :  { %v3673_v33 = vsel %vm14255_vm7, %v3672_v31, %v3671_v3  ;;  %v3338_v28 = vsel %vm14258_vm11, %v3337_v19, %v3336_v8  ;;  %v3345_v58 = vrot.slane %v10146_v50, 2  ;;  %v3349_v1 = vrot.slane %v10151_v38, 7  ;;  %vm14261_vm2 = vmmov %vm14243_vm5 }
 0x549   :  { %14254 = vst [vmem:[#allocation40_spill] sm:$0xff] %v10897_v59  ;;  %v3675_v61 = vsel %vm14257_vm10, %v3674_v6, %v3673_v33  ;;  %v4983_v45 = vunpack.c.l.b16 %v10802_v7  ;;  %v4681_v49 = vunpack.c.l.b16 %v3200_v60  ;;  %v10911_v31 = vsel %vm14259_vm9, %v3339_v5, %v3338_v28  ;;  %v3222_v5 = vpop.permute.xlu2 %3221  ;;  %vm14267_vm12 = vmmov %vm14259_vm9 }
 0x54a   :  { %v3351_v12 = vrot.slane %v10139_v2, 6  ;;  %v4685_v3 = vunpack.c.l.b16 %v10866_v17  ;;  %v10915_v6 = vunpack.i.l.s16 %v4680_v24  ;;  %vm14260_vm6 = vcmask 1044484   ;;  %v14264_v24 = vld [vmem:[#allocation69_spill] sm:$0xff] }
 0x54b   :  { %v3342_v19 = vsel %vm14260_vm6, %v3341_v52, %v10911_v31  ;;  %v3350_v33 = vsel %vm14261_vm2, %v3349_v1, %v10137_v18  ;;  %v3678_v8 = vpack.c.b16 %v3675_v61, %v3675_v61  ;;  %vm14262_vm14 = vcmask 1045509   ;;  %v14265_v61 = vld [vmem:[#allocation63_spill] sm:$0xff]  ;;  %vm14270_vm11 = vmmov %vm14260_vm6 }
 0x54c   :  { %v3344_v38 = vsel %vm14262_vm14, %v3343_v63, %v3342_v19  ;;  %v3347_v60 = vrot.slane %v10131_v25, 1  ;;  %v3355_v7 = vrot.slane %v10079_v34, 4  ;;  %vm14263_vm5 = vcmask 1046534   ;;  %v14266_v19 = vld [vmem:[#allocation7_spill] sm:$0xff]  ;;  %vm14271_vm9 = vmmov %vm14262_vm14 }
 0x54d   :  { %v3346_v28 = vsel %vm14263_vm5, %v3345_v58, %v3344_v38  ;;  %v3357_v17 = vrot.slane %v10075_v42, 3  ;;  %v3353_v2 = vrot.slane %v14264_v24, 5  ;;  %v4683_v50 = vunpack.c.l.b16 %v3208_v47  ;;  %vm14272_vm6 = vmmov %vm14263_vm5 }
 0x54e   :  { %v4990_v44 = vunpack.c.l.b16 %v3222_v5  ;;  %v10927_v52 = vunpack.i.l.s16 %v4681_v49  ;;  %4812 = vrot.lane.b32.xlu0 %v10813_v57, %s6137_s5  ;;  %v3352_v63 = vsel %vm14255_vm7, %v3351_v12, %v3350_v33  ;;  %v3359_v1 = vrot.slane %v14265_v61, 2  ;;  %3683 = vrot.lane.b32.xlu1 %v3678_v8, %s6125_s18  ;;  %vm14275_vm5 = vmmov %vm14261_vm2 }
 0x54f   :  { %v3361_v25 = vrot.slane %v14266_v19, 1  ;;  %v3354_v38 = vsel %vm14267_vm12, %v3353_v2, %v3352_v63  ;;  %v3391_v58 = vrot.slane %v10465_v23, 7  ;;  %v4065_v47 = vrot.slane %v10728_v35, 7  ;;  %v3212_v19 = vpop.permute.xlu0 %3211  ;;  %v3214_v42 = vpop.permute.xlu1 %3213 }
 0x550   :  { %v4985_v49 = vunpack.c.l.b16 %v10857_v36  ;;  %vm14268_vm10 = vcmask 1047559   ;;  %v3356_v57 = vsel %vm14270_vm11, %v3355_v7, %v3354_v38  ;;  %v3393_v12 = vrot.slane %v10652_v54, 6  ;;  %vm14278_vm11 = vmmov %vm14261_vm2 }
 0x551   :  { %v10940_v5 = vsel %vm14268_vm10, %v3347_v60, %v3346_v28  ;;  %v3358_v33 = vsel %vm14271_vm9, %v3357_v17, %v3356_v57  ;;  %v10945_v61 = vunpack.i.l.s16 %v4683_v50  ;;  %v3395_v2 = vrot.slane %v10660_v22, 5  ;;  %vm14273_vm14 = vmmov %vm14268_vm10 }
 0x552   :  { %14269 = vst [vmem:[#allocation10_spill] sm:$0xff] %v10940_v5  ;;  %v4067_v63 = vrot.slane %v10702_v0, 6  ;;  %v3360_v34 = vsel %vm14272_vm6, %v3359_v1, %v3358_v33  ;;  %v4066_v36 = vsel %vm14261_vm2, %v4065_v47, %v10722_v32  ;;  %v3885_v60 = vrot.slane %v10622_v21, 7  ;;  %vm14276_vm10 = vmmov %vm14255_vm7 }
 0x553   :  { %v3886_v7 = vrot.slane %v10465_v23, 6  ;;  %v10955_v28 = vsel %vm14273_vm14, %v3361_v25, %v3360_v34  ;;  %v4684_v50 = vunpack.c.l.b16 %v3212_v19  ;;  %v3392_v17 = vsel %vm14275_vm5, %v3391_v58, %v10622_v21  ;;  %vm14280_vm9 = vmmov %vm14267_vm12 }
 0x554   :  { %14274 = vst [vmem:[#allocation46_spill] sm:$0xff] %v10955_v28  ;;  %v4069_v38 = vrot.slane %v10811_v55, 5  ;;  %v4986_v57 = vunpack.c.l.b16 %v10904_v10  ;;  %v4988_v33 = vunpack.c.l.b16 %v3214_v42  ;;  %v3394_v47 = vsel %vm14255_vm7, %v3393_v12, %v3392_v17  ;;  %vm14281_vm6 = vmmov %vm14255_vm7 }
 0x555   :  { %v3396_v24 = vsel %vm14267_vm12, %v3395_v2, %v3394_v47  ;;  %v4068_v23 = vsel %vm14276_vm10, %v4067_v63, %v4066_v36  ;;  %v3888_v34 = vrot.slane %v10652_v54, 5  ;;  %v3890_v25 = vrot.slane %v10660_v22, 4  ;;  %vm14283_vm2 = vmmov %vm14280_vm9 }
 0x556   :  { %4879 = vrot.lane.b32.xlu0 %v3678_v8, %s14277_s0  ;;  %v3887_v21 = vsel %vm14278_vm11, %v3886_v7, %v3885_v60  ;;  %v4754_v10 = vrot.slane %v10915_v6, 1  ;;  %v4756_v19 = vrot.slane %v10822_v15, 7  ;;  %v4758_v42 = vrot.slane %v10945_v61, 6  ;;  %3755 = vrot.lane.b32.xlu1 %v10873_v29, %s6126_s20  ;;  %vm14284_vm14 = vmmov %vm14275_vm5 }
 0x557   :  { %v10973_v58 = vunpack.i.l.s16 %v4983_v45  ;;  %v10977_v12 = vunpack.i.l.s16 %v4684_v50  ;;  %v4070_v54 = vsel %vm14280_vm9, %v4069_v38, %v4068_v23  ;;  %v3889_v22 = vsel %vm14281_vm6, %v3888_v34, %v3887_v21  ;;  %v10994_v7 = vpop.permute.xlu0 %3217  ;;  %v3220_v50 = vpop.permute.xlu1 %3219  ;;  %vm14288_vm5 = vmmov %vm14281_vm6 }
 0x558   :  { %v10981_v8 = vunpack.i.l.s16 %v4685_v3  ;;  %v10983_v2 = vunpack.i.l.s16 %v4990_v44  ;;  %v3891_v63 = vsel %vm14283_vm2, %v3890_v25, %v3889_v22  ;;  %v4755_v36 = vsel %vm14284_vm14, %v10927_v52, %v4754_v10  ;;  %vm14290_vm7 = vmmov %vm14283_vm2 }
 0x559   :  { %14279 = vst [vmem:[#allocation18_spill] sm:$0xff] %v10973_v58  ;;  %v10988_v45 = vunpack.i.l.s16 %v4985_v49  ;;  %v10990_v60 = vunpack.i.l.s16 %v4986_v57  ;;  %v10992_v29 = vpack.c.b16 %v3396_v24, %v3396_v24  ;;  %v4757_v17 = vsel %vm14288_vm5, %v4756_v19, %v4755_v36  ;;  %vm14295_vm9 = vmmov %vm14288_vm5 }
 0x55a   :  { %14282 = vst [vmem:[#allocation17_spill] sm:$0xff] %v10983_v2  ;;  %v10997_v3 = vunpack.i.l.s16 %v4988_v33  ;;  %v10999_v44 = vpack.c.b16 %v4070_v54, %v4070_v54  ;;  %v4686_v38 = vunpack.c.l.b16 %v3220_v50  ;;  %v4759_v47 = vsel %vm14290_vm7, %v4758_v42, %v4757_v17  ;;  %vm14298_vm2 = vmmov %vm14278_vm11 }
 0x55b   :  { %14285 = vst [vmem:[#allocation5_spill] sm:$0xff] %v10988_v45  ;;  %v14291_v23 = vrot.slane %v10195_v62, 5  ;;  %vm14292_vm12 = vcmask 1044484   ;;  %v4764_v57 = vrot.slane %v10977_v12, 5  ;;  %v3377_v24 = vrot.slane %v10099_v39, 7 }
 0x55c   :  { %14286 = vst [vmem:[#allocation6_spill] sm:$0xff] %v10990_v60  ;;  %v11008_v25 = vunpack.i.l.s16 %v4686_v38  ;;  %v4766_v33 = vrot.slane %v10981_v8, 4  ;;  %v3379_v10 = vrot.slane %v10097_v4, 6  ;;  %v14293_v19 = vrot.slane %v10371_v56, 4  ;;  %vm14297_vm6 = vmmov %vm14292_vm12  ;;  %v14461_v60 = vld [vmem:[#allocation76_spill] sm:$0xff] }
 0x55d   :  { %14287 = vst [vmem:[#allocation59_spill] sm:$0xff] %v10992_v29  ;;  %v4760_v49 = vsel %vm14292_vm12, %v14291_v23, %v4759_v47  ;;  %vm14294_vm10 = vcmask 1045509   ;;  %v3378_v54 = vsel %vm14278_vm11, %v3377_v24, %v10095_v14  ;;  %v3381_v22 = vrot.slane %v10127_v27, 5  ;;  %v14296_v23 = vld [vmem:[#allocation14_spill] sm:$0xff]  ;;  %vm14301_vm12 = vmmov %vm14290_vm7 }
 0x55e   :  { %14289 = vst [vmem:[#allocation35_spill] sm:$0xff] %v10997_v3  ;;  %v4761_v42 = vsel %vm14294_vm10, %v14293_v19, %v4760_v49  ;;  %v4720_v36 = vrot.slane %v10927_v52, 7  ;;  %4078 = vrot.lane.b32.xlu0 %v10999_v44, %s6129_s23  ;;  %v11022_v50 = vpack.c.b16 %v3891_v63, %v3891_v63  ;;  %v3380_v38 = vsel %vm14295_vm9, %v3379_v10, %v3378_v54  ;;  %vm14303_vm10 = vmmov %vm14297_vm6  ;;  %v11367_v3 = vpop.permute.xlu2 %3465 }
 0x55f   :  { %v4722_v47 = vrot.slane %v10822_v15, 6  ;;  %4744 = vrot.lane.b32.xlu1 %v10992_v29, %s6120_s19  ;;  %v4765_v49 = vsel %vm14297_vm6, %v4764_v57, %v14296_v23  ;;  %v4724_v19 = vrot.slane %v10945_v61, 5  ;;  %v4730_v63 = vrot.slane %v10977_v12, 4  ;;  %v3224_v21 = vpop.permute.xlu0 %3223  ;;  %vm14304_vm11 = vmmov %vm14297_vm6  ;;  %14457 = vst [vmem:[#allocation58_spill] sm:$0xff] %v11367_v3  ;;  %v14465_v3 = vld [vmem:[#allocation88_spill] sm:$0xff] }
 0x560   :  { %v4721_v24 = vsel %vm14298_vm2, %v4720_v36, %v10915_v6  ;;  %v14299_v1 = vrot.slane %v10413_v48, 3  ;;  %vm14300_vm14 = vcmask 1046534   ;;  %v4768_v10 = vrot.slane %v11008_v25, 3 }
 0x561   :  { %v4723_v17 = vsel %vm14288_vm5, %v4722_v47, %v4721_v24  ;;  %v11042_v57 = vsel %vm14290_vm7, %v3381_v22, %v3380_v38  ;;  %v4732_v23 = vrot.slane %v10981_v8, 3  ;;  %v4136_v5 = vrot.slane %v10722_v32, 1  ;;  %vm14308_vm2 = vmmov %vm14300_vm14 }
 0x562   :  { %v4762_v34 = vsel %vm14300_vm14, %v14299_v1, %v4761_v42  ;;  %v4725_v36 = vsel %vm14301_vm12, %v4724_v19, %v4723_v17  ;;  %v4687_v58 = vunpack.c.l.b16 %v3224_v21  ;;  %v14302_v18 = vrot.slane %v10195_v62, 4  ;;  %vm14314_vm12 = vmmov %vm14308_vm2 }
 0x563   :  { %v4731_v42 = vsel %vm14304_vm11, %v4730_v63, %v11042_v57  ;;  %v4734_v47 = vrot.slane %v11008_v25, 2  ;;  %v14305_v22 = vrot.slane %v10316_v40, 2  ;;  %vm14306_vm9 = vcmask 1047559  }
 0x564   :  { %v4726_v1 = vsel %vm14303_vm10, %v14302_v18, %v4725_v36  ;;  %vm14307_vm6 = vcmask 1045509   ;;  %v11059_v21 = vunpack.i.l.s16 %v4687_v58  ;;  %v14309_v18 = vrot.slane %v10371_v56, 3  ;;  %vm14317_vm10 = vmmov %vm14308_vm2 }
 0x565   :  { %v4763_v17 = vsel %vm14306_vm9, %v14305_v22, %v4762_v34  ;;  %v4767_v38 = vsel %vm14307_vm6, %v4766_v33, %v4765_v49  ;;  %vm14310_vm14 = vmmov %vm14307_vm6  ;;  %v4138_v36 = vrot.slane %v10702_v0, 7  ;;  %vm14312_vm7 = vcmask 1041409  }
 0x566   :  { %v4769_v54 = vsel %vm14308_vm2, %v4768_v10, %v4767_v38  ;;  %v4727_v63 = vsel %vm14310_vm14, %v14309_v18, %v4726_v1  ;;  %vm14311_vm5 = vmmov %vm14307_vm6  ;;  %v4137_v43 = vsel %vm14312_vm7, %v10728_v35, %v4136_v5  ;;  %v4788_v34 = vrot.slane %v10915_v6, 2  ;;  %4945 = vrot.lane.b32.xlu0 %v10781_v53, %s14313_s10 }
 0x567   :  { %v4733_v24 = vsel %vm14311_vm5, %v4732_v23, %v4731_v42  ;;  %v4789_v33 = vrot.slane %v10927_v52, 1  ;;  %v4770_v58 = vrot.slane %v11059_v21, 2  ;;  %v4792_v10 = vrot.slane %v10945_v61, 7  ;;  %4846 = vrot.lane.b32.xlu1 %v10881_v16, %s14315_s11  ;;  %vm14318_vm11 = vmmov %vm14312_vm7 }
 0x568   :  { %v4735_v49 = vsel %vm14314_vm12, %v4734_v47, %v4733_v24  ;;  %v4798_v1 = vrot.slane %v10977_v12, 6  ;;  %v14316_v5 = vrot.slane %v10413_v48, 2  ;;  %v4800_v22 = vrot.slane %v10981_v8, 5 }
 0x569   :  { %v4790_v42 = vsel %vm14318_vm11, %v4789_v33, %v4788_v34  ;;  %v4802_v53 = vrot.slane %v11008_v25, 4  ;;  %v4771_v38 = vsel %vm14306_vm9, %v4770_v58, %v4769_v54  ;;  %vm14319_vm6 = vcmask 1042434  }
 0x56a   :  { %v4728_v23 = vsel %vm14317_vm10, %v14316_v5, %v4727_v63  ;;  %v4139_v47 = vsel %vm14319_vm6, %v4138_v36, %v4137_v43  ;;  %v4140_v24 = vrot.slane %v10811_v55, 6  ;;  %vm14320_vm2 = vmmov %vm14319_vm6  ;;  %v4773_v16 = vpack.c.b16 %v4771_v38, %v4763_v17  ;;  %v14322_v5 = vld [vmem:[#allocation28_spill] sm:$0xff] }
 0x56b   :  { %v4791_v18 = vsel %vm14320_vm2, %v10822_v15, %v4790_v42  ;;  %v4736_v19 = vrot.slane %v11059_v21, 1  ;;  %vm14321_vm14 = vcmask 1043459   ;;  %vm14323_vm5 = vcmask 1044484   ;;  %vm14328_vm10 = vmmov %vm14306_vm9 }
 0x56c   :  { %v4793_v63 = vsel %vm14321_vm14, %v4792_v10, %v4791_v18  ;;  %v4799_v34 = vsel %vm14323_vm5, %v4798_v1, %v14322_v5  ;;  %v14324_v33 = vrot.slane %v10195_v62, 6  ;;  %vm14325_vm7 = vmmov %vm14323_vm5  ;;  %vm14326_vm12 = vcmask 1045509   ;;  %4776 = vrot.lane.b32.xlu2 %v4773_v16, %s6121_s6 }
 0x56d   :  { %v4801_v54 = vsel %vm14326_vm12, %v4800_v22, %v4799_v34  ;;  %v4804_v43 = vrot.slane %v11059_v21, 3  ;;  %v4712_v36 = vrot.slane %v10711_v30, 4  ;;  %v14327_v17 = vrot.slane %v10316_v40, 1  ;;  %vm14330_vm11 = vmmov %vm14326_vm12 }
 0x56e   :  { %v4794_v46 = vsel %vm14325_vm7, %v14324_v33, %v4793_v63  ;;  %v14329_v10 = vrot.slane %v10371_v56, 5  ;;  %vm14331_vm9 = vcmask 1046534   ;;  %v4714_v38 = vrot.slane %v10818_v37, 3  ;;  %vm14334_vm2 = vmmov %vm14328_vm10  ;;  %4978 = vrot.lane.b32.xlu0 %v11022_v50, %s14339_s2 }
 0x56f   :  { %v4729_v58 = vsel %vm14328_vm10, %v14327_v17, %v4728_v23  ;;  %v4803_v42 = vsel %vm14331_vm9, %v4802_v53, %v4801_v54  ;;  %v14332_v22 = vrot.slane %v10413_v48, 4  ;;  %vm14333_vm6 = vmmov %vm14331_vm9  ;;  %v4716_v5 = vrot.slane %v10877_v13, 2  ;;  %3899 = vrot.lane.b32.xlu1 %v11022_v50, %s6128_s22 }
 0x570   :  { %v4795_v1 = vsel %vm14330_vm11, %v14329_v10, %v4794_v46  ;;  %v4805_v63 = vsel %vm14334_vm2, %v4804_v43, %v4803_v42  ;;  %vm14335_vm14 = vmmov %vm14323_vm5  ;;  %vm14337_vm7 = vcmask 1043459   ;;  %v4822_v53 = vrot.slane %v10915_v6, 3 }
 0x571   :  { %v4796_v18 = vsel %vm14333_vm6, %v14332_v22, %v4795_v1  ;;  %v4713_v16 = vsel %vm14335_vm14, %v4712_v36, %v10911_v31  ;;  %vm14336_vm5 = vmmov %vm14334_vm2  ;;  %v4141_v34 = vsel %vm14337_vm7, %v4140_v24, %v4139_v47  ;;  %v14340_v33 = vrot.slane %v10316_v40, 3  ;;  %v14345_v22 = vld [vmem:[#allocation49_spill] sm:$0xff] }
 0x572   :  { %v4737_v23 = vsel %vm14336_vm5, %v4736_v19, %v4735_v49  ;;  %vm14338_vm12 = vmmov %vm14330_vm11  ;;  %v4718_v43 = vrot.slane %v10726_v41, 1  ;;  %v4823_v31 = vrot.slane %v10927_v52, 2  ;;  %v4825_v36 = vrot.slane %v10822_v15, 1 }
 0x573   :  { %v4715_v46 = vsel %vm14338_vm12, %v4714_v38, %v4713_v16  ;;  %vm14341_vm10 = vmmov %vm14334_vm2  ;;  %v4832_v49 = vrot.slane %v10977_v12, 7  ;;  %v4834_v47 = vrot.slane %v10981_v8, 6  ;;  %v4836_v24 = vrot.slane %v11008_v25, 5 }
 0x574   :  { %v4797_v54 = vsel %vm14341_vm10, %v14340_v33, %v4796_v18  ;;  %vm14342_vm11 = vmmov %vm14333_vm6  ;;  %vm14343_vm9 = vcmask 1041409   ;;  %v4838_v1 = vrot.slane %v11059_v21, 4  ;;  %v4207_v42 = vrot.slane %v10722_v32, 2 }
 0x575   :  { %v4807_v19 = vpack.c.b16 %v4805_v63, %v4797_v54  ;;  %v4717_v17 = vsel %vm14342_vm11, %v4716_v5, %v4715_v46  ;;  %v4824_v10 = vsel %vm14343_vm9, %v4823_v31, %v4822_v53  ;;  %vm14344_vm6 = vcmask 1042434   ;;  %vm14346_vm2 = vmmov %vm14335_vm14 }
 0x576   :  { %v4826_v38 = vsel %vm14344_vm6, %v4825_v36, %v4824_v10  ;;  %v4833_v50 = vsel %vm14346_vm2, %v4832_v49, %v14345_v22  ;;  %v4208_v18 = vrot.slane %v10728_v35, 1  ;;  %v4211_v63 = vrot.slane %v10811_v55, 7  ;;  %vm14347_vm14 = vmmov %vm14337_vm7  ;;  %5048 = vrot.lane.b32.xlu0 %v10999_v44, %s14361_s8 }
 0x577   :  { %v4827_v16 = vsel %vm14347_vm14, %v10945_v61, %v4826_v38  ;;  %vm14348_vm5 = vmmov %vm14338_vm12  ;;  %v4855_v46 = vrot.slane %v10915_v6, 4  ;;  %v4856_v53 = vrot.slane %v10927_v52, 3  ;;  %v4739_v33 = vpack.c.b16 %v4737_v23, %v4729_v58  ;;  %4810 = vrot.lane.b32.xlu2 %v4807_v19, %s6137_s5 }
 0x578   :  { %v4835_v5 = vsel %vm14348_vm5, %v4834_v47, %v4833_v50  ;;  %v14349_v54 = vrot.slane %v10195_v62, 7  ;;  %vm14350_vm7 = vmmov %vm14346_vm2  ;;  %v14354_v47 = vrot.slane %v10371_v56, 6  ;;  %v14358_v23 = vrot.slane %v10413_v48, 5 }
 0x579   :  { %vm14351_vm12 = vmmov %vm14342_vm11  ;;  %vm14353_vm11 = vcmask 1047559   ;;  %4742 = vrot.lane.b32.xlu1 %v4739_v33, %s6120_s19  ;;  %v4871_v44 = vrot.slane %v11059_v21, 5  ;;  %v4350_v51 = vrot.slane %v10728_v35, 3  ;;  %v4899_v29 = vrot.slane %v10977_v12, 1 }
 0x57a   :  { %v4828_v31 = vsel %vm14350_vm7, %v14349_v54, %v4827_v16  ;;  %v4837_v36 = vsel %vm14351_vm12, %v4836_v24, %v4835_v5  ;;  %vm14352_vm10 = vmmov %vm14343_vm9  ;;  %v11154_v10 = vsel %vm14353_vm11, %v4718_v43, %v4717_v17  ;;  %v4860_v43 = vrot.slane %v10945_v61, 1 }
 0x57b   :  { %v4209_v49 = vsel %vm14352_vm10, %v4208_v18, %v4207_v42  ;;  %vm14355_vm9 = vmmov %vm14348_vm5  ;;  %vm14360_vm5 = vcmask 1042434   ;;  %v4858_v42 = vrot.slane %v10822_v15, 2  ;;  %v4144_v17 = vpack.c.b16 %v4141_v34, %v4141_v34 }
 0x57c   :  { %v4829_v38 = vsel %vm14355_vm9, %v14354_v47, %v4828_v31  ;;  %vm14356_vm6 = vmmov %vm14353_vm11  ;;  %v4210_v24 = vsel %vm14360_vm5, %v10702_v0, %v4209_v49  ;;  %vm14362_vm7 = vcmask 1043459   ;;  %v4867_v16 = vrot.slane %v10981_v8, 7 }
 0x57d   :  { %v4839_v22 = vsel %vm14356_vm6, %v4838_v1, %v4837_v36  ;;  %vm14357_vm2 = vmmov %vm14352_vm10  ;;  %v4212_v50 = vsel %vm14362_vm7, %v4211_v63, %v4210_v24  ;;  %v14363_v1 = vld [vmem:[#allocation41_spill] sm:$0xff]  ;;  %v14365_v5 = vrot.slane %v10316_v40, 4  ;;  %v4869_v54 = vrot.slane %v11008_v25, 6 }
 0x57e   :  { %v4857_v58 = vsel %vm14357_vm2, %v4856_v53, %v4855_v46  ;;  %vm14359_vm14 = vmmov %vm14351_vm12  ;;  %vm14364_vm12 = vcmask 1044484   ;;  %v4738_v34 = vpack.c.b16 %v10955_v28, %v11154_v10  ;;  %v4278_v47 = vrot.slane %v10722_v32, 3  ;;  %5082 = vrot.lane.b32.xlu0 %v4144_v17, %s6144_s13  ;;  %v11369_v59 = vpop.permute.xlu0 %3467 }
 0x57f   :  { %v4830_v19 = vsel %vm14359_vm14, %v14358_v23, %v4829_v38  ;;  %v4866_v18 = vsel %vm14364_vm12, %v10977_v12, %v14363_v1  ;;  %vm14366_vm10 = vmmov %vm14356_vm6  ;;  %vm14369_vm6 = vcmask 1045509   ;;  %v4279_v38 = vrot.slane %v10728_v35, 2  ;;  %v14377_v1 = vld [vmem:[#allocation100_spill] sm:$0xff] }
 0x580   :  { %v4831_v46 = vsel %vm14366_vm10, %v14365_v5, %v4830_v19  ;;  %vm14367_vm11 = vmmov %vm14360_vm5  ;;  %v4868_v36 = vsel %vm14369_vm6, %v4867_v16, %v4866_v18  ;;  %v14371_v23 = vrot.slane %v10371_v56, 7  ;;  %v14374_v19 = vld [vmem:[#allocation20_spill] sm:$0xff]  ;;  %v14378_v18 = vrot.slane %v10182_v26, 7 }
 0x581   :  { %v4859_v53 = vsel %vm14367_vm11, %v4858_v42, %v4857_v58  ;;  %v4841_v63 = vpack.c.b16 %v4839_v22, %v4831_v46  ;;  %vm14368_vm9 = vmmov %vm14362_vm7  ;;  %v4870_v49 = vsel %vm14359_vm14, %v4869_v54, %v4868_v36  ;;  %v11191_v58 = vpack.c.b16 %v4212_v50, %v4212_v50  ;;  %v14380_v16 = vld [vmem:[#allocation80_spill] sm:$0xff]  ;;  %v14381_v46 = vld [vmem:[#allocation30_spill] sm:$0xff]  ;;  %4149 = vrot.lane.b32.xlu1 %v4144_v17, %s6130_s24 }
 0x582   :  { %v4861_v31 = vsel %vm14368_vm9, %v4860_v43, %v4859_v53  ;;  %vm14370_vm2 = vmmov %vm14364_vm12  ;;  %v3365_v24 = vrot.slane %v14374_v19, 6  ;;  %v14375_v42 = vrot.slane %v10413_v48, 6  ;;  %v3367_v5 = vrot.slane %v14380_v16, 5  ;;  %v14385_v36 = vld [vmem:[#allocation37_spill] sm:$0xff] }
 0x583   :  { %v4862_v33 = vsel %vm14370_vm2, %v10195_v62, %v4861_v31  ;;  %vm14372_vm5 = vmmov %vm14369_vm6  ;;  %4844 = vrot.lane.b32.xlu2 %v4841_v63, %s14315_s11  ;;  %v3383_v53 = vrot.slane %v14381_v46, 4  ;;  %v14382_v54 = vrot.slane %v10316_v40, 5  ;;  %v4281_v31 = vrot.slane %v10702_v0, 1 }
 0x584   :  { %v4863_v10 = vsel %vm14372_vm5, %v14371_v23, %v4862_v33  ;;  %vm14373_vm7 = vmmov %vm14366_vm10  ;;  %vm14379_vm10 = vcmask 1041409   ;;  %vm14384_vm9 = vcmask 1042434   ;;  %v3385_v33 = vrot.slane %v14385_v36, 3 }
 0x585   :  { %v4872_v22 = vsel %vm14373_vm7, %v4871_v44, %v4870_v49  ;;  %vm14376_vm12 = vmmov %vm14359_vm14  ;;  %v3364_v50 = vsel %vm14379_vm10, %v14378_v18, %v14377_v1  ;;  %vm14387_vm2 = vcmask 1043459   ;;  %vm14388_vm14 = vcmask 1044484  }
 0x586   :  { %v4864_v43 = vsel %vm14376_vm12, %v14375_v42, %v4863_v10  ;;  %vm14383_vm11 = vmmov %vm14373_vm7  ;;  %v3366_v63 = vsel %vm14384_vm9, %v3365_v24, %v3364_v50  ;;  %v3384_v42 = vsel %vm14388_vm14, %v3383_v53, %v11042_v57  ;;  %v14389_v18 = vrot.slane %v10195_v62, 4  ;;  %v14392_v50 = vld [vmem:[#allocation68_spill] sm:$0xff]  ;;  %4740 = vrot.lane.b32.xlu0 %v4738_v34, %s6120_s19  ;;  %s14548_s19 = smov 95  }
 0x587   :  { %v4865_v44 = vsel %vm14383_vm11, %v14382_v54, %v4864_v43  ;;  %vm14386_vm6 = vmmov %vm14379_vm10  ;;  %v3368_v10 = vsel %vm14387_vm2, %v3367_v5, %v3366_v63  ;;  %vm14391_vm7 = vcmask 1045509   ;;  %v3387_v24 = vrot.slane %v10383_v11, 2 }
 0x588   :  { %v4874_v49 = vpack.c.b16 %v4872_v22, %v4865_v44  ;;  %v4280_v23 = vsel %vm14386_vm6, %v4279_v38, %v4278_v47  ;;  %vm14390_vm5 = vmmov %vm14388_vm14  ;;  %v3386_v54 = vsel %vm14391_vm7, %v3385_v33, %v3384_v42  ;;  %v3389_v28 = vrot.slane %v14392_v50, 1 }
 0x589   :  { %v3370_v43 = vsel %vm14390_vm5, %v14389_v18, %v3368_v10  ;;  %v14393_v47 = vrot.slane %v10371_v56, 3  ;;  %vm14394_vm12 = vmmov %vm14391_vm7  ;;  %v4780_v57 = vrot.slane %v10711_v30, 6  ;;  %v4782_v22 = vrot.slane %v10818_v37, 5  ;;  %4220 = vrot.lane.b32.xlu1 %v11191_v58, %s6131_s25 }
 0x58a   :  { %v4784_v5 = vrot.slane %v10877_v13, 4  ;;  %v14395_v53 = vrot.slane %v10413_v48, 2  ;;  %vm14396_vm10 = vcmask 1046534   ;;  %v4786_v33 = vrot.slane %v10726_v41, 3  ;;  %vm14402_vm2 = vmmov %vm14390_vm5 }
 0x58b   :  { %v3372_v38 = vsel %vm14394_vm12, %v14393_v47, %v3370_v43  ;;  %vm14397_vm11 = vmmov %vm14396_vm10  ;;  %v4349_v17 = vrot.slane %v10722_v32, 4  ;;  %v14398_v10 = vrot.slane %v10316_v40, 1  ;;  %vm14399_vm9 = vcmask 1047559   ;;  %v14401_v43 = vld [vmem:[#allocation55_spill] sm:$0xff]  ;;  %4877 = vrot.lane.b32.xlu2 %v4874_v49, %s14277_s0 }
 0x58c   :  { %v3374_v44 = vsel %vm14396_vm10, %v14395_v53, %v3372_v38  ;;  %v3388_v63 = vsel %vm14397_vm11, %v3387_v24, %v3386_v54  ;;  %vm14400_vm6 = vmmov %vm14399_vm9  ;;  %v4781_v47 = vsel %vm14402_vm2, %v4780_v57, %v14401_v43  ;;  %v4352_v38 = vrot.slane %v10702_v0, 2 }
 0x58d   :  { %v11241_v42 = vsel %vm14399_vm9, %v14398_v10, %v3374_v44  ;;  %v11244_v18 = vsel %vm14400_vm6, %v3389_v28, %v3388_v63  ;;  %vm14403_vm14 = vmmov %vm14391_vm7  ;;  %v4354_v53 = vrot.slane %v10811_v55, 1  ;;  %vm14405_vm7 = vcmask 1041409  }
 0x58e   :  { %v4783_v24 = vsel %vm14403_vm14, %v4782_v22, %v4781_v47  ;;  %vm14404_vm5 = vmmov %vm14396_vm10  ;;  %v4351_v28 = vsel %vm14405_vm7, %v4350_v51, %v4349_v17  ;;  %v3857_v63 = vrot.slane %v14377_v1, 7  ;;  %v3858_v57 = vrot.slane %v10182_v26, 6  ;;  %5116 = vrot.lane.b32.xlu0 %v11191_v58, %s6145_s14 }
 0x58f   :  { %v4785_v44 = vsel %vm14404_vm5, %v4784_v5, %v4783_v24  ;;  %vm14406_vm12 = vcmask 1042434   ;;  %v3860_v22 = vrot.slane %v14374_v19, 5  ;;  %v3862_v47 = vrot.slane %v14380_v16, 4  ;;  %vm14410_vm6 = vmmov %vm14405_vm7 }
 0x590   :  { %v4282_v10 = vsel %vm14406_vm12, %v4281_v31, %v4280_v23  ;;  %vm14407_vm10 = vmmov %vm14406_vm12  ;;  %vm14408_vm11 = vcmask 1043459   ;;  %v3859_v5 = vsel %vm14410_vm6, %v3858_v57, %v3857_v63  ;;  %v13366_v51 = vrot.slane %v10195_v62, 3  ;;  %v14420_v57 = vld [vmem:[#allocation98_spill] sm:$0xff] }
 0x591   :  { %v4353_v43 = vsel %vm14407_vm10, %v4352_v38, %v4351_v28  ;;  %v4283_v54 = vsel %vm14408_vm11, %v10811_v55, %v4282_v10  ;;  %vm14409_vm9 = vmmov %vm14408_vm11  ;;  %vm14411_vm2 = vcmask 1047559   ;;  %v13365_v16 = vrot.slane %v10371_v56, 2  ;;  %v14421_v10 = vld [vmem:[#allocation87_spill] sm:$0xff] }
 0x592   :  { %v4355_v49 = vsel %vm14409_vm9, %v4354_v53, %v4353_v43  ;;  %v11270_v26 = vsel %vm14411_vm2, %v4786_v33, %v4785_v44  ;;  %vm14413_vm14 = vmmov %vm14407_vm10  ;;  %v13364_v23 = vrot.slane %v10413_v48, 1  ;;  %v3871_v17 = vrot.slane %v10095_v14, 7 }
 0x593   :  { %v11272_v1 = vpack.c.b16 %v4355_v49, %v4355_v49  ;;  %v3861_v19 = vsel %vm14413_vm14, %v3860_v22, %v3859_v5  ;;  %vm14414_vm5 = vmmov %vm14409_vm9  ;;  %v3872_v34 = vrot.slane %v10099_v39, 6  ;;  %vm14415_vm7 = vcmask 1044484   ;;  %v14425_v5 = vld [vmem:[#allocation13_spill] sm:$0xff] }
 0x594   :  { %v3863_v31 = vsel %vm14414_vm5, %v3862_v47, %v3861_v19  ;;  %v3874_v24 = vrot.slane %v10097_v4, 5  ;;  %v3876_v38 = vrot.slane %v10127_v27, 4  ;;  %v3878_v53 = vrot.slane %v14381_v46, 3  ;;  %vm14417_vm10 = vmmov %vm14410_vm6  ;;  %v14424_v47 = vld [vmem:[#allocation66_spill] sm:$0xff] }
 0x595   :  { %14412 = vst [vmem:[#allocation54_spill] sm:$0xff] %v11272_v1  ;;  %v3865_v33 = vsel %vm14415_vm7, %v13366_v51, %v3863_v31  ;;  %vm14416_vm12 = vcmask 1045509   ;;  %v3873_v28 = vsel %vm14417_vm10, %v3872_v34, %v3871_v17  ;;  %v3880_v14 = vrot.slane %v14385_v36, 2  ;;  %vm14419_vm9 = vmmov %vm14413_vm14  ;;  %4363 = vrot.lane.b32.xlu2 %v11272_v1, %s6133_s27  ;;  %v14423_v36 = vld [vmem:[#allocation84_spill] sm:$0xff]  ;;  %v14427_v17 = vld [vmem:[#allocation99_spill] sm:$0xff] }
 0x596   :  { %v3867_v44 = vsel %vm14416_vm12, %v13365_v16, %v3865_v33  ;;  %v3882_v39 = vrot.slane %v10383_v11, 1  ;;  %vm14418_vm11 = vcmask 1046534   ;;  %v3875_v4 = vsel %vm14419_vm9, %v3874_v24, %v3873_v28  ;;  %vm14422_vm6 = vmmov %vm14414_vm5  ;;  %v14432_v28 = vld [vmem:[#allocation12_spill] sm:$0xff] }
 0x597   :  { %v3869_v63 = vsel %vm14418_vm11, %v13364_v23, %v3867_v44  ;;  %v4108_v27 = vrot.slane %v14420_v57, 1  ;;  %v4110_v46 = vrot.slane %v14421_v10, 7  ;;  %v11300_v43 = vpack.c.b16 %v4283_v54, %v4283_v54  ;;  %vm14426_vm14 = vmmov %vm14415_vm7  ;;  %v14436_v23 = vld [vmem:[#allocation65_spill] sm:$0xff]  ;;  %v14444_v51 = vld [vmem:[#allocation72_spill] sm:$0xff] }
 0x598   :  { %v11305_v22 = vsel %vm14422_vm6, %v3876_v38, %v3875_v4  ;;  %v4112_v11 = vrot.slane %v14423_v36, 6  ;;  %v13367_v49 = vrot.slane %v14424_v47, 5  ;;  %v4806_v19 = vpack.c.b16 %v14425_v5, %v11270_v26  ;;  %vm14428_vm5 = vmmov %vm14417_vm10  ;;  %v14431_v38 = vld [vmem:[#allocation97_spill] sm:$0xff]  ;;  %v14435_v5 = vld [vmem:[#allocation71_spill] sm:$0xff] }
 0x599   :  { %v3870_v31 = vsel %vm14411_vm2, %v10316_v40, %v3869_v63  ;;  %v3879_v54 = vsel %vm14426_vm14, %v3878_v53, %v11305_v22  ;;  %v4109_v34 = vsel %vm14428_vm5, %v14427_v17, %v4108_v27  ;;  %vm14429_vm7 = vmmov %vm14416_vm12  ;;  %v13370_v44 = vrot.slane %v14431_v38, 4  ;;  %4291 = vrot.lane.b32.xlu1 %v11300_v43, %s6132_s26 }
 0x59a   :  { %v3881_v33 = vsel %vm14429_vm7, %v3880_v14, %v3879_v54  ;;  %vm14430_vm12 = vmmov %vm14419_vm9  ;;  %v4122_v4 = vrot.slane %v14432_v28, 1  ;;  %v4124_v16 = vrot.slane %v14436_v23, 7  ;;  %v4128_v53 = vrot.slane %v14444_v51, 5  ;;  %4808 = vrot.lane.b32.xlu0 %v4806_v19, %s6137_s5  ;;  %s14598_s5 = smov 87  }
 0x59b   :  { %v4111_v24 = vsel %vm14430_vm12, %v4110_v46, %v4109_v34  ;;  %vm14433_vm10 = vmmov %vm14418_vm11  ;;  %v14439_v46 = vld [vmem:[#allocation90_spill] sm:$0xff]  ;;  %v14442_v34 = vld [vmem:[#allocation9_spill] sm:$0xff]  ;;  %v14450_v20 = vrot.slane %v14435_v5, 3  ;;  %v4752_v45 = vrot.slane %v10726_v41, 2 }
 0x59c   :  { %v3883_v26 = vsel %vm14433_vm10, %v3882_v39, %v3881_v33  ;;  %vm14434_vm11 = vmmov %vm14422_vm6  ;;  %v14441_v39 = vld [vmem:[#allocation52_spill] sm:$0xff]  ;;  %v4888_v33 = vrot.slane %v10915_v6, 5 }
 0x59d   :  { %v4113_v63 = vsel %vm14434_vm11, %v4112_v11, %v4111_v24  ;;  %vm14437_vm9 = vmmov %vm14411_vm2  ;;  %v4126_v54 = vrot.slane %v14441_v39, 6 }
 0x59e   :  { %v3884_v14 = vsel %vm14437_vm9, %v14392_v50, %v3883_v26  ;;  %vm14438_vm6 = vmmov %vm14426_vm14 }
 0x59f   :  { %v4115_v27 = vsel %vm14438_vm6, %v13367_v49, %v4113_v63  ;;  %vm14440_vm2 = vmmov %vm14428_vm5  ;;  %v3893_v11 = vpack.c.b16 %v3884_v14, %v3870_v31  ;;  %v14448_v63 = vld [vmem:[#allocation92_spill] sm:$0xff]  ;;  %v14453_v14 = vld [vmem:[#allocation61_spill] sm:$0xff] }
 0x5a0   :  { %v4123_v58 = vsel %vm14440_vm2, %v14439_v46, %v4122_v4  ;;  %vm14443_vm14 = vmmov %vm14430_vm12  ;;  %v4130_v49 = vrot.slane %v14448_v63, 4  ;;  %v4132_v4 = vrot.slane %v14449_v9, 3 }
 0x5a1   :  { %v4125_v24 = vsel %vm14443_vm14, %v4124_v16, %v4123_v58  ;;  %vm14445_vm5 = vmmov %vm14429_vm7  ;;  %v4134_v58 = vrot.slane %v14453_v14, 2  ;;  %3897 = vrot.lane.b32.xlu1 %v3893_v11, %s6128_s22 }
 0x5a2   :  { %v4117_v50 = vsel %vm14445_vm5, %v13370_v44, %v4115_v27  ;;  %vm14446_vm7 = vmmov %vm14434_vm11  ;;  %v4893_v44 = vrot.slane %v10945_v61, 2 }
 0x5a3   :  { %v11344_v26 = vsel %vm14446_vm7, %v4126_v54, %v4125_v24  ;;  %vm14451_vm12 = vmmov %vm14433_vm10  ;;  %v4889_v54 = vrot.slane %v10927_v52, 4  ;;  %v4891_v24 = vrot.slane %v10822_v15, 3 }
 0x5a4   :  { %14447 = vst [vmem:[#allocation57_spill] sm:$0xff] %v11344_v26  ;;  %v4119_v31 = vsel %vm14451_vm12, %v14450_v20, %v4117_v50  ;;  %vm14452_vm10 = vmmov %vm14438_vm6  ;;  %v4902_v20 = vrot.slane %v11008_v25, 7  ;;  %vm14456_vm6 = vcmask 1047559  }
 0x5a5   :  { %v4129_v16 = vsel %vm14452_vm10, %v4128_v53, %v11344_v26  ;;  %vm14454_vm11 = vmmov %vm14445_vm5  ;;  %v4904_v53 = vrot.slane %v11059_v21, 6  ;;  %v4890_v26 = vsel %vm14440_vm2, %v4889_v54, %v4888_v33  ;;  %vm14460_vm5 = vcmask 1042434  }
 0x5a6   :  { %v4131_v27 = vsel %vm14454_vm11, %v4130_v49, %v4129_v16  ;;  %vm14455_vm9 = vmmov %vm14451_vm12  ;;  %v4746_v49 = vrot.slane %v10711_v30, 5  ;;  %v4748_v16 = vrot.slane %v10818_v37, 4  ;;  %v4892_v1 = vsel %vm14460_vm5, %v4891_v24, %v4890_v26 }
 0x5a7   :  { %v4133_v2 = vsel %vm14455_vm9, %v4132_v4, %v4131_v27  ;;  %v14458_v4 = vrot.slane %v14442_v34, 2  ;;  %vm14459_vm14 = vmmov %vm14456_vm6  ;;  %v4750_v33 = vrot.slane %v10877_v13, 3  ;;  %vm14463_vm12 = vcmask 1043459  }
 0x5a8   :  { %v4135_v50 = vsel %vm14456_vm6, %v4134_v58, %v4133_v2  ;;  %vm14462_vm7 = vmmov %vm14452_vm10  ;;  %v4894_v58 = vsel %vm14463_vm12, %v4893_v44, %v4892_v1  ;;  %v14467_v26 = vrot.slane %v10195_v62, 1  ;;  %vm14469_vm6 = vcmask 1046534  }
 0x5a9   :  { %v4121_v27 = vsel %vm14459_vm14, %v14458_v4, %v4119_v31  ;;  %v4900_v2 = vsel %vm14462_vm7, %v4899_v29, %v14461_v60  ;;  %vm14464_vm10 = vmmov %vm14454_vm11  ;;  %vm14472_vm5 = vcmask 1047559  }
 0x5aa   :  { %v4901_v54 = vsel %vm14464_vm10, %v10981_v8, %v4900_v2  ;;  %vm14466_vm11 = vmmov %vm14462_vm7  ;;  %v4143_v31 = vpack.c.b16 %v4135_v50, %v4121_v27  ;;  %v4955_v27 = vrot.slane %v10927_v52, 6 }
 0x5ab   :  { %v4747_v19 = vsel %vm14466_vm11, %v4746_v49, %v14465_v3  ;;  %vm14468_vm9 = vmmov %vm14462_vm7  ;;  %v4903_v60 = vsel %vm14469_vm6, %v4902_v20, %v4901_v54  ;;  %v4954_v3 = vrot.slane %v10915_v6, 7  ;;  %v14474_v49 = vrot.slane %v10413_v48, 7 }
 0x5ac   :  { %v4895_v24 = vsel %vm14468_vm9, %v14467_v26, %v4894_v58  ;;  %vm14470_vm2 = vmmov %vm14464_vm10  ;;  %v4905_v44 = vsel %vm14472_vm5, %v4904_v53, %v4903_v60  ;;  %v4957_v20 = vrot.slane %v10822_v15, 5  ;;  %v14479_v58 = vld [vmem:[#allocation45_spill] sm:$0xff]  ;;  %v4965_v54 = vrot.slane %v10977_v12, 3  ;;  %4147 = vrot.lane.b32.xlu0 %v4143_v31, %s6130_s24 }
 0x5ad   :  { %v4749_v29 = vsel %vm14470_vm2, %v4748_v16, %v4747_v19  ;;  %vm14471_vm14 = vmmov %vm14470_vm2  ;;  %v14477_v16 = vrot.slane %v10316_v40, 6  ;;  %vm14480_vm9 = vcmask 1041409   ;;  %vm14482_vm2 = vcmask 1044484  }
 0x5ae   :  { %v4896_v1 = vsel %vm14471_vm14, %v10371_v56, %v4895_v24  ;;  %vm14473_vm7 = vmmov %vm14469_vm6  ;;  %v4956_v26 = vsel %vm14480_vm9, %v4955_v27, %v4954_v3  ;;  %v4967_v24 = vrot.slane %v10981_v8, 2  ;;  %vm14483_vm14 = vcmask 1043459  }
 0x5af   :  { %v4751_v11 = vsel %vm14473_vm7, %v4750_v33, %v4749_v29  ;;  %vm14475_vm12 = vmmov %vm14469_vm6  ;;  %v4959_v33 = vrot.slane %v10945_v61, 4  ;;  %vm14481_vm6 = vcmask 1042434   ;;  %v4966_v29 = vsel %vm14482_vm2, %v4965_v54, %v11305_v22 }
 0x5b0   :  { %v4897_v50 = vsel %vm14475_vm12, %v14474_v49, %v4896_v1  ;;  %vm14476_vm10 = vmmov %vm14472_vm5  ;;  %v4958_v60 = vsel %vm14481_vm6, %v4957_v20, %v4956_v26  ;;  %v4421_v1 = vrot.slane %v10722_v32, 5  ;;  %v4424_v49 = vrot.slane %v10702_v0, 3  ;;  %v3226_v26 = vpop.permute.xlu1 %3225 }
 0x5b1   :  { %v4753_v4 = vsel %vm14476_vm10, %v4752_v45, %v4751_v11  ;;  %vm14478_vm11 = vmmov %vm14472_vm5  ;;  %v4969_v45 = vrot.slane %v11008_v25, 1  ;;  %v4422_v11 = vrot.slane %v10728_v35, 4  ;;  %vm14484_vm5 = vcmask 1045509  }
 0x5b2   :  { %v4898_v2 = vsel %vm14478_vm11, %v14477_v16, %v4897_v50  ;;  %v4772_v53 = vpack.c.b16 %v14479_v58, %v4753_v4  ;;  %v4968_v3 = vsel %vm14484_vm5, %v4967_v24, %v4966_v29  ;;  %v4426_v50 = vrot.slane %v10811_v55, 2  ;;  %vm14486_vm7 = vmmov %vm14482_vm2  ;;  %v11429_v16 = vpop.permute.xlu2 %3536 }
 0x5b3   :  { %v4907_v19 = vpack.c.b16 %v4905_v44, %v4898_v2  ;;  %v4960_v44 = vsel %vm14483_vm14, %v4959_v33, %v4958_v60  ;;  %v14485_v22 = vrot.slane %v10195_v62, 3  ;;  %v4970_v27 = vsel %vm14475_vm12, %v4969_v45, %v4968_v3  ;;  %vm14487_vm10 = vmmov %vm14480_vm9  ;;  %14488 = vst [vmem:[#allocation56_spill] sm:$0xff] %v11429_v16  ;;  %v11431_v2 = vpop.permute.xlu0 %3538 }
 0x5b4   :  { %4774 = vrot.lane.b32.xlu1 %v4772_v53, %s6121_s6  ;;  %v4423_v31 = vsel %vm14487_vm10, %v4422_v11, %v4421_v1  ;;  %v4037_v20 = vrot.slane %v14427_v17, 7  ;;  %v14489_v58 = vrot.slane %v10371_v56, 2  ;;  %vm14490_vm11 = vmmov %vm14484_vm5  ;;  %vm14491_vm9 = vcmask 1047559   ;;  %s14568_s6 = smov 112  }
 0x5b5   :  { %4910 = vrot.lane.b32.xlu2 %v4907_v19, %s6140_s9  ;;  %v4961_v4 = vsel %vm14486_vm7, %v14485_v22, %v4960_v44  ;;  %v4971_v53 = vsel %vm14491_vm9, %v11059_v21, %v4970_v27  ;;  %v4425_v54 = vsel %vm14481_vm6, %v4424_v49, %v4423_v31  ;;  %v4039_v19 = vrot.slane %v14421_v10, 6  ;;  %vm14493_vm2 = vmmov %vm14475_vm12 }
 0x5b6   :  { %v4962_v33 = vsel %vm14490_vm11, %v14489_v58, %v4961_v4  ;;  %v14492_v24 = vrot.slane %v10413_v48, 1  ;;  %v4427_v60 = vsel %vm14483_vm14, %v4426_v50, %v4425_v54  ;;  %vm14494_vm5 = vmmov %vm14487_vm10  ;;  %v4041_v1 = vrot.slane %v14423_v36, 5 }
 0x5b7   :  { %v4038_v29 = vsel %vm14494_vm5, %v4037_v20, %v14420_v57  ;;  %vm14495_vm7 = vmmov %vm14491_vm9  ;;  %v11449_v44 = vpack.c.b16 %v4427_v60, %v4427_v60  ;;  %v13382_v49 = vrot.slane %v14424_v47, 4  ;;  %v13381_v27 = vrot.slane %v14431_v38, 3 }
 0x5b8   :  { %v4963_v45 = vsel %vm14493_vm2, %v14492_v24, %v4962_v33  ;;  %vm14496_vm12 = vmmov %vm14481_vm6  ;;  %v13379_v50 = vrot.slane %v14435_v5, 2  ;;  %vm14498_vm11 = vcmask 1044484   ;;  %v13380_v20 = vrot.slane %v14442_v34, 1 }
 0x5b9   :  { %v4964_v11 = vsel %vm14495_vm7, %v10316_v40, %v4963_v45  ;;  %v4040_v3 = vsel %vm14496_vm12, %v4039_v19, %v4038_v29  ;;  %vm14497_vm10 = vmmov %vm14483_vm14  ;;  %v4051_v58 = vrot.slane %v14439_v46, 7  ;;  %v4053_v33 = vrot.slane %v14436_v23, 6 }
 0x5ba   :  { %v4973_v22 = vpack.c.b16 %v4971_v53, %v4964_v11  ;;  %v4042_v4 = vsel %vm14497_vm10, %v4041_v1, %v4040_v3  ;;  %v14499_v54 = vunpack.c.l.b16 %v10994_v7  ;;  %vm14501_vm9 = vcmask 1045509   ;;  %vm14502_vm6 = vmmov %vm14493_vm2 }
 0x5bb   :  { %v4044_v31 = vsel %vm14498_vm11, %v13382_v49, %v4042_v4  ;;  %v4055_v24 = vrot.slane %v14441_v39, 5  ;;  %v4057_v45 = vrot.slane %v14444_v51, 4  ;;  %v4991_v60 = vunpack.c.l.b16 %v3226_v26  ;;  %vm14503_vm2 = vmmov %vm14494_vm5 }
 0x5bc   :  { %v11464_v19 = vunpack.i.l.s16 %v14499_v54  ;;  %v4046_v53 = vsel %vm14501_vm9, %v13381_v27, %v4044_v31  ;;  %4976 = vrot.lane.b32.xlu0 %v4973_v22, %s14339_s2  ;;  %v4052_v29 = vsel %vm14503_vm2, %v4051_v58, %v14432_v28  ;;  %v4059_v1 = vrot.slane %v14448_v63, 3  ;;  %vm14504_vm14 = vmmov %vm14495_vm7 }
 0x5bd   :  { %4435 = vrot.lane.b32.xlu2 %v11449_v44, %s6134_s28  ;;  %v4048_v7 = vsel %vm14502_vm6, %v13379_v50, %v4046_v53  ;;  %vm14505_vm5 = vmmov %vm14496_vm12  ;;  %v4061_v3 = vrot.slane %v14449_v9, 2  ;;  %v4063_v22 = vrot.slane %v14453_v14, 1  ;;  %v4565_v31 = vrot.slane %v10722_v32, 7  ;;  %v11494_v50 = vpop.permute.xlu1 %3469 }
 0x5be   :  { %14500 = vst [vmem:[#allocation70_spill] sm:$0xff] %v11464_v19  ;;  %v4050_v11 = vsel %vm14504_vm14, %v13380_v20, %v4048_v7  ;;  %v4054_v26 = vsel %vm14505_vm5, %v4053_v33, %v4052_v29  ;;  %vm14506_vm7 = vmmov %vm14497_vm10  ;;  %v4566_v54 = vrot.slane %v10728_v35, 6  ;;  %v4568_v58 = vrot.slane %v10702_v0, 5  ;;  %v11499_v20 = vpop.permute.xlu2 %3607 }
 0x5bf   :  { %v11487_v4 = vsel %vm14506_vm7, %v4055_v24, %v4054_v26  ;;  %vm14508_vm12 = vmmov %vm14498_vm11  ;;  %14509 = vst [vmem:[#allocation14_spill] sm:$0xff] %v11494_v50  ;;  %v4570_v33 = vrot.slane %v10811_v55, 4  ;;  %v4921_v7 = vrot.slane %v10915_v6, 6  ;;  %v4922_v29 = vrot.slane %v10927_v52, 5  ;;  %v11501_v24 = vpop.permute.xlu0 %3609 }
 0x5c0   :  { %14507 = vst [vmem:[#allocation75_spill] sm:$0xff] %v11487_v4  ;;  %v4058_v53 = vsel %vm14508_vm12, %v4057_v45, %v11487_v4  ;;  %vm14511_vm10 = vmmov %vm14501_vm9  ;;  %v4924_v49 = vrot.slane %v10822_v15, 4  ;;  %v4926_v45 = vrot.slane %v10945_v61, 3  ;;  %v4932_v52 = vrot.slane %v10977_v12, 2 }
 0x5c1   :  { %14510 = vst [vmem:[#allocation28_spill] sm:$0xff] %v11499_v20  ;;  %v4060_v26 = vsel %vm14511_vm10, %v4059_v1, %v4058_v53  ;;  %vm14512_vm11 = vmmov %vm14503_vm2  ;;  %v4923_v6 = vsel %vm14503_vm2, %v4922_v29, %v4921_v7  ;;  %vm14520_vm10 = vcmask 1044484   ;;  %v14522_v12 = vrot.slane %v10195_v62, 2 }
 0x5c2   :  { %v4567_v27 = vsel %vm14512_vm11, %v4566_v54, %v4565_v31  ;;  %vm14513_vm9 = vmmov %vm14502_vm6  ;;  %v4934_v31 = vrot.slane %v10981_v8, 1  ;;  %v4937_v8 = vrot.slane %v11059_v21, 7  ;;  %v4814_v21 = vrot.slane %v10711_v30, 7 }
 0x5c3   :  { %v4062_v16 = vsel %vm14513_vm9, %v4061_v3, %v4060_v26  ;;  %vm14514_vm6 = vmmov %vm14505_vm5  ;;  %v14519_v3 = vld [vmem:[#allocation15_spill] sm:$0xff]  ;;  %vm14524_vm9 = vcmask 1045509   ;;  %v4494_v29 = vrot.slane %v10728_v35, 5  ;;  %v4496_v26 = vrot.slane %v10702_v0, 4 }
 0x5c4   :  { %v4569_v50 = vsel %vm14514_vm6, %v4568_v58, %v4567_v27  ;;  %v4064_v20 = vsel %vm14504_vm14, %v4063_v22, %v4062_v16  ;;  %vm14515_vm5 = vmmov %vm14506_vm7  ;;  %v4933_v27 = vsel %vm14520_vm10, %v4932_v52, %v14519_v3  ;;  %v11520_v58 = vunpack.i.l.s16 %v4991_v60  ;;  %v14541_v3 = vld [vmem:[#allocation77_spill] sm:$0xff] }
 0x5c5   :  { %v4571_v4 = vsel %vm14515_vm5, %v4570_v33, %v4569_v50  ;;  %vm14516_vm7 = vmmov %vm14514_vm6  ;;  %v4072_v54 = vpack.c.b16 %v4064_v20, %v4050_v11  ;;  %5150 = vrot.lane.b32.xlu2 %v11300_v43, %s6146_s7  ;;  %v14525_v50 = vpack.c.b16 %v11244_v18, %v11241_v42  ;;  %vm14526_vm6 = vcmask 64512  }
 0x5c6   :  { %v4925_v1 = vsel %vm14516_vm7, %v4924_v49, %v4923_v6  ;;  %v11515_v15 = vpack.c.b16 %v4571_v4, %v4571_v4  ;;  %vm14518_vm12 = vmmov %vm14515_vm5  ;;  %14521 = vst [vmem:[#allocation41_spill] sm:$0xff] %v11520_v58  ;;  %v4935_v49 = vsel %vm14524_vm9, %v4934_v31, %v4933_v27  ;;  %v14527_v43 = vrot.slane %v10371_v56, 1  ;;  %v14534_v4 = vld [vmem:[#allocation60_spill] sm:$0xff]  ;;  %v11564_v31 = vpop.permute.xlu2 %3679 }
 0x5c7   :  { %v4927_v61 = vsel %vm14518_vm12, %v4926_v45, %v4925_v1  ;;  %vm14523_vm11 = vmmov %vm14520_vm10  ;;  %v4586_v20 = vsel %vm14526_vm6, %v14525_v50, %v11369_v59  ;;  %4076 = vrot.lane.b32.xlu1 %v4072_v54, %s6129_s23  ;;  %vm14529_vm14 = vcmask 1046534   ;;  %vm14531_vm7 = vcmask 1047559   ;;  %v11558_v45 = vpop.permute.xlu1 %3540  ;;  %14538 = vst [vmem:[#allocation100_spill] sm:$0xff] %v11564_v31 }
 0x5c8   :  { %14517 = vst [vmem:[#allocation49_spill] sm:$0xff] %v11515_v15  ;;  %v4928_v16 = vsel %vm14523_vm11, %v14522_v12, %v4927_v61  ;;  %4579 = vrot.lane.b32.xlu0 %v11515_v15, %s6136_s30  ;;  %vm14528_vm2 = vmmov %vm14524_vm9  ;;  %v4936_v60 = vsel %vm14529_vm14, %v11008_v25, %v4935_v49  ;;  %v4816_v59 = vrot.slane %v10818_v37, 6  ;;  %v4818_v18 = vrot.slane %v10877_v13, 5 }
 0x5c9   :  { %v4929_v62 = vsel %vm14528_vm2, %v14527_v43, %v4928_v16  ;;  %vm14530_vm5 = vmmov %vm14529_vm14  ;;  %v4938_v42 = vsel %vm14531_vm7, %v4937_v8, %v4936_v60  ;;  %v14532_v22 = vrot.slane %v10316_v40, 7  ;;  %v4815_v53 = vsel %vm14520_vm10, %v4814_v21, %v14534_v4  ;;  %14536 = vst [vmem:[#allocation20_spill] sm:$0xff] %v11558_v45  ;;  %v14616_v45 = vld [vmem:[#allocation59_spill] sm:$0xff] }
 0x5ca   :  { %v4930_v11 = vsel %vm14530_vm5, %v10413_v48, %v4929_v62  ;;  %vm14533_vm12 = vmmov %vm14531_vm7  ;;  %v4820_v25 = vrot.slane %v10726_v41, 4  ;;  %v4493_v33 = vrot.slane %v10722_v32, 6  ;;  %v4498_v6 = vrot.slane %v10811_v55, 3  ;;  %v3682_v32 = vpop.permute.xlu0 %3681  ;;  %v14543_v55 = vld [vmem:[#allocation85_spill] sm:$0xff] }
 0x5cb   :  { %v4931_v56 = vsel %vm14533_vm12, %v14532_v22, %v4930_v11  ;;  %vm14535_vm11 = vmmov %vm14528_vm2  ;;  %v4881_v52 = vrot.slane %v10711_v30, 1  ;;  %v4884_v1 = vrot.slane %v10877_v13, 7  ;;  %vm14540_vm2 = vcmask 1041409  }
 0x5cc   :  { %v4940_v7 = vpack.c.b16 %v4938_v42, %v4931_v56  ;;  %v4817_v48 = vsel %vm14535_vm11, %v4816_v59, %v4815_v53  ;;  %vm14537_vm9 = vmmov %vm14530_vm5  ;;  %v4495_v61 = vsel %vm14540_vm2, %v4494_v29, %v4493_v33  ;;  %v4886_v35 = vrot.slane %v10726_v41, 6 }
 0x5cd   :  { %v4819_v40 = vsel %vm14537_vm9, %v4818_v18, %v4817_v48  ;;  %vm14539_vm6 = vmmov %vm14531_vm7  ;;  %v4179_v0 = vrot.slane %v14420_v57, 2  ;;  %vm14542_vm14 = vcmask 1042434   ;;  %v4180_v49 = vrot.slane %v14427_v17, 1 }
 0x5ce   :  { %v4821_v54 = vsel %vm14539_vm6, %v4820_v25, %v4819_v40  ;;  %v4497_v12 = vsel %vm14542_vm14, %v4496_v26, %v4495_v61  ;;  %vm14544_vm5 = vmmov %vm14520_vm10  ;;  %vm14545_vm7 = vcmask 1043459   ;;  %v4183_v43 = vrot.slane %v14423_v36, 7 }
 0x5cf   :  { %v4840_v27 = vpack.c.b16 %v14541_v3, %v4821_v54  ;;  %v4882_v16 = vsel %vm14544_vm5, %v4881_v52, %v14543_v55  ;;  %v4499_v8 = vsel %vm14545_vm7, %v4498_v6, %v4497_v12  ;;  %vm14546_vm12 = vmmov %vm14535_vm11  ;;  %v13386_v62 = vrot.slane %v14424_v47, 6  ;;  %4943 = vrot.lane.b32.xlu1 %v4940_v7, %s14313_s10  ;;  %v14555_v7 = vld [vmem:[#allocation8_spill] sm:$0xff]  ;;  %v11620_v61 = vpop.permute.xlu1 %3611  ;;  %v14560_v3 = vld [vmem:[#allocation33_spill] sm:$0xff] }
 0x5d0   :  { %v4883_v50 = vsel %vm14546_vm12, %v10818_v37, %v4882_v16  ;;  %vm14547_vm10 = vcmask 130048   ;;  %5216 = vrot.lane.b32.xlu0 %v11449_v44, %s14548_s19  ;;  %vm14549_vm11 = vmmov %vm14537_vm9  ;;  %v13385_v42 = vrot.slane %v14431_v38, 5  ;;  %vm14551_vm6 = vcmask 195584   ;;  %14558 = vst [vmem:[#allocation80_spill] sm:$0xff] %v11620_v61  ;;  %v14561_v12 = vld [vmem:[#allocation29_spill] sm:$0xff]  ;;  %v11627_v16 = vpop.permute.xlu2 %3751  ;;  %v14591_v61 = vld [vmem:[#allocation36_spill] sm:$0xff] }
 0x5d1   :  { %v4593_v60 = vsel %vm14547_vm10, %v4586_v20, %v11431_v2  ;;  %v4885_v21 = vsel %vm14549_vm11, %v4884_v1, %v4883_v50  ;;  %vm14550_vm9 = vmmov %vm14540_vm2  ;;  %4842 = vrot.lane.b32.xlu2 %v4840_v27, %s14315_s11  ;;  %vm14552_vm2 = vcmask 1047559   ;;  %v13384_v20 = vrot.slane %v14435_v5, 4  ;;  %14562 = vst [vmem:[#allocation30_spill] sm:$0xff] %v11627_v16  ;;  %v14564_v50 = vld [vmem:[#allocation26_spill] sm:$0xff]  ;;  %s15112_s11 = smov 9  }
 0x5d2   :  { %v4181_v11 = vsel %vm14550_vm9, %v4180_v49, %v4179_v0  ;;  %v4599_v59 = vsel %vm14551_vm6, %v4593_v60, %v11501_v24  ;;  %v4887_v18 = vsel %vm14552_vm2, %v4886_v35, %v4885_v21  ;;  %vm14553_vm5 = vcmask 261120   ;;  %vm14559_vm6 = vmmov %vm14542_vm14  ;;  %v11629_v49 = vpop.permute.xlu0 %3753  ;;  %v14566_v60 = vld [vmem:[#allocation67_spill] sm:$0xff] }
 0x5d3   :  { %v4182_v2 = vsel %vm14542_vm14, %v14421_v10, %v4181_v11  ;;  %v11596_v44 = vsel %vm14553_vm5, %v4599_v59, %v3682_v32  ;;  %v11598_v22 = vpack.c.b16 %v4499_v8, %v4499_v8  ;;  %v4193_v4 = vrot.slane %v14432_v28, 2  ;;  %v14557_v32 = vld [vmem:[#allocation22_spill] sm:$0xff]  ;;  %vm14563_vm2 = vmmov %vm14545_vm7  ;;  %v14567_v11 = vld [vmem:[#allocation51_spill] sm:$0xff] }
 0x5d4   :  { %v4184_v56 = vsel %vm14545_vm7, %v4183_v43, %v4182_v2  ;;  %vm14554_vm12 = vcmask 1044484   ;;  %v13389_v53 = vrot.slane %v14442_v34, 3  ;;  %v4194_v25 = vrot.slane %v14439_v46, 1  ;;  %vm14565_vm14 = vmmov %vm14550_vm9 }
 0x5d5   :  { %v4186_v24 = vsel %vm14554_vm12, %v13386_v62, %v4184_v56  ;;  %v4197_v33 = vrot.slane %v14441_v39, 7  ;;  %v4906_v48 = vpack.c.b16 %v14555_v7, %v4887_v18  ;;  %vm14556_vm10 = vcmask 1045509   ;;  %vm14569_vm5 = vmmov %vm14554_vm12  ;;  %v14571_v56 = vld [vmem:[#allocation44_spill] sm:$0xff] }
 0x5d6   :  { %v4188_v29 = vsel %vm14556_vm10, %v13385_v42, %v4186_v24  ;;  %v4199_v26 = vrot.slane %v14444_v51, 6  ;;  %v4201_v40 = vrot.slane %v14448_v63, 5  ;;  %v4195_v52 = vsel %vm14550_vm9, %v4194_v25, %v4193_v4  ;;  %vm14570_vm7 = vmmov %vm14559_vm6  ;;  %v14572_v24 = vld [vmem:[#allocation96_spill] sm:$0xff] }
 0x5d7   :  { %v4190_v6 = vsel %vm14549_vm11, %v13384_v20, %v4188_v29  ;;  %v4203_v1 = vrot.slane %v14449_v9, 4  ;;  %v4009_v54 = vrot.slane %v14557_v32, 7  ;;  %v4196_v35 = vsel %vm14559_vm6, %v14436_v23, %v4195_v52  ;;  %4507 = vrot.lane.b32.xlu1 %v11598_v22, %s14568_s6  ;;  %vm14573_vm12 = vmmov %vm14556_vm10  ;;  %v14576_v29 = vld [vmem:[#allocation31_spill] sm:$0xff]  ;;  %v14579_v20 = vld [vmem:[#allocation24_spill] sm:$0xff] }
 0x5d8   :  { %v4205_v0 = vrot.slane %v14453_v14, 3  ;;  %v4011_v27 = vrot.slane %v14560_v3, 6  ;;  %v4013_v55 = vrot.slane %v14561_v12, 5  ;;  %v11632_v8 = vsel %vm14563_vm2, %v4197_v33, %v4196_v35  ;;  %4908 = vrot.lane.b32.xlu0 %v4906_v48, %s6140_s9  ;;  %vm14574_vm10 = vmmov %vm14563_vm2  ;;  %s14729_s9 = smov 103  }
 0x5d9   :  { %v4010_v43 = vsel %vm14565_vm14, %v4009_v54, %v14564_v50  ;;  %v4015_v21 = vrot.slane %v14566_v60, 4  ;;  %v4017_v59 = vrot.slane %v14567_v11, 3  ;;  %v4200_v18 = vsel %vm14569_vm5, %v4199_v26, %v11632_v8  ;;  %v14577_v54 = vld [vmem:[#allocation93_spill] sm:$0xff]  ;;  %vm14578_vm9 = vmmov %vm14569_vm5 }
 0x5da   :  { %v4012_v2 = vsel %vm14570_vm7, %v4011_v27, %v4010_v43  ;;  %v4019_v4 = vrot.slane %v14571_v56, 2  ;;  %v4021_v25 = vrot.slane %v14572_v24, 1  ;;  %v4202_v33 = vsel %vm14573_vm12, %v4201_v40, %v4200_v18  ;;  %v14580_v43 = vld [vmem:[#allocation86_spill] sm:$0xff]  ;;  %vm14583_vm14 = vmmov %vm14573_vm12 }
 0x5db   :  { %v11648_v7 = vsel %vm14574_vm10, %v4013_v55, %v4012_v2  ;;  %v4023_v52 = vrot.slane %v14576_v29, 7  ;;  %v4025_v35 = vrot.slane %v14577_v54, 6  ;;  %v4204_v48 = vsel %vm14549_vm11, %v4203_v1, %v4202_v33  ;;  %v14584_v2 = vld [vmem:[#allocation42_spill] sm:$0xff]  ;;  %vm14586_vm7 = vmmov %vm14549_vm11 }
 0x5dc   :  { %14575 = vst [vmem:[#allocation37_spill] sm:$0xff] %v11648_v7  ;;  %v4016_v26 = vsel %vm14578_vm9, %v4015_v21, %v11648_v7  ;;  %v4027_v27 = vrot.slane %v14579_v20, 5  ;;  %v4029_v42 = vrot.slane %v14580_v43, 4  ;;  %vm14581_vm6 = vcmask 1047559   ;;  %v14588_v33 = vld [vmem:[#allocation38_spill] sm:$0xff] }
 0x5dd   :  { %v4192_v40 = vsel %vm14581_vm6, %v13389_v53, %v4190_v6  ;;  %vm14582_vm2 = vmmov %vm14581_vm6  ;;  %v4018_v18 = vsel %vm14583_vm14, %v4017_v59, %v4016_v26  ;;  %vm14585_vm5 = vcmask 1041409   ;;  %vm14587_vm12 = vcmask 1042434   ;;  %v14592_v53 = vld [vmem:[#allocation64_spill] sm:$0xff]  ;;  %v14596_v26 = vld [vmem:[#allocation5_spill] sm:$0xff] }
 0x5de   :  { %v4206_v55 = vsel %vm14582_vm2, %v4205_v0, %v4204_v48  ;;  %v4024_v62 = vsel %vm14585_vm5, %v4023_v52, %v14584_v2  ;;  %v4020_v1 = vsel %vm14586_vm7, %v4019_v4, %v4018_v18  ;;  %v4031_v31 = vrot.slane %v14588_v33, 3  ;;  %vm14589_vm10 = vmmov %vm14582_vm2  ;;  %v14593_v52 = vld [vmem:[#allocation89_spill] sm:$0xff] }
 0x5df   :  { %v4214_v16 = vpack.c.b16 %v4206_v55, %v4192_v40  ;;  %v4026_v21 = vsel %vm14587_vm12, %v4025_v35, %v4024_v62  ;;  %v4022_v7 = vsel %vm14589_vm10, %v4021_v25, %v4020_v1  ;;  %vm14590_vm11 = vcmask 1043459   ;;  %vm14594_vm6 = vmmov %vm14578_vm9  ;;  %v14597_v40 = vld [vmem:[#allocation6_spill] sm:$0xff]  ;;  %v14603_v1 = vld [vmem:[#allocation40_spill] sm:$0xff] }
 0x5e0   :  { %v4028_v15 = vsel %vm14590_vm11, %v4027_v27, %v4026_v21  ;;  %v4033_v6 = vrot.slane %v14591_v61, 2  ;;  %v4035_v0 = vrot.slane %v14592_v53, 1  ;;  %v4848_v4 = vsel %vm14594_vm6, %v10711_v30, %v14593_v52  ;;  %vm14595_vm2 = vmmov %vm14583_vm14  ;;  %v14604_v52 = vld [vmem:[#allocation35_spill] sm:$0xff] }
 0x5e1   :  { %4218 = vrot.lane.b32.xlu2 %v4214_v16, %s6131_s25  ;;  %v4030_v59 = vsel %vm14578_vm9, %v4029_v42, %v4028_v15  ;;  %v4849_v62 = vrot.slane %v10818_v37, 7  ;;  %v4851_v35 = vrot.slane %v10877_v13, 6  ;;  %v4853_v48 = vrot.slane %v10726_v41, 5  ;;  %v14599_v16 = vld [vmem:[#allocation54_spill] sm:$0xff]  ;;  %v11684_v15 = vpop.permute.xlu1 %3683  ;;  %vm14601_vm14 = vmmov %vm14586_vm7  ;;  %v14614_v30 = vld [vmem:[#allocation75_spill] sm:$0xff] }
 0x5e2   :  { %v4032_v25 = vsel %vm14595_vm2, %v4031_v31, %v4030_v59  ;;  %v5024_v27 = vrot.slane %v14596_v26, 7  ;;  %v5026_v55 = vrot.slane %v14597_v40, 6  ;;  %5183 = vrot.lane.b32.xlu1 %v14599_v16, %s14598_s5  ;;  %14600 = vst [vmem:[#allocation68_spill] sm:$0xff] %v11684_v15  ;;  %vm14602_vm5 = vmmov %vm14595_vm2  ;;  %v5028_v21 = vrot.slane %v14603_v1, 5  ;;  %v11690_v31 = vpop.permute.xlu2 %3823  ;;  %v11692_v59 = vpop.permute.xlu0 %3825  ;;  %v14610_v16 = vld [vmem:[#allocation91_spill] sm:$0xff] }
 0x5e3   :  { %v4034_v42 = vsel %vm14601_vm14, %v4033_v6, %v4032_v25  ;;  %v4850_v18 = vsel %vm14602_vm5, %v4849_v62, %v4848_v4  ;;  %v5034_v13 = vrot.slane %v14604_v52, 4  ;;  %14605 = vst [vmem:[#allocation55_spill] sm:$0xff] %v11690_v31  ;;  %vm14607_vm7 = vmmov %vm14589_vm10  ;;  %vm14611_vm10 = vcmask 1041409  }
 0x5e4   :  { %14606 = vst [vmem:[#allocation98_spill] sm:$0xff] %v11692_v59  ;;  %v11695_v41 = vsel %vm14607_vm7, %v4035_v0, %v4034_v42  ;;  %vm14609_vm12 = vmmov %vm14601_vm14  ;;  %v5025_v15 = vsel %vm14611_vm10, %v5024_v27, %v14610_v16  ;;  %v5036_v6 = vrot.slane %v11464_v19, 3  ;;  %vm14613_vm9 = vcmask 1042434   ;;  %v14615_v59 = vld [vmem:[#allocation14_spill] sm:$0xff]  ;;  %v14620_v42 = vld [vmem:[#allocation17_spill] sm:$0xff] }
 0x5e5   :  { %14608 = vst [vmem:[#allocation87_spill] sm:$0xff] %v11695_v41  ;;  %v4852_v37 = vsel %vm14609_vm12, %v4851_v35, %v4850_v18  ;;  %v4071_v4 = vpack.c.b16 %v11695_v41, %v4022_v7  ;;  %vm14612_vm11 = vmmov %vm14607_vm7  ;;  %v5027_v25 = vsel %vm14613_vm9, %v5026_v55, %v5025_v15  ;;  %v5035_v31 = vsel %vm14594_vm6, %v5034_v13, %v14614_v30  ;;  %v14621_v7 = vld [vmem:[#allocation47_spill] sm:$0xff]  ;;  %v14624_v13 = vld [vmem:[#allocation62_spill] sm:$0xff] }
 0x5e6   :  { %v4854_v62 = vsel %vm14612_vm11, %v4853_v48, %v4852_v37  ;;  %vm14617_vm2 = vcmask 64512   ;;  %vm14619_vm14 = vcmask 1043459   ;;  %v5037_v27 = vsel %vm14602_vm5, %v5036_v6, %v5035_v31  ;;  %vm14623_vm7 = vmmov %vm14594_vm6 }
 0x5e7   :  { %v11709_v0 = vsel %vm14617_vm2, %v14616_v45, %v14615_v59  ;;  %v5029_v35 = vsel %vm14619_vm14, %v5028_v21, %v5027_v25  ;;  %v5038_v18 = vrot.slane %v14620_v42, 2  ;;  %4074 = vrot.lane.b32.xlu0 %v4071_v4, %s6129_s23  ;;  %v4873_v37 = vpack.c.b16 %v14621_v7, %v4854_v62  ;;  %vm14626_vm12 = vmmov %vm14602_vm5  ;;  %v14628_v59 = vld [vmem:[#allocation79_spill] sm:$0xff]  ;;  %v14629_v25 = vld [vmem:[#allocation74_spill] sm:$0xff] }
 0x5e8   :  { %14618 = vst [vmem:[#allocation66_spill] sm:$0xff] %v11709_v0  ;;  %v14622_v48 = vrot.slane %v14424_v47, 4  ;;  %v5040_v30 = vrot.slane %v11520_v58, 1  ;;  %v3829_v15 = vrot.slane %v14624_v13, 7  ;;  %v14625_v45 = vrot.slane %v14431_v38, 3  ;;  %v14634_v0 = vld [vmem:[#allocation39_spill] sm:$0xff] }
 0x5e9   :  { %vm14627_vm10 = vcmask 1046534   ;;  %v3830_v6 = vrot.slane %v14628_v59, 6  ;;  %v3832_v4 = vrot.slane %v14629_v25, 5  ;;  %v14630_v62 = vrot.slane %v14435_v5, 2  ;;  %v14639_v59 = vld [vmem:[#allocation95_spill] sm:$0xff] }
 0x5ea   :  { %v5030_v55 = vsel %vm14623_vm7, %v14622_v48, %v5029_v35  ;;  %v5039_v31 = vsel %vm14627_vm10, %v5038_v18, %v5037_v27  ;;  %vm14631_vm11 = vmmov %vm14627_vm10  ;;  %vm14632_vm9 = vcmask 1047559   ;;  %v14633_v48 = vld [vmem:[#allocation27_spill] sm:$0xff]  ;;  %v3836_v13 = vrot.slane %v14634_v0, 3  ;;  %v14638_v18 = vld [vmem:[#allocation81_spill] sm:$0xff]  ;;  %4875 = vrot.lane.b32.xlu1 %v4873_v37, %s14277_s0  ;;  %v11743_v0 = vpop.permute.xlu2 %4778  ;;  %v11752_v37 = vpop.permute.xlu1 %3755  ;;  %s15110_s0 = smov 25  }
 0x5eb   :  { %v5031_v21 = vsel %vm14626_vm12, %v14625_v45, %v5030_v55  ;;  %v5041_v35 = vsel %vm14632_vm9, %v5040_v30, %v5039_v31  ;;  %v3834_v41 = vrot.slane %v14633_v48, 4  ;;  %v14635_v53 = vrot.slane %v14442_v34, 1  ;;  %vm14636_vm6 = vmmov %vm14632_vm9  ;;  %v14641_v30 = vld [vmem:[#allocation19_spill] sm:$0xff]  ;;  %14648 = vst [vmem:[#allocation97_spill] sm:$0xff] %v11752_v37 }
 0x5ec   :  { %v5032_v7 = vsel %vm14631_vm11, %v14630_v62, %v5031_v21  ;;  %vm14637_vm2 = vcmask 1041409   ;;  %v3838_v45 = vrot.slane %v14638_v18, 2  ;;  %v3840_v25 = vrot.slane %v14639_v59, 1  ;;  %v14642_v62 = vld [vmem:[#allocation50_spill] sm:$0xff] }
 0x5ed   :  { %v5033_v55 = vsel %vm14636_vm6, %v14635_v53, %v5032_v7  ;;  %v3831_v27 = vsel %vm14637_vm2, %v3830_v6, %v3829_v15  ;;  %vm14640_vm14 = vcmask 1042434   ;;  %v3843_v31 = vrot.slane %v14641_v30, 7  ;;  %v14645_v53 = vld [vmem:[#allocation43_spill] sm:$0xff]  ;;  %v14646_v6 = vld [vmem:[#allocation69_spill] sm:$0xff]  ;;  %v14647_v18 = vld [vmem:[#allocation78_spill] sm:$0xff] }
 0x5ee   :  { %v5043_v54 = vpack.c.b16 %v5041_v35, %v5033_v55  ;;  %v3833_v21 = vsel %vm14640_vm14, %v3832_v4, %v3831_v27  ;;  %v3844_v48 = vrot.slane %v14642_v62, 6  ;;  %vm14643_vm5 = vcmask 1043459   ;;  %vm14649_vm12 = vmmov %vm14637_vm2  ;;  %v14650_v55 = vld [vmem:[#allocation83_spill] sm:$0xff] }
 0x5ef   :  { %v11746_v61 = vsel %vm14643_vm5, %v3834_v41, %v3833_v21  ;;  %v3846_v15 = vrot.slane %v14645_v53, 5  ;;  %v3848_v7 = vrot.slane %v14646_v6, 4  ;;  %v3850_v59 = vrot.slane %v14647_v18, 3  ;;  %v14651_v30 = vld [vmem:[#allocation63_spill] sm:$0xff]  ;;  %v11759_v21 = vpop.permute.xlu0 %4812  ;;  %vm14653_vm11 = vmmov %vm14640_vm14 }
 0x5f0   :  { %14644 = vst [vmem:[#allocation13_spill] sm:$0xff] %v11746_v61  ;;  %5046 = vrot.lane.b32.xlu2 %v5043_v54, %s14361_s8  ;;  %v3837_v4 = vsel %vm14623_vm7, %v3836_v13, %v11746_v61  ;;  %v3845_v35 = vsel %vm14649_vm12, %v3844_v48, %v3843_v31  ;;  %v3852_v27 = vrot.slane %v14650_v55, 2  ;;  %v3854_v41 = vrot.slane %v14651_v30, 1  ;;  %vm14655_vm6 = vmmov %vm14643_vm5  ;;  %v14656_v55 = vld [vmem:[#allocation16_spill] sm:$0xff] }
 0x5f1   :  { %vm14652_vm10 = vcmask 1045509   ;;  %v3847_v53 = vsel %vm14653_vm11, %v3846_v15, %v3845_v35  ;;  %v5092_v6 = vrot.slane %v14610_v16, 2  ;;  %v5093_v54 = vrot.slane %v14596_v26, 1  ;;  %vm14658_vm14 = vmmov %vm14623_vm7 }
 0x5f2   :  { %v3839_v62 = vsel %vm14652_vm10, %v3838_v45, %v3837_v4  ;;  %vm14654_vm9 = vcmask 1046534   ;;  %v3849_v13 = vsel %vm14655_vm6, %v3848_v7, %v3847_v53  ;;  %v5096_v31 = vrot.slane %v14603_v1, 7  ;;  %vm14659_vm5 = vmmov %vm14649_vm12 }
 0x5f3   :  { %v3841_v18 = vsel %vm14654_vm9, %v3840_v25, %v3839_v62  ;;  %v5102_v48 = vrot.slane %v14604_v52, 6  ;;  %vm14657_vm2 = vcmask 1047559   ;;  %v3851_v37 = vsel %vm14658_vm14, %v3850_v59, %v3849_v13  ;;  %vm14660_vm7 = vmmov %vm14652_vm10 }
 0x5f4   :  { %v3842_v30 = vsel %vm14657_vm2, %v14656_v55, %v3841_v18  ;;  %v5094_v45 = vsel %vm14659_vm5, %v5093_v54, %v5092_v6  ;;  %v5104_v15 = vrot.slane %v11464_v19, 5  ;;  %v3853_v4 = vsel %vm14660_vm7, %v3852_v27, %v3851_v37  ;;  %vm14661_vm12 = vmmov %vm14653_vm11  ;;  %v14666_v54 = vld [vmem:[#allocation7_spill] sm:$0xff] }
 0x5f5   :  { %v5095_v25 = vsel %vm14661_vm12, %v14597_v40, %v5094_v45  ;;  %vm14662_vm10 = vmmov %vm14658_vm14  ;;  %v5106_v35 = vrot.slane %v14620_v42, 4  ;;  %v5108_v6 = vrot.slane %v11520_v58, 3  ;;  %v14668_v37 = vrot.slane %v14424_v47, 6 }
 0x5f6   :  { %v5103_v7 = vsel %vm14662_vm10, %v5102_v48, %v11632_v8  ;;  %vm14663_vm11 = vmmov %vm14654_vm9  ;;  %v4250_v13 = vrot.slane %v14420_v57, 3  ;;  %v4251_v45 = vrot.slane %v14427_v17, 2 }
 0x5f7   :  { %v3855_v62 = vsel %vm14663_vm11, %v3854_v41, %v3853_v4  ;;  %vm14664_vm9 = vmmov %vm14655_vm6 }
 0x5f8   :  { %v5097_v53 = vsel %vm14664_vm9, %v5096_v31, %v5095_v25  ;;  %vm14665_vm6 = vmmov %vm14660_vm7  ;;  %v11786_v18 = vsel %vm14657_vm2, %v14666_v54, %v3855_v62  ;;  %v14671_v31 = vrot.slane %v14431_v38, 5  ;;  %v4253_v25 = vrot.slane %v14421_v10, 1  ;;  %v11805_v62 = vpop.permute.xlu2 %3827 }
 0x5f9   :  { %v5105_v59 = vsel %vm14665_vm6, %v5104_v15, %v5103_v7  ;;  %14667 = vst [vmem:[#allocation12_spill] sm:$0xff] %v11786_v18  ;;  %vm14669_vm14 = vmmov %vm14662_vm10  ;;  %v3892_v41 = vpack.c.b16 %v11786_v18, %v3842_v30  ;;  %v14674_v15 = vrot.slane %v14435_v5, 4  ;;  %v13399_v7 = vrot.slane %v14424_v47, 7 }
 0x5fa   :  { %v5098_v27 = vsel %vm14669_vm14, %v14668_v37, %v5097_v53  ;;  %vm14670_vm5 = vmmov %vm14663_vm11  ;;  %14676 = vst [vmem:[#allocation71_spill] sm:$0xff] %v11805_v62  ;;  %v14677_v30 = vrot.slane %v14442_v34, 3  ;;  %vm14679_vm9 = vcmask 1041409  }
 0x5fb   :  { %v5107_v8 = vsel %vm14670_vm5, %v5106_v35, %v5105_v59  ;;  %vm14672_vm7 = vmmov %vm14665_vm6  ;;  %v13401_v35 = vrot.slane %v14431_v38, 6  ;;  %3895 = vrot.lane.b32.xlu1 %v3892_v41, %s6128_s22  ;;  %v4252_v59 = vsel %vm14679_vm9, %v4251_v45, %v4250_v13  ;;  %vm14680_vm6 = vcmask 1042434  }
 0x5fc   :  { %v5099_v48 = vsel %vm14672_vm7, %v14671_v31, %v5098_v27  ;;  %vm14673_vm12 = vmmov %vm14657_vm2  ;;  %v4254_v27 = vsel %vm14680_vm6, %v4253_v25, %v4252_v59  ;;  %v4265_v31 = vrot.slane %v14439_v46, 2  ;;  %v4270_v13 = vrot.slane %v14444_v51, 7 }
 0x5fd   :  { %v5109_v55 = vsel %vm14673_vm12, %v5108_v6, %v5107_v8  ;;  %vm14675_vm10 = vmmov %vm14670_vm5  ;;  %v13400_v6 = vrot.slane %v14435_v5, 5  ;;  %v4264_v8 = vrot.slane %v14432_v28, 3  ;;  %v4272_v45 = vrot.slane %v14448_v63, 6 }
 0x5fe   :  { %v5100_v4 = vsel %vm14675_vm10, %v14674_v15, %v5099_v48  ;;  %vm14678_vm11 = vmmov %vm14657_vm2  ;;  %v4745_v48 = vpop.permute.xlu1 %4744  ;;  %v11817_v15 = vpop.permute.xlu0 %4879  ;;  %vm14681_vm2 = vcmask 1043459   ;;  %vm14684_vm10 = vcmask 64512  }
 0x5ff   :  { %v5101_v53 = vsel %vm14678_vm11, %v14677_v30, %v5100_v4  ;;  %v4255_v41 = vsel %vm14681_vm2, %v14423_v36, %v4254_v27  ;;  %v4267_v4 = vrot.slane %v14436_v23, 1  ;;  %vm14682_vm5 = vmmov %vm14679_vm9  ;;  %v4274_v30 = vrot.slane %v14449_v9, 5 }
 0x600   :  { %v5111_v37 = vpack.c.b16 %v5109_v55, %v5101_v53  ;;  %v4257_v55 = vsel %vm14669_vm14, %v13399_v7, %v4255_v41  ;;  %v4266_v25 = vsel %vm14682_vm5, %v4265_v31, %v4264_v8  ;;  %v4276_v53 = vrot.slane %v14453_v14, 4  ;;  %vm14683_vm12 = vmmov %vm14680_vm6 }
 0x601   :  { %v4259_v59 = vsel %vm14672_vm7, %v13401_v35, %v4257_v55  ;;  %v4268_v27 = vsel %vm14683_vm12, %v4267_v4, %v4266_v25  ;;  %v5292_v54 = vsel %vm14684_vm10, %v4745_v48, %v11743_v0  ;;  %vm14685_vm11 = vcmask 1046534   ;;  %vm14686_vm9 = vmmov %vm14681_vm2 }
 0x602   :  { %5114 = vrot.lane.b32.xlu0 %v5111_v37, %s6145_s14  ;;  %v4393_v37 = vrot.slane %v14420_v57, 5  ;;  %v4261_v41 = vsel %vm14685_vm11, %v13400_v6, %v4259_v59  ;;  %v11843_v8 = vsel %vm14686_vm9, %v14441_v39, %v4268_v27  ;;  %v4394_v31 = vrot.slane %v14427_v17, 4  ;;  %vm14690_vm2 = vmmov %vm14669_vm14 }
 0x603   :  { %14687 = vst [vmem:[#allocation65_spill] sm:$0xff] %v11843_v8  ;;  %v4396_v7 = vrot.slane %v14421_v10, 3  ;;  %v14688_v55 = vrot.slane %v14442_v34, 4  ;;  %vm14689_vm6 = vcmask 1047559   ;;  %v4271_v0 = vsel %vm14690_vm2, %v4270_v13, %v11843_v8  ;;  %vm14691_vm14 = vmmov %vm14672_vm7 }
 0x604   :  { %v4398_v48 = vrot.slane %v14423_v36, 2  ;;  %v4273_v59 = vsel %vm14691_vm14, %v4272_v45, %v4271_v0  ;;  %v4395_v27 = vsel %vm14682_vm5, %v4394_v31, %v4393_v37  ;;  %v13403_v6 = vrot.slane %v14435_v5, 7  ;;  %vm14692_vm7 = vmmov %vm14685_vm11  ;;  %v11866_v31 = vpop.permute.xlu2 %4912 }
 0x605   :  { %v4263_v4 = vsel %vm14689_vm6, %v14688_v55, %v4261_v41  ;;  %v4275_v62 = vsel %vm14692_vm7, %v4274_v30, %v4273_v59  ;;  %v4397_v18 = vsel %vm14683_vm12, %v4396_v7, %v4395_v27  ;;  %v4407_v41 = vrot.slane %v14432_v28, 5  ;;  %vm14693_vm10 = vmmov %vm14689_vm6 }
 0x606   :  { %v4408_v13 = vrot.slane %v14439_v46, 4  ;;  %v4277_v55 = vsel %vm14693_vm10, %v4276_v53, %v4275_v62  ;;  %vm14694_vm11 = vmmov %vm14686_vm9  ;;  %v4410_v45 = vrot.slane %v14436_v23, 3  ;;  %v4412_v37 = vrot.slane %v14441_v39, 2 }
 0x607   :  { %v4399_v25 = vsel %vm14694_vm11, %v4398_v48, %v4397_v18  ;;  %v4285_v0 = vpack.c.b16 %v4277_v55, %v4263_v4  ;;  %v14695_v35 = vrot.slane %v14424_v47, 1  ;;  %vm14696_vm9 = vmmov %vm14690_vm2  ;;  %v4414_v59 = vrot.slane %v14444_v51, 1  ;;  %v11879_v4 = vpop.permute.xlu0 %4078 }
 0x608   :  { %vm14697_vm6 = vmmov %vm14682_vm5  ;;  %v4417_v53 = vrot.slane %v14449_v9, 7  ;;  %v4419_v48 = vrot.slane %v14453_v14, 6  ;;  %14700 = vst [vmem:[#allocation90_spill] sm:$0xff] %v11879_v4  ;;  %v5058_v27 = vrot.slane %v14610_v16, 1 }
 0x609   :  { %v4401_v30 = vsel %vm14696_vm9, %v14695_v35, %v4399_v25  ;;  %v4409_v7 = vsel %vm14697_vm6, %v4408_v13, %v4407_v41  ;;  %vm14698_vm2 = vmmov %vm14691_vm14  ;;  %4289 = vrot.lane.b32.xlu2 %v4285_v0, %s6132_s26  ;;  %v5060_v41 = vrot.slane %v14597_v40, 7  ;;  %v14704_v13 = vrot.slane %v14442_v34, 6 }
 0x60a   :  { %v4402_v62 = vsel %vm14698_vm2, %v14431_v38, %v4401_v30  ;;  %vm14699_vm14 = vmmov %vm14683_vm12  ;;  %v5062_v0 = vrot.slane %v14603_v1, 6  ;;  %v5068_v30 = vrot.slane %v14604_v52, 5 }
 0x60b   :  { %v4411_v18 = vsel %vm14699_vm14, %v4410_v45, %v4409_v7  ;;  %vm14701_vm5 = vmmov %vm14692_vm7 }
 0x60c   :  { %v4404_v35 = vsel %vm14701_vm5, %v13403_v6, %v4402_v62  ;;  %vm14702_vm7 = vmmov %vm14694_vm11  ;;  %v5070_v62 = vrot.slane %v11464_v19, 4  ;;  %v4847_v6 = vpop.permute.xlu1 %4846  ;;  %v14716_v19 = vrot.slane %v14424_v47, 5 }
 0x60d   :  { %v11885_v25 = vsel %vm14702_vm7, %v4412_v37, %v4411_v18  ;;  %vm14705_vm12 = vmmov %vm14693_vm10  ;;  %v5072_v18 = vrot.slane %v14620_v42, 3 }
 0x60e   :  { %14703 = vst [vmem:[#allocation9_spill] sm:$0xff] %v11885_v25  ;;  %v4406_v55 = vsel %vm14705_vm12, %v14704_v13, %v4404_v35  ;;  %vm14706_vm10 = vmmov %vm14696_vm9 }
 0x60f   :  { %v4415_v45 = vsel %vm14706_vm10, %v4414_v59, %v11885_v25  ;;  %vm14707_vm11 = vmmov %vm14698_vm2  ;;  %v14711_v59 = vld [vmem:[#allocation57_spill] sm:$0xff]  ;;  %v5074_v25 = vrot.slane %v11520_v58, 2 }
 0x610   :  { %v4416_v7 = vsel %vm14707_vm11, %v14448_v63, %v4415_v45  ;;  %vm14708_vm9 = vmmov %vm14697_vm6 }
 0x611   :  { %v5059_v37 = vsel %vm14708_vm9, %v14596_v26, %v5058_v27  ;;  %vm14709_vm6 = vmmov %vm14701_vm5  ;;  %5249 = vrot.lane.b32.xlu2 %v11598_v22, %s14729_s9  ;;  %v4169_v22 = vrot.slane %v14579_v20, 7 }
 0x612   :  { %v4418_v35 = vsel %vm14709_vm6, %v4417_v53, %v4416_v7  ;;  %vm14710_vm2 = vmmov %vm14699_vm14  ;;  %v4159_v7 = vrot.slane %v14567_v11, 5 }
 0x613   :  { %v5061_v13 = vsel %vm14710_vm2, %v5060_v41, %v5059_v37  ;;  %vm14712_vm14 = vmmov %vm14706_vm10  ;;  %vm14715_vm10 = vcmask 130048   ;;  %vm14720_vm2 = vcmask 326656   ;;  %v4161_v37 = vrot.slane %v14571_v56, 4 }
 0x614   :  { %v5069_v4 = vsel %vm14712_vm14, %v5068_v30, %v14711_v59  ;;  %vm14713_vm5 = vmmov %vm14705_vm12  ;;  %v5063_v45 = vsel %vm14702_vm7, %v5062_v0, %v5061_v13  ;;  %v5298_v61 = vsel %vm14715_vm10, %v5292_v54, %v11759_v21  ;;  %v11922_v0 = vpop.permute.xlu2 %4776  ;;  %v4946_v13 = vpop.permute.xlu0 %4945 }
 0x615   :  { %v4420_v8 = vsel %vm14713_vm5, %v4419_v48, %v4418_v35  ;;  %vm14714_vm12 = vmmov %vm14707_vm11  ;;  %v11920_v48 = vsel %vm14720_vm2, %v11596_v44, %v11629_v49  ;;  %v4152_v49 = vrot.slane %v14557_v32, 1  ;;  %v4166_v35 = vrot.slane %v14576_v29, 1 }
 0x616   :  { %v5071_v27 = vsel %vm14714_vm12, %v5070_v62, %v5069_v4  ;;  %v4429_v42 = vpack.c.b16 %v4420_v8, %v4406_v55  ;;  %vm14717_vm11 = vmmov %vm14712_vm14  ;;  %14721 = vst [vmem:[#allocation76_spill] sm:$0xff] %v11920_v48  ;;  %v14722_v4 = vrot.slane %v14431_v38, 4  ;;  %v4151_v8 = vrot.slane %v14564_v50, 2 }
 0x617   :  { %v5064_v53 = vsel %vm14717_vm11, %v14716_v19, %v5063_v45  ;;  %vm14718_vm9 = vmmov %vm14709_vm6  ;;  %vm14719_vm6 = vcmask 195584   ;;  %v14724_v19 = vrot.slane %v14435_v5, 3  ;;  %v14727_v55 = vrot.slane %v14442_v34, 2 }
 0x618   :  { %v5073_v41 = vsel %vm14718_vm9, %v5072_v18, %v5071_v27  ;;  %v5304_v30 = vsel %vm14719_vm6, %v5298_v61, %v4847_v6  ;;  %vm14723_vm14 = vmmov %vm14714_vm12  ;;  %4433 = vrot.lane.b32.xlu0 %v4429_v42, %s6134_s28  ;;  %vm14726_vm12 = vcmask 261120   ;;  %v4155_v6 = vrot.slane %v14561_v12, 7 }
 0x619   :  { %v5065_v21 = vsel %vm14723_vm14, %v14722_v4, %v5064_v53  ;;  %v5075_v54 = vsel %vm14713_vm5, %v5074_v25, %v5073_v41  ;;  %vm14725_vm7 = vmmov %vm14718_vm9  ;;  %v11935_v44 = vsel %vm14726_vm12, %v5304_v30, %v11817_v15  ;;  %v4157_v42 = vrot.slane %v14566_v60, 6  ;;  %v14734_v4 = vld [vmem:[#allocation36_spill] sm:$0xff] }
 0x61a   :  { %v5066_v61 = vsel %vm14725_vm7, %v14724_v19, %v5065_v21  ;;  %vm14728_vm10 = vmmov %vm14713_vm5  ;;  %vm14730_vm11 = vcmask 1041409   ;;  %v4165_v18 = vrot.slane %v14584_v2, 2  ;;  %vm14731_vm9 = vcmask 1042434  }
 0x61b   :  { %v5067_v25 = vsel %vm14728_vm10, %v14727_v55, %v5066_v61  ;;  %v4153_v15 = vsel %vm14730_vm11, %v4152_v49, %v4151_v8  ;;  %v4163_v45 = vrot.slane %v14572_v24, 3  ;;  %v4171_v27 = vrot.slane %v14580_v43, 6  ;;  %vm14733_vm2 = vmmov %vm14730_vm11  ;;  %v14736_v8 = vld [vmem:[#allocation93_spill] sm:$0xff] }
 0x61c   :  { %v5077_v62 = vpack.c.b16 %v5075_v54, %v5067_v25  ;;  %v4154_v59 = vsel %vm14731_vm9, %v14560_v3, %v4153_v15  ;;  %vm14732_vm6 = vcmask 1043459   ;;  %v4167_v41 = vsel %vm14733_vm2, %v4166_v35, %v4165_v18  ;;  %vm14737_vm5 = vmmov %vm14731_vm9 }
 0x61d   :  { %v11957_v53 = vsel %vm14732_vm6, %v4155_v6, %v4154_v59  ;;  %v4173_v30 = vrot.slane %v14588_v33, 5  ;;  %v4175_v21 = vrot.slane %v14734_v4, 4  ;;  %vm14735_vm14 = vcmask 1044484   ;;  %vm14738_vm7 = vmmov %vm14732_vm6  ;;  %v14739_v6 = vld [vmem:[#allocation64_spill] sm:$0xff] }
 0x61e   :  { %5080 = vrot.lane.b32.xlu1 %v5077_v62, %s6144_s13  ;;  %v4158_v54 = vsel %vm14735_vm14, %v4157_v42, %v11957_v53  ;;  %v4168_v19 = vsel %vm14737_vm5, %v14736_v8, %v4167_v41  ;;  %v4321_v61 = vrot.slane %v14420_v57, 4  ;;  %v4322_v49 = vrot.slane %v14427_v17, 3  ;;  %vm14741_vm10 = vmmov %vm14735_vm14  ;;  %v11980_v17 = vpop.permute.xlu2 %4810 }
 0x61f   :  { %v4170_v55 = vsel %vm14738_vm7, %v4169_v22, %v4168_v19  ;;  %v4177_v25 = vrot.slane %v14739_v6, 3  ;;  %v4324_v62 = vrot.slane %v14421_v10, 2  ;;  %v4326_v15 = vrot.slane %v14423_v36, 1  ;;  %vm14742_vm11 = vmmov %vm14733_vm2 }
 0x620   :  { %vm14740_vm12 = vcmask 1045509   ;;  %v4172_v35 = vsel %vm14741_vm10, %v4171_v27, %v4170_v55  ;;  %v4323_v42 = vsel %vm14742_vm11, %v4322_v49, %v4321_v61  ;;  %v13412_v59 = vrot.slane %v14431_v38, 7  ;;  %vm14745_vm2 = vmmov %vm14737_vm5 }
 0x621   :  { %v4160_v18 = vsel %vm14740_vm12, %v4159_v7, %v4158_v54  ;;  %vm14743_vm9 = vcmask 1046534   ;;  %vm14744_vm6 = vmmov %vm14740_vm12  ;;  %v4325_v22 = vsel %vm14745_vm2, %v4324_v62, %v4323_v42  ;;  %v13413_v19 = vrot.slane %v14435_v5, 6  ;;  %v14750_v62 = vld [vmem:[#allocation20_spill] sm:$0xff] }
 0x622   :  { %v4162_v41 = vsel %vm14743_vm9, %v4161_v37, %v4160_v18  ;;  %v4174_v48 = vsel %vm14744_vm6, %v4173_v30, %v4172_v35  ;;  %vm14746_vm14 = vcmask 1047559   ;;  %vm14747_vm5 = vmmov %vm14743_vm9  ;;  %v4327_v27 = vsel %vm14738_vm7, %v4326_v15, %v4325_v22  ;;  %v14756_v22 = vld [vmem:[#allocation34_spill] sm:$0xff] }
 0x623   :  { %v4164_v36 = vsel %vm14746_vm14, %v4163_v45, %v4162_v41  ;;  %v4176_v7 = vsel %vm14747_vm5, %v4175_v21, %v4174_v48  ;;  %v4335_v54 = vrot.slane %v14432_v28, 4  ;;  %vm14748_vm12 = vmmov %vm14746_vm14  ;;  %v4328_v37 = vsel %vm14741_vm10, %v14424_v47, %v4327_v27  ;;  %v14757_v27 = vld [vmem:[#allocation11_spill] sm:$0xff] }
 0x624   :  { %v11987_v61 = vsel %vm14748_vm12, %v4177_v25, %v4176_v7  ;;  %v4336_v30 = vrot.slane %v14439_v46, 3  ;;  %v4338_v49 = vrot.slane %v14436_v23, 2  ;;  %vm14749_vm11 = vmmov %vm14744_vm6  ;;  %v4333_v45 = vrot.slane %v14442_v34, 5  ;;  %v14751_v25 = vld [vmem:[#allocation66_spill] sm:$0xff] }
 0x625   :  { %v4213_v55 = vpack.c.b16 %v11987_v61, %v4164_v36  ;;  %v4330_v48 = vsel %vm14749_vm11, %v13412_v59, %v4328_v37  ;;  %v4340_v21 = vrot.slane %v14441_v39, 1  ;;  %vm14752_vm9 = vcmask 130048   ;;  %vm14753_vm6 = vmmov %vm14747_vm5  ;;  %v4979_v59 = vpop.permute.xlu0 %4978 }
 0x626   :  { %v4595_v15 = vsel %vm14752_vm9, %v14751_v25, %v14750_v62  ;;  %v4332_v18 = vsel %vm14753_vm6, %v13413_v19, %v4330_v48  ;;  %vm14754_vm2 = vcmask 1041409   ;;  %v4343_v36 = vrot.slane %v14448_v63, 7  ;;  %vm14758_vm5 = vmmov %vm14738_vm7  ;;  %v14759_v48 = vld [vmem:[#allocation25_spill] sm:$0xff] }
 0x627   :  { %v4337_v35 = vsel %vm14754_vm2, %v4336_v30, %v4335_v54  ;;  %4216 = vrot.lane.b32.xlu0 %v4213_v55, %s6131_s25  ;;  %vm14755_vm14 = vcmask 1042434   ;;  %v4345_v41 = vrot.slane %v14449_v9, 6  ;;  %v4914_v7 = vrot.slane %v14756_v22, 2  ;;  %v14761_v55 = vld [vmem:[#allocation53_spill] sm:$0xff]  ;;  %vm14762_vm11 = vmmov %vm14741_vm10 }
 0x628   :  { %v4339_v42 = vsel %vm14755_vm14, %v4338_v49, %v4337_v35  ;;  %v4916_v37 = vrot.slane %v14757_v27, 1  ;;  %v4347_v25 = vrot.slane %v14453_v14, 5  ;;  %v4919_v19 = vrot.slane %v14759_v48, 7 }
 0x629   :  { %v4341_v62 = vsel %vm14758_vm5, %v4340_v21, %v4339_v42  ;;  %vm14760_vm7 = vcmask 326656   ;;  %v4334_v30 = vsel %vm14748_vm12, %v4333_v45, %v4332_v18  ;;  %v4915_v35 = vsel %vm14762_vm11, %v4914_v7, %v14761_v55  ;;  %v14773_v55 = vld [vmem:[#allocation70_spill] sm:$0xff] }
 0x62a   :  { %v5316_v54 = vsel %vm14760_vm7, %v11935_v44, %v11866_v31  ;;  %v4342_v49 = vsel %vm14741_vm10, %v14444_v51, %v4341_v62  ;;  %vm14763_vm9 = vcmask 392192   ;;  %vm14764_vm6 = vcmask 1045509   ;;  %v14768_v44 = vld [vmem:[#allocation21_spill] sm:$0xff]  ;;  %vm14770_vm10 = vmmov %vm14748_vm12 }
 0x62b   :  { %v5322_v9 = vsel %vm14763_vm9, %v5316_v54, %v4946_v13  ;;  %v4344_v21 = vsel %vm14764_vm6, %v4343_v36, %v4342_v49  ;;  %vm14765_vm2 = vmmov %vm14764_vm6  ;;  %vm14766_vm14 = vcmask 457728   ;;  %v5159_v63 = vrot.slane %v14610_v16, 4 }
 0x62c   :  { %v4917_v42 = vsel %vm14765_vm2, %v4916_v37, %v4915_v35  ;;  %v5328_v14 = vsel %vm14766_vm14, %v5322_v9, %v4979_v59  ;;  %vm14767_vm5 = vcmask 1046534   ;;  %v5160_v51 = vrot.slane %v14596_v26, 3  ;;  %v14771_v37 = vld [vmem:[#allocation82_spill] sm:$0xff] }
 0x62d   :  { %v4346_v31 = vsel %vm14767_vm5, %v4345_v41, %v4344_v21  ;;  %vm14769_vm7 = vmmov %vm14767_vm5  ;;  %v5162_v39 = vrot.slane %v14597_v40, 2  ;;  %v5164_v36 = vrot.slane %v14603_v1, 1  ;;  %v5170_v9 = vsel %vm14762_vm11, %v14604_v52, %v4341_v62  ;;  %v12039_v41 = vpop.permute.xlu2 %4844  ;;  %v12043_v21 = vpop.permute.xlu1 %3899 }
 0x62e   :  { %v4918_v18 = vsel %vm14769_vm7, %v14768_v44, %v4917_v42  ;;  %v4348_v7 = vsel %vm14748_vm12, %v4347_v25, %v4346_v31  ;;  %vm14772_vm9 = vcmask 1041409   ;;  %v5171_v35 = vrot.slane %v14773_v55, 7  ;;  %14774 = vst [vmem:[#allocation88_spill] sm:$0xff] %v12043_v21  ;;  %v14776_v42 = vld [vmem:[#allocation17_spill] sm:$0xff]  ;;  %vm14779_vm5 = vmmov %vm14762_vm11 }
 0x62f   :  { %v4920_v13 = vsel %vm14770_vm10, %v4919_v19, %v4918_v18  ;;  %v4357_v59 = vpack.c.b16 %v4348_v7, %v4334_v30  ;;  %v5161_v49 = vsel %vm14772_vm9, %v5160_v51, %v5159_v63  ;;  %vm14775_vm6 = vcmask 1042434   ;;  %vm14780_vm12 = vmmov %vm14772_vm9 }
 0x630   :  { %v4939_v54 = vpack.c.b16 %v14771_v37, %v4920_v13  ;;  %v5163_v25 = vsel %vm14775_vm6, %v5162_v39, %v5161_v49  ;;  %v5173_v19 = vrot.slane %v14776_v42, 6  ;;  %v5175_v31 = vrot.slane %v11520_v58, 5  ;;  %vm14784_vm9 = vmmov %vm14775_vm6 }
 0x631   :  { %v4080_v18 = vrot.slane %v14564_v50, 1  ;;  %4361 = vrot.lane.b32.xlu1 %v4357_v59, %s6133_s27  ;;  %vm14777_vm2 = vcmask 1043459   ;;  %vm14778_vm14 = vcmask 1045509   ;;  %v4082_v63 = vrot.slane %v14560_v3, 7 }
 0x632   :  { %4941 = vrot.lane.b32.xlu2 %v4939_v54, %s14313_s10  ;;  %v5165_v62 = vsel %vm14777_vm2, %v5164_v36, %v5163_v25  ;;  %v5172_v51 = vsel %vm14778_vm14, %v5171_v35, %v5170_v9  ;;  %v4084_v30 = vrot.slane %v14561_v12, 6  ;;  %v4086_v59 = vrot.slane %v14566_v60, 5  ;;  %vm14782_vm10 = vmmov %vm14778_vm14  ;;  %v14785_v35 = vld [vmem:[#allocation80_spill] sm:$0xff]  ;;  %s15111_s10 = smov 97  }
 0x633   :  { %v5166_v39 = vsel %vm14779_vm5, %v14424_v47, %v5165_v62  ;;  %v5174_v7 = vsel %vm14769_vm7, %v5173_v19, %v5172_v51  ;;  %v4081_v13 = vsel %vm14780_vm12, %v14557_v32, %v4080_v18  ;;  %v14781_v37 = vrot.slane %v14431_v38, 7  ;;  %vm14788_vm2 = vmmov %vm14769_vm7 }
 0x634   :  { %vm14783_vm11 = vcmask 1047559   ;;  %v4083_v54 = vsel %vm14784_vm9, %v4082_v63, %v4081_v13  ;;  %v4088_v49 = vrot.slane %v14567_v11, 4  ;;  %vm14786_vm6 = vcmask 195584   ;;  %vm14795_vm9 = vmmov %vm14788_vm2 }
 0x635   :  { %v5167_v36 = vsel %vm14782_vm10, %v14781_v37, %v5166_v39  ;;  %v5176_v9 = vsel %vm14783_vm11, %v5175_v31, %v5174_v7  ;;  %v4601_v25 = vsel %vm14786_vm6, %v4595_v15, %v14785_v35  ;;  %v14787_v19 = vrot.slane %v14435_v5, 6  ;;  %vm14790_vm5 = vmmov %vm14783_vm11  ;;  %v5049_v7 = vpop.permute.xlu0 %5048  ;;  %v14792_v35 = vld [vmem:[#allocation68_spill] sm:$0xff] }
 0x636   :  { %vm14789_vm14 = vcmask 1043459   ;;  %v4090_v51 = vrot.slane %v14571_v56, 3  ;;  %vm14791_vm7 = vcmask 1044484   ;;  %v4094_v31 = vrot.slane %v14584_v2, 1 }
 0x637   :  { %v5168_v62 = vsel %vm14788_vm2, %v14787_v19, %v5167_v36  ;;  %v4085_v18 = vsel %vm14789_vm14, %v4084_v30, %v4083_v54  ;;  %v4096_v63 = vrot.slane %v14736_v8, 7  ;;  %v4092_v15 = vrot.slane %v14572_v24, 2  ;;  %v14798_v24 = vld [vmem:[#allocation49_spill] sm:$0xff]  ;;  %vm14799_vm2 = vmmov %vm14789_vm14 }
 0x638   :  { %v5169_v21 = vsel %vm14790_vm5, %v4333_v45, %v5168_v62  ;;  %v4087_v39 = vsel %vm14791_vm7, %v4086_v59, %v4085_v18  ;;  %v4098_v37 = vrot.slane %v14579_v20, 6  ;;  %v4100_v36 = vrot.slane %v14580_v43, 5  ;;  %vm14802_vm14 = vmmov %vm14790_vm5 }
 0x639   :  { %v5178_v13 = vpack.c.b16 %v5176_v9, %v5169_v21  ;;  %vm14793_vm12 = vcmask 261120   ;;  %v4089_v54 = vsel %vm14782_vm10, %v4088_v49, %v4087_v39  ;;  %vm14794_vm11 = vcmask 1041409   ;;  %5282 = vrot.lane.b32.xlu1 %v14798_v24, %s14797_s29  ;;  %v12096_v39 = vpop.permute.xlu2 %4877  ;;  %vm14803_vm5 = vmmov %vm14791_vm7 }
 0x63a   :  { %v4607_v30 = vsel %vm14793_vm12, %v4601_v25, %v14792_v35  ;;  %v4095_v45 = vsel %vm14794_vm11, %v14576_v29, %v4094_v31  ;;  %v4102_v59 = vrot.slane %v14588_v33, 4  ;;  %v4091_v21 = vsel %vm14795_vm9, %v4090_v51, %v4089_v54  ;;  %v14800_v31 = vld [vmem:[#allocation94_spill] sm:$0xff]  ;;  %v4743_v54 = vpop.permute.xlu1 %4742  ;;  %vm14806_vm7 = vmmov %vm14782_vm10 }
 0x63b   :  { %5181 = vrot.lane.b32.xlu0 %v5178_v13, %s14598_s5  ;;  %vm14796_vm6 = vcmask 1042434   ;;  %v4104_v19 = vrot.slane %v14734_v4, 3  ;;  %v5334_v62 = vsel %vm1733_vm15, %v5328_v14, %v5049_v7  ;;  %v4106_v25 = vrot.slane %v14739_v6, 2  ;;  %v14801_v13 = vld [vmem:[#allocation23_spill] sm:$0xff]  ;;  %v14805_v7 = vld [vmem:[#allocation18_spill] sm:$0xff]  ;;  %vm14807_vm12 = vmmov %vm14803_vm5 }
 0x63c   :  { %v4097_v9 = vsel %vm14796_vm6, %v4096_v63, %v4095_v45  ;;  %v5050_v35 = vrot.slane %v14800_v31, 5  ;;  %v5052_v56 = vrot.slane %v14801_v13, 4  ;;  %v4093_v51 = vsel %vm14802_vm14, %v4092_v15, %v4091_v21  ;;  %v14804_v45 = vld [vmem:[#allocation73_spill] sm:$0xff]  ;;  %vm14808_vm10 = vmmov %vm14795_vm9 }
 0x63d   :  { %v4099_v49 = vsel %vm14799_vm2, %v4098_v37, %v4097_v9  ;;  %v5054_v14 = vrot.slane %v14804_v45, 3  ;;  %v5056_v11 = vrot.slane %v14805_v7, 2  ;;  %v4947_v9 = vrot.slane %v14756_v22, 3  ;;  %vm14809_vm11 = vmmov %vm14806_vm7  ;;  %v14812_v6 = vld [vmem:[#allocation13_spill] sm:$0xff] }
 0x63e   :  { %v4101_v63 = vsel %vm14803_vm5, %v4100_v36, %v4099_v49  ;;  %v5051_v37 = vsel %vm14807_vm12, %v5050_v35, %v4085_v18  ;;  %v4949_v60 = vrot.slane %v14757_v27, 2  ;;  %v4951_v15 = vrot.slane %v14768_v44, 1  ;;  %vm14810_vm9 = vmmov %vm14802_vm14 }
 0x63f   :  { %v4103_v24 = vsel %vm14806_vm7, %v4102_v59, %v4101_v63  ;;  %v5053_v12 = vsel %vm14809_vm11, %v5052_v56, %v5051_v37  ;;  %v5126_v36 = vrot.slane %v14610_v16, 3  ;;  %vm14811_vm6 = vmmov %vm14808_vm10  ;;  %v5127_v18 = vrot.slane %v14596_v26, 2  ;;  %v14822_v37 = vld [vmem:[#allocation65_spill] sm:$0xff] }
 0x640   :  { %v4105_v20 = vsel %vm14808_vm10, %v4104_v19, %v4103_v24  ;;  %v5055_v49 = vsel %vm14811_vm6, %v5054_v14, %v5053_v12  ;;  %vm14813_vm2 = vmmov %vm14803_vm5  ;;  %v5129_v56 = vrot.slane %v14597_v40, 1  ;;  %vm14817_vm12 = vcmask 1041409   ;;  %v5083_v12 = vpop.permute.xlu0 %5082 }
 0x641   :  { %v4107_v21 = vsel %vm14810_vm9, %v4106_v25, %v4105_v20  ;;  %v4948_v59 = vsel %vm14813_vm2, %v4947_v9, %v14812_v6  ;;  %vm14814_vm14 = vmmov %vm14810_vm9  ;;  %v5128_v63 = vsel %vm14817_vm12, %v5127_v18, %v5126_v36  ;;  %v5136_v20 = vrot.slane %v14604_v52, 7  ;;  %v14824_v36 = vld [vmem:[#allocation97_spill] sm:$0xff] }
 0x642   :  { %v4142_v22 = vpack.c.b16 %v4107_v21, %v4093_v51  ;;  %v5057_v27 = vsel %vm14814_vm14, %v5056_v11, %v5055_v49  ;;  %vm14815_vm5 = vmmov %vm14806_vm7  ;;  %vm14819_vm11 = vcmask 1042434   ;;  %v5138_v11 = vrot.slane %v14773_v55, 6  ;;  %v14820_v51 = vld [vmem:[#allocation12_spill] sm:$0xff] }
 0x643   :  { %v4950_v19 = vsel %vm14815_vm5, %v4949_v60, %v4948_v59  ;;  %v5076_v35 = vpack.c.b16 %v4107_v21, %v5057_v27  ;;  %vm14816_vm7 = vmmov %vm14811_vm6  ;;  %v5130_v25 = vsel %vm14819_vm11, %v5129_v56, %v5128_v63  ;;  %v5140_v60 = vrot.slane %v14776_v42, 5  ;;  %v12154_v56 = vpop.permute.xlu2 %4363  ;;  %v14899_v55 = vld [vmem:[#allocation96_spill] sm:$0xff] }
 0x644   :  { %v4952_v44 = vsel %vm14816_vm7, %v4951_v15, %v4950_v19  ;;  %4145 = vrot.lane.b32.xlu2 %v4142_v22, %s6130_s24  ;;  %vm14818_vm10 = vmmov %vm14810_vm9  ;;  %vm14821_vm9 = vcmask 1043459   ;;  %v5142_v15 = vrot.slane %v11520_v58, 4  ;;  %v14826_v21 = vrot.slane %v14424_v47, 7  ;;  %14833 = vst [vmem:[#allocation15_spill] sm:$0xff] %v12154_v56 }
 0x645   :  { %v4953_v6 = vsel %vm14818_vm10, %v14759_v48, %v4952_v44  ;;  %5078 = vrot.lane.b32.xlu0 %v5076_v35, %s6144_s13  ;;  %v5131_v24 = vsel %vm14821_vm9, %v14603_v1, %v5130_v25  ;;  %vm14823_vm6 = vmmov %vm14813_vm2  ;;  %vm14825_vm2 = vcmask 326656   ;;  %v12145_v18 = vsel %vm1740_vm0, %v5334_v62, %v5083_v12 }
 0x646   :  { %v4972_v14 = vpack.c.b16 %v14820_v51, %v4953_v6  ;;  %v5137_v9 = vsel %vm14823_vm6, %v5136_v20, %v14822_v37  ;;  %v12138_v48 = vsel %vm14825_vm2, %v4607_v30, %v14824_v36  ;;  %vm14827_vm14 = vmmov %vm14823_vm6  ;;  %14828 = vst [vmem:[#allocation45_spill] sm:$0xff] %v12145_v18  ;;  %vm14829_vm7 = vcmask 64512   ;;  %v12161_v20 = vpop.permute.xlu1 %4149  ;;  %v14886_v18 = vld [vmem:[#allocation24_spill] sm:$0xff] }
 0x647   :  { %v5132_v49 = vsel %vm14827_vm14, %v14826_v21, %v5131_v24  ;;  %v5139_v59 = vsel %vm14815_vm5, %v5138_v11, %v5137_v9  ;;  %v5289_v22 = vsel %vm14829_vm7, %v4743_v54, %v11922_v0  ;;  %v14830_v27 = vrot.slane %v14431_v38, 6  ;;  %vm14831_vm12 = vmmov %vm14815_vm5  ;;  %14837 = vst [vmem:[#allocation60_spill] sm:$0xff] %v12161_v20  ;;  %v14842_v24 = vld [vmem:[#allocation99_spill] sm:$0xff]  ;;  %v14845_v21 = vld [vmem:[#allocation84_spill] sm:$0xff] }
 0x648   :  { %4974 = vrot.lane.b32.xlu1 %v4972_v14, %s14339_s2  ;;  %vm14832_vm10 = vcmask 1046534   ;;  %v5084_v35 = vrot.slane %v14800_v31, 6  ;;  %v14834_v44 = vrot.slane %v14435_v5, 5  ;;  %vm14836_vm9 = vcmask 1047559   ;;  %vm14840_vm2 = vmmov %vm14827_vm14  ;;  %s15113_s2 = smov 81  }
 0x649   :  { %v5133_v19 = vsel %vm14831_vm12, %v14830_v27, %v5132_v49  ;;  %v5141_v30 = vsel %vm14832_vm10, %v5140_v60, %v5139_v59  ;;  %vm14835_vm11 = vmmov %vm14832_vm10  ;;  %v5086_v0 = vrot.slane %v14801_v13, 5  ;;  %v5088_v54 = vrot.slane %v14804_v45, 4 }
 0x64a   :  { %v5134_v62 = vsel %vm14835_vm11, %v14834_v44, %v5133_v19  ;;  %v5143_v63 = vsel %vm14836_vm9, %v5142_v15, %v5141_v30  ;;  %v14838_v12 = vrot.slane %v14442_v34, 4  ;;  %vm14839_vm6 = vmmov %vm14836_vm9  ;;  %v5085_v25 = vsel %vm14840_vm2, %v5084_v35, %v11957_v53 }
 0x64b   :  { %v5090_v11 = vrot.slane %v14805_v7, 3  ;;  %v4465_v60 = vrot.slane %v14420_v57, 6  ;;  %vm14841_vm14 = vmmov %vm14815_vm5  ;;  %v4466_v37 = vrot.slane %v14842_v24, 5  ;;  %v4468_v9 = vrot.slane %v14421_v10, 4 }
 0x64c   :  { %v5135_v6 = vsel %vm14839_vm6, %v14838_v12, %v5134_v62  ;;  %v5087_v14 = vsel %vm14841_vm14, %v5086_v0, %v5085_v25  ;;  %vm14843_vm5 = vcmask 130048   ;;  %vm14844_vm7 = vmmov %vm14832_vm10  ;;  %v4470_v49 = vrot.slane %v14845_v21, 3  ;;  %v14850_v0 = vld [vmem:[#allocation52_spill] sm:$0xff] }
 0x64d   :  { %v5145_v51 = vpack.c.b16 %v5143_v63, %v5135_v6  ;;  %v5296_v15 = vsel %vm14843_vm5, %v5289_v22, %v11980_v17  ;;  %v5089_v36 = vsel %vm14844_vm7, %v5088_v54, %v5087_v14  ;;  %v13426_v53 = vrot.slane %v14424_v47, 2  ;;  %vm14846_vm12 = vmmov %vm14839_vm6  ;;  %v14851_v12 = vld [vmem:[#allocation72_spill] sm:$0xff] }
 0x64e   :  { %v5091_v59 = vsel %vm14846_vm12, %v5090_v11, %v5089_v36  ;;  %vm14847_vm10 = vcmask 1041409   ;;  %v13427_v19 = vrot.slane %v14431_v38, 1  ;;  %v4479_v30 = vrot.slane %v14432_v28, 6  ;;  %vm14852_vm6 = vmmov %vm14840_vm2  ;;  %v14854_v11 = vld [vmem:[#allocation92_spill] sm:$0xff] }
 0x64f   :  { %5148 = vrot.lane.b32.xlu2 %v5145_v51, %s6146_s7  ;;  %v4467_v27 = vsel %vm14847_vm10, %v4466_v37, %v4465_v60  ;;  %v5110_v35 = vpack.c.b16 %v11987_v61, %v5091_v59  ;;  %vm14848_vm11 = vcmask 1042434   ;;  %v4480_v22 = vrot.slane %v14439_v46, 5  ;;  %vm14853_vm2 = vmmov %vm14847_vm10  ;;  %v14856_v37 = vld [vmem:[#allocation61_spill] sm:$0xff] }
 0x650   :  { %v4469_v17 = vsel %vm14848_vm11, %v4468_v9, %v4467_v27  ;;  %v4482_v44 = vrot.slane %v14436_v23, 4  ;;  %vm14849_vm9 = vcmask 1043459   ;;  %v13428_v63 = vrot.slane %v14442_v34, 7  ;;  %vm14855_vm14 = vmmov %vm14848_vm11 }
 0x651   :  { %v4471_v62 = vsel %vm14849_vm9, %v4470_v49, %v4469_v17  ;;  %v4484_v54 = vrot.slane %v14850_v0, 3  ;;  %v4486_v6 = vrot.slane %v14851_v12, 2  ;;  %5112 = vrot.lane.b32.xlu0 %v5110_v35, %s6145_s14  ;;  %v4481_v25 = vsel %vm14853_vm2, %v4480_v22, %v4479_v30  ;;  %vm14858_vm7 = vmmov %vm14849_vm9  ;;  %v14860_v30 = vld [vmem:[#allocation37_spill] sm:$0xff]  ;;  %v12213_v22 = vpop.permute.xlu0 %4740  ;;  %s15105_s14 = smov 89  }
 0x652   :  { %v4473_v61 = vsel %vm14852_vm6, %v13426_v53, %v4471_v62  ;;  %v4488_v60 = vrot.slane %v14854_v11, 1  ;;  %v5016_v51 = vrot.slane %v14800_v31, 4  ;;  %v4483_v14 = vsel %vm14855_vm14, %v4482_v44, %v4481_v25  ;;  %vm14861_vm12 = vmmov %vm14852_vm6  ;;  %14862 = vst [vmem:[#allocation85_spill] sm:$0xff] %v12213_v22  ;;  %v4911_v44 = vpop.permute.xlu2 %4910 }
 0x653   :  { %v4491_v9 = vrot.slane %v14856_v37, 7  ;;  %v5018_v36 = vrot.slane %v14801_v13, 3  ;;  %v5020_v49 = vrot.slane %v14804_v45, 2  ;;  %vm14857_vm5 = vcmask 1045509   ;;  %vm14864_vm11 = vmmov %vm14852_vm6 }
 0x654   :  { %v4475_v59 = vsel %vm14857_vm5, %v13427_v19, %v4473_v61  ;;  %v12208_v27 = vsel %vm14858_vm7, %v4484_v54, %v4483_v14  ;;  %v5017_v35 = vsel %vm14861_vm12, %v5016_v51, %v14860_v30  ;;  %v5022_v17 = vrot.slane %v14805_v7, 1  ;;  %vm14865_vm9 = vmmov %vm14857_vm5  ;;  %v12222_v61 = vpop.permute.xlu1 %4220  ;;  %v14872_v19 = vld [vmem:[#allocation48_spill] sm:$0xff] }
 0x655   :  { %14859 = vst [vmem:[#allocation77_spill] sm:$0xff] %v12208_v27  ;;  %vm14863_vm10 = vcmask 1046534   ;;  %v4487_v25 = vsel %vm14864_vm11, %v4486_v6, %v12208_v27  ;;  %v5019_v53 = vsel %vm14865_vm9, %v5018_v36, %v5017_v35  ;;  %vm14866_vm6 = vcmask 195584   ;;  %vm14869_vm14 = vmmov %vm14857_vm5 }
 0x656   :  { %v4476_v62 = vsel %vm14863_vm10, %v14435_v5, %v4475_v59  ;;  %v5302_v54 = vsel %vm14866_vm6, %v5296_v15, %v12039_v41  ;;  %14867 = vst [vmem:[#allocation8_spill] sm:$0xff] %v12222_v61  ;;  %vm14868_vm2 = vcmask 1047559   ;;  %v4489_v14 = vsel %vm14869_vm14, %v4488_v60, %v4487_v25  ;;  %vm14870_vm5 = vmmov %vm14863_vm10 }
 0x657   :  { %v4478_v51 = vsel %vm14868_vm2, %v13428_v63, %v4476_v62  ;;  %v5021_v30 = vsel %vm14870_vm5, %v5020_v49, %v5019_v53  ;;  %vm14871_vm7 = vcmask 261120   ;;  %vm14873_vm12 = vmmov %vm14870_vm5  ;;  %vm14875_vm11 = vcmask 326656   ;;  %v14878_v62 = vld [vmem:[#allocation87_spill] sm:$0xff] }
 0x658   :  { %v5308_v59 = vsel %vm14871_vm7, %v5302_v54, %v12096_v39  ;;  %v4490_v6 = vsel %vm14873_vm12, %v14872_v19, %v4489_v14  ;;  %vm14874_vm10 = vmmov %vm14868_vm2  ;;  %v4222_v15 = vrot.slane %v14564_v50, 3  ;;  %v4223_v60 = vrot.slane %v14557_v32, 2 }
 0x659   :  { %v5023_v36 = vsel %vm14874_vm10, %v5022_v17, %v5021_v30  ;;  %v12235_v41 = vsel %vm14875_vm11, %v5308_v59, %v4911_v44  ;;  %vm14877_vm9 = vmmov %vm14868_vm2  ;;  %v4225_v53 = vrot.slane %v14560_v3, 1  ;;  %v4236_v39 = vrot.slane %v14584_v2, 3  ;;  %v14882_v59 = vld [vmem:[#allocation64_spill] sm:$0xff]  ;;  %v12269_v20 = vpop.permute.xlu0 %5116 }
 0x65a   :  { %14876 = vst [vmem:[#allocation22_spill] sm:$0xff] %v12235_v41  ;;  %v4492_v35 = vsel %vm14877_vm9, %v4491_v9, %v4490_v6  ;;  %v5042_v63 = vpack.c.b16 %v14878_v62, %v5023_v36  ;;  %v4237_v25 = vrot.slane %v14576_v29, 2  ;;  %v4239_v17 = vrot.slane %v14736_v8, 1  ;;  %v12271_v22 = vpop.permute.xlu2 %4435 }
 0x65b   :  { %v4501_v49 = vpack.c.b16 %v4492_v35, %v4478_v51  ;;  %vm14879_vm6 = vcmask 1041409   ;;  %v4242_v54 = vrot.slane %v14580_v43, 7  ;;  %v4244_v9 = vrot.slane %v14588_v33, 6  ;;  %v14883_v35 = vld [vmem:[#allocation29_spill] sm:$0xff]  ;;  %14894 = vst [vmem:[#allocation33_spill] sm:$0xff] %v12269_v20 }
 0x65c   :  { %5044 = vrot.lane.b32.xlu2 %v5042_v63, %s14361_s8  ;;  %v4224_v44 = vsel %vm14879_vm6, %v4223_v60, %v4222_v15  ;;  %v4246_v14 = vrot.slane %v14734_v4, 5  ;;  %vm14880_vm2 = vcmask 1042434   ;;  %vm14881_vm14 = vmmov %vm14879_vm6  ;;  %v4248_v6 = vrot.slane %v14882_v59, 4  ;;  %14895 = vst [vmem:[#allocation26_spill] sm:$0xff] %v12271_v22  ;;  %v12277_v58 = vpop.permute.xlu1 %4291  ;;  %s15116_s8 = smov 33  }
 0x65d   :  { %4505 = vrot.lane.b32.xlu1 %v4501_v49, %s14568_s6  ;;  %v4226_v51 = vsel %vm14880_vm2, %v4225_v53, %v4224_v44  ;;  %v4238_v30 = vsel %vm14881_vm14, %v4237_v25, %v4236_v39  ;;  %v5118_v36 = vrot.slane %v14800_v31, 7  ;;  %vm14884_vm5 = vcmask 1043459   ;;  %vm14885_vm7 = vmmov %vm14880_vm2  ;;  %v14889_v25 = vld [vmem:[#allocation67_spill] sm:$0xff] }
 0x65e   :  { %v4227_v63 = vsel %vm14884_vm5, %v14883_v35, %v4226_v51  ;;  %v4240_v15 = vsel %vm14885_vm7, %v4239_v17, %v4238_v30  ;;  %v5120_v62 = vrot.slane %v14801_v13, 6  ;;  %v5122_v60 = vrot.slane %v14804_v45, 5  ;;  %vm14887_vm12 = vmmov %vm14884_vm5  ;;  %v14892_v51 = vld [vmem:[#allocation51_spill] sm:$0xff]  ;;  %v14893_v17 = vld [vmem:[#allocation44_spill] sm:$0xff] }
 0x65f   :  { %v4241_v49 = vsel %vm14887_vm12, %v14886_v18, %v4240_v15  ;;  %vm14888_vm10 = vcmask 1044484   ;;  %v5124_v39 = vrot.slane %v14805_v7, 4  ;;  %v4228_v44 = vrot.slane %v14889_v25, 7 }
 0x660   :  { %v5119_v53 = vsel %vm14888_vm10, %v5118_v36, %v4227_v63  ;;  %vm14890_vm11 = vmmov %vm14888_vm10  ;;  %vm14891_vm9 = vcmask 1045509   ;;  %v4230_v61 = vrot.slane %v14892_v51, 6  ;;  %v4232_v30 = vrot.slane %v14893_v17, 5 }
 0x661   :  { %v4243_v56 = vsel %vm14890_vm11, %v4242_v54, %v4241_v49  ;;  %v5121_v41 = vsel %vm14891_vm9, %v5120_v62, %v5119_v53  ;;  %vm14896_vm6 = vmmov %vm14891_vm9  ;;  %vm14897_vm2 = vcmask 1046534   ;;  %v4234_v25 = vrot.slane %v14899_v55, 4 }
 0x662   :  { %v4245_v15 = vsel %vm14896_vm6, %v4244_v9, %v4243_v56  ;;  %v5123_v36 = vsel %vm14897_vm2, %v5122_v60, %v5121_v41  ;;  %vm14898_vm14 = vmmov %vm14888_vm10  ;;  %vm14901_vm7 = vcmask 1047559   ;;  %v4537_v53 = vrot.slane %v14420_v57, 7 }
 0x663   :  { %v4229_v27 = vsel %vm14898_vm14, %v4228_v44, %v4227_v63  ;;  %vm14900_vm5 = vmmov %vm14897_vm2  ;;  %v5125_v62 = vsel %vm14901_vm7, %v5124_v39, %v5123_v36  ;;  %v4538_v41 = vrot.slane %v14842_v24, 6  ;;  %v4540_v9 = vrot.slane %v14421_v10, 5 }
 0x664   :  { %v4247_v54 = vsel %vm14900_vm5, %v4246_v14, %v4245_v15  ;;  %vm14902_vm12 = vmmov %vm14896_vm6  ;;  %v4542_v44 = vrot.slane %v14845_v21, 4  ;;  %v13435_v14 = vrot.slane %v14424_v47, 3  ;;  %vm14906_vm6 = vcmask 1041409   ;;  %v14908_v21 = vld [vmem:[#allocation98_spill] sm:$0xff] }
 0x665   :  { %v4231_v49 = vsel %vm14902_vm12, %v4230_v61, %v4229_v27  ;;  %vm14903_vm10 = vmmov %vm14901_vm7  ;;  %v4539_v27 = vsel %vm14906_vm6, %v4538_v41, %v4537_v53  ;;  %v13434_v57 = vrot.slane %v14431_v38, 2  ;;  %v13433_v61 = vrot.slane %v14435_v5, 1  ;;  %v14918_v41 = vld [vmem:[#allocation88_spill] sm:$0xff] }
 0x666   :  { %v4249_v20 = vsel %vm14903_vm10, %v4248_v6, %v4247_v54  ;;  %vm14904_vm11 = vmmov %vm14897_vm2  ;;  %vm14907_vm2 = vcmask 1042434   ;;  %v4551_v10 = vrot.slane %v14432_v28, 7  ;;  %v4552_v6 = vrot.slane %v14439_v46, 6 }
 0x667   :  { %v4233_v56 = vsel %vm14904_vm11, %v4232_v30, %v4231_v49  ;;  %v5144_v63 = vpack.c.b16 %v4249_v20, %v5125_v62  ;;  %vm14905_vm9 = vmmov %vm14901_vm7  ;;  %v4541_v24 = vsel %vm14907_vm2, %v4540_v9, %v4539_v27  ;;  %v14909_v30 = vld [vmem:[#allocation76_spill] sm:$0xff]  ;;  %vm14910_vm14 = vcmask 392192   ;;  %v14912_v62 = vld [vmem:[#allocation71_spill] sm:$0xff] }
 0x668   :  { %v4235_v60 = vsel %vm14905_vm9, %v4234_v25, %v4233_v56  ;;  %v4554_v25 = vrot.slane %v14436_v23, 5  ;;  %vm14911_vm5 = vcmask 1043459   ;;  %v4556_v36 = vrot.slane %v14850_v0, 4  ;;  %vm14913_vm7 = vmmov %vm14910_vm14 }
 0x669   :  { %v4284_v39 = vpack.c.b16 %v4249_v20, %v4235_v60  ;;  %5146 = vrot.lane.b32.xlu0 %v5144_v63, %s6146_s7  ;;  %v12301_v20 = vsel %vm14910_vm14, %v14909_v30, %v14908_v21  ;;  %v4543_v15 = vsel %vm14911_vm5, %v4542_v44, %v4541_v24  ;;  %v4558_v54 = vrot.slane %v14851_v12, 3  ;;  %vm14915_vm10 = vmmov %vm14906_vm6  ;;  %v12332_v60 = vpop.permute.xlu0 %4808  ;;  %v12334_v44 = vpop.permute.xlu2 %5150 }
 0x66a   :  { %v4619_v28 = vsel %vm14913_vm7, %v12138_v48, %v14912_v62  ;;  %vm14914_vm12 = vcmask 1044484   ;;  %v4553_v46 = vsel %vm14915_vm10, %v4552_v6, %v4551_v10  ;;  %v4560_v49 = vrot.slane %v14854_v11, 2  ;;  %vm14917_vm9 = vmmov %vm14907_vm2  ;;  %14922 = vst [vmem:[#allocation31_spill] sm:$0xff] %v12334_v44  ;;  %v3898_v10 = vpop.permute.xlu1 %3897 }
 0x66b   :  { %4287 = vrot.lane.b32.xlu1 %v4284_v39, %s6132_s26  ;;  %v4545_v23 = vsel %vm14914_vm12, %v13435_v14, %v4543_v15  ;;  %vm14916_vm11 = vcmask 1045509   ;;  %v4555_v0 = vsel %vm14917_vm9, %v4554_v25, %v4553_v46  ;;  %v4562_v12 = vrot.slane %v14872_v19, 1  ;;  %vm14921_vm14 = vmmov %vm14911_vm5 }
 0x66c   :  { %v4547_v53 = vsel %vm14916_vm11, %v13434_v57, %v4545_v23  ;;  %v4293_v56 = vrot.slane %v14564_v50, 4  ;;  %vm14919_vm6 = vcmask 457728   ;;  %vm14920_vm2 = vcmask 1046534   ;;  %vm14924_vm7 = vmmov %vm14914_vm12 }
 0x66d   :  { %v12323_v48 = vsel %vm14919_vm6, %v4619_v28, %v14918_v41  ;;  %v4549_v9 = vsel %vm14920_vm2, %v13433_v61, %v4547_v53  ;;  %v12329_v11 = vsel %vm14921_vm14, %v4556_v36, %v4555_v0  ;;  %v4294_v63 = vrot.slane %v14557_v32, 3  ;;  %vm14925_vm12 = vmmov %vm14916_vm11 }
 0x66e   :  { %vm14923_vm5 = vcmask 1047559   ;;  %v4559_v39 = vsel %vm14924_vm7, %v4558_v54, %v12329_v11  ;;  %v4296_v27 = vrot.slane %v14560_v3, 2  ;;  %v4298_v24 = vrot.slane %v14883_v35, 1  ;;  %vm14926_vm11 = vmmov %vm14920_vm2 }
 0x66f   :  { %v4550_v19 = vsel %vm14923_vm5, %v14442_v34, %v4549_v9  ;;  %v4561_v6 = vsel %vm14925_vm12, %v4560_v49, %v4559_v39  ;;  %v4295_v25 = vsel %vm14915_vm10, %v4294_v63, %v4293_v56  ;;  %v4307_v21 = vrot.slane %v14584_v2, 4  ;;  %vm14927_vm6 = vmmov %vm14923_vm5 }
 0x670   :  { %v4308_v30 = vrot.slane %v14576_v29, 3  ;;  %v4563_v15 = vsel %vm14926_vm11, %v4562_v12, %v4561_v6  ;;  %v4297_v36 = vsel %vm14917_vm9, %v4296_v27, %v4295_v25  ;;  %v4310_v62 = vrot.slane %v14736_v8, 2  ;;  %vm14928_vm2 = vmmov %vm14921_vm14 }
 0x671   :  { %v4312_v54 = vrot.slane %v14886_v18, 1  ;;  %v4564_v28 = vsel %vm14927_vm6, %v14856_v37, %v4563_v15  ;;  %v4299_v23 = vsel %vm14928_vm2, %v4298_v24, %v4297_v36  ;;  %vm14929_vm14 = vmmov %vm14915_vm10  ;;  %v4315_v49 = vrot.slane %v14588_v33, 7 }
 0x672   :  { %v4309_v46 = vsel %vm14929_vm14, %v4308_v30, %v4307_v21  ;;  %v4573_v53 = vpack.c.b16 %v4564_v28, %v4550_v19  ;;  %vm14930_vm5 = vmmov %vm14917_vm9  ;;  %v4317_v12 = vrot.slane %v14734_v4, 6  ;;  %v4319_v56 = vrot.slane %v14882_v59, 5 }
 0x673   :  { %v4311_v0 = vsel %vm14930_vm5, %v4310_v62, %v4309_v46  ;;  %vm14931_vm7 = vmmov %vm14928_vm2  ;;  %vm14932_vm12 = vcmask 1044484   ;;  %v5153_v37 = vrot.slane %v14801_v13, 7  ;;  %v5155_v63 = vrot.slane %v14804_v45, 6 }
 0x674   :  { %v4313_v41 = vsel %vm14931_vm7, %v4312_v54, %v4311_v0  ;;  %v5152_v9 = vsel %vm14932_vm12, %v14800_v31, %v4299_v23  ;;  %4577 = vrot.lane.b32.xlu2 %v4573_v53, %s6136_s30  ;;  %vm14933_vm10 = vmmov %vm14932_vm12  ;;  %v5157_v39 = vrot.slane %v14805_v7, 5  ;;  %v5192_v27 = vrot.slane %v14610_v16, 5  ;;  %v12381_v0 = vpop.permute.xlu0 %4147 }
 0x675   :  { %v4314_v19 = vsel %vm14933_vm10, %v14580_v43, %v4313_v41  ;;  %v5193_v24 = vrot.slane %v14596_v26, 4  ;;  %vm14934_vm11 = vcmask 1045509   ;;  %v5195_v21 = vrot.slane %v14597_v40, 3  ;;  %14941 = vst [vmem:[#allocation86_spill] sm:$0xff] %v12381_v0  ;;  %v12383_v41 = vpop.permute.xlu2 %4842 }
 0x676   :  { %v4316_v6 = vsel %vm14934_vm11, %v4315_v49, %v4314_v19  ;;  %vm14935_vm9 = vmmov %vm14934_vm11  ;;  %v5197_v30 = vrot.slane %v14603_v1, 2  ;;  %vm14936_vm6 = vcmask 1046534   ;;  %v5203_v54 = vrot.slane %v14604_v52, 1  ;;  %14942 = vst [vmem:[#allocation42_spill] sm:$0xff] %v12383_v41  ;;  %v14946_v19 = vld [vmem:[#allocation41_spill] sm:$0xff] }
 0x677   :  { %v5154_v25 = vsel %vm14935_vm9, %v5153_v37, %v5152_v9  ;;  %v4318_v15 = vsel %vm14936_vm6, %v4317_v12, %v4316_v6  ;;  %vm14937_vm2 = vmmov %vm14936_vm6  ;;  %v5194_v62 = vsel %vm14929_vm14, %v5193_v24, %v5192_v27  ;;  %vm14938_vm5 = vcmask 1047559   ;;  %v14944_v37 = vld [vmem:[#allocation9_spill] sm:$0xff]  ;;  %v12389_v24 = vpop.permute.xlu1 %4774  ;;  %v14949_v6 = vld [vmem:[#allocation70_spill] sm:$0xff] }
 0x678   :  { %v5156_v36 = vsel %vm14937_vm2, %v5155_v63, %v5154_v25  ;;  %v4320_v28 = vsel %vm14938_vm5, %v4319_v56, %v4318_v15  ;;  %vm14939_vm7 = vmmov %vm14938_vm5  ;;  %vm14940_vm12 = vcmask 1042434   ;;  %v5206_v53 = vrot.slane %v14776_v42, 7 }
 0x679   :  { %v5158_v46 = vsel %vm14939_vm7, %v5157_v39, %v5156_v36  ;;  %v5196_v49 = vsel %vm14940_vm12, %v5195_v21, %v5194_v62  ;;  %vm14943_vm10 = vcmask 1043459   ;;  %vm14945_vm11 = vcmask 1044484   ;;  %v14951_v21 = vld [vmem:[#allocation67_spill] sm:$0xff] }
 0x67a   :  { %v5177_v9 = vpack.c.b16 %v4320_v28, %v5158_v46  ;;  %v5198_v12 = vsel %vm14943_vm10, %v5197_v30, %v5196_v49  ;;  %v5204_v63 = vsel %vm14945_vm11, %v5203_v54, %v14944_v37  ;;  %v5208_v27 = vrot.slane %v14946_v19, 6  ;;  %vm14948_vm9 = vmmov %vm14945_vm11  ;;  %v14955_v49 = vld [vmem:[#allocation90_spill] sm:$0xff] }
 0x67b   :  { %v14947_v56 = vrot.slane %v14424_v47, 1  ;;  %vm14950_vm6 = vcmask 1045509   ;;  %vm14952_vm2 = vmmov %vm14948_vm9  ;;  %v4301_v36 = vrot.slane %v14892_v51, 7  ;;  %vm14954_vm5 = vcmask 1046534  }
 0x67c   :  { %v5205_v25 = vsel %vm14950_vm6, %v14949_v6, %v5204_v63  ;;  %v4300_v15 = vsel %vm14952_vm2, %v14951_v21, %v4299_v23  ;;  %5179 = vrot.lane.b32.xlu0 %v5177_v9, %s14598_s5  ;;  %vm14953_vm14 = vmmov %vm14950_vm6  ;;  %v4303_v54 = vrot.slane %v14893_v17, 6  ;;  %v4305_v46 = vrot.slane %v14899_v55, 5 }
 0x67d   :  { %v5199_v39 = vsel %vm14948_vm9, %v14947_v56, %v5198_v12  ;;  %v5207_v62 = vsel %vm14954_vm5, %v5206_v53, %v5205_v25  ;;  %v12408_v12 = vsel %vm1733_vm15, %v12323_v48, %v14955_v49  ;;  %v14956_v23 = vrot.slane %v14435_v5, 7  ;;  %vm14957_vm7 = vmmov %vm14954_vm5 }
 0x67e   :  { %v5200_v30 = vsel %vm14953_vm14, %v14431_v38, %v5199_v39  ;;  %vm14958_vm12 = vcmask 1047559   ;;  %vm14959_vm10 = vmmov %vm14950_vm6  ;;  %v14960_v56 = vrot.slane %v14442_v34, 6  ;;  %vm14963_vm6 = vcmask 457728  }
 0x67f   :  { %v5201_v37 = vsel %vm14957_vm7, %v14956_v23, %v5200_v30  ;;  %v5209_v9 = vsel %vm14958_vm12, %v5208_v27, %v5207_v62  ;;  %v4302_v63 = vsel %vm14959_vm10, %v4301_v36, %v4300_v15  ;;  %vm14961_vm11 = vmmov %vm14958_vm12  ;;  %v12421_v25 = vsel %vm14963_vm6, %v12301_v20, %v3898_v10 }
 0x680   :  { %v5202_v53 = vsel %vm14961_vm11, %v14960_v56, %v5201_v37  ;;  %vm14962_vm9 = vmmov %vm14954_vm5  ;;  %v4437_v48 = vrot.slane %v14564_v50, 6  ;;  %v4438_v30 = vrot.slane %v14557_v32, 5  ;;  %v4440_v27 = vrot.slane %v14560_v3, 4  ;;  %v12435_v37 = vpop.permute.xlu0 %4976 }
 0x681   :  { %v4304_v39 = vsel %vm14962_vm9, %v4303_v54, %v4302_v63  ;;  %v5211_v49 = vpack.c.b16 %v5209_v9, %v5202_v53  ;;  %vm14964_vm2 = vmmov %vm14961_vm11  ;;  %v4442_v36 = vrot.slane %v14883_v35, 3  ;;  %v4451_v62 = vrot.slane %v14584_v2, 6  ;;  %v12437_v9 = vpop.permute.xlu2 %4218  ;;  %v12444_v53 = vpop.permute.xlu1 %4076 }
 0x682   :  { %v4306_v61 = vsel %vm14964_vm2, %v4305_v46, %v4304_v39  ;;  %v4452_v54 = vrot.slane %v14576_v29, 5  ;;  %vm14965_vm14 = vcmask 1041409   ;;  %v4454_v10 = vrot.slane %v14736_v8, 4  ;;  %14966 = vst [vmem:[#allocation38_spill] sm:$0xff] %v12437_v9 }
 0x683   :  { %v4356_v15 = vpack.c.b16 %v4320_v28, %v4306_v61  ;;  %5214 = vrot.lane.b32.xlu1 %v5211_v49, %s14548_s19  ;;  %v4439_v20 = vsel %vm14965_vm14, %v4438_v30, %v4437_v48  ;;  %v4456_v23 = vrot.slane %v14886_v18, 3  ;;  %v4458_v46 = vrot.slane %v14580_v43, 2  ;;  %vm14968_vm7 = vmmov %vm14965_vm14 }
 0x684   :  { %vm14967_vm5 = vcmask 1042434   ;;  %v4453_v28 = vsel %vm14968_vm7, %v4452_v54, %v4451_v62  ;;  %v4460_v63 = vrot.slane %v14588_v33, 1  ;;  %v4463_v56 = vrot.slane %v14882_v59, 7 }
 0x685   :  { %4359 = vrot.lane.b32.xlu2 %v4356_v15, %s6133_s27  ;;  %v4441_v61 = vsel %vm14967_vm5, %v4440_v27, %v4439_v20  ;;  %vm14969_vm12 = vcmask 1043459   ;;  %vm14970_vm10 = vmmov %vm14967_vm5  ;;  %v5218_v49 = vrot.slane %v14800_v31, 2  ;;  %v5220_v30 = vrot.slane %v14801_v13, 1 }
 0x686   :  { %v12447_v39 = vsel %vm14969_vm12, %v4442_v36, %v4441_v61  ;;  %v4455_v48 = vsel %vm14970_vm10, %v4454_v10, %v4453_v28  ;;  %vm14971_vm11 = vmmov %vm14969_vm12  ;;  %v5223_v27 = vrot.slane %v14805_v7, 7  ;;  %v5225_v62 = vrot.slane %v14610_v16, 6 }
 0x687   :  { %v4457_v15 = vsel %vm14971_vm11, %v4456_v23, %v4455_v48  ;;  %v5226_v54 = vrot.slane %v14596_v26, 5  ;;  %vm14972_vm9 = vcmask 1044484   ;;  %v5228_v61 = vrot.slane %v14597_v40, 4  ;;  %vm14976_vm5 = vmmov %vm14968_vm7 }
 0x688   :  { %v4459_v20 = vsel %vm14972_vm9, %v4458_v46, %v4457_v15  ;;  %vm14973_vm6 = vmmov %vm14972_vm9  ;;  %v5230_v10 = vrot.slane %v14603_v1, 3  ;;  %vm14974_vm2 = vcmask 1045509   ;;  %v5236_v48 = vrot.slane %v14604_v52, 2 }
 0x689   :  { %v5219_v36 = vsel %vm14973_vm6, %v5218_v49, %v12447_v39  ;;  %v4461_v28 = vsel %vm14974_vm2, %v4460_v63, %v4459_v20  ;;  %vm14975_vm14 = vmmov %vm14974_vm2  ;;  %v5227_v23 = vsel %vm14976_vm5, %v5226_v54, %v5225_v62  ;;  %vm14977_vm7 = vcmask 1046534   ;;  %v14982_v62 = vld [vmem:[#allocation77_spill] sm:$0xff] }
 0x68a   :  { %v5221_v57 = vsel %vm14975_vm14, %v5220_v30, %v5219_v36  ;;  %v4462_v14 = vsel %vm14977_vm7, %v14734_v4, %v4461_v28  ;;  %vm14978_vm12 = vmmov %vm14977_vm7  ;;  %v5229_v49 = vsel %vm14970_vm10, %v5228_v61, %v5227_v23  ;;  %v5238_v15 = vrot.slane %v14949_v6, 1  ;;  %v12484_v23 = vpop.permute.xlu2 %5046 }
 0x68b   :  { %v5222_v46 = vsel %vm14978_vm12, %v14804_v45, %v5221_v57  ;;  %vm14979_vm11 = vcmask 1047559   ;;  %vm14981_vm6 = vcmask 1043459   ;;  %vm14983_vm2 = vcmask 1044484   ;;  %14987 = vst [vmem:[#allocation89_spill] sm:$0xff] %v12484_v23  ;;  %vm14990_vm10 = vmmov %vm14978_vm12 }
 0x68c   :  { %v12472_v9 = vsel %vm14979_vm11, %v4463_v56, %v4462_v14  ;;  %vm14980_vm9 = vmmov %vm14979_vm11  ;;  %v5231_v30 = vsel %vm14981_vm6, %v5230_v10, %v5229_v49  ;;  %v5237_v54 = vsel %vm14983_vm2, %v5236_v48, %v14982_v62  ;;  %v14984_v36 = vrot.slane %v14424_v47, 2  ;;  %v12501_v62 = vpop.permute.xlu0 %4579 }
 0x68d   :  { %v5224_v63 = vsel %vm14980_vm9, %v5223_v27, %v5222_v46  ;;  %vm14985_vm14 = vmmov %vm14983_vm2  ;;  %vm14986_vm5 = vcmask 1045509   ;;  %v5241_v28 = vrot.slane %v14946_v19, 7  ;;  %v14988_v14 = vrot.slane %v14431_v38, 1  ;;  %v12493_v46 = vpop.permute.xlu1 %4943  ;;  %14992 = vst [vmem:[#allocation5_spill] sm:$0xff] %v12501_v62 }
 0x68e   :  { %v5243_v20 = vpack.c.b16 %v12472_v9, %v5224_v63  ;;  %v5232_v57 = vsel %vm14985_vm14, %v14984_v36, %v5231_v30  ;;  %v5239_v61 = vsel %vm14986_vm5, %v5238_v15, %v5237_v54  ;;  %vm14989_vm7 = vmmov %vm14986_vm5  ;;  %v4365_v10 = vrot.slane %v14564_v50, 5 }
 0x68f   :  { %v5233_v56 = vsel %vm14989_vm7, %v14988_v14, %v5232_v57  ;;  %v5240_v27 = vsel %vm14978_vm12, %v14776_v42, %v5239_v61  ;;  %v4366_v48 = vrot.slane %v14557_v32, 4  ;;  %vm14991_vm11 = vmmov %vm14980_vm9  ;;  %v4368_v63 = vrot.slane %v14560_v3, 3 }
 0x690   :  { %5245 = vrot.lane.b32.xlu0 %v5243_v20, %s14729_s9  ;;  %v5234_v49 = vsel %vm14990_vm10, %v14435_v5, %v5233_v56  ;;  %v5242_v15 = vsel %vm14991_vm11, %v5241_v28, %v5240_v27  ;;  %v4370_v30 = vrot.slane %v14883_v35, 2  ;;  %v14993_v54 = vrot.slane %v14442_v34, 7 }
 0x691   :  { %vm14994_vm6 = vcmask 1041409   ;;  %v4372_v61 = vrot.slane %v14951_v21, 1  ;;  %v4375_v20 = vrot.slane %v14893_v17, 7  ;;  %vm14995_vm2 = vcmask 1042434  }
 0x692   :  { %v5235_v36 = vsel %vm14980_vm9, %v14993_v54, %v5234_v49  ;;  %v4367_v57 = vsel %vm14994_vm6, %v4366_v48, %v4365_v10  ;;  %v4377_v28 = vrot.slane %v14899_v55, 6  ;;  %v4379_v27 = vrot.slane %v14584_v2, 5  ;;  %vm14998_vm12 = vmmov %vm14994_vm6  ;;  %v12538_v22 = vpop.permute.xlu2 %4289 }
 0x693   :  { %v5244_v14 = vpack.c.b16 %v5242_v15, %v5235_v36  ;;  %v4369_v56 = vsel %vm14995_vm2, %v4368_v63, %v4367_v57  ;;  %vm14996_vm14 = vcmask 1043459   ;;  %v4380_v44 = vrot.slane %v14576_v29, 4  ;;  %v14999_v57 = vld [vmem:[#allocation85_spill] sm:$0xff]  ;;  %vm15002_vm9 = vmmov %vm14995_vm2 }
 0x694   :  { %v12513_v0 = vsel %vm14996_vm14, %v4370_v30, %v4369_v56  ;;  %v4382_v49 = vrot.slane %v14736_v8, 3  ;;  %v4384_v10 = vrot.slane %v14886_v18, 2  ;;  %vm14997_vm5 = vcmask 1044484  }
 0x695   :  { %5247 = vrot.lane.b32.xlu1 %v5244_v14, %s14729_s9  ;;  %v4373_v48 = vsel %vm14997_vm5, %v4372_v61, %v12513_v0  ;;  %v4386_v15 = vrot.slane %v14580_v43, 1  ;;  %v4389_v63 = vrot.slane %v14734_v4, 7  ;;  %v4391_v54 = vrot.slane %v14882_v59, 6 }
 0x696   :  { %v4374_v30 = vsel %vm14989_vm7, %v14892_v51, %v4373_v48  ;;  %v4381_v36 = vsel %vm14998_vm12, %v4380_v44, %v4379_v27  ;;  %vm15000_vm10 = vcmask 64512   ;;  %v5258_v14 = vrot.slane %v14610_v16, 7  ;;  %v12544_v48 = vpop.permute.xlu1 %4507  ;;  %vm15005_vm7 = vmmov %vm14998_vm12 }
 0x697   :  { %v5286_v56 = vsel %vm15000_vm10, %v14999_v57, %v12389_v24  ;;  %vm15001_vm11 = vcmask 1046534   ;;  %v4383_v61 = vsel %vm15002_vm9, %v4382_v49, %v4381_v36  ;;  %vm15003_vm6 = vcmask 130048   ;;  %vm15007_vm10 = vmmov %vm15002_vm9 }
 0x698   :  { %v4376_v23 = vsel %vm15001_vm11, %v4375_v20, %v4374_v30  ;;  %v12535_v41 = vsel %vm15003_vm6, %v5286_v56, %v12332_v60  ;;  %v5259_v62 = vrot.slane %v14596_v26, 6  ;;  %vm15004_vm2 = vcmask 1047559   ;;  %vm15008_vm9 = vmmov %vm14996_vm14  ;;  %v15014_v56 = vld [vmem:[#allocation60_spill] sm:$0xff] }
 0x699   :  { %v4378_v44 = vsel %vm15004_vm2, %v4377_v28, %v4376_v23  ;;  %v4385_v27 = vsel %vm14996_vm14, %v4384_v10, %v4383_v61  ;;  %v5261_v24 = vrot.slane %v14597_v40, 5  ;;  %v5263_v16 = vrot.slane %v14603_v1, 4  ;;  %vm15009_vm6 = vmmov %vm14997_vm5 }
 0x69a   :  { %v4387_v20 = vsel %vm14997_vm5, %v4386_v15, %v4385_v27  ;;  %v5260_v49 = vsel %vm15005_vm7, %v5259_v62, %v5258_v14  ;;  %v5269_v60 = vrot.slane %v14604_v52, 3  ;;  %v5271_v26 = vrot.slane %v14949_v6, 2  ;;  %v12560_v15 = vpop.permute.xlu0 %5216  ;;  %vm15011_vm14 = vmmov %vm14997_vm5 }
 0x69b   :  { %vm15006_vm12 = vcmask 1045509   ;;  %v5262_v23 = vsel %vm15007_vm10, %v5261_v24, %v5260_v49  ;;  %v5273_v28 = vrot.slane %v14776_v42, 1  ;;  %v4444_v40 = vrot.slane %v14951_v21, 2  ;;  %vm15013_vm7 = vmmov %vm15009_vm6  ;;  %v12596_v49 = vpop.permute.xlu2 %5249 }
 0x69c   :  { %v4388_v30 = vsel %vm15006_vm12, %v14588_v33, %v4387_v20  ;;  %v5264_v10 = vsel %vm15008_vm9, %v5263_v16, %v5262_v23  ;;  %v5270_v62 = vsel %vm15009_vm6, %v5269_v60, %v12329_v11  ;;  %v4446_v52 = vrot.slane %v14892_v51, 1  ;;  %vm15012_vm5 = vmmov %vm15006_vm12 }
 0x69d   :  { %v4390_v1 = vsel %vm15001_vm11, %v4389_v63, %v4388_v30  ;;  %v15010_v36 = vrot.slane %v14424_v47, 3  ;;  %v5272_v57 = vsel %vm15012_vm5, %v5271_v26, %v5270_v62  ;;  %v4445_v63 = vsel %vm15013_vm7, %v4444_v40, %v12447_v39  ;;  %vm15016_vm12 = vmmov %vm15012_vm5 }
 0x69e   :  { %v12563_v6 = vsel %vm15004_vm2, %v4391_v54, %v4390_v1  ;;  %v4637_v11 = vsel %vm1740_vm0, %v12408_v12, %v15014_v56  ;;  %v15015_v61 = vrot.slane %v14431_v38, 2  ;;  %vm15017_vm10 = vmmov %vm15001_vm11  ;;  %v15018_v47 = vrot.slane %v14435_v5, 1  ;;  %v12603_v23 = vpop.permute.xlu1 %5183 }
 0x69f   :  { %v5265_v42 = vsel %vm15011_vm14, %v15010_v36, %v5264_v10  ;;  %v4428_v14 = vpack.c.b16 %v12563_v6, %v4378_v44  ;;  %v5274_v27 = vsel %vm15017_vm10, %v5273_v28, %v5272_v57  ;;  %vm15019_vm11 = vmmov %vm15017_vm10  ;;  %v4449_v20 = vrot.slane %v14899_v55, 7 }
 0x6a0   :  { %v5266_v54 = vsel %vm15016_vm12, %v15015_v61, %v5265_v42  ;;  %vm15020_vm9 = vmmov %vm15004_vm2  ;;  %v12592_v12 = vsel %vm1733_vm15, %v12421_v25, %v12444_v53  ;;  %v4509_v5 = vrot.slane %v14564_v50, 7  ;;  %v4510_v44 = vrot.slane %v14557_v32, 6  ;;  %v15037_v61 = vld [vmem:[#allocation15_spill] sm:$0xff] }
 0x6a1   :  { %v5267_v24 = vsel %vm15019_vm11, %v15018_v47, %v5266_v54  ;;  %v5275_v16 = vsel %vm15020_vm9, %v14946_v19, %v5274_v27  ;;  %vm15021_vm6 = vmmov %vm15012_vm5  ;;  %4431 = vrot.lane.b32.xlu2 %v4428_v14, %s6134_s28  ;;  %v15022_v19 = vld [vmem:[#allocation8_spill] sm:$0xff]  ;;  %vm15023_vm14 = vcmask 654336   ;;  %vm15026_vm12 = vcmask 1041409  }
 0x6a2   :  { %v4447_v39 = vsel %vm15021_vm6, %v4446_v52, %v4445_v63  ;;  %v5268_v38 = vsel %vm15004_vm2, %v14442_v34, %v5267_v24  ;;  %v4643_v60 = vsel %vm15023_vm14, %v4637_v11, %v15022_v19  ;;  %vm15024_vm5 = vmmov %vm15017_vm10  ;;  %v4512_v34 = vrot.slane %v14560_v3, 5  ;;  %v4909_v63 = vpop.permute.xlu0 %4908  ;;  %v15040_v24 = vld [vmem:[#allocation58_spill] sm:$0xff] }
 0x6a3   :  { %v5277_v26 = vpack.c.b16 %v5275_v16, %v5268_v38  ;;  %v4448_v30 = vsel %vm15024_vm5, %v14893_v17, %v4447_v39  ;;  %vm15025_vm7 = vmmov %vm15004_vm2  ;;  %v4511_v53 = vsel %vm15026_vm12, %v4510_v44, %v4509_v5  ;;  %v4514_v50 = vrot.slane %v14883_v35, 4  ;;  %v4942_v14 = vpop.permute.xlu2 %4941  ;;  %v15041_v16 = vld [vmem:[#allocation46_spill] sm:$0xff]  ;;  %v15048_v44 = vld [vmem:[#allocation56_spill] sm:$0xff] }
 0x6a4   :  { %v4450_v25 = vsel %vm15025_vm7, %v4449_v20, %v4448_v30  ;;  %v4516_v32 = vrot.slane %v14951_v21, 3  ;;  %v4649_v28 = vsel %vm1754_vm4, %v4643_v60, %v12277_v58  ;;  %vm15027_vm10 = vcmask 1042434   ;;  %vm15030_vm6 = vmmov %vm15026_vm12  ;;  %v15042_v39 = vld [vmem:[#allocation10_spill] sm:$0xff] }
 0x6a5   :  { %5280 = vrot.lane.b32.xlu1 %v5277_v26, %s14797_s29  ;;  %v4500_v40 = vpack.c.b16 %v12472_v9, %v4450_v25  ;;  %v4513_v1 = vsel %vm15027_vm10, %v4512_v34, %v4511_v53  ;;  %v4523_v3 = vrot.slane %v14584_v2, 7  ;;  %vm15028_vm11 = vcmask 1043459   ;;  %vm15031_vm2 = vmmov %vm15027_vm10  ;;  %v15055_v53 = vld [vmem:[#allocation26_spill] sm:$0xff] }
 0x6a6   :  { %v4515_v10 = vsel %vm15028_vm11, %v4514_v50, %v4513_v1  ;;  %v4524_v62 = vrot.slane %v14576_v29, 6  ;;  %v4526_v52 = vrot.slane %v14736_v8, 5  ;;  %v4528_v35 = vrot.slane %v14886_v18, 4  ;;  %vm15034_vm5 = vmmov %vm15028_vm11  ;;  %v4876_v47 = vpop.permute.xlu1 %4875 }
 0x6a7   :  { %vm15029_vm9 = vcmask 1044484   ;;  %v4518_v58 = vrot.slane %v14892_v51, 2  ;;  %v4520_v36 = vrot.slane %v14893_v17, 1  ;;  %v4530_v9 = vrot.slane %v14580_v43, 3  ;;  %v15032_v51 = vld [vmem:[#allocation22_spill] sm:$0xff] }
 0x6a8   :  { %v4517_v21 = vsel %vm15029_vm9, %v4516_v32, %v4515_v10  ;;  %v4525_v42 = vsel %vm15030_vm6, %v4524_v62, %v4523_v3  ;;  %v4532_v2 = vrot.slane %v14588_v33, 2  ;;  %v5185_v57 = vrot.slane %v14800_v31, 1  ;;  %vm15035_vm7 = vmmov %vm15029_vm9  ;;  %v15058_v3 = vld [vmem:[#allocation28_spill] sm:$0xff] }
 0x6a9   :  { %v5188_v29 = vrot.slane %v14804_v45, 7  ;;  %v4527_v8 = vsel %vm15031_vm2, %v4526_v52, %v4525_v42  ;;  %v4534_v18 = vrot.slane %v14734_v4, 1  ;;  %v5190_v56 = vrot.slane %v14805_v7, 6  ;;  %4503 = vrot.lane.b32.xlu2 %v4500_v40, %s14568_s6  ;;  %vm15038_vm10 = vmmov %vm15035_vm7  ;;  %v15060_v52 = vld [vmem:[#allocation5_spill] sm:$0xff] }
 0x6aa   :  { %vm15033_vm14 = vcmask 392192   ;;  %v4529_v43 = vsel %vm15034_vm5, %v4528_v35, %v4527_v8  ;;  %v5186_v33 = vsel %vm15035_vm7, %v5185_v57, %v12513_v0  ;;  %vm15036_vm12 = vcmask 457728   ;;  %v15073_v57 = vld [vmem:[#allocation55_spill] sm:$0xff] }
 0x6ab   :  { %v5320_v17 = vsel %vm15033_vm14, %v15032_v51, %v12493_v46  ;;  %v4655_v4 = vsel %vm1761_vm3, %v4649_v28, %v15037_v61  ;;  %v4531_v54 = vsel %vm15038_vm10, %v4530_v9, %v4529_v43  ;;  %vm15039_vm11 = vcmask 1045509  }
 0x6ac   :  { %v5326_v11 = vsel %vm15036_vm12, %v5320_v17, %v12435_v37  ;;  %v5187_v27 = vsel %vm15039_vm11, %v14801_v13, %v5186_v33  ;;  %v5251_v46 = vrot.slane %v14800_v31, 3  ;;  %v15043_v20 = vpack.c.b16 %v15041_v16, %v15042_v39  ;;  %vm15045_vm6 = vmmov %vm15039_vm11  ;;  %v15082_v39 = vld [vmem:[#allocation31_spill] sm:$0xff] }
 0x6ad   :  { %vm15044_vm9 = vcmask 64512   ;;  %v4519_v37 = vsel %vm15045_vm6, %v4518_v58, %v4517_v21  ;;  %vm15046_vm2 = vmmov %vm15045_vm6  ;;  %vm15047_vm14 = vcmask 1046534   ;;  %vm15049_vm5 = vcmask 130048   ;;  %v15064_v21 = vld [vmem:[#allocation100_spill] sm:$0xff]  ;;  %v15068_v58 = vld [vmem:[#allocation89_spill] sm:$0xff] }
 0x6ae   :  { %v4583_v0 = vsel %vm15044_vm9, %v15043_v20, %v15040_v24  ;;  %v4533_v38 = vsel %vm15046_vm2, %v4532_v2, %v4531_v54  ;;  %v5189_v5 = vsel %vm15047_vm14, %v5188_v29, %v5187_v27  ;;  %vm15050_vm7 = vmmov %vm15047_vm14  ;;  %vm15052_vm10 = vcmask 1047559  }
 0x6af   :  { %v4591_v19 = vsel %vm15049_vm5, %v4583_v0, %v15048_v44  ;;  %v4521_v60 = vsel %vm15050_vm7, %v4520_v36, %v4519_v37  ;;  %vm15051_vm12 = vmmov %vm15050_vm7  ;;  %v5191_v26 = vsel %vm15052_vm10, %v5190_v56, %v5189_v5  ;;  %v5253_v25 = vrot.slane %v14801_v13, 2  ;;  %v15062_v13 = vld [vmem:[#allocation42_spill] sm:$0xff]  ;;  %v3896_v56 = vpop.permute.xlu1 %3895 }
 0x6b0   :  { %v4535_v31 = vsel %vm15051_vm12, %v4534_v18, %v4533_v38  ;;  %vm15053_vm11 = vmmov %vm15052_vm10  ;;  %v4661_v50 = vsel %vm1768_vm1, %v4655_v4, %v15055_v53  ;;  %vm15056_vm6 = vcmask 1044484   ;;  %v5255_v40 = vrot.slane %v14804_v45, 1  ;;  %v4146_v18 = vpop.permute.xlu2 %4145 }
 0x6b1   :  { %v4522_v30 = vsel %vm15053_vm11, %v14899_v55, %v4521_v60  ;;  %vm15054_vm9 = vmmov %vm15052_vm10  ;;  %v5252_v28 = vsel %vm15056_vm6, %v5251_v46, %v4515_v10  ;;  %vm15057_vm2 = vcmask 916480   ;;  %vm15059_vm14 = vcmask 195584  }
 0x6b2   :  { %v4536_v34 = vsel %vm15054_vm9, %v14882_v59, %v4535_v31  ;;  %v4667_v1 = vsel %vm15057_vm2, %v4661_v50, %v12544_v48  ;;  %v4597_v62 = vsel %vm15059_vm14, %v4591_v19, %v15058_v3  ;;  %v5210_v55 = vpack.c.b16 %v12563_v6, %v5191_v26  ;;  %vm15063_vm7 = vmmov %vm15059_vm14  ;;  %v15069_v6 = vld [vmem:[#allocation30_spill] sm:$0xff] }
 0x6b3   :  { %v4572_v32 = vpack.c.b16 %v4536_v34, %v4522_v30  ;;  %vm15061_vm5 = vcmask 982016   ;;  %v5300_v35 = vsel %vm15063_vm7, %v12535_v41, %v15062_v13  ;;  %vm15065_vm12 = vcmask 261120   ;;  %v4075_v41 = vpop.permute.xlu0 %4074 }
 0x6b4   :  { %v4675_v59 = vsel %vm15061_vm5, %v4667_v1, %v15060_v52  ;;  %v4603_v10 = vsel %vm15065_vm12, %v4597_v62, %v15064_v21  ;;  %vm15066_vm10 = vcmask 1041408   ;;  %vm15067_vm11 = vmmov %vm15065_vm12  ;;  %v5332_v36 = vsel %vm1733_vm15, %v5326_v11, %v15068_v58  ;;  %5212 = vrot.lane.b32.xlu2 %v5210_v55, %s14548_s19  ;;  %s15117_s19 = smov 17  }
 0x6b5   :  { %4575 = vrot.lane.b32.xlu1 %v4572_v32, %s6136_s30  ;;  %v5379_v45 = vsel %vm15066_vm10, %v4675_v59, 0  ;;  %v5306_v48 = vsel %vm15067_vm11, %v5300_v35, %v4876_v47  ;;  %vm15070_vm9 = vcmask 326656   ;;  %vm15071_vm6 = vcmask 1045509   ;;  %v15079_v47 = vld [vmem:[#allocation33_spill] sm:$0xff] }
 0x6b6   :  { %v4609_v9 = vsel %vm15070_vm9, %v4603_v10, %v15069_v6  ;;  %v5254_v42 = vsel %vm15071_vm6, %v5253_v25, %v5252_v28  ;;  %5386 = vmatpush.bf16.msrb.mxu3 %v5379_v45  ;;  %vm15072_vm2 = vmmov %vm15070_vm9  ;;  %vm15074_vm14 = vcmask 392192   ;;  %vm15075_vm5 = vcmask 1046534  }
 0x6b7   :  { %v5312_v2 = vsel %vm15072_vm2, %v5306_v48, %v4909_v63  ;;  %v4615_v29 = vsel %vm15074_vm14, %v4609_v9, %v15073_v57  ;;  %v5256_v8 = vsel %vm15075_vm5, %v5255_v40, %v5254_v42  ;;  %vm15076_vm7 = vcmask 1047559   ;;  %v5081_v63 = vpop.permute.xlu1 %5080  ;;  %vm15083_vm9 = vmmov %vm15074_vm14 }
 0x6b8   :  { %v5257_v51 = vsel %vm15076_vm7, %v14805_v7, %v5256_v8  ;;  %vm15077_vm12 = vcmask 457728   ;;  %v5338_v4 = vsel %vm1740_vm0, %v5332_v36, %v5081_v63  ;;  %v5149_v54 = vpop.permute.xlu2 %5148  ;;  %vm15078_vm10 = vcmask 654336   ;;  %v15080_v7 = vld [vmem:[#allocation45_spill] sm:$0xff] }
 0x6b9   :  { %v4621_v17 = vsel %vm15077_vm12, %v4615_v29, %v3896_v56  ;;  %v5276_v11 = vpack.c.b16 %v4536_v34, %v5257_v51  ;;  %vm15081_vm11 = vmmov %vm15078_vm10  ;;  %v5318_v37 = vsel %vm15083_vm9, %v5312_v2, %v4942_v14  ;;  %vm15084_vm6 = vcmask 916480   ;;  %v15088_v34 = vld [vmem:[#allocation86_spill] sm:$0xff] }
 0x6ba   :  { %v4627_v43 = vsel %vm1733_vm15, %v4621_v17, %v4075_v41  ;;  %v5346_v24 = vsel %vm15081_vm11, %v15080_v7, %v15079_v47  ;;  %vm15085_vm2 = vcmask 982016   ;;  %vm15086_vm14 = vcmask 1041408   ;;  %vm15087_vm5 = vmmov %vm15077_vm12 }
 0x6bb   :  { %v4633_v33 = vsel %vm1740_vm0, %v4627_v43, %v4146_v18  ;;  %v5115_v61 = vpop.permute.xlu0 %5114  ;;  %v5352_v20 = vsel %vm1754_vm4, %v5346_v24, %v15082_v39  ;;  %vm15090_vm7 = vmmov %vm15078_vm10  ;;  %v15103_v24 = vld [vmem:[#allocation32_spill] sm:$0xff] }
 0x6bc   :  { %v5344_v27 = vsel %vm15078_vm10, %v5338_v4, %v5115_v61  ;;  %v5358_v0 = vsel %vm1761_vm3, %v5352_v20, %v12603_v23  ;;  %v4635_v23 = vsel %vm1740_vm0, %v12592_v12, %v15088_v34  ;;  %vm15091_vm12 = vmmov %vm15084_vm6  ;;  %v6093_v61 = vld [vmem:[%s13006_s1] sm:$0xf]  ;;  %s15104_s1 = smov 105  }
 0x6bd   :  { %5278 = vrot.lane.b32.xlu1 %v5276_v11, %s14797_s29  ;;  %v5350_v46 = vsel %vm1754_vm4, %v5344_v27, %v5149_v54  ;;  %v5364_v38 = vsel %vm1768_vm1, %v5358_v0, %v12560_v15  ;;  %v15089_v15 = vld [vmem:[#allocation38_spill] sm:$0xff]  ;;  %vm15092_vm10 = vmmov %vm15085_vm2 }
 0x6be   :  { %v5370_v44 = vsel %vm15084_vm6, %v5364_v38, %v12596_v49  ;;  %v4641_v25 = vsel %vm15090_vm7, %v4635_v23, %v15089_v15  ;;  %vm15093_vm11 = vmmov %vm15084_vm6 }
 0x6bf   :  { %v4362_v16 = vpop.permute.xlu1 %4361  ;;  %v4647_v49 = vsel %vm1754_vm4, %v4641_v25, %v12538_v22  ;;  %vm15094_vm9 = vmmov %vm15085_vm2 }
 0x6c0   :  { %v5045_v26 = vpop.permute.xlu2 %5044  ;;  %v4653_v53 = vsel %vm1761_vm3, %v4647_v49, %v4362_v16  ;;  %vm15095_vm6 = vmmov %vm15090_vm7  ;;  %vm15099_vm7 = vcmask 293888  }
 0x6c3   :  { %v4434_v50 = vpop.permute.xlu0 %4433 }
 0x6c4   :  { %v4659_v32 = vsel %vm1768_vm1, %v4653_v53, %v4434_v50 }
 0x6c7   :  { %v5283_v5 = vpop.permute.xlu1 %5282 }
 0x6c8   :  { %v5378_v19 = vsel %vm15085_vm2, %v5370_v44, %v5283_v5  ;;  %vm15096_vm2 = vmmov %vm15093_vm11 }
 0x6c9   :  { %v5394_v60 = vsel %vm15086_vm14, %v5378_v19, 0  ;;  %vm15097_vm14 = vmmov %vm15094_vm9 }
 0x6ca   :  { %5401 = vmatpush.bf16.msrb.mxu0 %v5394_v60 }
 0x6cb   :  { %v4217_v12 = vpop.permute.xlu0 %4216 }
 0x6cc   :  { %v4639_v9 = vsel %vm15095_vm6, %v4633_v33, %v4217_v12 }
 0x6ce   :  { %v4578_v40 = vpop.permute.xlu2 %4577 }
 0x6cf   :  { %v4975_v31 = vpop.permute.xlu1 %4974 }
 0x6d0   :  { %v5324_v30 = vsel %vm15087_vm5, %v5318_v37, %v4975_v31  ;;  %vm15098_vm5 = vmmov %vm15095_vm6  ;;  %vm15124_vm6 = vcmask 326656  }
 0x6d1   :  { %v5330_v14 = vsel %vm1733_vm15, %v5324_v30, %v5045_v26 }
 0x6d3   :  { %v5182_v62 = vpop.permute.xlu0 %5181 }
 0x6d4   :  { %v5356_v45 = vsel %vm1761_vm3, %v5350_v46, %v5182_v62 }
 0x6d7   :  { %v4506_v28 = vpop.permute.xlu1 %4505 }
 0x6d8   :  { %v4665_v1 = vsel %vm15091_vm12, %v4659_v32, %v4506_v28  ;;  %vm15100_vm12 = vmmov %vm15096_vm2 }
 0x6d9   :  { %v4672_v3 = vsel %vm15092_vm10, %v4665_v1, %v4578_v40  ;;  %vm15101_vm10 = vmmov %vm15094_vm9 }
 0x6da   :  { %5387 = vmatpush.bf16.msrb.mxu3 %v4672_v3 }
 0x6db   :  { %v5079_v52 = vpop.permute.xlu0 %5078 }
 0x6dc   :  { %v5336_v56 = vsel %vm1740_vm0, %v5330_v14, %v5079_v52 }
 0x6df   :  { %v4288_v55 = vpop.permute.xlu1 %4287  ;;  %v4360_v13 = vpop.permute.xlu2 %4359 }
 0x6e0   :  { %v4645_v42 = vsel %vm1754_vm4, %v4639_v9, %v4288_v55 }
 0x6e1   :  { %v4651_v2 = vsel %vm1761_vm3, %v4645_v42, %v4360_v13 }
 0x6e3   :  { %v5113_v35 = vpop.permute.xlu0 %5112 }
 0x6e4   :  { %v5342_v17 = vsel %vm15098_vm5, %v5336_v56, %v5113_v35 }
 0x6eb   :  { %v5147_v10 = vpop.permute.xlu0 %5146 }
 0x6ec   :  { %v5348_v43 = vsel %vm1754_vm4, %v5342_v17, %v5147_v10  ;;  %vm15122_vm4 = vcmask 195584  }
 0x6f3   :  { %v5180_v57 = vpop.permute.xlu0 %5179 }
 0x6f4   :  { %v5354_v33 = vsel %vm1761_vm3, %v5348_v43, %v5180_v57  ;;  %vm15121_vm3 = vcmask 130048  }
 0x6f5   :  { %v5215_v59 = vpop.permute.xlu1 %5214 }
 0x6f6   :  { %v5362_v48 = vsel %vm1768_vm1, %v5356_v45, %v5215_v59 }
 0x6fb   :  { %v4432_v21 = vpop.permute.xlu2 %4431 }
 0x6fc   :  { %v4657_v29 = vsel %vm1768_vm1, %v4651_v2, %v4432_v21 }
 0x702   :  { %v5246_v63 = vpop.permute.xlu0 %5245 }
 0x703   :  { %v4504_v41 = vpop.permute.xlu2 %4503 }
 0x704   :  { %v4663_v18 = vsel %vm15096_vm2, %v4657_v29, %v4504_v41  ;;  %vm15125_vm2 = vcmask 392192  }
 0x707   :  { %v5248_v22 = vpop.permute.xlu1 %5247 }
 0x708   :  { %v5368_v58 = vsel %vm15093_vm11, %v5362_v48, %v5248_v22  ;;  %vm15102_vm11 = vmmov %vm15099_vm7 }
 0x70e   :  { %v5213_v11 = vpop.permute.xlu2 %5212 }
 0x70f   :  { %v5360_v4 = vsel %vm1768_vm1, %v5354_v33, %v5213_v11  ;;  %vm15120_vm1 = vcmask 64512  }
 0x710   :  { %v5366_v54 = vsel %vm15100_vm12, %v5360_v4, %v5246_v63  ;;  %vm15127_vm5 = vmmov %vm15120_vm1 }
 0x711   :  { %vm15129_vm12 = vmmov %vm15122_vm4 }
 0x717   :  { %v5281_v36 = vpop.permute.xlu1 %5280 }
 0x718   :  { %v5375_v6 = vsel %vm15094_vm9, %v5368_v58, %v5281_v36  ;;  %vm15123_vm9 = vcmask 261120  }
 0x719   :  { %5402 = vmatpush.bf16.msrb.mxu0 %v5375_v6 }
 0x727   :  { %v4576_v8 = vpop.permute.xlu1 %4575 }
 0x728   :  { %v4669_v51 = vsel %vm15097_vm14, %v4663_v18, %v4576_v8  ;;  %vm15126_vm14 = vcmask 457728  }
 0x729   :  { %5388 = vmatpush.bf16.msrb.mxu3 %v4669_v51 }
 0x72c   :  { %6040 = vmatmul.msk.bf16.vlgmr.msrb.gmra.mxu3 %vm15099_vm7, %v6093_v61  ;;  %vm15128_vm7 = vmmov %vm15121_vm3 }
 0x72f   :  { %v5279_v27 = vpop.permute.xlu1 %5278 }
 0x730   :  { %v5372_v46 = vsel %vm15101_vm10, %v5366_v54, %v5279_v27  ;;  %vm15130_vm10 = vmmov %vm15123_vm9 }
 0x731   :  { %5403 = vmatpush.bf16.msrb.mxu0 %v5372_v46 }
 0x734   :  { %6041 = vmatmul.msk.bf16.vlgmr.msrb.gmra.mxu0 %vm15102_vm11, %v6093_v61  ;;  %vm15131_vm11 = vmmov %vm15124_vm6 }
 0x7af   :  { %v5390_v47 = vpop.f32.mrf.mxu3 }
 0x7b0   :  { %v5391_v16 = vadd.f32 %v5390_v47, %v15103_v24 }
 0x7b1   :  { %v5405_v7 = vpop.f32.mrf.mxu0 }
 0x7b2   :  { %v5406_v39 = vadd.f32 %v5405_v7, %v15103_v24  ;;  %v5409_v0 = vmax.f32 %v5391_v16, 0.0 }
 0x7b4   :  { %v5411_v20 = vmax.f32 %v5406_v39, 0.0  ;;  %v12752_v19 = vpack.c.bf16 %v5409_v0, %v5409_v0 }
 0x7b6   :  { %v5412_v37 = vpack.c.bf16 %v5411_v20, %v5411_v20  ;;  %v5427_v31 = vunpack.c.l.b16 %v12752_v19 }
 0x7b7   :  { %v5392_v38 = vpop.f32.mrf.mxu3 }
 0x7b8   :  { %v5414_v5 = vunpack.c.l.b16 %v5412_v37  ;;  %v5428_v26 = vpack.c.b16 %v5427_v31, %v5427_v31 }
 0x7b9   :  { %v5407_v44 = vpop.f32.mrf.mxu0 }
 0x7ba   :  { %v12754_v60 = vpack.c.b16 %v5414_v5, %v5414_v5 }
 0x7bc   :  { %5508 = vrot.lane.b32.xlu1 %v12754_v60, %s6130_s24  ;;  %5482 = vrot.lane.b32.xlu0 %v12754_v60, %s6132_s26 }
 0x7bd   :  { %5456 = vrot.lane.b32.xlu2 %v12754_v60, %s6134_s28 }
 0x7c4   :  { %5454 = vrot.lane.b32.xlu1 %v5428_v26, %s6134_s28  ;;  %5534 = vrot.lane.b32.xlu0 %v12754_v60, %s6128_s22  ;;  %s15106_s28 = smov 73  }
 0x7c5   :  { %5444 = vrot.lane.b32.xlu2 %v12754_v60, %s15104_s1 }
 0x7cc   :  { %5480 = vrot.lane.b32.xlu1 %v5428_v26, %s6132_s26  ;;  %5560 = vrot.lane.b32.xlu0 %v12754_v60, %s6126_s20  ;;  %s15107_s26 = smov 57  }
 0x7cd   :  { %5470 = vrot.lane.b32.xlu2 %v12754_v60, %s15105_s14 }
 0x7d4   :  { %5506 = vrot.lane.b32.xlu1 %v5428_v26, %s6130_s24  ;;  %5586 = vrot.lane.b32.xlu0 %v12754_v60, %s6124_s17  ;;  %s15108_s24 = smov 41  }
 0x7d5   :  { %5496 = vrot.lane.b32.xlu2 %v12754_v60, %s15106_s28 }
 0x7dc   :  { %5532 = vrot.lane.b32.xlu1 %v5428_v26, %s6128_s22  ;;  %5612 = vrot.lane.b32.xlu0 %v12754_v60, %s6122_s15 }
 0x7dd   :  { %5522 = vrot.lane.b32.xlu2 %v12754_v60, %s15107_s26 }
 0x7e4   :  { %5452 = vrot.lane.b32.xlu1 %v12754_v60, %s14568_s6  ;;  %5450 = vrot.lane.b32.xlu0 %v5428_v26, %s14568_s6  ;;  %s15118_s6 = smov 121  }
 0x7e5   :  { %5548 = vrot.lane.b32.xlu2 %v12754_v60, %s15108_s24 }
 0x7ec   :  { %5440 = vrot.lane.b32.xlu1 %v12754_v60, %s15109_s12  ;;  %5574 = vrot.lane.b32.xlu0 %v12754_v60, %s15110_s0 }
 0x7ed   :  { %5558 = vrot.lane.b32.xlu2 %v5428_v26, %s6126_s20 }
 0x7f4   :  { %5584 = vrot.lane.b32.xlu1 %v5428_v26, %s6124_s17  ;;  %5478 = vrot.lane.b32.xlu0 %v12754_v60, %s6133_s27 }
 0x7f5   :  { %5476 = vrot.lane.b32.xlu2 %v5428_v26, %s6133_s27  ;;  %s15114_s27 = smov 65  }
 0x7fc   :  { %5502 = vrot.lane.b32.xlu1 %v5428_v26, %s6131_s25  ;;  %5466 = vrot.lane.b32.xlu0 %v12754_v60, %s15111_s10 }
 0x7fd   :  { %5600 = vrot.lane.b32.xlu2 %v12754_v60, %s15112_s11 }
 0x804   :  { %5492 = vrot.lane.b32.xlu1 %v12754_v60, %s15113_s2  ;;  %5610 = vrot.lane.b32.xlu0 %v5428_v26, %s6122_s15 }
 0x805   :  { %5504 = vrot.lane.b32.xlu2 %v12754_v60, %s6131_s25  ;;  %s15115_s25 = smov 49  }
 0x80c   :  { %5431 = vrot.lane.b32.xlu1 %v12754_v60, %s6136_s30  ;;  %5530 = vrot.lane.b32.xlu0 %v12754_v60, %s6129_s23 }
 0x80d   :  { %5528 = vrot.lane.b32.xlu2 %v5428_v26, %s6129_s23 }
 0x814   :  { %5556 = vrot.lane.b32.xlu1 %v12754_v60, %s6127_s21  ;;  %5554 = vrot.lane.b32.xlu0 %v5428_v26, %s6127_s21 }
 0x815   :  { %5518 = vrot.lane.b32.xlu2 %v12754_v60, %s15114_s27 }
 0x817   :  { %v12817_v30 = vpop.permute.xlu2 %5456 }
 0x81c   :  { %5582 = vrot.lane.b32.xlu1 %v12754_v60, %s6125_s18  ;;  %5580 = vrot.lane.b32.xlu0 %v5428_v26, %s6125_s18 }
 0x81d   :  { %5544 = vrot.lane.b32.xlu2 %v12754_v60, %s15115_s25 }
 0x81f   :  { %v5445_v34 = vpop.permute.xlu2 %5444 }
 0x820   :  { %v5447_v32 = vsel %vm2543_vm8, 0, %v5445_v34 }
 0x824   :  { %5608 = vrot.lane.b32.xlu1 %v12754_v60, %s6123_s16  ;;  %5606 = vrot.lane.b32.xlu0 %v5428_v26, %s6123_s16 }
 0x825   :  { %5570 = vrot.lane.b32.xlu2 %v12754_v60, %s15116_s8 }
 0x827   :  { %v5471_v23 = vpop.permute.xlu2 %5470 }
 0x828   :  { %v5473_v12 = vsel %vm2543_vm8, 0, %v5471_v23 }
 0x82c   :  { %5429 = vrot.lane.b32.xlu1 %v5428_v26, %s6136_s30  ;;  %5596 = vrot.lane.b32.xlu0 %v12754_v60, %s15117_s19  ;;  %s15119_s30 = smov 1  }
 0x82d   :  { %5420 = vrot.lane.b32.xlu2 %v12754_v60, %s15118_s6 }
 0x82e   :  { %v12834_v14 = vpop.permute.xlu1 %5508  ;;  %v12836_v15 = vpop.permute.xlu0 %5482 }
 0x82f   :  { %v5497_v25 = vpop.permute.xlu2 %5496 }
 0x830   :  { %v5499_v13 = vsel %vm2543_vm8, 0, %v5497_v25 }
 0x834   :  { %5660 = vrot.lane.b32.xlu1 %v12834_v14, %s6124_s17  ;;  %5647 = vrot.lane.b32.xlu0 %v12836_v15, %s6123_s16 }
 0x835   :  { %5634 = vrot.lane.b32.xlu2 %v12817_v30, %s6122_s15 }
 0x836   :  { %v5455_v49 = vpop.permute.xlu1 %5454  ;;  %v12844_v53 = vpop.permute.xlu0 %5534 }
 0x837   :  { %v5523_v50 = vpop.permute.xlu2 %5522  ;;  %v12848_v28 = vsel %vm2560_vm13, %v5447_v32, %v5455_v49 }
 0x838   :  { %v5525_v35 = vsel %vm2543_vm8, 0, %v5523_v50 }
 0x83c   :  { %5632 = vrot.lane.b32.xlu1 %v12848_v28, %s6122_s15 }
 0x83d   :  { %5673 = vrot.lane.b32.xlu2 %v12844_v53, %s6125_s18 }
 0x83e   :  { %v5481_v40 = vpop.permute.xlu1 %5480  ;;  %v12854_v1 = vpop.permute.xlu0 %5560 }
 0x83f   :  { %5686 = vrot.lane.b32.xlu0 %v12854_v1, %s6126_s20  ;;  %v5549_v3 = vpop.permute.xlu2 %5548  ;;  %v12860_v62 = vsel %vm2560_vm13, %v5473_v12, %v5481_v40 }
 0x840   :  { %v5551_v58 = vsel %vm2543_vm8, 0, %v5549_v3 }
 0x846   :  { %v5507_v55 = vpop.permute.xlu1 %5506  ;;  %v12862_v52 = vpop.permute.xlu0 %5586 }
 0x847   :  { %5699 = vrot.lane.b32.xlu2 %v12862_v52, %s6127_s21  ;;  %5645 = vrot.lane.b32.xlu0 %v12860_v62, %s6123_s16  ;;  %v5559_v59 = vpop.permute.xlu2 %5558  ;;  %v12871_v22 = vsel %vm2560_vm13, %v5499_v13, %v5507_v55 }
 0x848   :  { %v12883_v9 = vsel %vm2560_vm13, %v5551_v58, %v5559_v59 }
 0x84e   :  { %v5533_v21 = vpop.permute.xlu1 %5532  ;;  %v5613_v10 = vpop.permute.xlu0 %5612 }
 0x84f   :  { %v12874_v45 = vsel %vm2560_vm13, %v5525_v35, %v5533_v21  ;;  %5712 = vrot.lane.b32.xlu1 %v5613_v10, %s6128_s22  ;;  %5658 = vrot.lane.b32.xlu2 %v12871_v22, %s6124_s17  ;;  %v5477_v48 = vpop.permute.xlu2 %5476 }
 0x850   :  { %5671 = vrot.lane.b32.xlu0 %v12874_v45, %s6125_s18 }
 0x856   :  { %v5453_v36 = vpop.permute.xlu1 %5452  ;;  %v5451_v6 = vpop.permute.xlu0 %5450 }
 0x857   :  { %v5463_v42 = vsel %vm2560_vm13, %v5451_v6, %v5453_v36  ;;  %5416 = vrot.lane.b32.xlu1 %v12754_v60, %s15119_s30  ;;  %v5601_v57 = vpop.permute.xlu2 %5600 }
 0x858   :  { %5630 = vrot.lane.b32.xlu2 %v5463_v42, %s6122_s15  ;;  %5684 = vrot.lane.b32.xlu0 %v12883_v9, %s6126_s20  ;;  %v5603_v61 = vsel %vm2543_vm8, 0, %v5601_v57 }
 0x85e   :  { %v5441_v41 = vpop.permute.xlu1 %5440  ;;  %v5575_v2 = vpop.permute.xlu0 %5574 }
 0x85f   :  { %v5577_v29 = vsel %vm2543_vm8, 0, %v5575_v2  ;;  %v5505_v17 = vpop.permute.xlu2 %5504  ;;  %v5443_v46 = vsel %vm2543_vm8, 0, %v5441_v41 }
 0x860   :  { %v5449_v47 = vrot.slane %v5443_v46, 4 }
 0x866   :  { %v5585_v8 = vpop.permute.xlu1 %5584  ;;  %v5479_v18 = vpop.permute.xlu0 %5478 }
 0x867   :  { %v12893_v56 = vsel %vm2560_vm13, %v5577_v29, %v5585_v8  ;;  %v5489_v51 = vsel %vm2560_vm13, %v5477_v48, %v5479_v18  ;;  %v5529_v63 = vpop.permute.xlu2 %5528 }
 0x868   :  { %5697 = vrot.lane.b32.xlu2 %v12893_v56, %s6127_s21  ;;  %5643 = vrot.lane.b32.xlu1 %v5489_v51, %s6123_s16 }
 0x86e   :  { %v5503_v43 = vpop.permute.xlu1 %5502  ;;  %v5467_v33 = vpop.permute.xlu0 %5466 }
 0x86f   :  { %v5515_v11 = vsel %vm2560_vm13, %v5503_v43, %v5505_v17  ;;  %v5519_v7 = vpop.permute.xlu2 %5518  ;;  %v5469_v0 = vsel %vm2543_vm8, 0, %v5467_v33 }
 0x870   :  { %5656 = vrot.lane.b32.xlu0 %v5515_v11, %s6124_s17  ;;  %v5475_v37 = vrot.slane %v5469_v0, 4  ;;  %v5521_v40 = vsel %vm2543_vm8, 0, %v5519_v7 }
 0x871   :  { %v5527_v3 = vrot.slane %v5521_v40, 4 }
 0x872   :  { %v5486_v26 = vsel %vm2560_vm13, %v12817_v30, %v5475_v37 }
 0x873   :  { %v5538_v13 = vsel %vm2560_vm13, %v12834_v14, %v5527_v3 }
 0x876   :  { %v5493_v4 = vpop.permute.xlu1 %5492  ;;  %v5611_v54 = vpop.permute.xlu0 %5610 }
 0x877   :  { %v5621_v27 = vsel %vm2560_vm13, %v5603_v61, %v5611_v54  ;;  %v5545_v44 = vpop.permute.xlu2 %5544  ;;  %v5495_v34 = vsel %vm2543_vm8, 0, %v5493_v4 }
 0x878   :  { %5710 = vrot.lane.b32.xlu1 %v5621_v27, %s6128_s22  ;;  %v5501_v23 = vrot.slane %v5495_v34, 4  ;;  %v5547_v35 = vsel %vm2543_vm8, 0, %v5545_v44  ;;  %v5437_v34 = vsel %vm2560_vm13, %v12752_v19, %v12754_v60 }
 0x87a   :  { %v5512_v32 = vsel %vm2560_vm13, %v12836_v15, %v5501_v23  ;;  %v5553_v15 = vrot.slane %v5547_v35, 4  ;;  %v21_v35 = vld [vmem:[%s13008_s3] sm:$0xf]  ;;  %s6168_s3 = smov [#allocation2]  }
 0x87b   :  { %5927 = vmatmul.msk.bf16.vlgmr.msra.gmra.mxu2 %vm1740_vm0, %v21_v35 }
 0x87c   :  { %v5564_v6 = vsel %vm2560_vm13, %v12844_v53, %v5553_v15 }
 0x87e   :  { %v5432_v24 = vpop.permute.xlu1 %5431  ;;  %v5531_v16 = vpop.permute.xlu0 %5530 }
 0x87f   :  { %v5460_v39 = vsel %vm2560_vm13, %v5432_v24, %v5449_v47  ;;  %v5541_v20 = vsel %vm2560_vm13, %v5529_v63, %v5531_v16  ;;  %v5571_v30 = vpop.permute.xlu2 %5570 }
 0x880   :  { %5628 = vrot.lane.b32.xlu0 %v5460_v39, %s6122_s15  ;;  %5669 = vrot.lane.b32.xlu2 %v5541_v20, %s6125_s18  ;;  %v5573_v14 = vsel %vm2543_vm8, 0, %v5571_v30 }
 0x881   :  { %v5579_v2 = vrot.slane %v5573_v14, 4 }
 0x883   :  { %v5590_v53 = vsel %vm2560_vm13, %v12854_v1, %v5579_v2 }
 0x886   :  { %v5557_v38 = vpop.permute.xlu1 %5556  ;;  %v5555_v5 = vpop.permute.xlu0 %5554 }
 0x887   :  { %v5567_v31 = vsel %vm2560_vm13, %v5555_v5, %v5557_v38  ;;  %v5421_v21 = vpop.permute.xlu2 %5420 }
 0x888   :  { %5682 = vrot.lane.b32.xlu1 %v5567_v31, %s6126_s20  ;;  %5641 = vrot.lane.b32.xlu2 %v5486_v26, %s6123_s16  ;;  %v5423_v10 = vsel %vm2543_vm8, 0, %v5421_v21 }
 0x88e   :  { %v5583_v25 = vpop.permute.xlu1 %5582  ;;  %v5581_v49 = vpop.permute.xlu0 %5580 }
 0x88f   :  { %v5593_v50 = vsel %vm2560_vm13, %v5581_v49, %v5583_v25 }
 0x890   :  { %5654 = vrot.lane.b32.xlu1 %v5512_v32, %s6124_s17  ;;  %5695 = vrot.lane.b32.xlu0 %v5593_v50, %s6127_s21 }
 0x896   :  { %v5609_v12 = vpop.permute.xlu1 %5608  ;;  %v5607_v55 = vpop.permute.xlu0 %5606 }
 0x897   :  { %v5619_v59 = vsel %vm2560_vm13, %v5607_v55, %v5609_v12 }
 0x898   :  { %5708 = vrot.lane.b32.xlu2 %v5619_v59, %s6128_s22  ;;  %5667 = vrot.lane.b32.xlu0 %v5538_v13, %s6125_s18 }
 0x89e   :  { %v5430_v48 = vpop.permute.xlu1 %5429  ;;  %v5597_v58 = vpop.permute.xlu0 %5596 }
 0x89f   :  { %v5439_v36 = vsel %vm2560_vm13, %v5423_v10, %v5430_v48  ;;  %v5599_v42 = vsel %vm2543_vm8, 0, %v5597_v58 }
 0x8a0   :  { %5639 = vrot.lane.b32.xlu0 %v12848_v28, %s6123_s16  ;;  %5680 = vrot.lane.b32.xlu2 %v5564_v6, %s6126_s20  ;;  %v5605_v41 = vrot.slane %v5599_v42, 4  ;;  %v5635_v28 = vpop.permute.xlu2 %5634 }
 0x8a1   :  { %5626 = vrot.lane.b32.xlu1 %v5439_v36, %s6122_s15  ;;  %v5723_v8 = vsel %vm15120_vm1, %v5432_v24, %v5635_v28  ;;  %vm15132_vm1 = vmmov %vm15125_vm2 }
 0x8a2   :  { %v5616_v57 = vsel %vm2560_vm13, %v12862_v52, %v5605_v41 }
 0x8a6   :  { %v5661_v29 = vpop.permute.xlu1 %5660  ;;  %v5648_v52 = vpop.permute.xlu0 %5647 }
 0x8a8   :  { %5706 = vrot.lane.b32.xlu0 %v5616_v57, %s6128_s22  ;;  %5652 = vrot.lane.b32.xlu2 %v12860_v62, %s6124_s17  ;;  %v5733_v62 = vsel %vm15121_vm3, %v5723_v8, %v5648_v52  ;;  %v5674_v18 = vpop.permute.xlu2 %5673  ;;  %vm15133_vm3 = vmmov %vm15126_vm14  ;;  %s5814_s17 = sshll.u32 %s6168_s3, 4  ;;  %s5815_s17 = int_to_ptr.vmem [resolvable:$true] %s5814_s17 }
 0x8a9   :  { %5693 = vrot.lane.b32.xlu1 %v5590_v53, %s6127_s21  ;;  %v5743_v51 = vsel %vm15122_vm4, %v5733_v62, %v5661_v29  ;;  %vm15134_vm4 = vmmov %vm15127_vm5 }
 0x8ae   :  { %v5633_v1 = vpop.permute.xlu1 %5632 }
 0x8af   :  { %v5721_v27 = vsel %vm15127_vm5, %v5439_v36, %v5633_v1  ;;  %vm15139_vm5 = vmmov %vm15132_vm1 }
 0x8b0   :  { %5691 = vrot.lane.b32.xlu0 %v12883_v9, %s6127_s21  ;;  %5678 = vrot.lane.b32.xlu2 %v12874_v45, %s6126_s20  ;;  %v5753_v9 = vsel %vm15123_vm9, %v5743_v51, %v5674_v18  ;;  %v5700_v43 = vpop.permute.xlu2 %5699  ;;  %vm15135_vm9 = vmmov %vm15128_vm7  ;;  %s5816_s21 = sshll.u32 %s13009_s4, 4  ;;  %s5817_s21 = int_to_ptr.hbm [resolvable:$true] %s5816_s21 }
 0x8b1   :  { %5665 = vrot.lane.b32.xlu1 %v12871_v22, %s6125_s18  ;;  %v5687_v17 = vpop.permute.xlu0 %5686 }
 0x8b2   :  { %v5763_v45 = vsel %vm15124_vm6, %v5753_v9, %v5687_v17  ;;  %vm15136_vm6 = vmmov %vm15129_vm12 }
 0x8b3   :  { %v5773_v22 = vsel %vm15125_vm2, %v5763_v45, %v5700_v43  ;;  %vm15137_vm2 = vmmov %vm15130_vm10 }
 0x8b8   :  { %v5659_v4 = vpop.permute.xlu2 %5658 }
 0x8b9   :  { %5704 = vrot.lane.b32.xlu1 %v12893_v56, %s6128_s22  ;;  %v5646_v61 = vpop.permute.xlu0 %5645 }
 0x8ba   :  { %v5731_v47 = vsel %vm15128_vm7, %v5721_v27, %v5646_v61  ;;  %vm15140_vm7 = vmmov %vm15133_vm3 }
 0x8bb   :  { %v5741_v16 = vsel %vm15129_vm12, %v5731_v47, %v5659_v4  ;;  %vm15141_vm12 = vmmov %vm15134_vm4 }
 0x8c0   :  { %v5631_v46 = vpop.permute.xlu2 %5630 }
 0x8c1   :  { %v5713_v33 = vpop.permute.xlu1 %5712  ;;  %v5719_v25 = vsel %vm15134_vm4, %v5437_v34, %v5631_v46  ;;  %vm15147_vm4 = vmmov %vm15140_vm7 }
 0x8c2   :  { %v5787_v11 = vsel %vm15126_vm14, %v5773_v22, %v5713_v33  ;;  %v5672_v54 = vpop.permute.xlu0 %5671  ;;  %vm15138_vm14 = vmmov %vm15131_vm11 }
 0x8c3   :  { %v5788_v63 = vsel %vm2560_vm13, %v5787_v11, 0  ;;  %v5751_v39 = vsel %vm15130_vm10, %v5741_v16, %v5672_v54  ;;  %vm15142_vm10 = vmmov %vm15135_vm9 }
 0x8c4   :  { %5793 = vmatpush.bf16.msra.mxu1 %v5788_v63 }
 0x8c8   :  { %v5698_v0 = vpop.permute.xlu2 %5697 }
 0x8c9   :  { %v5417_v56 = vpop.permute.xlu1 %5416 }
 0x8ca   :  { %v5685_v24 = vpop.permute.xlu0 %5684  ;;  %v5419_v60 = vsel %vm2543_vm8, 0, %v5417_v56  ;;  %vm15144_vm8 = vmmov %vm15137_vm2 }
 0x8cb   :  { %v5761_v20 = vsel %vm15131_vm11, %v5751_v39, %v5685_v24  ;;  %v5425_v15 = vrot.slane %v5419_v60, 4  ;;  %vm15143_vm11 = vmmov %vm15136_vm6 }
 0x8cc   :  { %v5771_v38 = vsel %vm15132_vm1, %v5761_v20, %v5698_v0  ;;  %vm15145_vm1 = vmmov %vm15138_vm14 }
 0x8cd   :  { %v5434_v21 = vsel %vm2560_vm13, 0, %v5425_v15  ;;  %vm15148_vm13 = vmmov %vm15141_vm12 }
 0x8da   :  { %v5644_v7 = vpop.permute.xlu1 %5643  ;;  %v5670_v44 = vpop.permute.xlu2 %5669 }
 0x8db   :  { %v5729_v49 = vsel %vm15135_vm9, %v5719_v25, %v5644_v7 }
 0x8e2   :  { %v5657_v31 = vpop.permute.xlu0 %5656  ;;  %v5642_v23 = vpop.permute.xlu2 %5641 }
 0x8e3   :  { %v5739_v50 = vsel %vm15136_vm6, %v5729_v49, %v5657_v31 }
 0x8e4   :  { %v5749_v40 = vsel %vm15137_vm2, %v5739_v50, %v5670_v44 }
 0x8ea   :  { %v5711_v37 = vpop.permute.xlu1 %5710 }
 0x8eb   :  { %v5784_v5 = vsel %vm15133_vm3, %v5771_v38, %v5711_v37  ;;  %vm15146_vm3 = vmmov %vm15139_vm5 }
 0x8ec   :  { %5794 = vmatpush.bf16.msra.mxu1 %v5784_v5 }
 0x8f2   :  { %v5629_v26 = vpop.permute.xlu0 %5628  ;;  %v5709_v12 = vpop.permute.xlu2 %5708 }
 0x8f3   :  { %v5717_v48 = vsel %vm15141_vm12, %v5434_v21, %v5629_v26 }
 0x8f4   :  { %v5727_v6 = vsel %vm15142_vm10, %v5717_v48, %v5642_v23 }
 0x8fa   :  { %v5683_v32 = vpop.permute.xlu1 %5682  ;;  %v5681_v58 = vpop.permute.xlu2 %5680 }
 0x8fb   :  { %v5759_v30 = vsel %vm15138_vm14, %v5749_v40, %v5683_v32  ;;  %vm15149_vm14 = vmmov %vm15145_vm1 }
 0x8fe   :  { %v2930_v22 = vpop.f32.mrf.mxu2 }
 0x902   :  { %v5696_v3 = vpop.permute.xlu0 %5695  ;;  %v5655_v13 = vpop.permute.xlu1 %5654 }
 0x903   :  { %v5769_v55 = vsel %vm15139_vm5, %v5759_v30, %v5696_v3  ;;  %v5737_v42 = vsel %vm15143_vm11, %v5727_v6, %v5655_v13  ;;  %v5653_v28 = vpop.permute.xlu2 %5652  ;;  %vm15150_vm5 = vmmov %vm15146_vm3 }
 0x904   :  { %v5781_v59 = vsel %vm15140_vm7, %v5769_v55, %v5709_v12  ;;  %vm15151_vm7 = vmmov %vm15147_vm4 }
 0x905   :  { %5795 = vmatpush.bf16.msra.mxu1 %v5781_v59 }
 0x906   :  { %v2932_v11 = vpop.f32.mrf.mxu2 }
 0x90a   :  { %v5668_v19 = vpop.permute.xlu0 %5667 }
 0x90b   :  { %v5747_v14 = vsel %vm15144_vm8, %v5737_v42, %v5668_v19  ;;  %v5679_v51 = vpop.permute.xlu2 %5678 }
 0x90c   :  { %v5757_v57 = vsel %vm15145_vm1, %v5747_v14, %v5681_v58 }
 0x912   :  { %v5640_v10 = vpop.permute.xlu0 %5639 }
 0x913   :  { %v5627_v36 = vpop.permute.xlu1 %5626 }
 0x914   :  { %v5715_v52 = vsel %vm15148_vm13, 0, %v5627_v36 }
 0x915   :  { %v5725_v8 = vsel %vm15135_vm9, %v5715_v52, %v5640_v10 }
 0x916   :  { %v5735_v18 = vsel %vm15136_vm6, %v5725_v8, %v5653_v28 }
 0x91a   :  { %v5707_v41 = vpop.permute.xlu0 %5706 }
 0x91b   :  { %v5694_v2 = vpop.permute.xlu1 %5693 }
 0x91c   :  { %v5767_v53 = vsel %vm15146_vm3, %v5757_v57, %v5694_v2 }
 0x91d   :  { %v5778_v29 = vsel %vm15147_vm4, %v5767_v53, %v5707_v41 }
 0x91e   :  { %5796 = vmatpush.bf16.msra.mxu1 %v5778_v29 }
 0x922   :  { %v5692_v9 = vpop.permute.xlu0 %5691 }
 0x923   :  { %v5666_v62 = vpop.permute.xlu1 %5665 }
 0x924   :  { %v5745_v1 = vsel %vm15137_vm2, %v5735_v18, %v5666_v62 }
 0x925   :  { %v5755_v17 = vsel %vm15149_vm14, %v5745_v1, %v5679_v51 }
 0x926   :  { %v5765_v43 = vsel %vm15150_vm5, %v5755_v17, %v5692_v9 }
 0x92b   :  { %v5705_v45 = vpop.permute.xlu1 %5704 }
 0x92c   :  { %v5775_v33 = vsel %vm15151_vm7, %v5765_v43, %v5705_v45 }
 0x92d   :  { %5797 = vmatpush.bf16.msra.mxu1 %v5775_v33 }
 0x930   :  { %6042 = vmatmul.msk.bf16.vlgmr.msra.gmra.mxu1 %vm1740_vm0, %v21_v35 }
 0x9ad   :  { %v5799_v63 = vpop.f32.mrf.mxu1 }
 0x9ae   :  { %5804 = vrot.lane.b32.xlu2 %v5799_v63, %s6129_s23 }
 0x9b5   :  { %v5801_v61 = vpop.f32.mrf.mxu1 }
 0xa08   :  { %v5805_v4 = vpop.permute.xlu2 %5804 }
 0xa09   :  { %v5807_v54 = vsel %vm1733_vm15, %v2930_v22, %v5805_v4 }
 0xa0a   :  { %5808 = vst [vmem:[#allocation2] sm:$0xff] %v5807_v54 }
 0xa0b   :  { %5819 = dma.vmem_to_hbm [thread:$0]  %s5815_s17, 128, %s5817_s21, [#allocation3]  }
 0xa0c   :  { %6118 = dma.done.wait [#allocation3], 128  }
 0xa0d   :  { %6119 = vsyncadd [#allocation3], 4294967168 }
 0xa0e   :  { %5824 = vsyncpa [#allocation3], 1 }

</bundles_post_ra>
